<compile_context>
chip_gen: v7x
topology: tpu7x:2x2x1
jax: 0.10.0
libtpu: 0.0.40
codegen_flags: <defaults>
</compile_context>

<pallas_src>
import functools

import jax
import jax.numpy as jnp
from jax import lax
from jax.experimental import pallas as pl
from jax.experimental.pallas import tpu as pltpu


# ---------------------------------------------------------------------------
# Pallas kernel: fused 3x3 conv (stride 1, pad 1) + folded BN + ReLU
# Supports n_in inputs whose channel-concat is the conv input (fused concat).
# ---------------------------------------------------------------------------
def _conv3x3_bn_relu_kernel(*refs, n_in, H, W, cins, Cout):
    # refs layout:
    #   x_refs[i]    : (H+2, W+2, Cin_i)  bf16 zero-padded input tile (one batch elem)
    #   w_refs[i]    : (9*Cin_i, Cout)    bf16 conv weights, rows ordered (dy, dx, cin)
    #   scale_ref    : (1, Cout) f32 folded-BN scale
    #   bias_ref     : (1, Cout) f32 folded-BN bias
    #   o_ref        : (H, W, Cout)
    #   patch_refs[i]: VMEM scratch (H*W, 9*Cin_i) bf16 (im2col buffer)
    #   acc_ref      : VMEM scratch (H*W, Cout) f32 accumulator
    x_refs = refs[:n_in]
    w_refs = refs[n_in:2 * n_in]
    scale_ref = refs[2 * n_in]
    bias_ref = refs[2 * n_in + 1]
    o_ref = refs[2 * n_in + 2]
    patch_refs = refs[2 * n_in + 3: 2 * n_in + 3 + n_in]
    acc_ref = refs[2 * n_in + 3 + n_in]

    for i in range(n_in):
        cin = cins[i]
        x_ref, w_ref, patch_ref = x_refs[i], w_refs[i], patch_refs[i]
        # im2col: pack the 9 shifted taps along the lane (K) axis of a VMEM
        # scratch.  dx gives 3 sublane-offset slices; dy slices the outer
        # (untiled) dim, which is free.  Lane stores are 128-aligned because
        # every cin is padded to a multiple of 128 in the wrapper.
        for dx in range(3):
            col = x_ref[:, dx:dx + W, :]                       # (H+2, W, Cin)
            for dy in range(3):
                k = dy * 3 + dx
                patch_ref[:, k * cin:(k + 1) * cin] = (
                    col[dy:dy + H].reshape(H * W, cin))
        # One wide-K matmul per input: (H*W, 9*Cin) x (9*Cin, Cout) on the MXU.
        contrib = jnp.dot(patch_ref[...], w_ref[...],
                          preferred_element_type=jnp.float32)
        if i == 0:
            acc_ref[...] = contrib
        else:
            acc_ref[...] += contrib

    # f32 epilogue (BN affine + ReLU) on the f32 accumulator.
    y = acc_ref[...] * scale_ref[...] + bias_ref[...]
    y = jnp.maximum(y, 0.0)
    o_ref[...] = y.reshape(H, W, Cout).astype(o_ref.dtype)


def _pad_to_128(n):
    return max(128, ((n + 127) // 128) * 128)


def conv3x3_bn_relu(xs, ws, scale, bias, out_dtype=jnp.bfloat16):
    """Fused 3x3 conv (stride 1, pad 1) + folded BN + ReLU.

    xs: list of NHWC inputs (B, H, W, Cin_i); the conv acts on their channel
        concatenation (concat is fused into the kernel).
    ws: list of HWIO weights (3, 3, Cin_i, Cout), already split to match xs.
    scale, bias: (1, Cout) folded-BN affine.
    Returns (B, H, W, Cout) of dtype out_dtype.
    """
    assert len(xs) == len(ws)
    B, H, W, _ = xs[0].shape
    Cout = int(ws[0].shape[-1])

    # Lane-dense channels: zero-pad every Cin / Cout to a multiple of 128.
    xs_p, ws_p = [], []
    for x, w in zip(xs, ws):
        cin = int(x.shape[-1])
        cin_p = _pad_to_128(cin)
        if cin_p != cin:
            x = jnp.pad(x, ((0, 0), (0, 0), (0, 0), (0, cin_p - cin)))
            w = jnp.pad(w, ((0, 0), (0, 0), (0, cin_p - cin), (0, 0)))
        xs_p.append(x)
        ws_p.append(w)

    Cout_p = _pad_to_128(Cout)
    scale = jnp.asarray(scale, jnp.float32).reshape(1, Cout)
    bias = jnp.asarray(bias, jnp.float32).reshape(1, Cout)
    if Cout_p != Cout:
        ws_p = [jnp.pad(w, ((0, 0), (0, 0), (0, 0), (0, Cout_p - Cout))) for w in ws_p]
        scale = jnp.pad(scale, ((0, 0), (0, Cout_p - Cout)))
        bias = jnp.pad(bias, ((0, 0), (0, Cout_p - Cout)))

    cins = tuple(int(x.shape[-1]) for x in xs_p)
    # bf16 operands for the MXU; spatial zero-pad (halo) for the 3x3/pad=1 conv.
    xs_k = [jnp.pad(x.astype(jnp.bfloat16), ((0, 0), (1, 1), (1, 1), (0, 0)))
            for x in xs_p]
    ws_k = [w.astype(jnp.bfloat16).reshape(9 * c, Cout_p)
            for w, c in zip(ws_p, cins)]

    n_in = len(xs_k)
    kernel = functools.partial(_conv3x3_bn_relu_kernel,
                               n_in=n_in, H=H, W=W, cins=cins, Cout=Cout_p)

    in_specs = (
        [pl.BlockSpec((None, H + 2, W + 2, c), lambda b: (b, 0, 0, 0)) for c in cins]
        + [pl.BlockSpec((9 * c, Cout_p), lambda b: (0, 0)) for c in cins]
        + [pl.BlockSpec((1, Cout_p), lambda b: (0, 0)),
           pl.BlockSpec((1, Cout_p), lambda b: (0, 0))]
    )
    scratch = ([pltpu.VMEM((H * W, 9 * c), jnp.bfloat16) for c in cins]
               + [pltpu.VMEM((H * W, Cout_p), jnp.float32)])

    out = pl.pallas_call(
        kernel,
        out_shape=jax.ShapeDtypeStruct((B, H, W, Cout_p), out_dtype),
        grid_spec=pltpu.PrefetchScalarGridSpec(
            num_scalar_prefetch=0,
            grid=(B,),  # one batch element per grid step
            in_specs=in_specs,
            out_specs=pl.BlockSpec((None, H, W, Cout_p), lambda b: (b, 0, 0, 0)),
            scratch_shapes=scratch,
        ),
        compiler_params=pltpu.CompilerParams(
            dimension_semantics=("parallel",),
            vmem_limit_bytes=32 * 1024 * 1024,
        ),
    )(*xs_k, *ws_k, scale, bias)

    if Cout_p != Cout:
        out = out[..., :Cout]
    return out


# ---------------------------------------------------------------------------
# Glue: gather-free 2x bilinear upsample, matching
# nn.Upsample(scale_factor=2, mode='bilinear') with align_corners=False.
# even output = 0.25*x[i-1] + 0.75*x[i]   (i-1 edge-clamped)
# odd  output = 0.75*x[i]   + 0.25*x[i+1] (i+1 edge-clamped)
# ---------------------------------------------------------------------------
def upsample2x_bilinear(x):
    """x: (B, H, W, C) -> (B, 2H, 2W, C)."""
    def up1d(v, axis):
        n = v.shape[axis]
        first = lax.slice_in_dim(v, 0, 1, axis=axis)
        last = lax.slice_in_dim(v, n - 1, n, axis=axis)
        prev = jnp.concatenate([first, lax.slice_in_dim(v, 0, n - 1, axis=axis)], axis=axis)
        nxt = jnp.concatenate([lax.slice_in_dim(v, 1, n, axis=axis), last], axis=axis)
        even = 0.25 * prev + 0.75 * v
        odd = 0.75 * v + 0.25 * nxt
        st = jnp.stack([even, odd], axis=axis + 1)
        new_shape = list(v.shape)
        new_shape[axis] = 2 * n
        return st.reshape(new_shape)

    x = up1d(x, 1)
    x = up1d(x, 2)
    return x


# ---------------------------------------------------------------------------
# Decoder forward (Pallas conv blocks + XLA glue for upsample / transpose)
# ---------------------------------------------------------------------------
def decoder_forward(feature1_nchw, feature2_nchw, feature3_nchw, params):
    # NCHW -> NHWC
    f1 = jnp.transpose(feature1_nchw, (0, 2, 3, 1))
    f2 = jnp.transpose(feature2_nchw, (0, 2, 3, 1))
    f3 = jnp.transpose(feature3_nchw, (0, 2, 3, 1))

    # decoder1: conv over concat(up(f3), f2) -- concat fused into the kernel.
    w, s, b = params['d1a']
    c0 = int(f3.shape[-1])
    x = conv3x3_bn_relu([upsample2x_bilinear(f3), f2],
                        [w[:, :, :c0, :], w[:, :, c0:, :]], s, b)
    w, s, b = params['d1b']
    x = conv3x3_bn_relu([x], [w], s, b)

    # decoder2: conv over concat(up(x), f1) -- concat fused into the kernel.
    w, s, b = params['d2a']
    c0 = int(x.shape[-1])
    x = conv3x3_bn_relu([upsample2x_bilinear(x), f1],
                        [w[:, :, :c0, :], w[:, :, c0:, :]], s, b)
    w, s, b = params['d2b']
    x = conv3x3_bn_relu([x], [w], s, b, out_dtype=jnp.float32)

    return jnp.transpose(x, (0, 3, 1, 2))  # back to NCHW


# ---------------------------------------------------------------------------
# Pure-JAX reference (same bf16 operand precision as the kernel path)
# ---------------------------------------------------------------------------
def _conv_block_ref(x, w, scale, bias, out_dtype=jnp.bfloat16):
    y = lax.conv_general_dilated(
        x.astype(jnp.bfloat16), w.astype(jnp.bfloat16),
        window_strides=(1, 1), padding='SAME',
        dimension_numbers=('NHWC', 'HWIO', 'NHWC'),
        preferred_element_type=jnp.float32)
    y = jnp.maximum(y * scale.reshape(1, 1, 1, -1) + bias.reshape(1, 1, 1, -1), 0.0)
    return y.astype(out_dtype)


def decoder_forward_ref(feature1_nchw, feature2_nchw, feature3_nchw, params):
    f1 = jnp.transpose(feature1_nchw, (0, 2, 3, 1))
    f2 = jnp.transpose(feature2_nchw, (0, 2, 3, 1))
    f3 = jnp.transpose(feature3_nchw, (0, 2, 3, 1))
    x = jnp.concatenate([upsample2x_bilinear(f3), f2], axis=-1)
    x = _conv_block_ref(x, *params['d1a'])
    x = _conv_block_ref(x, *params['d1b'])
    x = jnp.concatenate([upsample2x_bilinear(x).astype(jnp.float32), f1], axis=-1)
    x = _conv_block_ref(x, *params['d2a'])
    x = _conv_block_ref(x, *params['d2b'], out_dtype=jnp.float32)
    return jnp.transpose(x, (0, 3, 1, 2))


# ---------------------------------------------------------------------------
# Deterministic parameter init (folded-BN affine)
# ---------------------------------------------------------------------------
def init_conv_block(key, cin, cout, eps=1e-5):
    kw, kg, kb, km, kv = jax.random.split(key, 5)
    w = jax.random.normal(kw, (3, 3, cin, cout), jnp.float32) / jnp.sqrt(9.0 * cin)
    gamma = 1.0 + 0.1 * jax.random.normal(kg, (cout,), jnp.float32)
    beta = 0.1 * jax.random.normal(kb, (cout,), jnp.float32)
    mean = 0.1 * jax.random.normal(km, (cout,), jnp.float32)
    var = jnp.abs(jax.random.normal(kv, (cout,), jnp.float32)) + 0.5
    scale = gamma / jnp.sqrt(var + eps)
    bias = beta - mean * scale
    return w, scale.reshape(1, cout), bias.reshape(1, cout)


if __name__ == "__main__":
    OUT_CHAN = 64
    B, H, W = 2, 16, 16

    key = jax.random.PRNGKey(0)
    keys = jax.random.split(key, 7)

    # PyTorch-style NCHW inputs (channel counts implied by the module:
    # feature3=128 @ H/4, feature2=128 @ H/2 (128+128=256), feature1=64 @ H (128+64=192))
    feature1 = jax.random.normal(keys[0], (B, 64, H, W), jnp.float32)
    feature2 = jax.random.normal(keys[1], (B, 128, H // 2, W // 2), jnp.float32)
    feature3 = jax.random.normal(keys[2], (B, 128, H // 4, W // 4), jnp.float32)

    params = {
        'd1a': init_conv_block(keys[3], 256, 128),
        'd1b': init_conv_block(keys[4], 128, 128),
        'd2a': init_conv_block(keys[5], 192, 128),
        'd2b': init_conv_block(keys[6], 128, OUT_CHAN),
    }

    fwd = jax.jit(decoder_forward)
    out = jax.block_until_ready(fwd(feature1, feature2, feature3, params))
    ref = jax.block_until_ready(decoder_forward_ref(feature1, feature2, feature3, params))

    assert out.shape == (B, OUT_CHAN, H, W), out.shape
    assert bool(jnp.all(jnp.isfinite(out)))
    max_err = float(jnp.max(jnp.abs(out - ref)))
    assert bool(jnp.allclose(out, ref, atol=2e-2, rtol=2e-2)), max_err

    print("KERNEL_OK")
</pallas_src>

<mosaic_0001>
module attributes {stable_mosaic.version = 11 : i64} {
  func.func @_conv3x3_bn_relu_kernel(%arg0: i32, %arg1: memref<1x10x10x128xbf16, #tpu.memory_space<vmem>>, %arg2: memref<1x10x10x128xbf16, #tpu.memory_space<vmem>>, %arg3: memref<1152x128xbf16, #tpu.memory_space<vmem>>, %arg4: memref<1152x128xbf16, #tpu.memory_space<vmem>>, %arg5: memref<1x128xf32, #tpu.memory_space<vmem>>, %arg6: memref<1x128xf32, #tpu.memory_space<vmem>>, %arg7: memref<1x8x8x128xbf16, #tpu.memory_space<vmem>>, %arg8: memref<64x1152xbf16, #tpu.memory_space<vmem>>, %arg9: memref<64x1152xbf16, #tpu.memory_space<vmem>>, %arg10: memref<64x128xf32, #tpu.memory_space<vmem>>) attributes {dimension_semantics = [#tpu.dimension_semantics<parallel>], iteration_bounds = array<i64: 2>, scalar_prefetch = 0 : i64, scratch_operands = 3 : i64, tpu.core_type = #tpu.core_type<tc>, window_params = [{transform_indices = @transform_0, window_bounds = array<i64: 1, 10, 10, 128>}, {transform_indices = @transform_1, window_bounds = array<i64: 1, 10, 10, 128>}, {pipeline_mode = #tpu.pipeline_mode<synchronous>, transform_indices = @transform_2, window_bounds = array<i64: 1152, 128>}, {pipeline_mode = #tpu.pipeline_mode<synchronous>, transform_indices = @transform_3, window_bounds = array<i64: 1152, 128>}, {pipeline_mode = #tpu.pipeline_mode<synchronous>, transform_indices = @transform_4, window_bounds = array<i64: 1, 128>}, {pipeline_mode = #tpu.pipeline_mode<synchronous>, transform_indices = @transform_5, window_bounds = array<i64: 1, 128>}, {transform_indices = @transform_6, window_bounds = array<i64: 1, 8, 8, 128>}]} {
    %c0 = arith.constant 0 : index
    %c0_0 = arith.constant 0 : index
    %c0_1 = arith.constant 0 : index
    %c0_2 = arith.constant 0 : index
    %0 = vector.load %arg1[%c0, %c0_0, %c0_1, %c0_2] : memref<1x10x10x128xbf16, #tpu.memory_space<vmem>>, vector<1x10x8x128xbf16>
    %1 = vector.shape_cast %0 : vector<1x10x8x128xbf16> to vector<10x8x128xbf16>
    %2 = vector.extract_strided_slice %1 {offsets = [0, 0, 0], sizes = [8, 8, 128], strides = [1, 1, 1]} : vector<10x8x128xbf16> to vector<8x8x128xbf16>
    %3 = vector.shape_cast %2 : vector<8x8x128xbf16> to vector<64x128xbf16>
    %c0_3 = arith.constant 0 : index
    %c0_4 = arith.constant 0 : index
    %4 = vector.load %arg8[%c0_3, %c0_4] : memref<64x1152xbf16, #tpu.memory_space<vmem>>, vector<64x128xbf16>
    tpu.vector_store %arg8[%c0_3, %c0_4], %3 {strides = array<i32>} : memref<64x1152xbf16, #tpu.memory_space<vmem>>, vector<64x128xbf16>,
    %5 = vector.extract_strided_slice %1 {offsets = [1, 0, 0], sizes = [8, 8, 128], strides = [1, 1, 1]} : vector<10x8x128xbf16> to vector<8x8x128xbf16>
    %6 = vector.shape_cast %5 : vector<8x8x128xbf16> to vector<64x128xbf16>
    %c0_5 = arith.constant 0 : index
    %c384 = arith.constant 384 : index
    %7 = vector.load %arg8[%c0_5, %c384] : memref<64x1152xbf16, #tpu.memory_space<vmem>>, vector<64x128xbf16>
    tpu.vector_store %arg8[%c0_5, %c384], %6 {strides = array<i32>} : memref<64x1152xbf16, #tpu.memory_space<vmem>>, vector<64x128xbf16>,
    %8 = vector.extract_strided_slice %1 {offsets = [2, 0, 0], sizes = [8, 8, 128], strides = [1, 1, 1]} : vector<10x8x128xbf16> to vector<8x8x128xbf16>
    %9 = vector.shape_cast %8 : vector<8x8x128xbf16> to vector<64x128xbf16>
    %c0_6 = arith.constant 0 : index
    %c768 = arith.constant 768 : index
    %10 = vector.load %arg8[%c0_6, %c768] : memref<64x1152xbf16, #tpu.memory_space<vmem>>, vector<64x128xbf16>
    tpu.vector_store %arg8[%c0_6, %c768], %9 {strides = array<i32>} : memref<64x1152xbf16, #tpu.memory_space<vmem>>, vector<64x128xbf16>,
    %c0_7 = arith.constant 0 : index
    %c0_8 = arith.constant 0 : index
    %c1 = arith.constant 1 : index
    %c0_9 = arith.constant 0 : index
    %11 = vector.load %arg1[%c0_7, %c0_8, %c1, %c0_9] : memref<1x10x10x128xbf16, #tpu.memory_space<vmem>>, vector<1x10x8x128xbf16>
    %12 = vector.shape_cast %11 : vector<1x10x8x128xbf16> to vector<10x8x128xbf16>
    %13 = vector.extract_strided_slice %12 {offsets = [0, 0, 0], sizes = [8, 8, 128], strides = [1, 1, 1]} : vector<10x8x128xbf16> to vector<8x8x128xbf16>
    %14 = vector.shape_cast %13 : vector<8x8x128xbf16> to vector<64x128xbf16>
    %c0_10 = arith.constant 0 : index
    %c128 = arith.constant 128 : index
    %15 = vector.load %arg8[%c0_10, %c128] : memref<64x1152xbf16, #tpu.memory_space<vmem>>, vector<64x128xbf16>
    tpu.vector_store %arg8[%c0_10, %c128], %14 {strides = array<i32>} : memref<64x1152xbf16, #tpu.memory_space<vmem>>, vector<64x128xbf16>,
    %16 = vector.extract_strided_slice %12 {offsets = [1, 0, 0], sizes = [8, 8, 128], strides = [1, 1, 1]} : vector<10x8x128xbf16> to vector<8x8x128xbf16>
    %17 = vector.shape_cast %16 : vector<8x8x128xbf16> to vector<64x128xbf16>
    %c0_11 = arith.constant 0 : index
    %c512 = arith.constant 512 : index
    %18 = vector.load %arg8[%c0_11, %c512] : memref<64x1152xbf16, #tpu.memory_space<vmem>>, vector<64x128xbf16>
    tpu.vector_store %arg8[%c0_11, %c512], %17 {strides = array<i32>} : memref<64x1152xbf16, #tpu.memory_space<vmem>>, vector<64x128xbf16>,
    %19 = vector.extract_strided_slice %12 {offsets = [2, 0, 0], sizes = [8, 8, 128], strides = [1, 1, 1]} : vector<10x8x128xbf16> to vector<8x8x128xbf16>
    %20 = vector.shape_cast %19 : vector<8x8x128xbf16> to vector<64x128xbf16>
    %c0_12 = arith.constant 0 : index
    %c896 = arith.constant 896 : index
    %21 = vector.load %arg8[%c0_12, %c896] : memref<64x1152xbf16, #tpu.memory_space<vmem>>, vector<64x128xbf16>
    tpu.vector_store %arg8[%c0_12, %c896], %20 {strides = array<i32>} : memref<64x1152xbf16, #tpu.memory_space<vmem>>, vector<64x128xbf16>,
    %c0_13 = arith.constant 0 : index
    %c0_14 = arith.constant 0 : index
    %c2 = arith.constant 2 : index
    %c0_15 = arith.constant 0 : index
    %22 = vector.load %arg1[%c0_13, %c0_14, %c2, %c0_15] : memref<1x10x10x128xbf16, #tpu.memory_space<vmem>>, vector<1x10x8x128xbf16>
    %23 = vector.shape_cast %22 : vector<1x10x8x128xbf16> to vector<10x8x128xbf16>
    %24 = vector.extract_strided_slice %23 {offsets = [0, 0, 0], sizes = [8, 8, 128], strides = [1, 1, 1]} : vector<10x8x128xbf16> to vector<8x8x128xbf16>
    %25 = vector.shape_cast %24 : vector<8x8x128xbf16> to vector<64x128xbf16>
    %c0_16 = arith.constant 0 : index
    %c256 = arith.constant 256 : index
    %26 = vector.load %arg8[%c0_16, %c256] : memref<64x1152xbf16, #tpu.memory_space<vmem>>, vector<64x128xbf16>
    tpu.vector_store %arg8[%c0_16, %c256], %25 {strides = array<i32>} : memref<64x1152xbf16, #tpu.memory_space<vmem>>, vector<64x128xbf16>,
    %27 = vector.extract_strided_slice %23 {offsets = [1, 0, 0], sizes = [8, 8, 128], strides = [1, 1, 1]} : vector<10x8x128xbf16> to vector<8x8x128xbf16>
    %28 = vector.shape_cast %27 : vector<8x8x128xbf16> to vector<64x128xbf16>
    %c0_17 = arith.constant 0 : index
    %c640 = arith.constant 640 : index
    %29 = vector.load %arg8[%c0_17, %c640] : memref<64x1152xbf16, #tpu.memory_space<vmem>>, vector<64x128xbf16>
    tpu.vector_store %arg8[%c0_17, %c640], %28 {strides = array<i32>} : memref<64x1152xbf16, #tpu.memory_space<vmem>>, vector<64x128xbf16>,
    %30 = vector.extract_strided_slice %23 {offsets = [2, 0, 0], sizes = [8, 8, 128], strides = [1, 1, 1]} : vector<10x8x128xbf16> to vector<8x8x128xbf16>
    %31 = vector.shape_cast %30 : vector<8x8x128xbf16> to vector<64x128xbf16>
    %c0_18 = arith.constant 0 : index
    %c1024 = arith.constant 1024 : index
    %32 = vector.load %arg8[%c0_18, %c1024] : memref<64x1152xbf16, #tpu.memory_space<vmem>>, vector<64x128xbf16>
    tpu.vector_store %arg8[%c0_18, %c1024], %31 {strides = array<i32>} : memref<64x1152xbf16, #tpu.memory_space<vmem>>, vector<64x128xbf16>,
    %c0_19 = arith.constant 0 : index
    %c0_20 = arith.constant 0 : index
    %33 = vector.load %arg8[%c0_19, %c0_20] : memref<64x1152xbf16, #tpu.memory_space<vmem>>, vector<64x1152xbf16>
    %c0_21 = arith.constant 0 : index
    %c0_22 = arith.constant 0 : index
    %34 = vector.load %arg3[%c0_21, %c0_22] : memref<1152x128xbf16, #tpu.memory_space<vmem>>, vector<1152x128xbf16>
    %cst = arith.constant dense<0.000000e+00> : vector<64x128xf32>
    %35 = tpu.matmul %33, %34, %cst {dimension_numbers = #tpu.dot_dimension_numbers<[1], [0], [0], [1], [0, 0, 1, 1], [], []>} : vector<64x1152xbf16>, vector<1152x128xbf16>, vector<64x128xf32> -> vector<64x128xf32>
    %c0_23 = arith.constant 0 : index
    %c0_24 = arith.constant 0 : index
    %36 = vector.load %arg10[%c0_23, %c0_24] : memref<64x128xf32, #tpu.memory_space<vmem>>, vector<64x128xf32>
    tpu.vector_store %arg10[%c0_23, %c0_24], %35 {strides = array<i32>} : memref<64x128xf32, #tpu.memory_space<vmem>>, vector<64x128xf32>,
    %c0_25 = arith.constant 0 : index
    %c0_26 = arith.constant 0 : index
    %c0_27 = arith.constant 0 : index
    %c0_28 = arith.constant 0 : index
    %37 = vector.load %arg2[%c0_25, %c0_26, %c0_27, %c0_28] : memref<1x10x10x128xbf16, #tpu.memory_space<vmem>>, vector<1x10x8x128xbf16>
    %38 = vector.shape_cast %37 : vector<1x10x8x128xbf16> to vector<10x8x128xbf16>
    %39 = vector.extract_strided_slice %38 {offsets = [0, 0, 0], sizes = [8, 8, 128], strides = [1, 1, 1]} : vector<10x8x128xbf16> to vector<8x8x128xbf16>
    %40 = vector.shape_cast %39 : vector<8x8x128xbf16> to vector<64x128xbf16>
    %c0_29 = arith.constant 0 : index
    %c0_30 = arith.constant 0 : index
    %41 = vector.load %arg9[%c0_29, %c0_30] : memref<64x1152xbf16, #tpu.memory_space<vmem>>, vector<64x128xbf16>
    tpu.vector_store %arg9[%c0_29, %c0_30], %40 {strides = array<i32>} : memref<64x1152xbf16, #tpu.memory_space<vmem>>, vector<64x128xbf16>,
    %42 = vector.extract_strided_slice %38 {offsets = [1, 0, 0], sizes = [8, 8, 128], strides = [1, 1, 1]} : vector<10x8x128xbf16> to vector<8x8x128xbf16>
    %43 = vector.shape_cast %42 : vector<8x8x128xbf16> to vector<64x128xbf16>
    %c0_31 = arith.constant 0 : index
    %c384_32 = arith.constant 384 : index
    %44 = vector.load %arg9[%c0_31, %c384_32] : memref<64x1152xbf16, #tpu.memory_space<vmem>>, vector<64x128xbf16>
    tpu.vector_store %arg9[%c0_31, %c384_32], %43 {strides = array<i32>} : memref<64x1152xbf16, #tpu.memory_space<vmem>>, vector<64x128xbf16>,
    %45 = vector.extract_strided_slice %38 {offsets = [2, 0, 0], sizes = [8, 8, 128], strides = [1, 1, 1]} : vector<10x8x128xbf16> to vector<8x8x128xbf16>
    %46 = vector.shape_cast %45 : vector<8x8x128xbf16> to vector<64x128xbf16>
    %c0_33 = arith.constant 0 : index
    %c768_34 = arith.constant 768 : index
    %47 = vector.load %arg9[%c0_33, %c768_34] : memref<64x1152xbf16, #tpu.memory_space<vmem>>, vector<64x128xbf16>
    tpu.vector_store %arg9[%c0_33, %c768_34], %46 {strides = array<i32>} : memref<64x1152xbf16, #tpu.memory_space<vmem>>, vector<64x128xbf16>,
    %c0_35 = arith.constant 0 : index
    %c0_36 = arith.constant 0 : index
    %c1_37 = arith.constant 1 : index
    %c0_38 = arith.constant 0 : index
    %48 = vector.load %arg2[%c0_35, %c0_36, %c1_37, %c0_38] : memref<1x10x10x128xbf16, #tpu.memory_space<vmem>>, vector<1x10x8x128xbf16>
    %49 = vector.shape_cast %48 : vector<1x10x8x128xbf16> to vector<10x8x128xbf16>
    %50 = vector.extract_strided_slice %49 {offsets = [0, 0, 0], sizes = [8, 8, 128], strides = [1, 1, 1]} : vector<10x8x128xbf16> to vector<8x8x128xbf16>
    %51 = vector.shape_cast %50 : vector<8x8x128xbf16> to vector<64x128xbf16>
    %c0_39 = arith.constant 0 : index
    %c128_40 = arith.constant 128 : index
    %52 = vector.load %arg9[%c0_39, %c128_40] : memref<64x1152xbf16, #tpu.memory_space<vmem>>, vector<64x128xbf16>
    tpu.vector_store %arg9[%c0_39, %c128_40], %51 {strides = array<i32>} : memref<64x1152xbf16, #tpu.memory_space<vmem>>, vector<64x128xbf16>,
    %53 = vector.extract_strided_slice %49 {offsets = [1, 0, 0], sizes = [8, 8, 128], strides = [1, 1, 1]} : vector<10x8x128xbf16> to vector<8x8x128xbf16>
    %54 = vector.shape_cast %53 : vector<8x8x128xbf16> to vector<64x128xbf16>
    %c0_41 = arith.constant 0 : index
    %c512_42 = arith.constant 512 : index
    %55 = vector.load %arg9[%c0_41, %c512_42] : memref<64x1152xbf16, #tpu.memory_space<vmem>>, vector<64x128xbf16>
    tpu.vector_store %arg9[%c0_41, %c512_42], %54 {strides = array<i32>} : memref<64x1152xbf16, #tpu.memory_space<vmem>>, vector<64x128xbf16>,
    %56 = vector.extract_strided_slice %49 {offsets = [2, 0, 0], sizes = [8, 8, 128], strides = [1, 1, 1]} : vector<10x8x128xbf16> to vector<8x8x128xbf16>
    %57 = vector.shape_cast %56 : vector<8x8x128xbf16> to vector<64x128xbf16>
    %c0_43 = arith.constant 0 : index
    %c896_44 = arith.constant 896 : index
    %58 = vector.load %arg9[%c0_43, %c896_44] : memref<64x1152xbf16, #tpu.memory_space<vmem>>, vector<64x128xbf16>
    tpu.vector_store %arg9[%c0_43, %c896_44], %57 {strides = array<i32>} : memref<64x1152xbf16, #tpu.memory_space<vmem>>, vector<64x128xbf16>,
    %c0_45 = arith.constant 0 : index
    %c0_46 = arith.constant 0 : index
    %c2_47 = arith.constant 2 : index
    %c0_48 = arith.constant 0 : index
    %59 = vector.load %arg2[%c0_45, %c0_46, %c2_47, %c0_48] : memref<1x10x10x128xbf16, #tpu.memory_space<vmem>>, vector<1x10x8x128xbf16>
    %60 = vector.shape_cast %59 : vector<1x10x8x128xbf16> to vector<10x8x128xbf16>
    %61 = vector.extract_strided_slice %60 {offsets = [0, 0, 0], sizes = [8, 8, 128], strides = [1, 1, 1]} : vector<10x8x128xbf16> to vector<8x8x128xbf16>
    %62 = vector.shape_cast %61 : vector<8x8x128xbf16> to vector<64x128xbf16>
    %c0_49 = arith.constant 0 : index
    %c256_50 = arith.constant 256 : index
    %63 = vector.load %arg9[%c0_49, %c256_50] : memref<64x1152xbf16, #tpu.memory_space<vmem>>, vector<64x128xbf16>
    tpu.vector_store %arg9[%c0_49, %c256_50], %62 {strides = array<i32>} : memref<64x1152xbf16, #tpu.memory_space<vmem>>, vector<64x128xbf16>,
    %64 = vector.extract_strided_slice %60 {offsets = [1, 0, 0], sizes = [8, 8, 128], strides = [1, 1, 1]} : vector<10x8x128xbf16> to vector<8x8x128xbf16>
    %65 = vector.shape_cast %64 : vector<8x8x128xbf16> to vector<64x128xbf16>
    %c0_51 = arith.constant 0 : index
    %c640_52 = arith.constant 640 : index
    %66 = vector.load %arg9[%c0_51, %c640_52] : memref<64x1152xbf16, #tpu.memory_space<vmem>>, vector<64x128xbf16>
    tpu.vector_store %arg9[%c0_51, %c640_52], %65 {strides = array<i32>} : memref<64x1152xbf16, #tpu.memory_space<vmem>>, vector<64x128xbf16>,
    %67 = vector.extract_strided_slice %60 {offsets = [2, 0, 0], sizes = [8, 8, 128], strides = [1, 1, 1]} : vector<10x8x128xbf16> to vector<8x8x128xbf16>
    %68 = vector.shape_cast %67 : vector<8x8x128xbf16> to vector<64x128xbf16>
    %c0_53 = arith.constant 0 : index
    %c1024_54 = arith.constant 1024 : index
    %69 = vector.load %arg9[%c0_53, %c1024_54] : memref<64x1152xbf16, #tpu.memory_space<vmem>>, vector<64x128xbf16>
    tpu.vector_store %arg9[%c0_53, %c1024_54], %68 {strides = array<i32>} : memref<64x1152xbf16, #tpu.memory_space<vmem>>, vector<64x128xbf16>,
    %c0_55 = arith.constant 0 : index
    %c0_56 = arith.constant 0 : index
    %70 = vector.load %arg9[%c0_55, %c0_56] : memref<64x1152xbf16, #tpu.memory_space<vmem>>, vector<64x1152xbf16>
    %c0_57 = arith.constant 0 : index
    %c0_58 = arith.constant 0 : index
    %71 = vector.load %arg4[%c0_57, %c0_58] : memref<1152x128xbf16, #tpu.memory_space<vmem>>, vector<1152x128xbf16>
    %cst_59 = arith.constant dense<0.000000e+00> : vector<64x128xf32>
    %72 = tpu.matmul %70, %71, %cst_59 {dimension_numbers = #tpu.dot_dimension_numbers<[1], [0], [0], [1], [0, 0, 1, 1], [], []>} : vector<64x1152xbf16>, vector<1152x128xbf16>, vector<64x128xf32> -> vector<64x128xf32>
    %c0_60 = arith.constant 0 : index
    %c0_61 = arith.constant 0 : index
    %73 = vector.load %arg10[%c0_60, %c0_61] : memref<64x128xf32, #tpu.memory_space<vmem>>, vector<64x128xf32>
    %74 = arith.addf %73, %72 : vector<64x128xf32>
    %c0_62 = arith.constant 0 : index
    %c0_63 = arith.constant 0 : index
    %75 = vector.load %arg10[%c0_62, %c0_63] : memref<64x128xf32, #tpu.memory_space<vmem>>, vector<64x128xf32>
    tpu.vector_store %arg10[%c0_62, %c0_63], %74 {strides = array<i32>} : memref<64x128xf32, #tpu.memory_space<vmem>>, vector<64x128xf32>,
    %c0_64 = arith.constant 0 : index
    %c0_65 = arith.constant 0 : index
    %76 = vector.load %arg10[%c0_64, %c0_65] : memref<64x128xf32, #tpu.memory_space<vmem>>, vector<64x128xf32>
    %c0_66 = arith.constant 0 : index
    %c0_67 = arith.constant 0 : index
    %77 = vector.load %arg5[%c0_66, %c0_67] : memref<1x128xf32, #tpu.memory_space<vmem>>, vector<1x128xf32>
    %78 = vector.broadcast %77 : vector<1x128xf32> to vector<64x128xf32>
    %79 = arith.mulf %76, %78 : vector<64x128xf32>
    %c0_68 = arith.constant 0 : index
    %c0_69 = arith.constant 0 : index
    %80 = vector.load %arg6[%c0_68, %c0_69] : memref<1x128xf32, #tpu.memory_space<vmem>>, vector<1x128xf32>
    %81 = vector.broadcast %80 : vector<1x128xf32> to vector<64x128xf32>
    %82 = arith.addf %79, %81 : vector<64x128xf32>
    %cst_70 = arith.constant 0.000000e+00 : f32
    %83 = vector.broadcast %cst_70 : f32 to vector<64x128xf32>
    %84 = arith.maximumf %82, %83 : vector<64x128xf32>
    %85 = vector.shape_cast %84 : vector<64x128xf32> to vector<8x8x128xf32>
    %86 = arith.truncf %85 : vector<8x8x128xf32> to vector<8x8x128xbf16>
    %c0_71 = arith.constant 0 : index
    %c0_72 = arith.constant 0 : index
    %c0_73 = arith.constant 0 : index
    %c0_74 = arith.constant 0 : index
    %87 = vector.load %arg7[%c0_71, %c0_72, %c0_73, %c0_74] : memref<1x8x8x128xbf16, #tpu.memory_space<vmem>>, vector<1x8x8x128xbf16>
    %88 = vector.shape_cast %87 : vector<1x8x8x128xbf16> to vector<8x8x128xbf16>
    %89 = vector.shape_cast %86 : vector<8x8x128xbf16> to vector<1x8x8x128xbf16>
    tpu.vector_store %arg7[%c0_71, %c0_72, %c0_73, %c0_74], %89 {strides = array<i32>} : memref<1x8x8x128xbf16, #tpu.memory_space<vmem>>, vector<1x8x8x128xbf16>,
    return
  }
  func.func @transform_0(%arg0: i32) -> (i32, i32, i32, i32) {
    %c0_i32 = arith.constant 0 : i32
    %c0_i32_0 = arith.constant 0 : i32
    %c0_i32_1 = arith.constant 0 : i32
    %c0_i32_2 = arith.constant 0 : i32
    return %arg0, %c0_i32, %c0_i32_0, %c0_i32_1 : i32, i32, i32, i32
  }
  func.func @transform_1(%arg0: i32) -> (i32, i32, i32, i32) {
    %c0_i32 = arith.constant 0 : i32
    %c0_i32_0 = arith.constant 0 : i32
    %c0_i32_1 = arith.constant 0 : i32
    %c0_i32_2 = arith.constant 0 : i32
    return %arg0, %c0_i32, %c0_i32_0, %c0_i32_1 : i32, i32, i32, i32
  }
  func.func @transform_2(%arg0: i32) -> (i32, i32) {
    %c0_i32 = arith.constant 0 : i32
    %c0_i32_0 = arith.constant 0 : i32
    %c0_i32_1 = arith.constant 0 : i32
    return %c0_i32, %c0_i32_0 : i32, i32
  }
  func.func @transform_3(%arg0: i32) -> (i32, i32) {
    %c0_i32 = arith.constant 0 : i32
    %c0_i32_0 = arith.constant 0 : i32
    %c0_i32_1 = arith.constant 0 : i32
    return %c0_i32, %c0_i32_0 : i32, i32
  }
  func.func @transform_4(%arg0: i32) -> (i32, i32) {
    %c0_i32 = arith.constant 0 : i32
    %c0_i32_0 = arith.constant 0 : i32
    %c0_i32_1 = arith.constant 0 : i32
    return %c0_i32, %c0_i32_0 : i32, i32
  }
  func.func @transform_5(%arg0: i32) -> (i32, i32) {
    %c0_i32 = arith.constant 0 : i32
    %c0_i32_0 = arith.constant 0 : i32
    %c0_i32_1 = arith.constant 0 : i32
    return %c0_i32, %c0_i32_0 : i32, i32
  }
  func.func @transform_6(%arg0: i32) -> (i32, i32, i32, i32) {
    %c0_i32 = arith.constant 0 : i32
    %c0_i32_0 = arith.constant 0 : i32
    %c0_i32_1 = arith.constant 0 : i32
    %c0_i32_2 = arith.constant 0 : i32
    return %arg0, %c0_i32, %c0_i32_0, %c0_i32_1 : i32, i32, i32, i32
  }
}

module attributes {stable_mosaic.version = 11 : i64} {
  func.func @_conv3x3_bn_relu_kernel(%arg0: i32, %arg1: memref<1x10x10x128xbf16, #tpu.memory_space<vmem>>, %arg2: memref<1152x128xbf16, #tpu.memory_space<vmem>>, %arg3: memref<1x128xf32, #tpu.memory_space<vmem>>, %arg4: memref<1x128xf32, #tpu.memory_space<vmem>>, %arg5: memref<1x8x8x128xbf16, #tpu.memory_space<vmem>>, %arg6: memref<64x1152xbf16, #tpu.memory_space<vmem>>, %arg7: memref<64x128xf32, #tpu.memory_space<vmem>>) attributes {dimension_semantics = [#tpu.dimension_semantics<parallel>], iteration_bounds = array<i64: 2>, scalar_prefetch = 0 : i64, scratch_operands = 2 : i64, tpu.core_type = #tpu.core_type<tc>, window_params = [{transform_indices = @transform_0, window_bounds = array<i64: 1, 10, 10, 128>}, {pipeline_mode = #tpu.pipeline_mode<synchronous>, transform_indices = @transform_1, window_bounds = array<i64: 1152, 128>}, {pipeline_mode = #tpu.pipeline_mode<synchronous>, transform_indices = @transform_2, window_bounds = array<i64: 1, 128>}, {pipeline_mode = #tpu.pipeline_mode<synchronous>, transform_indices = @transform_3, window_bounds = array<i64: 1, 128>}, {transform_indices = @transform_4, window_bounds = array<i64: 1, 8, 8, 128>}]} {
    %c0 = arith.constant 0 : index
    %c0_0 = arith.constant 0 : index
    %c0_1 = arith.constant 0 : index
    %c0_2 = arith.constant 0 : index
    %0 = vector.load %arg1[%c0, %c0_0, %c0_1, %c0_2] : memref<1x10x10x128xbf16, #tpu.memory_space<vmem>>, vector<1x10x8x128xbf16>
    %1 = vector.shape_cast %0 : vector<1x10x8x128xbf16> to vector<10x8x128xbf16>
    %2 = vector.extract_strided_slice %1 {offsets = [0, 0, 0], sizes = [8, 8, 128], strides = [1, 1, 1]} : vector<10x8x128xbf16> to vector<8x8x128xbf16>
    %3 = vector.shape_cast %2 : vector<8x8x128xbf16> to vector<64x128xbf16>
    %c0_3 = arith.constant 0 : index
    %c0_4 = arith.constant 0 : index
    %4 = vector.load %arg6[%c0_3, %c0_4] : memref<64x1152xbf16, #tpu.memory_space<vmem>>, vector<64x128xbf16>
    tpu.vector_store %arg6[%c0_3, %c0_4], %3 {strides = array<i32>} : memref<64x1152xbf16, #tpu.memory_space<vmem>>, vector<64x128xbf16>,
    %5 = vector.extract_strided_slice %1 {offsets = [1, 0, 0], sizes = [8, 8, 128], strides = [1, 1, 1]} : vector<10x8x128xbf16> to vector<8x8x128xbf16>
    %6 = vector.shape_cast %5 : vector<8x8x128xbf16> to vector<64x128xbf16>
    %c0_5 = arith.constant 0 : index
    %c384 = arith.constant 384 : index
    %7 = vector.load %arg6[%c0_5, %c384] : memref<64x1152xbf16, #tpu.memory_space<vmem>>, vector<64x128xbf16>
    tpu.vector_store %arg6[%c0_5, %c384], %6 {strides = array<i32>} : memref<64x1152xbf16, #tpu.memory_space<vmem>>, vector<64x128xbf16>,
    %8 = vector.extract_strided_slice %1 {offsets = [2, 0, 0], sizes = [8, 8, 128], strides = [1, 1, 1]} : vector<10x8x128xbf16> to vector<8x8x128xbf16>
    %9 = vector.shape_cast %8 : vector<8x8x128xbf16> to vector<64x128xbf16>
    %c0_6 = arith.constant 0 : index
    %c768 = arith.constant 768 : index
    %10 = vector.load %arg6[%c0_6, %c768] : memref<64x1152xbf16, #tpu.memory_space<vmem>>, vector<64x128xbf16>
    tpu.vector_store %arg6[%c0_6, %c768], %9 {strides = array<i32>} : memref<64x1152xbf16, #tpu.memory_space<vmem>>, vector<64x128xbf16>,
    %c0_7 = arith.constant 0 : index
    %c0_8 = arith.constant 0 : index
    %c1 = arith.constant 1 : index
    %c0_9 = arith.constant 0 : index
    %11 = vector.load %arg1[%c0_7, %c0_8, %c1, %c0_9] : memref<1x10x10x128xbf16, #tpu.memory_space<vmem>>, vector<1x10x8x128xbf16>
    %12 = vector.shape_cast %11 : vector<1x10x8x128xbf16> to vector<10x8x128xbf16>
    %13 = vector.extract_strided_slice %12 {offsets = [0, 0, 0], sizes = [8, 8, 128], strides = [1, 1, 1]} : vector<10x8x128xbf16> to vector<8x8x128xbf16>
    %14 = vector.shape_cast %13 : vector<8x8x128xbf16> to vector<64x128xbf16>
    %c0_10 = arith.constant 0 : index
    %c128 = arith.constant 128 : index
    %15 = vector.load %arg6[%c0_10, %c128] : memref<64x1152xbf16, #tpu.memory_space<vmem>>, vector<64x128xbf16>
    tpu.vector_store %arg6[%c0_10, %c128], %14 {strides = array<i32>} : memref<64x1152xbf16, #tpu.memory_space<vmem>>, vector<64x128xbf16>,
    %16 = vector.extract_strided_slice %12 {offsets = [1, 0, 0], sizes = [8, 8, 128], strides = [1, 1, 1]} : vector<10x8x128xbf16> to vector<8x8x128xbf16>
    %17 = vector.shape_cast %16 : vector<8x8x128xbf16> to vector<64x128xbf16>
    %c0_11 = arith.constant 0 : index
    %c512 = arith.constant 512 : index
    %18 = vector.load %arg6[%c0_11, %c512] : memref<64x1152xbf16, #tpu.memory_space<vmem>>, vector<64x128xbf16>
    tpu.vector_store %arg6[%c0_11, %c512], %17 {strides = array<i32>} : memref<64x1152xbf16, #tpu.memory_space<vmem>>, vector<64x128xbf16>,
    %19 = vector.extract_strided_slice %12 {offsets = [2, 0, 0], sizes = [8, 8, 128], strides = [1, 1, 1]} : vector<10x8x128xbf16> to vector<8x8x128xbf16>
    %20 = vector.shape_cast %19 : vector<8x8x128xbf16> to vector<64x128xbf16>
    %c0_12 = arith.constant 0 : index
    %c896 = arith.constant 896 : index
    %21 = vector.load %arg6[%c0_12, %c896] : memref<64x1152xbf16, #tpu.memory_space<vmem>>, vector<64x128xbf16>
    tpu.vector_store %arg6[%c0_12, %c896], %20 {strides = array<i32>} : memref<64x1152xbf16, #tpu.memory_space<vmem>>, vector<64x128xbf16>,
    %c0_13 = arith.constant 0 : index
    %c0_14 = arith.constant 0 : index
    %c2 = arith.constant 2 : index
    %c0_15 = arith.constant 0 : index
    %22 = vector.load %arg1[%c0_13, %c0_14, %c2, %c0_15] : memref<1x10x10x128xbf16, #tpu.memory_space<vmem>>, vector<1x10x8x128xbf16>
    %23 = vector.shape_cast %22 : vector<1x10x8x128xbf16> to vector<10x8x128xbf16>
    %24 = vector.extract_strided_slice %23 {offsets = [0, 0, 0], sizes = [8, 8, 128], strides = [1, 1, 1]} : vector<10x8x128xbf16> to vector<8x8x128xbf16>
    %25 = vector.shape_cast %24 : vector<8x8x128xbf16> to vector<64x128xbf16>
    %c0_16 = arith.constant 0 : index
    %c256 = arith.constant 256 : index
    %26 = vector.load %arg6[%c0_16, %c256] : memref<64x1152xbf16, #tpu.memory_space<vmem>>, vector<64x128xbf16>
    tpu.vector_store %arg6[%c0_16, %c256], %25 {strides = array<i32>} : memref<64x1152xbf16, #tpu.memory_space<vmem>>, vector<64x128xbf16>,
    %27 = vector.extract_strided_slice %23 {offsets = [1, 0, 0], sizes = [8, 8, 128], strides = [1, 1, 1]} : vector<10x8x128xbf16> to vector<8x8x128xbf16>
    %28 = vector.shape_cast %27 : vector<8x8x128xbf16> to vector<64x128xbf16>
    %c0_17 = arith.constant 0 : index
    %c640 = arith.constant 640 : index
    %29 = vector.load %arg6[%c0_17, %c640] : memref<64x1152xbf16, #tpu.memory_space<vmem>>, vector<64x128xbf16>
    tpu.vector_store %arg6[%c0_17, %c640], %28 {strides = array<i32>} : memref<64x1152xbf16, #tpu.memory_space<vmem>>, vector<64x128xbf16>,
    %30 = vector.extract_strided_slice %23 {offsets = [2, 0, 0], sizes = [8, 8, 128], strides = [1, 1, 1]} : vector<10x8x128xbf16> to vector<8x8x128xbf16>
    %31 = vector.shape_cast %30 : vector<8x8x128xbf16> to vector<64x128xbf16>
    %c0_18 = arith.constant 0 : index
    %c1024 = arith.constant 1024 : index
    %32 = vector.load %arg6[%c0_18, %c1024] : memref<64x1152xbf16, #tpu.memory_space<vmem>>, vector<64x128xbf16>
    tpu.vector_store %arg6[%c0_18, %c1024], %31 {strides = array<i32>} : memref<64x1152xbf16, #tpu.memory_space<vmem>>, vector<64x128xbf16>,
    %c0_19 = arith.constant 0 : index
    %c0_20 = arith.constant 0 : index
    %33 = vector.load %arg6[%c0_19, %c0_20] : memref<64x1152xbf16, #tpu.memory_space<vmem>>, vector<64x1152xbf16>
    %c0_21 = arith.constant 0 : index
    %c0_22 = arith.constant 0 : index
    %34 = vector.load %arg2[%c0_21, %c0_22] : memref<1152x128xbf16, #tpu.memory_space<vmem>>, vector<1152x128xbf16>
    %cst = arith.constant dense<0.000000e+00> : vector<64x128xf32>
    %35 = tpu.matmul %33, %34, %cst {dimension_numbers = #tpu.dot_dimension_numbers<[1], [0], [0], [1], [0, 0, 1, 1], [], []>} : vector<64x1152xbf16>, vector<1152x128xbf16>, vector<64x128xf32> -> vector<64x128xf32>
    %c0_23 = arith.constant 0 : index
    %c0_24 = arith.constant 0 : index
    %36 = vector.load %arg7[%c0_23, %c0_24] : memref<64x128xf32, #tpu.memory_space<vmem>>, vector<64x128xf32>
    tpu.vector_store %arg7[%c0_23, %c0_24], %35 {strides = array<i32>} : memref<64x128xf32, #tpu.memory_space<vmem>>, vector<64x128xf32>,
    %c0_25 = arith.constant 0 : index
    %c0_26 = arith.constant 0 : index
    %37 = vector.load %arg7[%c0_25, %c0_26] : memref<64x128xf32, #tpu.memory_space<vmem>>, vector<64x128xf32>
    %c0_27 = arith.constant 0 : index
    %c0_28 = arith.constant 0 : index
    %38 = vector.load %arg3[%c0_27, %c0_28] : memref<1x128xf32, #tpu.memory_space<vmem>>, vector<1x128xf32>
    %39 = vector.broadcast %38 : vector<1x128xf32> to vector<64x128xf32>
    %40 = arith.mulf %37, %39 : vector<64x128xf32>
    %c0_29 = arith.constant 0 : index
    %c0_30 = arith.constant 0 : index
    %41 = vector.load %arg4[%c0_29, %c0_30] : memref<1x128xf32, #tpu.memory_space<vmem>>, vector<1x128xf32>
    %42 = vector.broadcast %41 : vector<1x128xf32> to vector<64x128xf32>
    %43 = arith.addf %40, %42 : vector<64x128xf32>
    %cst_31 = arith.constant 0.000000e+00 : f32
    %44 = vector.broadcast %cst_31 : f32 to vector<64x128xf32>
    %45 = arith.maximumf %43, %44 : vector<64x128xf32>
    %46 = vector.shape_cast %45 : vector<64x128xf32> to vector<8x8x128xf32>
    %47 = arith.truncf %46 : vector<8x8x128xf32> to vector<8x8x128xbf16>
    %c0_32 = arith.constant 0 : index
    %c0_33 = arith.constant 0 : index
    %c0_34 = arith.constant 0 : index
    %c0_35 = arith.constant 0 : index
    %48 = vector.load %arg5[%c0_32, %c0_33, %c0_34, %c0_35] : memref<1x8x8x128xbf16, #tpu.memory_space<vmem>>, vector<1x8x8x128xbf16>
    %49 = vector.shape_cast %48 : vector<1x8x8x128xbf16> to vector<8x8x128xbf16>
    %50 = vector.shape_cast %47 : vector<8x8x128xbf16> to vector<1x8x8x128xbf16>
    tpu.vector_store %arg5[%c0_32, %c0_33, %c0_34, %c0_35], %50 {strides = array<i32>} : memref<1x8x8x128xbf16, #tpu.memory_space<vmem>>, vector<1x8x8x128xbf16>,
    return
  }
  func.func @transform_0(%arg0: i32) -> (i32, i32, i32, i32) {
    %c0_i32 = arith.constant 0 : i32
    %c0_i32_0 = arith.constant 0 : i32
    %c0_i32_1 = arith.constant 0 : i32
    %c0_i32_2 = arith.constant 0 : i32
    return %arg0, %c0_i32, %c0_i32_0, %c0_i32_1 : i32, i32, i32, i32
  }
  func.func @transform_1(%arg0: i32) -> (i32, i32) {
    %c0_i32 = arith.constant 0 : i32
    %c0_i32_0 = arith.constant 0 : i32
    %c0_i32_1 = arith.constant 0 : i32
    return %c0_i32, %c0_i32_0 : i32, i32
  }
  func.func @transform_2(%arg0: i32) -> (i32, i32) {
    %c0_i32 = arith.constant 0 : i32
    %c0_i32_0 = arith.constant 0 : i32
    %c0_i32_1 = arith.constant 0 : i32
    return %c0_i32, %c0_i32_0 : i32, i32
  }
  func.func @transform_3(%arg0: i32) -> (i32, i32) {
    %c0_i32 = arith.constant 0 : i32
    %c0_i32_0 = arith.constant 0 : i32
    %c0_i32_1 = arith.constant 0 : i32
    return %c0_i32, %c0_i32_0 : i32, i32
  }
  func.func @transform_4(%arg0: i32) -> (i32, i32, i32, i32) {
    %c0_i32 = arith.constant 0 : i32
    %c0_i32_0 = arith.constant 0 : i32
    %c0_i32_1 = arith.constant 0 : i32
    %c0_i32_2 = arith.constant 0 : i32
    return %arg0, %c0_i32, %c0_i32_0, %c0_i32_1 : i32, i32, i32, i32
  }
}

module attributes {stable_mosaic.version = 11 : i64} {
  func.func @_conv3x3_bn_relu_kernel(%arg0: i32, %arg1: memref<1x18x18x128xbf16, #tpu.memory_space<vmem>>, %arg2: memref<1x18x18x128xbf16, #tpu.memory_space<vmem>>, %arg3: memref<1152x128xbf16, #tpu.memory_space<vmem>>, %arg4: memref<1152x128xbf16, #tpu.memory_space<vmem>>, %arg5: memref<1x128xf32, #tpu.memory_space<vmem>>, %arg6: memref<1x128xf32, #tpu.memory_space<vmem>>, %arg7: memref<1x16x16x128xbf16, #tpu.memory_space<vmem>>, %arg8: memref<256x1152xbf16, #tpu.memory_space<vmem>>, %arg9: memref<256x1152xbf16, #tpu.memory_space<vmem>>, %arg10: memref<256x128xf32, #tpu.memory_space<vmem>>) attributes {dimension_semantics = [#tpu.dimension_semantics<parallel>], iteration_bounds = array<i64: 2>, scalar_prefetch = 0 : i64, scratch_operands = 3 : i64, tpu.core_type = #tpu.core_type<tc>, window_params = [{transform_indices = @transform_0, window_bounds = array<i64: 1, 18, 18, 128>}, {transform_indices = @transform_1, window_bounds = array<i64: 1, 18, 18, 128>}, {pipeline_mode = #tpu.pipeline_mode<synchronous>, transform_indices = @transform_2, window_bounds = array<i64: 1152, 128>}, {pipeline_mode = #tpu.pipeline_mode<synchronous>, transform_indices = @transform_3, window_bounds = array<i64: 1152, 128>}, {pipeline_mode = #tpu.pipeline_mode<synchronous>, transform_indices = @transform_4, window_bounds = array<i64: 1, 128>}, {pipeline_mode = #tpu.pipeline_mode<synchronous>, transform_indices = @transform_5, window_bounds = array<i64: 1, 128>}, {transform_indices = @transform_6, window_bounds = array<i64: 1, 16, 16, 128>}]} {
    %c0 = arith.constant 0 : index
    %c0_0 = arith.constant 0 : index
    %c0_1 = arith.constant 0 : index
    %c0_2 = arith.constant 0 : index
    %0 = vector.load %arg1[%c0, %c0_0, %c0_1, %c0_2] : memref<1x18x18x128xbf16, #tpu.memory_space<vmem>>, vector<1x18x16x128xbf16>
    %1 = vector.shape_cast %0 : vector<1x18x16x128xbf16> to vector<18x16x128xbf16>
    %2 = vector.extract_strided_slice %1 {offsets = [0, 0, 0], sizes = [16, 16, 128], strides = [1, 1, 1]} : vector<18x16x128xbf16> to vector<16x16x128xbf16>
    %3 = vector.shape_cast %2 : vector<16x16x128xbf16> to vector<256x128xbf16>
    %c0_3 = arith.constant 0 : index
    %c0_4 = arith.constant 0 : index
    %4 = vector.load %arg8[%c0_3, %c0_4] : memref<256x1152xbf16, #tpu.memory_space<vmem>>, vector<256x128xbf16>
    tpu.vector_store %arg8[%c0_3, %c0_4], %3 {strides = array<i32>} : memref<256x1152xbf16, #tpu.memory_space<vmem>>, vector<256x128xbf16>,
    %5 = vector.extract_strided_slice %1 {offsets = [1, 0, 0], sizes = [16, 16, 128], strides = [1, 1, 1]} : vector<18x16x128xbf16> to vector<16x16x128xbf16>
    %6 = vector.shape_cast %5 : vector<16x16x128xbf16> to vector<256x128xbf16>
    %c0_5 = arith.constant 0 : index
    %c384 = arith.constant 384 : index
    %7 = vector.load %arg8[%c0_5, %c384] : memref<256x1152xbf16, #tpu.memory_space<vmem>>, vector<256x128xbf16>
    tpu.vector_store %arg8[%c0_5, %c384], %6 {strides = array<i32>} : memref<256x1152xbf16, #tpu.memory_space<vmem>>, vector<256x128xbf16>,
    %8 = vector.extract_strided_slice %1 {offsets = [2, 0, 0], sizes = [16, 16, 128], strides = [1, 1, 1]} : vector<18x16x128xbf16> to vector<16x16x128xbf16>
    %9 = vector.shape_cast %8 : vector<16x16x128xbf16> to vector<256x128xbf16>
    %c0_6 = arith.constant 0 : index
    %c768 = arith.constant 768 : index
    %10 = vector.load %arg8[%c0_6, %c768] : memref<256x1152xbf16, #tpu.memory_space<vmem>>, vector<256x128xbf16>
    tpu.vector_store %arg8[%c0_6, %c768], %9 {strides = array<i32>} : memref<256x1152xbf16, #tpu.memory_space<vmem>>, vector<256x128xbf16>,
    %c0_7 = arith.constant 0 : index
    %c0_8 = arith.constant 0 : index
    %c1 = arith.constant 1 : index
    %c0_9 = arith.constant 0 : index
    %11 = vector.load %arg1[%c0_7, %c0_8, %c1, %c0_9] : memref<1x18x18x128xbf16, #tpu.memory_space<vmem>>, vector<1x18x16x128xbf16>
    %12 = vector.shape_cast %11 : vector<1x18x16x128xbf16> to vector<18x16x128xbf16>
    %13 = vector.extract_strided_slice %12 {offsets = [0, 0, 0], sizes = [16, 16, 128], strides = [1, 1, 1]} : vector<18x16x128xbf16> to vector<16x16x128xbf16>
    %14 = vector.shape_cast %13 : vector<16x16x128xbf16> to vector<256x128xbf16>
    %c0_10 = arith.constant 0 : index
    %c128 = arith.constant 128 : index
    %15 = vector.load %arg8[%c0_10, %c128] : memref<256x1152xbf16, #tpu.memory_space<vmem>>, vector<256x128xbf16>
    tpu.vector_store %arg8[%c0_10, %c128], %14 {strides = array<i32>} : memref<256x1152xbf16, #tpu.memory_space<vmem>>, vector<256x128xbf16>,
    %16 = vector.extract_strided_slice %12 {offsets = [1, 0, 0], sizes = [16, 16, 128], strides = [1, 1, 1]} : vector<18x16x128xbf16> to vector<16x16x128xbf16>
    %17 = vector.shape_cast %16 : vector<16x16x128xbf16> to vector<256x128xbf16>
    %c0_11 = arith.constant 0 : index
    %c512 = arith.constant 512 : index
    %18 = vector.load %arg8[%c0_11, %c512] : memref<256x1152xbf16, #tpu.memory_space<vmem>>, vector<256x128xbf16>
    tpu.vector_store %arg8[%c0_11, %c512], %17 {strides = array<i32>} : memref<256x1152xbf16, #tpu.memory_space<vmem>>, vector<256x128xbf16>,
    %19 = vector.extract_strided_slice %12 {offsets = [2, 0, 0], sizes = [16, 16, 128], strides = [1, 1, 1]} : vector<18x16x128xbf16> to vector<16x16x128xbf16>
    %20 = vector.shape_cast %19 : vector<16x16x128xbf16> to vector<256x128xbf16>
    %c0_12 = arith.constant 0 : index
    %c896 = arith.constant 896 : index
    %21 = vector.load %arg8[%c0_12, %c896] : memref<256x1152xbf16, #tpu.memory_space<vmem>>, vector<256x128xbf16>
    tpu.vector_store %arg8[%c0_12, %c896], %20 {strides = array<i32>} : memref<256x1152xbf16, #tpu.memory_space<vmem>>, vector<256x128xbf16>,
    %c0_13 = arith.constant 0 : index
    %c0_14 = arith.constant 0 : index
    %c2 = arith.constant 2 : index
    %c0_15 = arith.constant 0 : index
    %22 = vector.load %arg1[%c0_13, %c0_14, %c2, %c0_15] : memref<1x18x18x128xbf16, #tpu.memory_space<vmem>>, vector<1x18x16x128xbf16>
    %23 = vector.shape_cast %22 : vector<1x18x16x128xbf16> to vector<18x16x128xbf16>
    %24 = vector.extract_strided_slice %23 {offsets = [0, 0, 0], sizes = [16, 16, 128], strides = [1, 1, 1]} : vector<18x16x128xbf16> to vector<16x16x128xbf16>
    %25 = vector.shape_cast %24 : vector<16x16x128xbf16> to vector<256x128xbf16>
    %c0_16 = arith.constant 0 : index
    %c256 = arith.constant 256 : index
    %26 = vector.load %arg8[%c0_16, %c256] : memref<256x1152xbf16, #tpu.memory_space<vmem>>, vector<256x128xbf16>
    tpu.vector_store %arg8[%c0_16, %c256], %25 {strides = array<i32>} : memref<256x1152xbf16, #tpu.memory_space<vmem>>, vector<256x128xbf16>,
    %27 = vector.extract_strided_slice %23 {offsets = [1, 0, 0], sizes = [16, 16, 128], strides = [1, 1, 1]} : vector<18x16x128xbf16> to vector<16x16x128xbf16>
    %28 = vector.shape_cast %27 : vector<16x16x128xbf16> to vector<256x128xbf16>
    %c0_17 = arith.constant 0 : index
    %c640 = arith.constant 640 : index
    %29 = vector.load %arg8[%c0_17, %c640] : memref<256x1152xbf16, #tpu.memory_space<vmem>>, vector<256x128xbf16>
    tpu.vector_store %arg8[%c0_17, %c640], %28 {strides = array<i32>} : memref<256x1152xbf16, #tpu.memory_space<vmem>>, vector<256x128xbf16>,
    %30 = vector.extract_strided_slice %23 {offsets = [2, 0, 0], sizes = [16, 16, 128], strides = [1, 1, 1]} : vector<18x16x128xbf16> to vector<16x16x128xbf16>
    %31 = vector.shape_cast %30 : vector<16x16x128xbf16> to vector<256x128xbf16>
    %c0_18 = arith.constant 0 : index
    %c1024 = arith.constant 1024 : index
    %32 = vector.load %arg8[%c0_18, %c1024] : memref<256x1152xbf16, #tpu.memory_space<vmem>>, vector<256x128xbf16>
    tpu.vector_store %arg8[%c0_18, %c1024], %31 {strides = array<i32>} : memref<256x1152xbf16, #tpu.memory_space<vmem>>, vector<256x128xbf16>,
    %c0_19 = arith.constant 0 : index
    %c0_20 = arith.constant 0 : index
    %33 = vector.load %arg8[%c0_19, %c0_20] : memref<256x1152xbf16, #tpu.memory_space<vmem>>, vector<256x1152xbf16>
    %c0_21 = arith.constant 0 : index
    %c0_22 = arith.constant 0 : index
    %34 = vector.load %arg3[%c0_21, %c0_22] : memref<1152x128xbf16, #tpu.memory_space<vmem>>, vector<1152x128xbf16>
    %cst = arith.constant dense<0.000000e+00> : vector<256x128xf32>
    %35 = tpu.matmul %33, %34, %cst {dimension_numbers = #tpu.dot_dimension_numbers<[1], [0], [0], [1], [0, 0, 1, 1], [], []>} : vector<256x1152xbf16>, vector<1152x128xbf16>, vector<256x128xf32> -> vector<256x128xf32>
    %c0_23 = arith.constant 0 : index
    %c0_24 = arith.constant 0 : index
    %36 = vector.load %arg10[%c0_23, %c0_24] : memref<256x128xf32, #tpu.memory_space<vmem>>, vector<256x128xf32>
    tpu.vector_store %arg10[%c0_23, %c0_24], %35 {strides = array<i32>} : memref<256x128xf32, #tpu.memory_space<vmem>>, vector<256x128xf32>,
    %c0_25 = arith.constant 0 : index
    %c0_26 = arith.constant 0 : index
    %c0_27 = arith.constant 0 : index
    %c0_28 = arith.constant 0 : index
    %37 = vector.load %arg2[%c0_25, %c0_26, %c0_27, %c0_28] : memref<1x18x18x128xbf16, #tpu.memory_space<vmem>>, vector<1x18x16x128xbf16>
    %38 = vector.shape_cast %37 : vector<1x18x16x128xbf16> to vector<18x16x128xbf16>
    %39 = vector.extract_strided_slice %38 {offsets = [0, 0, 0], sizes = [16, 16, 128], strides = [1, 1, 1]} : vector<18x16x128xbf16> to vector<16x16x128xbf16>
    %40 = vector.shape_cast %39 : vector<16x16x128xbf16> to vector<256x128xbf16>
    %c0_29 = arith.constant 0 : index
    %c0_30 = arith.constant 0 : index
    %41 = vector.load %arg9[%c0_29, %c0_30] : memref<256x1152xbf16, #tpu.memory_space<vmem>>, vector<256x128xbf16>
    tpu.vector_store %arg9[%c0_29, %c0_30], %40 {strides = array<i32>} : memref<256x1152xbf16, #tpu.memory_space<vmem>>, vector<256x128xbf16>,
    %42 = vector.extract_strided_slice %38 {offsets = [1, 0, 0], sizes = [16, 16, 128], strides = [1, 1, 1]} : vector<18x16x128xbf16> to vector<16x16x128xbf16>
    %43 = vector.shape_cast %42 : vector<16x16x128xbf16> to vector<256x128xbf16>
    %c0_31 = arith.constant 0 : index
    %c384_32 = arith.constant 384 : index
    %44 = vector.load %arg9[%c0_31, %c384_32] : memref<256x1152xbf16, #tpu.memory_space<vmem>>, vector<256x128xbf16>
    tpu.vector_store %arg9[%c0_31, %c384_32], %43 {strides = array<i32>} : memref<256x1152xbf16, #tpu.memory_space<vmem>>, vector<256x128xbf16>,
    %45 = vector.extract_strided_slice %38 {offsets = [2, 0, 0], sizes = [16, 16, 128], strides = [1, 1, 1]} : vector<18x16x128xbf16> to vector<16x16x128xbf16>
    %46 = vector.shape_cast %45 : vector<16x16x128xbf16> to vector<256x128xbf16>
    %c0_33 = arith.constant 0 : index
    %c768_34 = arith.constant 768 : index
    %47 = vector.load %arg9[%c0_33, %c768_34] : memref<256x1152xbf16, #tpu.memory_space<vmem>>, vector<256x128xbf16>
    tpu.vector_store %arg9[%c0_33, %c768_34], %46 {strides = array<i32>} : memref<256x1152xbf16, #tpu.memory_space<vmem>>, vector<256x128xbf16>,
    %c0_35 = arith.constant 0 : index
    %c0_36 = arith.constant 0 : index
    %c1_37 = arith.constant 1 : index
    %c0_38 = arith.constant 0 : index
    %48 = vector.load %arg2[%c0_35, %c0_36, %c1_37, %c0_38] : memref<1x18x18x128xbf16, #tpu.memory_space<vmem>>, vector<1x18x16x128xbf16>
    %49 = vector.shape_cast %48 : vector<1x18x16x128xbf16> to vector<18x16x128xbf16>
    %50 = vector.extract_strided_slice %49 {offsets = [0, 0, 0], sizes = [16, 16, 128], strides = [1, 1, 1]} : vector<18x16x128xbf16> to vector<16x16x128xbf16>
    %51 = vector.shape_cast %50 : vector<16x16x128xbf16> to vector<256x128xbf16>
    %c0_39 = arith.constant 0 : index
    %c128_40 = arith.constant 128 : index
    %52 = vector.load %arg9[%c0_39, %c128_40] : memref<256x1152xbf16, #tpu.memory_space<vmem>>, vector<256x128xbf16>
    tpu.vector_store %arg9[%c0_39, %c128_40], %51 {strides = array<i32>} : memref<256x1152xbf16, #tpu.memory_space<vmem>>, vector<256x128xbf16>,
    %53 = vector.extract_strided_slice %49 {offsets = [1, 0, 0], sizes = [16, 16, 128], strides = [1, 1, 1]} : vector<18x16x128xbf16> to vector<16x16x128xbf16>
    %54 = vector.shape_cast %53 : vector<16x16x128xbf16> to vector<256x128xbf16>
    %c0_41 = arith.constant 0 : index
    %c512_42 = arith.constant 512 : index
    %55 = vector.load %arg9[%c0_41, %c512_42] : memref<256x1152xbf16, #tpu.memory_space<vmem>>, vector<256x128xbf16>
    tpu.vector_store %arg9[%c0_41, %c512_42], %54 {strides = array<i32>} : memref<256x1152xbf16, #tpu.memory_space<vmem>>, vector<256x128xbf16>,
    %56 = vector.extract_strided_slice %49 {offsets = [2, 0, 0], sizes = [16, 16, 128], strides = [1, 1, 1]} : vector<18x16x128xbf16> to vector<16x16x128xbf16>
    %57 = vector.shape_cast %56 : vector<16x16x128xbf16> to vector<256x128xbf16>
    %c0_43 = arith.constant 0 : index
    %c896_44 = arith.constant 896 : index
    %58 = vector.load %arg9[%c0_43, %c896_44] : memref<256x1152xbf16, #tpu.memory_space<vmem>>, vector<256x128xbf16>
    tpu.vector_store %arg9[%c0_43, %c896_44], %57 {strides = array<i32>} : memref<256x1152xbf16, #tpu.memory_space<vmem>>, vector<256x128xbf16>,
    %c0_45 = arith.constant 0 : index
    %c0_46 = arith.constant 0 : index
    %c2_47 = arith.constant 2 : index
    %c0_48 = arith.constant 0 : index
    %59 = vector.load %arg2[%c0_45, %c0_46, %c2_47, %c0_48] : memref<1x18x18x128xbf16, #tpu.memory_space<vmem>>, vector<1x18x16x128xbf16>
    %60 = vector.shape_cast %59 : vector<1x18x16x128xbf16> to vector<18x16x128xbf16>
    %61 = vector.extract_strided_slice %60 {offsets = [0, 0, 0], sizes = [16, 16, 128], strides = [1, 1, 1]} : vector<18x16x128xbf16> to vector<16x16x128xbf16>
    %62 = vector.shape_cast %61 : vector<16x16x128xbf16> to vector<256x128xbf16>
    %c0_49 = arith.constant 0 : index
    %c256_50 = arith.constant 256 : index
    %63 = vector.load %arg9[%c0_49, %c256_50] : memref<256x1152xbf16, #tpu.memory_space<vmem>>, vector<256x128xbf16>
    tpu.vector_store %arg9[%c0_49, %c256_50], %62 {strides = array<i32>} : memref<256x1152xbf16, #tpu.memory_space<vmem>>, vector<256x128xbf16>,
    %64 = vector.extract_strided_slice %60 {offsets = [1, 0, 0], sizes = [16, 16, 128], strides = [1, 1, 1]} : vector<18x16x128xbf16> to vector<16x16x128xbf16>
    %65 = vector.shape_cast %64 : vector<16x16x128xbf16> to vector<256x128xbf16>
    %c0_51 = arith.constant 0 : index
    %c640_52 = arith.constant 640 : index
    %66 = vector.load %arg9[%c0_51, %c640_52] : memref<256x1152xbf16, #tpu.memory_space<vmem>>, vector<256x128xbf16>
    tpu.vector_store %arg9[%c0_51, %c640_52], %65 {strides = array<i32>} : memref<256x1152xbf16, #tpu.memory_space<vmem>>, vector<256x128xbf16>,
    %67 = vector.extract_strided_slice %60 {offsets = [2, 0, 0], sizes = [16, 16, 128], strides = [1, 1, 1]} : vector<18x16x128xbf16> to vector<16x16x128xbf16>
    %68 = vector.shape_cast %67 : vector<16x16x128xbf16> to vector<256x128xbf16>
    %c0_53 = arith.constant 0 : index
    %c1024_54 = arith.constant 1024 : index
    %69 = vector.load %arg9[%c0_53, %c1024_54] : memref<256x1152xbf16, #tpu.memory_space<vmem>>, vector<256x128xbf16>
    tpu.vector_store %arg9[%c0_53, %c1024_54], %68 {strides = array<i32>} : memref<256x1152xbf16, #tpu.memory_space<vmem>>, vector<256x128xbf16>,
    %c0_55 = arith.constant 0 : index
    %c0_56 = arith.constant 0 : index
    %70 = vector.load %arg9[%c0_55, %c0_56] : memref<256x1152xbf16, #tpu.memory_space<vmem>>, vector<256x1152xbf16>
    %c0_57 = arith.constant 0 : index
    %c0_58 = arith.constant 0 : index
    %71 = vector.load %arg4[%c0_57, %c0_58] : memref<1152x128xbf16, #tpu.memory_space<vmem>>, vector<1152x128xbf16>
    %cst_59 = arith.constant dense<0.000000e+00> : vector<256x128xf32>
    %72 = tpu.matmul %70, %71, %cst_59 {dimension_numbers = #tpu.dot_dimension_numbers<[1], [0], [0], [1], [0, 0, 1, 1], [], []>} : vector<256x1152xbf16>, vector<1152x128xbf16>, vector<256x128xf32> -> vector<256x128xf32>
    %c0_60 = arith.constant 0 : index
    %c0_61 = arith.constant 0 : index
    %73 = vector.load %arg10[%c0_60, %c0_61] : memref<256x128xf32, #tpu.memory_space<vmem>>, vector<256x128xf32>
    %74 = arith.addf %73, %72 : vector<256x128xf32>
    %c0_62 = arith.constant 0 : index
    %c0_63 = arith.constant 0 : index
    %75 = vector.load %arg10[%c0_62, %c0_63] : memref<256x128xf32, #tpu.memory_space<vmem>>, vector<256x128xf32>
    tpu.vector_store %arg10[%c0_62, %c0_63], %74 {strides = array<i32>} : memref<256x128xf32, #tpu.memory_space<vmem>>, vector<256x128xf32>,
    %c0_64 = arith.constant 0 : index
    %c0_65 = arith.constant 0 : index
    %76 = vector.load %arg10[%c0_64, %c0_65] : memref<256x128xf32, #tpu.memory_space<vmem>>, vector<256x128xf32>
    %c0_66 = arith.constant 0 : index
    %c0_67 = arith.constant 0 : index
    %77 = vector.load %arg5[%c0_66, %c0_67] : memref<1x128xf32, #tpu.memory_space<vmem>>, vector<1x128xf32>
    %78 = vector.broadcast %77 : vector<1x128xf32> to vector<256x128xf32>
    %79 = arith.mulf %76, %78 : vector<256x128xf32>
    %c0_68 = arith.constant 0 : index
    %c0_69 = arith.constant 0 : index
    %80 = vector.load %arg6[%c0_68, %c0_69] : memref<1x128xf32, #tpu.memory_space<vmem>>, vector<1x128xf32>
    %81 = vector.broadcast %80 : vector<1x128xf32> to vector<256x128xf32>
    %82 = arith.addf %79, %81 : vector<256x128xf32>
    %cst_70 = arith.constant 0.000000e+00 : f32
    %83 = vector.broadcast %cst_70 : f32 to vector<256x128xf32>
    %84 = arith.maximumf %82, %83 : vector<256x128xf32>
    %85 = vector.shape_cast %84 : vector<256x128xf32> to vector<16x16x128xf32>
    %86 = arith.truncf %85 : vector<16x16x128xf32> to vector<16x16x128xbf16>
    %c0_71 = arith.constant 0 : index
    %c0_72 = arith.constant 0 : index
    %c0_73 = arith.constant 0 : index
    %c0_74 = arith.constant 0 : index
    %87 = vector.load %arg7[%c0_71, %c0_72, %c0_73, %c0_74] : memref<1x16x16x128xbf16, #tpu.memory_space<vmem>>, vector<1x16x16x128xbf16>
    %88 = vector.shape_cast %87 : vector<1x16x16x128xbf16> to vector<16x16x128xbf16>
    %89 = vector.shape_cast %86 : vector<16x16x128xbf16> to vector<1x16x16x128xbf16>
    tpu.vector_store %arg7[%c0_71, %c0_72, %c0_73, %c0_74], %89 {strides = array<i32>} : memref<1x16x16x128xbf16, #tpu.memory_space<vmem>>, vector<1x16x16x128xbf16>,
    return
  }
  func.func @transform_0(%arg0: i32) -> (i32, i32, i32, i32) {
    %c0_i32 = arith.constant 0 : i32
    %c0_i32_0 = arith.constant 0 : i32
    %c0_i32_1 = arith.constant 0 : i32
    %c0_i32_2 = arith.constant 0 : i32
    return %arg0, %c0_i32, %c0_i32_0, %c0_i32_1 : i32, i32, i32, i32
  }
  func.func @transform_1(%arg0: i32) -> (i32, i32, i32, i32) {
    %c0_i32 = arith.constant 0 : i32
    %c0_i32_0 = arith.constant 0 : i32
    %c0_i32_1 = arith.constant 0 : i32
    %c0_i32_2 = arith.constant 0 : i32
    return %arg0, %c0_i32, %c0_i32_0, %c0_i32_1 : i32, i32, i32, i32
  }
  func.func @transform_2(%arg0: i32) -> (i32, i32) {
    %c0_i32 = arith.constant 0 : i32
    %c0_i32_0 = arith.constant 0 : i32
    %c0_i32_1 = arith.constant 0 : i32
    return %c0_i32, %c0_i32_0 : i32, i32
  }
  func.func @transform_3(%arg0: i32) -> (i32, i32) {
    %c0_i32 = arith.constant 0 : i32
    %c0_i32_0 = arith.constant 0 : i32
    %c0_i32_1 = arith.constant 0 : i32
    return %c0_i32, %c0_i32_0 : i32, i32
  }
  func.func @transform_4(%arg0: i32) -> (i32, i32) {
    %c0_i32 = arith.constant 0 : i32
    %c0_i32_0 = arith.constant 0 : i32
    %c0_i32_1 = arith.constant 0 : i32
    return %c0_i32, %c0_i32_0 : i32, i32
  }
  func.func @transform_5(%arg0: i32) -> (i32, i32) {
    %c0_i32 = arith.constant 0 : i32
    %c0_i32_0 = arith.constant 0 : i32
    %c0_i32_1 = arith.constant 0 : i32
    return %c0_i32, %c0_i32_0 : i32, i32
  }
  func.func @transform_6(%arg0: i32) -> (i32, i32, i32, i32) {
    %c0_i32 = arith.constant 0 : i32
    %c0_i32_0 = arith.constant 0 : i32
    %c0_i32_1 = arith.constant 0 : i32
    %c0_i32_2 = arith.constant 0 : i32
    return %arg0, %c0_i32, %c0_i32_0, %c0_i32_1 : i32, i32, i32, i32
  }
}

module attributes {stable_mosaic.version = 11 : i64} {
  func.func @_conv3x3_bn_relu_kernel(%arg0: i32, %arg1: memref<1x18x18x128xbf16, #tpu.memory_space<vmem>>, %arg2: memref<1152x128xbf16, #tpu.memory_space<vmem>>, %arg3: memref<1x128xf32, #tpu.memory_space<vmem>>, %arg4: memref<1x128xf32, #tpu.memory_space<vmem>>, %arg5: memref<1x16x16x128xf32, #tpu.memory_space<vmem>>, %arg6: memref<256x1152xbf16, #tpu.memory_space<vmem>>, %arg7: memref<256x128xf32, #tpu.memory_space<vmem>>) attributes {dimension_semantics = [#tpu.dimension_semantics<parallel>], iteration_bounds = array<i64: 2>, scalar_prefetch = 0 : i64, scratch_operands = 2 : i64, tpu.core_type = #tpu.core_type<tc>, window_params = [{transform_indices = @transform_0, window_bounds = array<i64: 1, 18, 18, 128>}, {pipeline_mode = #tpu.pipeline_mode<synchronous>, transform_indices = @transform_1, window_bounds = array<i64: 1152, 128>}, {pipeline_mode = #tpu.pipeline_mode<synchronous>, transform_indices = @transform_2, window_bounds = array<i64: 1, 128>}, {pipeline_mode = #tpu.pipeline_mode<synchronous>, transform_indices = @transform_3, window_bounds = array<i64: 1, 128>}, {transform_indices = @transform_4, window_bounds = array<i64: 1, 16, 16, 128>}]} {
    %c0 = arith.constant 0 : index
    %c0_0 = arith.constant 0 : index
    %c0_1 = arith.constant 0 : index
    %c0_2 = arith.constant 0 : index
    %0 = vector.load %arg1[%c0, %c0_0, %c0_1, %c0_2] : memref<1x18x18x128xbf16, #tpu.memory_space<vmem>>, vector<1x18x16x128xbf16>
    %1 = vector.shape_cast %0 : vector<1x18x16x128xbf16> to vector<18x16x128xbf16>
    %2 = vector.extract_strided_slice %1 {offsets = [0, 0, 0], sizes = [16, 16, 128], strides = [1, 1, 1]} : vector<18x16x128xbf16> to vector<16x16x128xbf16>
    %3 = vector.shape_cast %2 : vector<16x16x128xbf16> to vector<256x128xbf16>
    %c0_3 = arith.constant 0 : index
    %c0_4 = arith.constant 0 : index
    %4 = vector.load %arg6[%c0_3, %c0_4] : memref<256x1152xbf16, #tpu.memory_space<vmem>>, vector<256x128xbf16>
    tpu.vector_store %arg6[%c0_3, %c0_4], %3 {strides = array<i32>} : memref<256x1152xbf16, #tpu.memory_space<vmem>>, vector<256x128xbf16>,
    %5 = vector.extract_strided_slice %1 {offsets = [1, 0, 0], sizes = [16, 16, 128], strides = [1, 1, 1]} : vector<18x16x128xbf16> to vector<16x16x128xbf16>
    %6 = vector.shape_cast %5 : vector<16x16x128xbf16> to vector<256x128xbf16>
    %c0_5 = arith.constant 0 : index
    %c384 = arith.constant 384 : index
    %7 = vector.load %arg6[%c0_5, %c384] : memref<256x1152xbf16, #tpu.memory_space<vmem>>, vector<256x128xbf16>
    tpu.vector_store %arg6[%c0_5, %c384], %6 {strides = array<i32>} : memref<256x1152xbf16, #tpu.memory_space<vmem>>, vector<256x128xbf16>,
    %8 = vector.extract_strided_slice %1 {offsets = [2, 0, 0], sizes = [16, 16, 128], strides = [1, 1, 1]} : vector<18x16x128xbf16> to vector<16x16x128xbf16>
    %9 = vector.shape_cast %8 : vector<16x16x128xbf16> to vector<256x128xbf16>
    %c0_6 = arith.constant 0 : index
    %c768 = arith.constant 768 : index
    %10 = vector.load %arg6[%c0_6, %c768] : memref<256x1152xbf16, #tpu.memory_space<vmem>>, vector<256x128xbf16>
    tpu.vector_store %arg6[%c0_6, %c768], %9 {strides = array<i32>} : memref<256x1152xbf16, #tpu.memory_space<vmem>>, vector<256x128xbf16>,
    %c0_7 = arith.constant 0 : index
    %c0_8 = arith.constant 0 : index
    %c1 = arith.constant 1 : index
    %c0_9 = arith.constant 0 : index
    %11 = vector.load %arg1[%c0_7, %c0_8, %c1, %c0_9] : memref<1x18x18x128xbf16, #tpu.memory_space<vmem>>, vector<1x18x16x128xbf16>
    %12 = vector.shape_cast %11 : vector<1x18x16x128xbf16> to vector<18x16x128xbf16>
    %13 = vector.extract_strided_slice %12 {offsets = [0, 0, 0], sizes = [16, 16, 128], strides = [1, 1, 1]} : vector<18x16x128xbf16> to vector<16x16x128xbf16>
    %14 = vector.shape_cast %13 : vector<16x16x128xbf16> to vector<256x128xbf16>
    %c0_10 = arith.constant 0 : index
    %c128 = arith.constant 128 : index
    %15 = vector.load %arg6[%c0_10, %c128] : memref<256x1152xbf16, #tpu.memory_space<vmem>>, vector<256x128xbf16>
    tpu.vector_store %arg6[%c0_10, %c128], %14 {strides = array<i32>} : memref<256x1152xbf16, #tpu.memory_space<vmem>>, vector<256x128xbf16>,
    %16 = vector.extract_strided_slice %12 {offsets = [1, 0, 0], sizes = [16, 16, 128], strides = [1, 1, 1]} : vector<18x16x128xbf16> to vector<16x16x128xbf16>
    %17 = vector.shape_cast %16 : vector<16x16x128xbf16> to vector<256x128xbf16>
    %c0_11 = arith.constant 0 : index
    %c512 = arith.constant 512 : index
    %18 = vector.load %arg6[%c0_11, %c512] : memref<256x1152xbf16, #tpu.memory_space<vmem>>, vector<256x128xbf16>
    tpu.vector_store %arg6[%c0_11, %c512], %17 {strides = array<i32>} : memref<256x1152xbf16, #tpu.memory_space<vmem>>, vector<256x128xbf16>,
    %19 = vector.extract_strided_slice %12 {offsets = [2, 0, 0], sizes = [16, 16, 128], strides = [1, 1, 1]} : vector<18x16x128xbf16> to vector<16x16x128xbf16>
    %20 = vector.shape_cast %19 : vector<16x16x128xbf16> to vector<256x128xbf16>
    %c0_12 = arith.constant 0 : index
    %c896 = arith.constant 896 : index
    %21 = vector.load %arg6[%c0_12, %c896] : memref<256x1152xbf16, #tpu.memory_space<vmem>>, vector<256x128xbf16>
    tpu.vector_store %arg6[%c0_12, %c896], %20 {strides = array<i32>} : memref<256x1152xbf16, #tpu.memory_space<vmem>>, vector<256x128xbf16>,
    %c0_13 = arith.constant 0 : index
    %c0_14 = arith.constant 0 : index
    %c2 = arith.constant 2 : index
    %c0_15 = arith.constant 0 : index
    %22 = vector.load %arg1[%c0_13, %c0_14, %c2, %c0_15] : memref<1x18x18x128xbf16, #tpu.memory_space<vmem>>, vector<1x18x16x128xbf16>
    %23 = vector.shape_cast %22 : vector<1x18x16x128xbf16> to vector<18x16x128xbf16>
    %24 = vector.extract_strided_slice %23 {offsets = [0, 0, 0], sizes = [16, 16, 128], strides = [1, 1, 1]} : vector<18x16x128xbf16> to vector<16x16x128xbf16>
    %25 = vector.shape_cast %24 : vector<16x16x128xbf16> to vector<256x128xbf16>
    %c0_16 = arith.constant 0 : index
    %c256 = arith.constant 256 : index
    %26 = vector.load %arg6[%c0_16, %c256] : memref<256x1152xbf16, #tpu.memory_space<vmem>>, vector<256x128xbf16>
    tpu.vector_store %arg6[%c0_16, %c256], %25 {strides = array<i32>} : memref<256x1152xbf16, #tpu.memory_space<vmem>>, vector<256x128xbf16>,
    %27 = vector.extract_strided_slice %23 {offsets = [1, 0, 0], sizes = [16, 16, 128], strides = [1, 1, 1]} : vector<18x16x128xbf16> to vector<16x16x128xbf16>
    %28 = vector.shape_cast %27 : vector<16x16x128xbf16> to vector<256x128xbf16>
    %c0_17 = arith.constant 0 : index
    %c640 = arith.constant 640 : index
    %29 = vector.load %arg6[%c0_17, %c640] : memref<256x1152xbf16, #tpu.memory_space<vmem>>, vector<256x128xbf16>
    tpu.vector_store %arg6[%c0_17, %c640], %28 {strides = array<i32>} : memref<256x1152xbf16, #tpu.memory_space<vmem>>, vector<256x128xbf16>,
    %30 = vector.extract_strided_slice %23 {offsets = [2, 0, 0], sizes = [16, 16, 128], strides = [1, 1, 1]} : vector<18x16x128xbf16> to vector<16x16x128xbf16>
    %31 = vector.shape_cast %30 : vector<16x16x128xbf16> to vector<256x128xbf16>
    %c0_18 = arith.constant 0 : index
    %c1024 = arith.constant 1024 : index
    %32 = vector.load %arg6[%c0_18, %c1024] : memref<256x1152xbf16, #tpu.memory_space<vmem>>, vector<256x128xbf16>
    tpu.vector_store %arg6[%c0_18, %c1024], %31 {strides = array<i32>} : memref<256x1152xbf16, #tpu.memory_space<vmem>>, vector<256x128xbf16>,
    %c0_19 = arith.constant 0 : index
    %c0_20 = arith.constant 0 : index
    %33 = vector.load %arg6[%c0_19, %c0_20] : memref<256x1152xbf16, #tpu.memory_space<vmem>>, vector<256x1152xbf16>
    %c0_21 = arith.constant 0 : index
    %c0_22 = arith.constant 0 : index
    %34 = vector.load %arg2[%c0_21, %c0_22] : memref<1152x128xbf16, #tpu.memory_space<vmem>>, vector<1152x128xbf16>
    %cst = arith.constant dense<0.000000e+00> : vector<256x128xf32>
    %35 = tpu.matmul %33, %34, %cst {dimension_numbers = #tpu.dot_dimension_numbers<[1], [0], [0], [1], [0, 0, 1, 1], [], []>} : vector<256x1152xbf16>, vector<1152x128xbf16>, vector<256x128xf32> -> vector<256x128xf32>
    %c0_23 = arith.constant 0 : index
    %c0_24 = arith.constant 0 : index
    %36 = vector.load %arg7[%c0_23, %c0_24] : memref<256x128xf32, #tpu.memory_space<vmem>>, vector<256x128xf32>
    tpu.vector_store %arg7[%c0_23, %c0_24], %35 {strides = array<i32>} : memref<256x128xf32, #tpu.memory_space<vmem>>, vector<256x128xf32>,
    %c0_25 = arith.constant 0 : index
    %c0_26 = arith.constant 0 : index
    %37 = vector.load %arg7[%c0_25, %c0_26] : memref<256x128xf32, #tpu.memory_space<vmem>>, vector<256x128xf32>
    %c0_27 = arith.constant 0 : index
    %c0_28 = arith.constant 0 : index
    %38 = vector.load %arg3[%c0_27, %c0_28] : memref<1x128xf32, #tpu.memory_space<vmem>>, vector<1x128xf32>
    %39 = vector.broadcast %38 : vector<1x128xf32> to vector<256x128xf32>
    %40 = arith.mulf %37, %39 : vector<256x128xf32>
    %c0_29 = arith.constant 0 : index
    %c0_30 = arith.constant 0 : index
    %41 = vector.load %arg4[%c0_29, %c0_30] : memref<1x128xf32, #tpu.memory_space<vmem>>, vector<1x128xf32>
    %42 = vector.broadcast %41 : vector<1x128xf32> to vector<256x128xf32>
    %43 = arith.addf %40, %42 : vector<256x128xf32>
    %cst_31 = arith.constant 0.000000e+00 : f32
    %44 = vector.broadcast %cst_31 : f32 to vector<256x128xf32>
    %45 = arith.maximumf %43, %44 : vector<256x128xf32>
    %46 = vector.shape_cast %45 : vector<256x128xf32> to vector<16x16x128xf32>
    %c0_32 = arith.constant 0 : index
    %c0_33 = arith.constant 0 : index
    %c0_34 = arith.constant 0 : index
    %c0_35 = arith.constant 0 : index
    %47 = vector.load %arg5[%c0_32, %c0_33, %c0_34, %c0_35] : memref<1x16x16x128xf32, #tpu.memory_space<vmem>>, vector<1x16x16x128xf32>
    %48 = vector.shape_cast %47 : vector<1x16x16x128xf32> to vector<16x16x128xf32>
    %49 = vector.shape_cast %46 : vector<16x16x128xf32> to vector<1x16x16x128xf32>
    tpu.vector_store %arg5[%c0_32, %c0_33, %c0_34, %c0_35], %49 {strides = array<i32>} : memref<1x16x16x128xf32, #tpu.memory_space<vmem>>, vector<1x16x16x128xf32>,
    return
  }
  func.func @transform_0(%arg0: i32) -> (i32, i32, i32, i32) {
    %c0_i32 = arith.constant 0 : i32
    %c0_i32_0 = arith.constant 0 : i32
    %c0_i32_1 = arith.constant 0 : i32
    %c0_i32_2 = arith.constant 0 : i32
    return %arg0, %c0_i32, %c0_i32_0, %c0_i32_1 : i32, i32, i32, i32
  }
  func.func @transform_1(%arg0: i32) -> (i32, i32) {
    %c0_i32 = arith.constant 0 : i32
    %c0_i32_0 = arith.constant 0 : i32
    %c0_i32_1 = arith.constant 0 : i32
    return %c0_i32, %c0_i32_0 : i32, i32
  }
  func.func @transform_2(%arg0: i32) -> (i32, i32) {
    %c0_i32 = arith.constant 0 : i32
    %c0_i32_0 = arith.constant 0 : i32
    %c0_i32_1 = arith.constant 0 : i32
    return %c0_i32, %c0_i32_0 : i32, i32
  }
  func.func @transform_3(%arg0: i32) -> (i32, i32) {
    %c0_i32 = arith.constant 0 : i32
    %c0_i32_0 = arith.constant 0 : i32
    %c0_i32_1 = arith.constant 0 : i32
    return %c0_i32, %c0_i32_0 : i32, i32
  }
  func.func @transform_4(%arg0: i32) -> (i32, i32, i32, i32) {
    %c0_i32 = arith.constant 0 : i32
    %c0_i32_0 = arith.constant 0 : i32
    %c0_i32_1 = arith.constant 0 : i32
    %c0_i32_2 = arith.constant 0 : i32
    return %arg0, %c0_i32, %c0_i32_0, %c0_i32_1 : i32, i32, i32, i32
  }
}

</mosaic_0001>

<bundles_post_ra>
// kernel: decoder_forward.5
= control target key start
LH: loop header
LB: loop body
LE: loop exit
PB: predicated region body
PF: predicated region fallthrough
CT: control target
= control target key end

     0   :  { %s2127_s15 = smov 0   ;;  %s2585_s0 = inlined_call_operand.vmem [shape: bf16[2,10,10,128], index: 0, kind: input, shape index: {}]   ;;  %s2586_s1 = inlined_call_operand.vmem [shape: bf16[1152,128], index: 1, kind: input, shape index: {}]   ;;  %s2587_s2 = inlined_call_operand.vmem [shape: f32[1,128], index: 2, kind: input, shape index: {}]   ;;  %s2588_s3 = inlined_call_operand.vmem [shape: f32[1,128], index: 3, kind: input, shape index: {}]   ;;  %s2589_s4 = inlined_call_operand.vmem [shape: bf16[2,8,8,128], index: 4, kind: output, shape index: {}]  }
   0x1 LB: > { %s1647_s16 = sadd.s32 4294967295, %s2100_s15   ;;  %p1651_p0 = scmp.ge.s32.totalorder %s2100_s15, 1  ;;  %s2100_s15 = sphi %s2127_s15, %s14_s15  }
   0x2   : > { %p162_p1 = scmp.lt.s32.totalorder %s2100_s15, 3 }
   0x4   : > { %p163_p2 = pnand %p1651_p0, %p162_p1 }
   0x5   : > { %v2013_v0 = vld [vmem:[%s2586_s1 + $0x40] sm:$0xff] (!%p163_p2)   ;;  %v2017_v4 = vld [vmem:[%s2586_s1 + $0x48] sm:$0xff] (!%p163_p2)   ;;  %v2021_v8 = vld [vmem:[%s2586_s1 + $0x50] sm:$0xff] (!%p163_p2)   ;;  %p188_p3 = scmp.lt.s32.totalorder (!%p163_p2), %s1647_s16, 1  ;;  %vm498_vm0 = vcmask (!%p163_p2), 1042432   ;;  %vm499_vm1 = vcmask (!%p163_p2), 1046532  }
   0x6   : > { %166 = sbr.rel (%p163_p2) target bundleno = 333 (0x14d), region = 36  ;;  %v2014_v1 = vld [vmem:[%s2586_s1 + $0xc0] sm:$0xff] (!%p163_p2)   ;;  %1792 = vmatprep.subr.bf16.mxu0 (!%p163_p2), %v2013_v0  ;;  %v2018_v5 = vld [vmem:[%s2586_s1 + $0xc8] sm:$0xff] (!%p163_p2)   ;;  %v2022_v9 = vld [vmem:[%s2586_s1 + $0xd0] sm:$0xff] (!%p163_p2)   ;;  %vm279_vm2 = vsmask.f32 (!%p163_p2), 3328 }
   0x7   : > { %v2015_v2 = vld [vmem:[%s2586_s1] sm:$0xff] (!%p163_p2)   ;;  %1832 = vmatprep.subr.bf16.mxu1 (!%p163_p2), %v2014_v1  ;;  %v2019_v6 = vld [vmem:[%s2586_s1 + $0x8] sm:$0xff] (!%p163_p2)   ;;  %v2023_v10 = vld [vmem:[%s2586_s1 + $0x10] sm:$0xff] (!%p163_p2)   ;;  %vm280_vm3 = vsmask.f32 (!%p163_p2), 7440 }
   0x8   : > { %v2016_v3 = vld [vmem:[%s2586_s1 + $0x80] sm:$0xff] (!%p163_p2)   ;;  %1793 = vmatpush3.bf16.msra.mxu0 (!%p163_p2), %v2015_v2  ;;  %v2020_v7 = vld [vmem:[%s2586_s1 + $0x88] sm:$0xff] (!%p163_p2)   ;;  %v2024_v11 = vld [vmem:[%s2586_s1 + $0x90] sm:$0xff] (!%p163_p2)  }
   0x9   : > { %1833 = vmatpush3.bf16.msra.mxu1 (!%p163_p2), %v2016_v3  ;;  %1794 = vmatprep.subr.bf16.mxu0 (!%p163_p2), %v2017_v4  ;;  %v2025_v12 = vld [vmem:[%s2586_s1 + $0x58] sm:$0xff] (!%p163_p2)   ;;  %v2029_v16 = vld [vmem:[%s2586_s1 + $0x60] sm:$0xff] (!%p163_p2)   ;;  %v2033_v20 = vld [vmem:[%s2586_s1 + $0x68] sm:$0xff] (!%p163_p2)  }
   0xa   : > { %1834 = vmatprep.subr.bf16.mxu1 (!%p163_p2), %v2018_v5  ;;  %v2026_v13 = vld [vmem:[%s2586_s1 + $0xd8] sm:$0xff] (!%p163_p2)   ;;  %v2030_v17 = vld [vmem:[%s2586_s1 + $0xe0] sm:$0xff] (!%p163_p2)   ;;  %v2034_v21 = vld [vmem:[%s2586_s1 + $0xe8] sm:$0xff] (!%p163_p2)  }
   0xb   : > { %v2027_v14 = vld [vmem:[%s2586_s1 + $0x18] sm:$0xff] (!%p163_p2)   ;;  %v2031_v18 = vld [vmem:[%s2586_s1 + $0x20] sm:$0xff] (!%p163_p2)   ;;  %v2035_v22 = vld [vmem:[%s2586_s1 + $0x28] sm:$0xff] (!%p163_p2)  }
   0xc   : > { %1795 = vmatpush3.bf16.msra.mxu0 (!%p163_p2), %v2019_v6  ;;  %v2028_v15 = vld [vmem:[%s2586_s1 + $0x98] sm:$0xff] (!%p163_p2)   ;;  %v2032_v19 = vld [vmem:[%s2586_s1 + $0xa0] sm:$0xff] (!%p163_p2)   ;;  %v2036_v23 = vld [vmem:[%s2586_s1 + $0xa8] sm:$0xff] (!%p163_p2)  }
   0xd   : > { %1835 = vmatpush3.bf16.msra.mxu1 %v2020_v7  ;;  %1796 = vmatprep.subr.bf16.mxu0 %v2021_v8  ;;  %s2595_s16 = smov (!%p188_p3, %s1647_s16), 1  ;;  %v2037_v24 = vld [vmem:[%s2586_s1 + $0x70] sm:$0xff]   ;;  %v2041_v28 = vld [vmem:[%s2586_s1 + $0x78] sm:$0xff]   ;;  %vm2255_vm4 = vmor %vm279_vm2, %vm280_vm3 }
   0xe   : > { %1836 = vmatprep.subr.bf16.mxu1 %v2022_v9  ;;  %v2038_v25 = vld [vmem:[%s2586_s1 + $0xf0] sm:$0xff]   ;;  %s2004_s21 = smul.u32 80, %s2595_s16  ;;  %v2042_v29 = vld [vmem:[%s2586_s1 + $0xf8] sm:$0xff]   ;;  %v2048_v58 = vld [vmem:[%s2586_s1 + $0x140] sm:$0xff]   ;;  %s1768_s27 = sshll.u32 %s2595_s16, 5 }
   0xf   : > { %v2039_v26 = vld [vmem:[%s2586_s1 + $0x30] sm:$0xff]   ;;  %v2043_v30 = vld [vmem:[%s2586_s1 + $0x38] sm:$0xff]   ;;  %vm2270_vm5 = vmor %vm498_vm0, %vm499_vm1  ;;  %s197_s30 = scalar_lea.vmem %s2589_s4, %s1768_s27 }
  0x10   : > { %1797 = vmatpush3.bf16.msra.mxu0 %v2023_v10  ;;  %v2040_v27 = vld [vmem:[%s2586_s1 + $0xb0] sm:$0xff]   ;;  %s2235_s6 = scalar_lea.vmem %s2585_s0, %s2004_s21  ;;  %v2044_v31 = vld [vmem:[%s2586_s1 + $0xb8] sm:$0xff]   ;;  %v2049_v5 = vld [vmem:[%s2586_s1 + $0x1c0] sm:$0xff]  }
  0x11   : > { %1837 = vmatpush3.bf16.msra.mxu1 %v2024_v11  ;;  %1798 = vmatprep.subr.bf16.mxu0 %v2025_v12  ;;  %v259_v32 = vld [vmem:[%s2235_s6] sm:$0xf]  ;;  %v260_v33 = vld [vmem:[%s2235_s6 + $0x4] sm:$0x1]  ;;  %v261_v34 = vld [vmem:[%s2235_s6 + $0x8] sm:$0xf] }
  0x12   : > { %1838 = vmatprep.subr.bf16.mxu1 %v2026_v13  ;;  %v262_v35 = vld [vmem:[%s2235_s6 + $0xc] sm:$0x1]  ;;  %v263_v36 = vld [vmem:[%s2235_s6 + $0x10] sm:$0xf]  ;;  %v283_v37 = vshrl.u32 %v259_v32, 16  ;;  %v286_v38 = vshll.u32 %v259_v32, 16 }
  0x13   : > { %v292_v39 = vshll.u32 %v260_v33, 16  ;;  %v297_v40 = vshrl.u32 %v261_v34, 16  ;;  %v300_v41 = vshll.u32 %v261_v34, 16  ;;  %v306_v42 = vshll.u32 %v262_v35, 16  ;;  %v200_v47 = vld [vmem:[%s2235_s6 + $0x8] sm:$0xf] }
  0x14   : > { %1799 = vmatpush3.bf16.msra.mxu0 %v2027_v14  ;;  %v285_v43 = vrot.slane %v283_v37, 4  ;;  %v288_v44 = vrot.slane %v286_v38, 5  ;;  %v311_v45 = vshrl.u32 %v263_v36, 16  ;;  %v314_v46 = vshll.u32 %v263_v36, 16  ;;  %v264_v48 = vld [vmem:[%s2235_s6 + $0x14] sm:$0x1] }
  0x15   : > { %1839 = vmatpush3.bf16.msra.mxu1 %v2028_v15  ;;  %1800 = vmatprep.subr.bf16.mxu0 %v2029_v16  ;;  %v299_v49 = vrot.slane %v297_v40, 4  ;;  %v302_v50 = vrot.slane %v300_v41, 5  ;;  %v2251_v51 = vld [vmem:[%s2235_s6 + $0x10] sm:$0xf]  ;;  %v294_v54 = vrot.slane %v292_v39, 5  ;;  %v308_v55 = vrot.slane %v306_v42, 5 }
  0x16   : > { %1840 = vmatprep.subr.bf16.mxu1 %v2030_v17  ;;  %v289_v53 = vor.u32 %v288_v44, %v285_v43  ;;  %v313_v56 = vrot.slane %v311_v45, 4  ;;  %v199_v57 = vld [vmem:[%s2235_s6] sm:$0xf]  ;;  %v1659_v60 = vcombine.low %v200_v47, %v2251_v51  ;;  %v463_v62 = vld [vmem:[%s2235_s6 + $0x4] sm:$0x1]  ;;  %v316_v1 = vrot.slane %v314_v46, 5 }
  0x17   : > { %v303_v59 = vor.u32 %v302_v50, %v299_v49  ;;  %v462_v61 = vld [vmem:[%s2235_s6] sm:$0xe]  ;;  %v464_v63 = vld [vmem:[%s2235_s6 + $0x8] sm:$0xe]  ;;  %v465_v2 = vld [vmem:[%s2235_s6 + $0xc] sm:$0x1]  ;;  %v1655_v14 = vcombine.low %v199_v57, %v200_v47 }
  0x18   : > { %1801 = vmatpush3.bf16.msra.mxu0 %v2031_v18  ;;  %v290_v0 = vrot.slane %v289_v53, 4  ;;  %v1673_v4 = vrot.slane %v462_v61, 9  ;;  %1294 = vmatprep.mubr.bf16.mxu1 %v1659_v60  ;;  %v503_v7 = vrot.slane %v463_v62, 5  ;;  %v1674_v8 = vrot.slane %v464_v63, 9  ;;  %v2050_v12 = vld [vmem:[%s2586_s1 + $0x100] sm:$0xff]   ;;  %v2057_v36 = vld [vmem:[%s2586_s1 + $0x150] sm:$0xff]  }
  0x19   : > { %1841 = vmatpush3.bf16.msra.mxu1 %v2032_v19  ;;  %1802 = vmatprep.subr.bf16.mxu0 %v2033_v20  ;;  %v304_v6 = vrot.slane %v303_v59, 4  ;;  %v507_v9 = vrot.slane %v465_v2, 5  ;;  %v320_v11 = vshll.u32 %v264_v48, 16  ;;  %v317_v17 = vor.u32 %v316_v1, %v313_v56  ;;  %v2051_v20 = vld [vmem:[%s2586_s1 + $0x180] sm:$0xff]   ;;  %v466_v35 = vld [vmem:[%s2235_s6 + $0x10] sm:$0xe] }
  0x1a   : > { %1842 = vmatprep.subr.bf16.mxu1 %v2034_v21  ;;  %v295_v10 = vsel %vm2255_vm4, %v290_v0, %v294_v54  ;;  %v504_v15 = vsel %vm2270_vm5, %v1673_v4, %v503_v7  ;;  %v202_v21 = vld [vmem:[%s2235_s6 + $0x18] sm:$0xf]  ;;  %v467_v37 = vld [vmem:[%s2235_s6 + $0x14] sm:$0x1]  ;;  %v469_v39 = vld [vmem:[%s2235_s6 + $0x1c] sm:$0x1] }
  0x1b   : > { %v2284_v13 = vsel %vm2255_vm4, %v304_v6, %v308_v55  ;;  %v2290_v16 = vsel %vm2270_vm5, %v1674_v8, %v507_v9  ;;  %v468_v38 = vld [vmem:[%s2235_s6 + $0x18] sm:$0xe]  ;;  %v1675_v43 = vrot.slane %v466_v35, 9  ;;  %v511_v44 = vrot.slane %v467_v37, 5  ;;  %v2058_v47 = vld [vmem:[%s2586_s1 + $0x1d0] sm:$0xff]   ;;  %v2069_v37 = vld [vmem:[%s2586_s1 + $0x120] sm:$0xff]  }
  0x1c   : > { %1803 = vmatpush3.bf16.msra.mxu0 %v2035_v22  ;;  %v1664_v18 = vcombine.low %v295_v10, %v2284_v13  ;;  %v1681_v19 = vcombine.low %v504_v15, %v2290_v16  ;;  %v2052_v22 = vld [vmem:[%s2586_s1 + $0x148] sm:$0xff]   ;;  %v1676_v45 = vrot.slane %v468_v38, 9  ;;  %v515_v46 = vrot.slane %v469_v39, 5  ;;  %v2059_v53 = vld [vmem:[%s2586_s1 + $0x110] sm:$0xff]   ;;  %v2062_v61 = vld [vmem:[%s2586_s1 + $0x1d8] sm:$0xff]  }
  0x1d   : > { %1843 = vmatpush3.bf16.msra.mxu1 %v2036_v23  ;;  %1804 = vmatprep.subr.bf16.mxu0 %v2037_v24  ;;  %v2053_v23 = vld [vmem:[%s2586_s1 + $0x1c8] sm:$0xff]   ;;  %v322_v24 = vrot.slane %v320_v11, 5  ;;  %v2328_v49 = vsel %vm2270_vm5, %v1675_v43, %v511_v44  ;;  %v2060_v57 = vld [vmem:[%s2586_s1 + $0x190] sm:$0xff]   ;;  %v2352_v59 = vcombine.low %v2251_v51, %v202_v21  ;;  %v2063_v51 = vld [vmem:[%s2586_s1 + $0x118] sm:$0xff]  }
  0x1e   : > { %1844 = vmatprep.subr.bf16.mxu1 %v2038_v25  ;;  %1229 = vmatprep.mubr.bf16.mxu0 %v1664_v18  ;;  %v2054_v25 = vld [vmem:[%s2586_s1 + $0x108] sm:$0xff]   ;;  %v2332_v50 = vsel %vm2270_vm5, %v1676_v45, %v515_v46  ;;  %v2064_v63 = vld [vmem:[%s2586_s1 + $0x198] sm:$0xff]   ;;  %v267_v0 = vld [vmem:[%s2235_s6 + $0x20] sm:$0xf] }
  0x1f   : > { %v2343_v56 = vcombine.low %v2328_v49, %v2332_v50  ;;  %v268_v1 = vld [vmem:[%s2235_s6 + $0x24] sm:$0x1]  ;;  %v269_v2 = vld [vmem:[%s2235_s6 + $0x28] sm:$0xf]  ;;  %v270_v4 = vld [vmem:[%s2235_s6 + $0x2c] sm:$0x1] }
  0x20   : > { %1805 = vmatpush3.bf16.msra.mxu0 %v2039_v26  ;;  %v318_v26 = vrot.slane %v317_v17, 4  ;;  %v342_v6 = vshll.u32 %v267_v0, 16  ;;  %v348_v7 = vshll.u32 %v268_v1, 16  ;;  %v353_v8 = vshrl.u32 %v269_v2, 16  ;;  %v204_v9 = vld [vmem:[%s2235_s6 + $0x28] sm:$0xf] }
  0x21   : > { %1845 = vmatpush3.bf16.msra.mxu1 %v2040_v27  ;;  %1806 = vmatprep.subr.bf16.mxu0 %v2041_v28  ;;  %v2055_v27 = vld [vmem:[%s2586_s1 + $0x188] sm:$0xff]   ;;  %v265_v28 = vld [vmem:[%s2235_s6 + $0x18] sm:$0xf]  ;;  %v356_v10 = vshll.u32 %v269_v2, 16  ;;  %v362_v11 = vshll.u32 %v270_v4, 16  ;;  %v2092_v52 = vld [vmem:[%s2586_s1 + $0x230] sm:$0xff]  }
  0x22   : > { %1846 = vmatprep.subr.bf16.mxu1 %v2042_v29  ;;  %v266_v29 = vld [vmem:[%s2235_s6 + $0x1c] sm:$0x1]  ;;  %v328_v32 = vshll.u32 %v265_v28, 16  ;;  %v2339_v54 = vsel %vm2255_vm4, %v318_v26, %v322_v24  ;;  %v344_v17 = vrot.slane %v342_v6, 5  ;;  %v350_v18 = vrot.slane %v348_v7, 5  ;;  %v2071_v45 = vld [vmem:[%s2586_s1 + $0x168] sm:$0xff]  }
  0x23   : > { %v334_v33 = vshll.u32 %v266_v29, 16  ;;  %v472_v24 = vld [vmem:[%s2235_s6 + $0x28] sm:$0xe]  ;;  %v206_v4 = vld [vmem:[%s2235_s6 + $0x38] sm:$0xf] }
  0x24   : > { %1807 = vmatpush3.bf16.msra.mxu0 %v2043_v30  ;;  %v2313_v30 = vld [vmem:[%s2235_s6 + $0x20] sm:$0xf]  ;;  %v330_v41 = vrot.slane %v328_v32, 5  ;;  %v1678_v29 = vrot.slane %v472_v24, 9 }
  0x25   : > { %1847 = vmatpush3.bf16.msra.mxu1 %v2044_v31  ;;  %1872 = vmatprep.subr.bf16.mxu0 %v2048_v58  ;;  %v325_v31 = vshrl.u32 %v265_v28, 16  ;;  %v1660_v34 = vcombine.low %v202_v21, %v2313_v30  ;;  %v336_v42 = vrot.slane %v334_v33, 5  ;;  %v2061_v58 = vld [vmem:[%s2586_s1 + $0x158] sm:$0xff]   ;;  %v358_v21 = vrot.slane %v356_v10, 5  ;;  %v2447_v7 = vld [vmem:[%s2235_s6 + $0x40] sm:$0xf] }
  0x26   : > { %1912 = vmatprep.subr.bf16.mxu1 %v2049_v5  ;;  %v339_v5 = vshrl.u32 %v267_v0, 16  ;;  %v2420_v44 = vcombine.low %v2313_v30, %v204_v9  ;;  %v2073_v30 = vld [vmem:[%s2586_s1 + $0x128] sm:$0xff]  }
  0x27   : > { %1230 = vmatmul.mubr.bf16.vlgmr.msra.gmra.mrb[0].mxu0 %v1655_v14  ;;  %v327_v40 = vrot.slane %v325_v31, 4  ;;  %v470_v14 = vld [vmem:[%s2235_s6 + $0x20] sm:$0xe] }
  0x28   : > { %1295 = vmatmul.mubr.bf16.vlgmr.msra.gmra.mrb[0].mxu1 %v1681_v19  ;;  %1873 = vmatpush3.bf16.msra.mxu0 %v2050_v12  ;;  %v2380_v12 = vld [vmem:[%s2235_s6 + $0x30] sm:$0xf]  ;;  %v341_v15 = vrot.slane %v339_v5, 4  ;;  %v355_v19 = vrot.slane %v353_v8, 4  ;;  %v2067_v31 = vld [vmem:[%s2586_s1 + $0x160] sm:$0xff]  }
  0x29   : > { %1913 = vmatpush3.bf16.msra.mxu1 %v2051_v20  ;;  %1874 = vmatprep.subr.bf16.mxu0 %v2052_v22  ;;  %v331_v48 = vor.u32 %v330_v41, %v327_v40  ;;  %v471_v20 = vld [vmem:[%s2235_s6 + $0x24] sm:$0x1]  ;;  %v364_v22 = vrot.slane %v362_v11, 5  ;;  %v474_v8 = vld [vmem:[%s2235_s6 + $0x30] sm:$0xe] }
  0x2a   : > { %1914 = vmatprep.subr.bf16.mxu1 %v2053_v23  ;;  %1302 = vmatprep.mubr.bf16.mxu1 %v1660_v34  ;;  %v1661_v23 = vcombine.low %v204_v9, %v2380_v12  ;;  %v345_v26 = vor.u32 %v344_v17, %v341_v15  ;;  %v519_v28 = vrot.slane %v471_v20, 5  ;;  %v359_v32 = vor.u32 %v358_v21, %v355_v19  ;;  %v2068_v34 = vld [vmem:[%s2586_s1 + $0x1e0] sm:$0xff]   ;;  %v475_v15 = vld [vmem:[%s2235_s6 + $0x34] sm:$0x1]  ;;  %v476_v19 = vld [vmem:[%s2235_s6 + $0x38] sm:$0xe] }
  0x2b   : > { %v332_v55 = vrot.slane %v331_v48, 4  ;;  %v2070_v40 = vld [vmem:[%s2586_s1 + $0x1a0] sm:$0xff]   ;;  %v2074_v48 = vld [vmem:[%s2586_s1 + $0x1a8] sm:$0xff]   ;;  %v477_v20 = vld [vmem:[%s2235_s6 + $0x3c] sm:$0x1]  ;;  %v1679_v21 = vrot.slane %v474_v8, 9 }
  0x2c   : > { %1875 = vmatpush3.bf16.msra.mxu0 %v2054_v25  ;;  %v473_v25 = vld [vmem:[%s2235_s6 + $0x2c] sm:$0x1]  ;;  %v346_v35 = vrot.slane %v345_v26, 4  ;;  %v360_v38 = vrot.slane %v359_v32, 4  ;;  %v1680_v24 = vrot.slane %v476_v19, 9  ;;  %v2078_v32 = vld [vmem:[%s2586_s1 + $0x1f0] sm:$0xff]  }
  0x2d   : > { %1915 = vmatpush3.bf16.msra.mxu1 %v2055_v27  ;;  %1876 = vmatprep.subr.bf16.mxu0 %v2057_v36  ;;  %v2356_v60 = vsel %vm2255_vm4, %v332_v55, %v336_v42  ;;  %v1677_v27 = vrot.slane %v470_v14, 9  ;;  %v523_v33 = vrot.slane %v473_v25, 5  ;;  %v272_v55 = vld [vmem:[%s2235_s6 + $0x34] sm:$0x1]  ;;  %v531_v25 = vrot.slane %v477_v20, 5 }
  0x2e   : > { %1916 = vmatprep.subr.bf16.mxu1 %v2058_v47  ;;  %v2364_v62 = vcombine.low %v2339_v54, %v2356_v60  ;;  %v2409_v41 = vsel %vm2255_vm4, %v346_v35, %v350_v18  ;;  %v2417_v43 = vsel %vm2255_vm4, %v360_v38, %v364_v22  ;;  %v2072_v47 = vld [vmem:[%s2586_s1 + $0x1e8] sm:$0xff]   ;;  %v1662_v18 = vcombine.low %v206_v4, %v2447_v7  ;;  %v2079_v35 = vld [vmem:[%s2586_s1 + $0x130] sm:$0xff]  }
  0x2f   : > { %v2395_v36 = vsel %vm2270_vm5, %v1677_v27, %v519_v28  ;;  %v2402_v39 = vsel %vm2270_vm5, %v1678_v29, %v523_v33  ;;  %v2427_v46 = vcombine.low %v2409_v41, %v2417_v43  ;;  %v527_v22 = vrot.slane %v475_v15, 5  ;;  %v2077_v28 = vld [vmem:[%s2586_s1 + $0x170] sm:$0xff]  }
  0x30   : > { %1877 = vmatpush3.bf16.msra.mxu0 %v2059_v53  ;;  %1303 = vmatmul.mubr.bf16.gmra.mrb[4].mxu1 %v2343_v56  ;;  %v2413_v42 = vcombine.low %v2395_v36, %v2402_v39  ;;  %v271_v53 = vld [vmem:[%s2235_s6 + $0x30] sm:$0xf]  ;;  %v2484_v38 = vcombine.low %v2380_v12, %v206_v4  ;;  %v2082_v12 = vld [vmem:[%s2586_s1 + $0x1f8] sm:$0xff]  }
  0x31   : > { %1917 = vmatpush3.bf16.msra.mxu1 %v2060_v57  ;;  %1878 = vmatprep.subr.bf16.mxu0 %v2061_v58  ;;  %v273_v57 = vld [vmem:[%s2235_s6 + $0x38] sm:$0xf]  ;;  %v274_v58 = vld [vmem:[%s2235_s6 + $0x3c] sm:$0x1]  ;;  %v2456_v27 = vsel %vm2270_vm5, %v1679_v21, %v527_v22  ;;  %v2090_v21 = vld [vmem:[%s2586_s1 + $0x228] sm:$0xff]  }
  0x32   : > { %1918 = vmatprep.subr.bf16.mxu1 %v2062_v61  ;;  %1237 = vmatprep.mubr.bf16.mxu0 %v2364_v62  ;;  %v367_v61 = vshrl.u32 %v271_v53, 16  ;;  %v381_v0 = vshrl.u32 %v273_v57, 16  ;;  %v384_v1 = vshll.u32 %v273_v57, 16  ;;  %v390_v2 = vshll.u32 %v274_v58, 16  ;;  %v2087_v57 = vld [vmem:[%s2586_s1 + $0x210] sm:$0xff]  }
  0x33   : > { %1238 = vmatmul.mubr.bf16.gmra.mrb[4].mxu0 %v2352_v59  ;;  %1310 = vmatprep.mubr.bf16.mxu1 %v1661_v23  ;;  %v275_v58 = vld [vmem:[%s2235_s6 + $0x40] sm:$0xf] }
  0x34   : > { %1879 = vmatpush3.bf16.msra.mxu0 %v2063_v51  ;;  %1245 = vmatprep.mubr.bf16.mxu0 %v2427_v46  ;;  %v370_v51 = vshll.u32 %v271_v53, 16  ;;  %v369_v5 = vrot.slane %v367_v61, 4  ;;  %v383_v10 = vrot.slane %v381_v0, 4  ;;  %v386_v11 = vrot.slane %v384_v1, 5  ;;  %v276_v61 = vld [vmem:[%s2235_s6 + $0x44] sm:$0x1] }
  0x35   : > { %1919 = vmatpush3.bf16.msra.mxu1 %v2064_v63  ;;  %1880 = vmatprep.subr.bf16.mxu0 %v2067_v31  ;;  %v376_v63 = vshll.u32 %v272_v55, 16  ;;  %v392_v14 = vrot.slane %v390_v2, 5  ;;  %v2463_v31 = vsel %vm2270_vm5, %v1680_v24, %v531_v25  ;;  %v1668_v53 = vcombine.low %v2284_v13, %v2339_v54  ;;  %v478_v13 = vld [vmem:[%s2235_s6 + $0x40] sm:$0xe]  ;;  %v277_v54 = vld [vmem:[%s2235_s6 + $0x48] sm:$0xf] }
  0x36   : > { %1920 = vmatprep.subr.bf16.mxu1 %v2068_v34  ;;  %v372_v6 = vrot.slane %v370_v51, 5  ;;  %v387_v23 = vor.u32 %v386_v11, %v383_v10  ;;  %v2474_v34 = vcombine.low %v2456_v27, %v2463_v31  ;;  %v1687_v55 = vcombine.low %v2332_v50, %v2395_v36  ;;  %v479_v50 = vld [vmem:[%s2235_s6 + $0x44] sm:$0x1]  ;;  %v2088_v0 = vld [vmem:[%s2586_s1 + $0x218] sm:$0xff]  }
  0x37   : > { %v378_v9 = vrot.slane %v376_v63, 5  ;;  %v415_v51 = vshrl.u32 %v275_v58, 16  ;;  %v418_v63 = vshll.u32 %v275_v58, 16  ;;  %v424_v36 = vshll.u32 %v276_v61, 16 }
  0x38   : > { %1881 = vmatpush3.bf16.msra.mxu0 %v2069_v37  ;;  %1311 = vmatmul.mubr.bf16.gmra.mrb[8].mxu1 %v2413_v42  ;;  %v373_v17 = vor.u32 %v372_v6, %v369_v5  ;;  %v388_v29 = vrot.slane %v387_v23, 4  ;;  %v445_v4 = vshll.u32 %v277_v54, 16  ;;  %v1669_v5 = vcombine.low %v2356_v60, %v2409_v41  ;;  %v2089_v60 = vld [vmem:[%s2586_s1 + $0x220] sm:$0xff]  }
  0x39   : > { %1921 = vmatpush3.bf16.msra.mxu1 %v2070_v40  ;;  %1882 = vmatprep.subr.bf16.mxu0 %v2071_v45  ;;  %v2080_v40 = vld [vmem:[%s2586_s1 + $0x1b0] sm:$0xff]   ;;  %v417_v1 = vrot.slane %v415_v51, 4  ;;  %v420_v2 = vrot.slane %v418_v63, 5  ;;  %v426_v11 = vrot.slane %v424_v36, 5  ;;  %v1685_v15 = vrot.slane %v478_v13, 9 }
  0x3a   : > { %1922 = vmatprep.subr.bf16.mxu1 %v2072_v47  ;;  %v374_v26 = vrot.slane %v373_v17, 4  ;;  %1318 = vmatprep.mubr.bf16.mxu1 %v1662_v18  ;;  %v2481_v37 = vsel %vm2255_vm4, %v388_v29, %v392_v14  ;;  %v2081_v47 = vld [vmem:[%s2586_s1 + $0x178] sm:$0xff]   ;;  %v447_v14 = vrot.slane %v445_v4, 5  ;;  %v557_v17 = vrot.slane %v479_v50, 5 }
  0x3b   : > { %1246 = vmatmul.mubr.bf16.gmra.mrb[8].mxu0 %v2420_v44  ;;  %v421_v10 = vor.u32 %v420_v2, %v417_v1 }
  0x3c   : > { %1883 = vmatpush3.bf16.msra.mxu0 %v2073_v30  ;;  %v2470_v33 = vsel %vm2255_vm4, %v374_v26, %v378_v9  ;;  %v1686_v30 = vcombine.low %v2290_v16, %v2328_v49  ;;  %v2084_v16 = vld [vmem:[%s2586_s1 + $0x1b8] sm:$0xff]   ;;  %v2085_v49 = vld [vmem:[%s2586_s1 + $0x200] sm:$0xff]   ;;  %v1688_v9 = vcombine.low %v2402_v39, %v2456_v27  ;;  %v558_v20 = vsel %vm2270_vm5, %v1685_v15, %v557_v17  ;;  %v208_v26 = vld [vmem:[%s2235_s6 + $0x48] sm:$0xf] }
  0x3d   : > { %1923 = vmatpush3.bf16.msra.mxu1 %v2074_v48  ;;  %1884 = vmatprep.subr.bf16.mxu0 %v2077_v28  ;;  %v1667_v45 = vcombine.low %v2470_v33, %v2481_v37  ;;  %v2083_v48 = vld [vmem:[%s2586_s1 + $0x138] sm:$0xff]   ;;  %v422_v41 = vrot.slane %v421_v10, 4  ;;  %v1670_v23 = vcombine.low %v2417_v43, %v2470_v33  ;;  %v1689_v25 = vcombine.low %v2463_v31, %v558_v20  ;;  %v480_v27 = vld [vmem:[%s2235_s6 + $0x48] sm:$0xe]  ;;  %v481_v28 = vld [vmem:[%s2235_s6 + $0x4c] sm:$0x1] }
  0x3e   : > { %1924 = vmatprep.subr.bf16.mxu1 %v2078_v32  ;;  %v1663_v43 = vcombine.low %v2447_v7, %v208_v26  ;;  %v1690_v29 = vrot.slane %v480_v27, 9  ;;  %v576_v31 = vrot.slane %v481_v28, 5  ;;  %v2093_v32 = vld [vmem:[%s2586_s1 + $0x238] sm:$0xff]  }
  0x3f   : > { %1253 = vmatprep.mubr.bf16.mxu0 %v1667_v45  ;;  %v427_v39 = vsel %vm2255_vm4, %v422_v41, %v426_v11 }
  0x40   : > { %1319 = vmatmul.mubr.bf16.gmra.mrb[12].mxu1 %v2474_v34  ;;  %1885 = vmatpush3.bf16.msra.mxu0 %v2079_v35  ;;  %v1671_v33 = vcombine.low %v2481_v37, %v427_v39  ;;  %v577_v35 = vsel %vm2270_vm5, %v1690_v29, %v576_v31 }
  0x41   : > { %1925 = vmatpush3.bf16.msra.mxu1 %v2080_v40  ;;  %1424 = vmatprep.mubr.bf16.mxu1 %v2364_v62  ;;  %v2086_v62 = vld [vmem:[%s2586_s1 + $0x208] sm:$0xff]   ;;  %v1691_v7 = vcombine.low %v558_v20, %v577_v35 }
  0x42   : > { %1886 = vmatprep.subr.bf16.mxu0 %v2081_v47  ;;  %1926 = vmatprep.subr.bf16.mxu1 %v2082_v12 }
  0x43   : > { %1254 = vmatmul.mubr.bf16.gmra.mrb[12].mxu0 %v2484_v38 }
  0x44   : > { %1887 = vmatpush3.bf16.msra.mxu0 %v2083_v48  ;;  %1359 = vmatprep.mubr.bf16.mxu0 %v1686_v30 }
  0x45   : > { %1927 = vmatpush3.bf16.msra.mxu1 %v2084_v16  ;;  %1964 = vmatprep.subr.bf16.mxu0 %v2085_v49 }
  0x46   : > { %1988 = vmatprep.subr.bf16.mxu1 %v2085_v49 }
  0x48   : > { %1425 = vmatmul.mubr.bf16.vlgmr.msra.gmra.mrb[16].mxu1 %v2352_v59  ;;  %v278_v59 = vld [vmem:[%s2235_s6 + $0x4c] sm:$0x1] }
  0x49   : > { %1996 = vmatpush3.bf16.msra.mxu1 %v2085_v49  ;;  %1432 = vmatprep.mubr.bf16.mxu1 %v2427_v46  ;;  %v442_v46 = vshrl.u32 %v277_v54, 16  ;;  %v451_v8 = vshll.u32 %v278_v59, 16 }
  0x4a   : > { %1989 = vmatprep.subr.bf16.mxu1 %v2086_v62 }
  0x4b   : > { %1360 = vmatmul.mubr.bf16.vlgmr.msra.gmra.mrb[16].mxu0 %v1668_v53  ;;  %v444_v6 = vrot.slane %v442_v46, 4  ;;  %v453_v19 = vrot.slane %v451_v8, 5 }
  0x4c   : > { %1965 = vmatpush3.bf16.msra.mxu0 %v2085_v49  ;;  %1367 = vmatprep.mubr.bf16.mxu0 %v1687_v55 }
  0x4d   : > { %1966 = vmatprep.subr.bf16.mxu0 %v2086_v62  ;;  %1997 = vmatpush3.bf16.msra.mxu1 %v2086_v62  ;;  %v448_v18 = vor.u32 %v447_v14, %v444_v6 }
  0x4e   : > { %1990 = vmatprep.subr.bf16.mxu1 %v2087_v57 }
  0x50   : > { %1967 = vmatpush3.bf16.msra.mxu0 %v2086_v62  ;;  %1433 = vmatmul.mubr.bf16.gmra.mrb[20].mxu1 %v2420_v44  ;;  %v449_v44 = vrot.slane %v448_v18, 4 }
  0x51   : > { %1968 = vmatprep.subr.bf16.mxu0 %v2087_v57  ;;  %1998 = vmatpush3.bf16.msra.mxu1 %v2087_v57 }
  0x52   : > { %1991 = vmatprep.subr.bf16.mxu1 %v2088_v0  ;;  %1440 = vmatprep.mubr.bf16.mxu1 %v1667_v45  ;;  %v454_v22 = vsel %vm2255_vm4, %v449_v44, %v453_v19 }
  0x53   : > { %1368 = vmatmul.mubr.bf16.gmra.mrb[20].mxu0 %v1669_v5  ;;  %v1672_v24 = vcombine.low %v427_v39, %v454_v22 }
  0x54   : > { %1969 = vmatpush3.bf16.msra.mxu0 %v2087_v57  ;;  %1375 = vmatprep.mubr.bf16.mxu0 %v1688_v9 }
  0x55   : > { %1970 = vmatprep.subr.bf16.mxu0 %v2088_v0  ;;  %1999 = vmatpush3.bf16.msra.mxu1 %v2088_v0 }
  0x56   : > { %1992 = vmatprep.subr.bf16.mxu1 %v2089_v60 }
  0x58   : > { %1971 = vmatpush3.bf16.msra.mxu0 %v2088_v0  ;;  %1441 = vmatmul.mubr.bf16.gmra.mrb[24].mxu1 %v2484_v38 }
  0x59   : > { %1972 = vmatprep.subr.bf16.mxu0 %v2089_v60  ;;  %2000 = vmatpush3.bf16.msra.mxu1 %v2089_v60 }
  0x5a   : > { %1993 = vmatprep.subr.bf16.mxu1 %v2090_v21  ;;  %1448 = vmatprep.mubr.bf16.mxu1 %v1672_v24 }
  0x5b   : > { %1376 = vmatmul.mubr.bf16.gmra.mrb[24].mxu0 %v1670_v23 }
  0x5c   : > { %1973 = vmatpush3.bf16.msra.mxu0 %v2089_v60  ;;  %1383 = vmatprep.mubr.bf16.mxu0 %v1689_v25 }
  0x5d   : > { %1974 = vmatprep.subr.bf16.mxu0 %v2090_v21  ;;  %2001 = vmatpush3.bf16.msra.mxu1 %v2090_v21 }
  0x5e   : > { %1994 = vmatprep.subr.bf16.mxu1 %v2092_v52 }
  0x60   : > { %1975 = vmatpush3.bf16.msra.mxu0 %v2090_v21  ;;  %1449 = vmatmul.mubr.bf16.gmra.mrb[28].mxu1 %v1663_v43 }
  0x61   : > { %1976 = vmatprep.subr.bf16.mxu0 %v2092_v52  ;;  %2002 = vmatpush3.bf16.msra.mxu1 %v2092_v52 }
  0x62   : > { %1995 = vmatprep.subr.bf16.mxu1 %v2093_v32  ;;  %1984 = vmatprep.mubr.bf16.mxu1 %v2474_v34 }
  0x63   : > { %1384 = vmatmul.mubr.bf16.gmra.mrb[28].mxu0 %v1671_v33 }
  0x64   : > { %1977 = vmatpush3.bf16.msra.mxu0 %v2092_v52  ;;  %1980 = vmatprep.mubr.bf16.mxu0 %v2343_v56 }
  0x65   : > { %1978 = vmatprep.subr.bf16.mxu0 %v2093_v32  ;;  %2003 = vmatpush3.bf16.msra.mxu1 %v2093_v32 }
  0x68   : > { %1979 = vmatpush3.bf16.msra.mxu0 %v2093_v32  ;;  %1985 = vmatmul.mubr.bf16.vlgmr.msra.gmra.mrb[32].mxu1 %v1691_v7 }
  0x6b   : > { %1981 = vmatmul.mubr.bf16.vlgmr.msra.gmra.mrb[32].mxu0 %v2413_v42 }
  0xfa   : > { %v1808_v38 = vpop.f32.mrb[0].mxu0 }
  0xfb   : > { %v1848_v37 = vpop.f32.mrb[0].mxu1  ;;  %v1809_v40 = vpop.f32.mrb[1].mxu0 }
  0xfc   : > { %v1849_v3 = vpop.f32.mrb[1].mxu1  ;;  %v1810_v30 = vadd.f32 %v1809_v40, %v1808_v38  ;;  %v1811_v12 = vpop.f32.mrb[2].mxu0 }
  0xfd   : > { %v1850_v45 = vadd.f32 %v1849_v3, %v1848_v37  ;;  %v1851_v47 = vpop.f32.mrb[2].mxu1  ;;  %v1812_v48 = vpop.f32.mrb[3].mxu0 }
  0xfe   : > { %v1852_v34 = vpop.f32.mrb[3].mxu1  ;;  %v1813_v62 = vadd.f32 %v1812_v48, %v1811_v12 }
  0xff   : > { %v1853_v16 = vadd.f32 %v1852_v34, %v1851_v47  ;;  %v1297_v49 = vadd.f32 %v1850_v45, %v1810_v30 }
 0x101   : > { %v1300_v56 = vadd.f32 %v1853_v16, %v1813_v62 }
 0x103   : > { %v1854_v53 = vpop.f32.mrb[4].mxu1 }
 0x104   : > { %v1855_v55 = vpop.f32.mrb[5].mxu1 }
 0x105   : > { %v1856_v57 = vadd.f32 %v1855_v55, %v1854_v53  ;;  %v1857_v58 = vpop.f32.mrb[6].mxu1 }
 0x106   : > { %v1858_v61 = vpop.f32.mrb[7].mxu1  ;;  %v1814_v42 = vpop.f32.mrb[4].mxu0 }
 0x107   : > { %v1859_v13 = vadd.f32 %v1858_v61, %v1857_v58  ;;  %v1815_v54 = vpop.f32.mrb[5].mxu0 }
 0x108   : > { %v1816_v59 = vadd.f32 %v1815_v54, %v1814_v42  ;;  %v1817_v51 = vpop.f32.mrb[6].mxu0 }
 0x109   : > { %v1818_v63 = vpop.f32.mrb[7].mxu0 }
 0x10a   : > { %v1305_v50 = vadd.f32 %v1856_v57, %v1816_v59  ;;  %v1819_v36 = vadd.f32 %v1818_v63, %v1817_v51 }
 0x10b   : > { %v1860_v0 = vpop.f32.mrb[8].mxu1 }
 0x10c   : > { %v1308_v46 = vadd.f32 %v1859_v13, %v1819_v36  ;;  %v1861_v1 = vpop.f32.mrb[9].mxu1 }
 0x10d   : > { %v1862_v2 = vadd.f32 %v1861_v1, %v1860_v0  ;;  %v1863_v4 = vpop.f32.mrb[10].mxu1 }
 0x10e   : > { %v1820_v5 = vpop.f32.mrb[8].mxu0  ;;  %v1864_v6 = vpop.f32.mrb[11].mxu1 }
 0x10f   : > { %v1821_v8 = vpop.f32.mrb[9].mxu0  ;;  %v1865_v9 = vadd.f32 %v1864_v6, %v1863_v4 }
 0x110   : > { %v1822_v10 = vadd.f32 %v1821_v8, %v1820_v5  ;;  %v1823_v11 = vpop.f32.mrb[10].mxu0 }
 0x111   : > { %v1824_v14 = vpop.f32.mrb[11].mxu0 }
 0x112   : > { %v1313_v15 = vadd.f32 %v1862_v2, %v1822_v10  ;;  %v1825_v17 = vadd.f32 %v1824_v14, %v1823_v11 }
 0x113   : > { %v1866_v41 = vpop.f32.mrb[12].mxu1 }
 0x114   : > { %v1316_v60 = vadd.f32 %v1865_v9, %v1825_v17  ;;  %v1867_v18 = vpop.f32.mrb[13].mxu1 }
 0x115   : > { %v1868_v19 = vadd.f32 %v1867_v18, %v1866_v41  ;;  %v1869_v39 = vpop.f32.mrb[14].mxu1 }
 0x116   : > { %v1826_v44 = vpop.f32.mrb[12].mxu0  ;;  %v1870_v20 = vpop.f32.mrb[15].mxu1 }
 0x117   : > { %v1827_v21 = vpop.f32.mrb[13].mxu0  ;;  %v1871_v22 = vadd.f32 %v1870_v20, %v1869_v39 }
 0x118   : > { %v1828_v23 = vadd.f32 %v1827_v21, %v1826_v44  ;;  %v1829_v24 = vpop.f32.mrb[14].mxu0 }
 0x119   : > { %v1830_v25 = vpop.f32.mrb[15].mxu0 }
 0x11a   : > { %v1321_v26 = vadd.f32 %v1868_v19, %v1828_v23  ;;  %v1831_v27 = vadd.f32 %v1830_v25, %v1829_v24 }
 0x11b   : > { %v1928_v28 = vpop.f32.mrb[16].mxu1 }
 0x11c   : > { %v1324_v52 = vadd.f32 %v1871_v22, %v1831_v27  ;;  %v1929_v43 = vpop.f32.mrb[17].mxu1 }
 0x11d   : > { %v1930_v29 = vadd.f32 %v1929_v43, %v1928_v28  ;;  %v1931_v31 = vpop.f32.mrb[18].mxu1 }
 0x11e   : > { %v1888_v32 = vpop.f32.mrb[16].mxu0  ;;  %v1932_v33 = vpop.f32.mrb[19].mxu1 }
 0x11f   : > { %v1889_v35 = vpop.f32.mrb[17].mxu0  ;;  %v1933_v7 = vadd.f32 %v1932_v33, %v1931_v31 }
 0x120   : > { %v1890_v37 = vadd.f32 %v1889_v35, %v1888_v32  ;;  %v1891_v38 = vpop.f32.mrb[18].mxu0 }
 0x121   : > { %v1892_v3 = vpop.f32.mrb[19].mxu0 }
 0x122   : > { %v1362_v40 = vadd.f32 %v1890_v37, %v1297_v49  ;;  %v1893_v45 = vadd.f32 %v1892_v3, %v1891_v38 }
 0x123   : > { %v1934_v47 = vpop.f32.mrb[20].mxu1 }
 0x124   : > { %v1365_v30 = vadd.f32 %v1893_v45, %v1300_v56  ;;  %v1935_v12 = vpop.f32.mrb[21].mxu1  ;;  %v1427_v34 = vadd.f32 %v1930_v29, %v1362_v40 }
 0x125   : > { %v1936_v48 = vadd.f32 %v1935_v12, %v1934_v47  ;;  %v1937_v16 = vpop.f32.mrb[22].mxu1 }
 0x126   : > { %v1894_v62 = vpop.f32.mrb[20].mxu0  ;;  %v1938_v53 = vpop.f32.mrb[23].mxu1  ;;  %v2569_v55 = vadd.f32 %v1933_v7, %v1365_v30  ;;  %v1765_v7 = vld [vmem:[%s2588_s3] ss:$0 sm:$0xff] }
 0x127   : > { %v1895_v57 = vpop.f32.mrb[21].mxu0  ;;  %v1939_v58 = vadd.f32 %v1938_v53, %v1937_v16 }
 0x128   : > { %v1896_v61 = vadd.f32 %v1895_v57, %v1894_v62  ;;  %v1897_v42 = vpop.f32.mrb[22].mxu0 }
 0x129   : > { %v1898_v13 = vpop.f32.mrb[23].mxu0 }
 0x12a   : > { %v1370_v54 = vadd.f32 %v1896_v61, %v1305_v50  ;;  %v1899_v59 = vadd.f32 %v1898_v13, %v1897_v42 }
 0x12b   : > { %v1940_v51 = vpop.f32.mrb[24].mxu1 }
 0x12c   : > { %v1373_v49 = vadd.f32 %v1899_v59, %v1308_v46  ;;  %v1941_v63 = vpop.f32.mrb[25].mxu1  ;;  %v1435_v36 = vadd.f32 %v1936_v48, %v1370_v54 }
 0x12d   : > { %v1942_v56 = vadd.f32 %v1941_v63, %v1940_v51  ;;  %v1943_v0 = vpop.f32.mrb[26].mxu1 }
 0x12e   : > { %v1900_v1 = vpop.f32.mrb[24].mxu0  ;;  %v1944_v2 = vpop.f32.mrb[27].mxu1  ;;  %v1438_v4 = vadd.f32 %v1939_v58, %v1373_v49 }
 0x12f   : > { %v1901_v5 = vpop.f32.mrb[25].mxu0  ;;  %v1945_v6 = vadd.f32 %v1944_v2, %v1943_v0 }
 0x130   : > { %v1902_v8 = vadd.f32 %v1901_v5, %v1900_v1  ;;  %v1903_v9 = vpop.f32.mrb[26].mxu0 }
 0x131   : > { %v1904_v10 = vpop.f32.mrb[27].mxu0 }
 0x132   : > { %v1378_v11 = vadd.f32 %v1902_v8, %v1313_v15  ;;  %v1905_v14 = vadd.f32 %v1904_v10, %v1903_v9  ;;  %v1764_v15 = vld [vmem:[%s2587_s2] ss:$0 sm:$0xff] }
 0x133   : > { %v1946_v17 = vpop.f32.mrb[28].mxu1 }
 0x134   : > { %v1381_v41 = vadd.f32 %v1905_v14, %v1316_v60  ;;  %v1947_v50 = vpop.f32.mrb[29].mxu1  ;;  %v1443_v18 = vadd.f32 %v1942_v56, %v1378_v11 }
 0x135   : > { %v1948_v19 = vadd.f32 %v1947_v50, %v1946_v17  ;;  %v1949_v46 = vpop.f32.mrb[30].mxu1 }
 0x136   : > { %v1906_v39 = vpop.f32.mrb[28].mxu0  ;;  %v1950_v44 = vpop.f32.mrb[31].mxu1  ;;  %v1446_v20 = vadd.f32 %v1945_v6, %v1381_v41 }
 0x137   : > { %v1907_v21 = vpop.f32.mrb[29].mxu0  ;;  %v1951_v22 = vadd.f32 %v1950_v44, %v1949_v46 }
 0x138   : > { %v1908_v23 = vadd.f32 %v1907_v21, %v1906_v39  ;;  %v1909_v24 = vpop.f32.mrb[30].mxu0 }
 0x139   : > { %v1910_v25 = vpop.f32.mrb[31].mxu0 }
 0x13a   : > { %v1386_v27 = vadd.f32 %v1908_v23, %v1321_v26  ;;  %v1911_v28 = vadd.f32 %v1910_v25, %v1909_v24 }
 0x13b   : > { %v1986_v43 = vpop.f32.mrb[32].mxu1 }
 0x13c   : > { %v1389_v29 = vadd.f32 %v1911_v28, %v1324_v52  ;;  %v1451_v60 = vadd.f32 %v1948_v19, %v1386_v27  ;;  %v1507_v31 = vpop.f32.mrb[33].mxu1 }
 0x13d   : > { %v1508_v32 = vadd.f32 %v1507_v31, %v1443_v18  ;;  %v1987_v33 = vpop.f32.mrb[34].mxu1 }
 0x13e   : > { %v1982_v35 = vpop.f32.mrb[32].mxu0  ;;  %v1516_v37 = vadd.f32 %v1986_v43, %v1451_v60  ;;  %v1454_v38 = vadd.f32 %v1951_v22, %v1389_v29  ;;  %v1510_v3 = vpop.f32.mrb[35].mxu1 }
 0x13f   : > { %v1500_v26 = vadd.f32 %v1982_v35, %v1435_v36  ;;  %v1491_v40 = vpop.f32.mrb[33].mxu0  ;;  %v1549_v45 = vmul.f32 %v1764_v15, %v1508_v32  ;;  %v1511_v52 = vadd.f32 %v1510_v3, %v1446_v20 }
 0x140   : > { %v1551_v47 = vmul.f32 %v1764_v15, %v1516_v37  ;;  %v1492_v30 = vadd.f32 %v1491_v40, %v1427_v34  ;;  %v1983_v12 = vpop.f32.mrb[34].mxu0  ;;  %v1519_v48 = vadd.f32 %v1987_v33, %v1454_v38 }
 0x141   : > { %v1547_v16 = vmul.f32 %v1764_v15, %v1500_v26  ;;  %v1564_v62 = vadd.f32 %v1765_v7, %v1549_v45  ;;  %v1503_v53 = vadd.f32 %v1983_v12, %v1438_v4  ;;  %v1494_v57 = vpop.f32.mrb[35].mxu0  ;;  %v1550_v58 = vmul.f32 %v1764_v15, %v1511_v52 }
 0x142   : > { %v1566_v61 = vadd.f32 %v1765_v7, %v1551_v47  ;;  %v1545_v42 = vmul.f32 %v1764_v15, %v1492_v30  ;;  %v1552_v13 = vmul.f32 %v1764_v15, %v1519_v48  ;;  %v1495_v54 = vadd.f32 %v1494_v57, %v2569_v55 }
 0x143   : > { %v1562_v59 = vadd.f32 %v1765_v7, %v1547_v16  ;;  %v1548_v51 = vmul.f32 %v1764_v15, %v1503_v53  ;;  %v1565_v49 = vadd.f32 %v1765_v7, %v1550_v58  ;;  %v1572_v34 = vmax.f32 %v1564_v62, 0.0 }
 0x144   : > { %v1560_v63 = vadd.f32 %v1765_v7, %v1545_v42  ;;  %v1567_v36 = vadd.f32 %v1765_v7, %v1552_v13  ;;  %v1546_v56 = vmul.f32 %v1764_v15, %v1495_v54  ;;  %v1574_v2 = vmax.f32 %v1566_v61, 0.0 }
 0x145   : > { %v1563_v0 = vadd.f32 %v1765_v7, %v1548_v51  ;;  %v1573_v1 = vmax.f32 %v1565_v49, 0.0  ;;  %v1570_v6 = vmax.f32 %v1562_v59, 0.0 }
 0x146   : > { %v1575_v4 = vmax.f32 %v1567_v36, 0.0  ;;  %v1561_v5 = vadd.f32 %v1765_v7, %v1546_v56  ;;  %v1568_v9 = vmax.f32 %v1560_v63, 0.0 }
 0x147   : > { %v1571_v8 = vmax.f32 %v1563_v0, 0.0  ;;  %v1782_v55 = vpack.c.bf16 %v1573_v1, %v1572_v34 }
 0x148   : > { %v1787_v10 = vpack.c.bf16 %v1575_v4, %v1574_v2  ;;  %v1569_v11 = vmax.f32 %v1561_v5, 0.0 }
 0x149   : > { %v1777_v14 = vpack.c.bf16 %v1571_v8, %v1570_v6  ;;  %1790 = vst [vmem:[%s197_s30 + $0x10] sm:$0xff] %v1782_v55  }
 0x14a   : > { %1791 = vst [vmem:[%s197_s30 + $0x18] sm:$0xff] %v1787_v10   ;;  %v1772_v17 = vpack.c.bf16 %v1569_v11, %v1568_v9 }
 0x14b   : > { %1789 = vst [vmem:[%s197_s30 + $0x8] sm:$0xff] %v1777_v14  }
 0x14c   : > { %1773 = vst [vmem:[%s197_s30] sm:$0xff] %v1772_v17  }
 0x14d PF: > { %s14_s15 = sadd.s32 1, %s2100_s15  }
 0x14e   : > { %p11_p4 = scmp.ge.s32.totalorder %s14_s15, 4  }
 0x150   :  { %13 = sbr.rel (!%p11_p4) target bundleno = 1 (0x1), region = 66 }

// kernel: decoder_forward.4
= control target key start
LH: loop header
LB: loop body
LE: loop exit
PB: predicated region body
PF: predicated region fallthrough
CT: control target
= control target key end

     0   :  { %s3959_s21 = smov 0   ;;  %s4904_s0 = inlined_call_operand.vmem [shape: bf16[2,10,10,128], index: 0, kind: input, shape index: {}]   ;;  %s4905_s1 = inlined_call_operand.vmem [shape: bf16[2,10,10,128], index: 1, kind: input, shape index: {}]   ;;  %s4906_s2 = inlined_call_operand.vmem [shape: bf16[1152,128], index: 2, kind: input, shape index: {}]   ;;  %s4907_s3 = inlined_call_operand.vmem [shape: bf16[1152,128], index: 3, kind: input, shape index: {}]   ;;  %s4908_s4 = inlined_call_operand.vmem [shape: f32[1,128], index: 4, kind: input, shape index: {}]   ;;  %s4909_s5 = inlined_call_operand.vmem [shape: f32[1,128], index: 5, kind: input, shape index: {}]   ;;  %s4910_s6 = inlined_call_operand.vmem [shape: bf16[2,8,8,128], index: 6, kind: output, shape index: {}]  }
   0x1 LB: > { %s3074_s22 = sadd.s32 4294967295, %s3922_s21   ;;  %p3078_p0 = scmp.ge.s32.totalorder %s3922_s21, 1  ;;  %s3922_s21 = sphi %s3959_s21, %s16_s21  }
   0x2   : > { %p222_p1 = scmp.lt.s32.totalorder %s3922_s21, 3 }
   0x4   : > { %p223_p2 = pnand %p3078_p0, %p222_p1 }
   0x5   : > { %v3754_v0 = vld [vmem:[%s4906_s2 + $0x40] sm:$0xff] (!%p223_p2)   ;;  %v3758_v4 = vld [vmem:[%s4906_s2 + $0x48] sm:$0xff] (!%p223_p2)   ;;  %v3762_v8 = vld [vmem:[%s4906_s2 + $0x50] sm:$0xff] (!%p223_p2)   ;;  %p257_p3 = scmp.lt.s32.totalorder (!%p223_p2), %s3074_s22, 1  ;;  %vm353_vm0 = vsmask.f32 (!%p223_p2), 3328 }
   0x6   : > { %226 = sbr.rel (%p223_p2) target bundleno = 434 (0x1b2), region = 44  ;;  %v3755_v1 = vld [vmem:[%s4906_s2 + $0x140] sm:$0xff] (!%p223_p2)   ;;  %3329 = vmatprep.subr.bf16.mxu1 (!%p223_p2), %v3754_v0  ;;  %v3759_v5 = vld [vmem:[%s4906_s2 + $0x148] sm:$0xff] (!%p223_p2)   ;;  %v3763_v9 = vld [vmem:[%s4906_s2 + $0x150] sm:$0xff] (!%p223_p2)   ;;  %vm354_vm1 = vsmask.f32 (!%p223_p2), 7440 }
   0x7   : > { %v3756_v2 = vld [vmem:[%s4906_s2] sm:$0xff] (!%p223_p2)   ;;  %3409 = vmatprep.subr.bf16.mxu0 (!%p223_p2), %v3755_v1  ;;  %v3760_v6 = vld [vmem:[%s4906_s2 + $0x8] sm:$0xff] (!%p223_p2)   ;;  %v3764_v10 = vld [vmem:[%s4906_s2 + $0x10] sm:$0xff] (!%p223_p2)   ;;  %vm572_vm2 = vcmask (!%p223_p2), 1042432   ;;  %vm573_vm4 = vcmask (!%p223_p2), 1046532  }
   0x8   : > { %v3757_v3 = vld [vmem:[%s4906_s2 + $0x100] sm:$0xff] (!%p223_p2)   ;;  %3330 = vmatpush3.bf16.msra.mxu1 (!%p223_p2), %v3756_v2  ;;  %v3761_v7 = vld [vmem:[%s4906_s2 + $0x108] sm:$0xff] (!%p223_p2)   ;;  %v3765_v11 = vld [vmem:[%s4906_s2 + $0x110] sm:$0xff] (!%p223_p2)  }
   0x9   : > { %3410 = vmatpush3.bf16.msra.mxu0 (!%p223_p2), %v3757_v3  ;;  %3331 = vmatprep.subr.bf16.mxu1 (!%p223_p2), %v3758_v4  ;;  %v3766_v12 = vld [vmem:[%s4906_s2 + $0x58] sm:$0xff] (!%p223_p2)   ;;  %v3770_v16 = vld [vmem:[%s4906_s2 + $0x60] sm:$0xff] (!%p223_p2)   ;;  %v3774_v20 = vld [vmem:[%s4906_s2 + $0x68] sm:$0xff] (!%p223_p2)  }
   0xa   : > { %3411 = vmatprep.subr.bf16.mxu0 (!%p223_p2), %v3759_v5  ;;  %v3767_v13 = vld [vmem:[%s4906_s2 + $0x158] sm:$0xff] (!%p223_p2)   ;;  %v3771_v17 = vld [vmem:[%s4906_s2 + $0x160] sm:$0xff] (!%p223_p2)   ;;  %v3775_v21 = vld [vmem:[%s4906_s2 + $0x168] sm:$0xff] (!%p223_p2)  }
   0xb   : > { %v3768_v14 = vld [vmem:[%s4906_s2 + $0x18] sm:$0xff] (!%p223_p2)   ;;  %v3772_v18 = vld [vmem:[%s4906_s2 + $0x20] sm:$0xff] (!%p223_p2)   ;;  %v3776_v22 = vld [vmem:[%s4906_s2 + $0x28] sm:$0xff] (!%p223_p2)  }
   0xc   : > { %3332 = vmatpush3.bf16.msra.mxu1 (!%p223_p2), %v3760_v6  ;;  %v3769_v15 = vld [vmem:[%s4906_s2 + $0x118] sm:$0xff] (!%p223_p2)   ;;  %v3773_v19 = vld [vmem:[%s4906_s2 + $0x120] sm:$0xff] (!%p223_p2)   ;;  %v3777_v23 = vld [vmem:[%s4906_s2 + $0x128] sm:$0xff] (!%p223_p2)  }
   0xd   : > { %3412 = vmatpush3.bf16.msra.mxu0 %v3761_v7  ;;  %3333 = vmatprep.subr.bf16.mxu1 %v3762_v8  ;;  %s4916_s22 = smov (!%p257_p3, %s3074_s22), 1  ;;  %v3778_v24 = vld [vmem:[%s4906_s2 + $0x70] sm:$0xff]   ;;  %v3782_v28 = vld [vmem:[%s4906_s2 + $0x78] sm:$0xff]   ;;  %v3787_v56 = vld [vmem:[%s4906_s2 + $0xc0] sm:$0xff]  }
   0xe   : > { %3413 = vmatprep.subr.bf16.mxu0 %v3763_v9  ;;  %v3779_v25 = vld [vmem:[%s4906_s2 + $0x170] sm:$0xff]   ;;  %s3745_s7 = smul.u32 80, %s4916_s22  ;;  %v3783_v29 = vld [vmem:[%s4906_s2 + $0x178] sm:$0xff]   ;;  %vm4089_vm3 = vmor %vm353_vm0, %vm354_vm1 }
   0xf   : > { %v3780_v26 = vld [vmem:[%s4906_s2 + $0x30] sm:$0xff]   ;;  %v3784_v30 = vld [vmem:[%s4906_s2 + $0x38] sm:$0xff]   ;;  %vm4105_vm5 = vmor %vm572_vm2, %vm573_vm4 }
  0x10   : > { %3334 = vmatpush3.bf16.msra.mxu1 %v3764_v10  ;;  %v3781_v27 = vld [vmem:[%s4906_s2 + $0x130] sm:$0xff]   ;;  %s4069_s18 = scalar_lea.vmem %s4904_s0, %s3745_s7  ;;  %v3785_v31 = vld [vmem:[%s4906_s2 + $0x138] sm:$0xff]   ;;  %s4417_s29 = scalar_lea.vmem %s4905_s1, %s3745_s7 }
  0x11   : > { %3414 = vmatpush3.bf16.msra.mxu0 %v3765_v11  ;;  %3335 = vmatprep.subr.bf16.mxu1 %v3766_v12  ;;  %v333_v32 = vld [vmem:[%s4069_s18] sm:$0xf]  ;;  %v334_v33 = vld [vmem:[%s4069_s18 + $0x4] sm:$0x1]  ;;  %v335_v34 = vld [vmem:[%s4069_s18 + $0x8] sm:$0xf] }
  0x12   : > { %3415 = vmatprep.subr.bf16.mxu0 %v3767_v13  ;;  %v336_v35 = vld [vmem:[%s4069_s18 + $0xc] sm:$0x1]  ;;  %v337_v36 = vld [vmem:[%s4069_s18 + $0x10] sm:$0xf]  ;;  %v357_v37 = vshrl.u32 %v333_v32, 16  ;;  %v360_v38 = vshll.u32 %v333_v32, 16 }
  0x13   : > { %v338_v39 = vld [vmem:[%s4069_s18 + $0x14] sm:$0x1]  ;;  %v366_v40 = vshll.u32 %v334_v33, 16  ;;  %v371_v41 = vshrl.u32 %v335_v34, 16  ;;  %v374_v42 = vshll.u32 %v335_v34, 16  ;;  %v380_v43 = vshll.u32 %v336_v35, 16 }
  0x14   : > { %3336 = vmatpush3.bf16.msra.mxu1 %v3768_v14  ;;  %v359_v44 = vrot.slane %v357_v37, 4  ;;  %v362_v45 = vrot.slane %v360_v38, 5  ;;  %v385_v46 = vshrl.u32 %v337_v36, 16  ;;  %v388_v47 = vshll.u32 %v337_v36, 16  ;;  %v273_v51 = vld [vmem:[%s4069_s18] sm:$0xf] }
  0x15   : > { %3416 = vmatpush3.bf16.msra.mxu0 %v3769_v15  ;;  %3337 = vmatprep.subr.bf16.mxu1 %v3770_v16  ;;  %v368_v48 = vrot.slane %v366_v40, 5  ;;  %v373_v49 = vrot.slane %v371_v41, 4  ;;  %v376_v50 = vrot.slane %v374_v42, 5  ;;  %v394_v55 = vshll.u32 %v338_v39, 16  ;;  %v4094_v60 = vld [vmem:[%s4069_s18 + $0x8] sm:$0xf] }
  0x16   : > { %3417 = vmatprep.subr.bf16.mxu0 %v3771_v17  ;;  %v363_v52 = vor.u32 %v362_v45, %v359_v44  ;;  %v387_v53 = vrot.slane %v385_v46, 4  ;;  %v390_v54 = vrot.slane %v388_v47, 5  ;;  %v382_v59 = vrot.slane %v380_v43, 5  ;;  %v538_v61 = vld [vmem:[%s4069_s18 + $0x8] sm:$0xe]  ;;  %v3788_v11 = vld [vmem:[%s4906_s2 + $0x200] sm:$0xff]  }
  0x17   : > { %v377_v58 = vor.u32 %v376_v50, %v373_v49  ;;  %v396_v0 = vrot.slane %v394_v55, 5  ;;  %v539_v1 = vld [vmem:[%s4069_s18 + $0xc] sm:$0x1]  ;;  %v540_v2 = vld [vmem:[%s4069_s18 + $0x10] sm:$0xe]  ;;  %v3083_v7 = vcombine.low %v273_v51, %v4094_v60  ;;  %v3102_v10 = vrot.slane %v538_v61, 9 }
  0x18   : > { %3338 = vmatpush3.bf16.msra.mxu1 %v3772_v18  ;;  %v364_v62 = vrot.slane %v363_v52, 4  ;;  %v391_v63 = vor.u32 %v390_v54, %v387_v53  ;;  %v541_v4 = vld [vmem:[%s4069_s18 + $0x14] sm:$0x1]  ;;  %v542_v8 = vld [vmem:[%s4069_s18 + $0x18] sm:$0xe]  ;;  %v581_v14 = vrot.slane %v539_v1, 5 }
  0x19   : > { %3418 = vmatpush3.bf16.msra.mxu0 %v3773_v19  ;;  %3339 = vmatprep.subr.bf16.mxu1 %v3774_v20  ;;  %v378_v3 = vrot.slane %v377_v58, 4  ;;  %v543_v13 = vld [vmem:[%s4069_s18 + $0x1c] sm:$0x1]  ;;  %v3103_v15 = vrot.slane %v540_v2, 9  ;;  %v585_v16 = vrot.slane %v541_v4, 5  ;;  %v3789_v19 = vld [vmem:[%s4906_s2 + $0x80] sm:$0xff]  }
  0x1a   : > { %3419 = vmatprep.subr.bf16.mxu0 %v3775_v21  ;;  %v369_v5 = vsel %vm4089_vm3, %v364_v62, %v368_v48  ;;  %v392_v6 = vrot.slane %v391_v63, 4  ;;  %v4122_v21 = vsel %vm4105_vm5, %v3102_v10, %v581_v14  ;;  %v3794_v34 = vld [vmem:[%s4906_s2 + $0xd0] sm:$0xff]   ;;  %v544_v35 = vld [vmem:[%s4069_s18 + $0x20] sm:$0xe]  ;;  %v545_v38 = vld [vmem:[%s4069_s18 + $0x24] sm:$0x1] }
  0x1b   : > { %v383_v12 = vsel %vm4089_vm3, %v378_v3, %v382_v59  ;;  %v3105_v39 = vrot.slane %v544_v35, 9  ;;  %v4151_v41 = vld [vmem:[%s4069_s18 + $0x10] sm:$0xf]  ;;  %v4154_v42 = vld [vmem:[%s4069_s18 + $0x18] sm:$0xf]  ;;  %v593_v43 = vrot.slane %v545_v38, 5 }
  0x1c   : > { %3340 = vmatpush3.bf16.msra.mxu1 %v3776_v22  ;;  %v397_v17 = vsel %vm4089_vm3, %v392_v6, %v396_v0  ;;  %v3092_v18 = vcombine.low %v369_v5, %v383_v12  ;;  %v4126_v22 = vsel %vm4105_vm5, %v3103_v15, %v585_v16  ;;  %v3795_v44 = vld [vmem:[%s4906_s2 + $0x210] sm:$0xff]   ;;  %v341_v49 = vld [vmem:[%s4069_s18 + $0x20] sm:$0xf]  ;;  %v342_v50 = vld [vmem:[%s4069_s18 + $0x24] sm:$0x1]  ;;  %v4180_v61 = vcombine.low %v4151_v41, %v4154_v42 }
  0x1d   : > { %3420 = vmatpush3.bf16.msra.mxu0 %v3777_v23  ;;  %3341 = vmatprep.subr.bf16.mxu1 %v3778_v24  ;;  %v3096_v20 = vcombine.low %v383_v12, %v397_v17  ;;  %v3790_v23 = vld [vmem:[%s4906_s2 + $0xc8] sm:$0xff]   ;;  %v3114_v24 = vcombine.low %v4122_v21, %v4126_v22  ;;  %v3796_v47 = vld [vmem:[%s4906_s2 + $0x90] sm:$0xff]   ;;  %v4164_v48 = vsel %vm4105_vm5, %v3105_v39, %v593_v43  ;;  %v413_v53 = vshrl.u32 %v341_v49, 16  ;;  %v3797_v55 = vld [vmem:[%s4906_s2 + $0xd8] sm:$0xff]  }
  0x1e   : > { %3421 = vmatprep.subr.bf16.mxu0 %v3779_v25  ;;  %1303 = vmatprep.mubr.bf16.mxu1 %v3092_v18  ;;  %v3104_v25 = vrot.slane %v542_v8, 9  ;;  %v416_v54 = vshll.u32 %v341_v49, 16  ;;  %v3798_v58 = vld [vmem:[%s4906_s2 + $0x218] sm:$0xff]   ;;  %v343_v3 = vld [vmem:[%s4069_s18 + $0x28] sm:$0xf]  ;;  %v3801_v10 = vld [vmem:[%s4906_s2 + $0xe0] sm:$0xff]  }
  0x1f   : > { %1433 = vmatprep.mubr.bf16.mxu0 %v3114_v24  ;;  %v415_v62 = vrot.slane %v413_v53, 4  ;;  %v3799_v2 = vld [vmem:[%s4906_s2 + $0x98] sm:$0xff]   ;;  %v344_v4 = vld [vmem:[%s4069_s18 + $0x2c] sm:$0x1]  ;;  %v427_v6 = vshrl.u32 %v343_v3, 16 }
  0x20   : > { %3342 = vmatpush3.bf16.msra.mxu1 %v3780_v26  ;;  %v3791_v26 = vld [vmem:[%s4906_s2 + $0x208] sm:$0xff]   ;;  %v418_v63 = vrot.slane %v416_v54, 5  ;;  %v436_v8 = vshll.u32 %v344_v4, 16  ;;  %v4196_v16 = vld [vmem:[%s4069_s18 + $0x20] sm:$0xf]  ;;  %v3808_v4 = vld [vmem:[%s4906_s2 + $0xf0] sm:$0xff]  }
  0x21   : > { %3422 = vmatpush3.bf16.msra.mxu0 %v3781_v27  ;;  %3343 = vmatprep.subr.bf16.mxu1 %v3782_v28  ;;  %v589_v27 = vrot.slane %v543_v13, 5  ;;  %v3792_v28 = vld [vmem:[%s4906_s2 + $0x88] sm:$0xff]   ;;  %v429_v12 = vrot.slane %v427_v6, 4  ;;  %v346_v39 = vld [vmem:[%s4069_s18 + $0x34] sm:$0x1] }
  0x22   : > { %3423 = vmatprep.subr.bf16.mxu0 %v3783_v29  ;;  %v339_v29 = vld [vmem:[%s4069_s18 + $0x18] sm:$0xf]  ;;  %v419_v5 = vor.u32 %v418_v63, %v415_v62  ;;  %v438_v14 = vrot.slane %v436_v8, 5  ;;  %v546_v15 = vld [vmem:[%s4069_s18 + $0x28] sm:$0xe]  ;;  %v450_v49 = vshll.u32 %v346_v39, 16 }
  0x23   : > { %v402_v32 = vshll.u32 %v339_v29, 16  ;;  %v4148_v40 = vsel %vm4105_vm5, %v3104_v25, %v589_v27  ;;  %v547_v18 = vld [vmem:[%s4069_s18 + $0x2c] sm:$0x1]  ;;  %v3106_v25 = vrot.slane %v546_v15, 9  ;;  %v4257_v8 = vld [vmem:[%s4069_s18 + $0x30] sm:$0xf] }
  0x24   : > { %3344 = vmatpush3.bf16.msra.mxu1 %v3784_v30  ;;  %v340_v30 = vld [vmem:[%s4069_s18 + $0x1c] sm:$0x1]  ;;  %v3115_v52 = vcombine.low %v4148_v40, %v4164_v48  ;;  %v3804_v35 = vld [vmem:[%s4906_s2 + $0xe8] sm:$0xff]   ;;  %v3810_v15 = vld [vmem:[%s4906_s2 + $0xb0] sm:$0xff]  }
  0x25   : > { %3424 = vmatpush3.bf16.msra.mxu0 %v3785_v31  ;;  %3369 = vmatprep.subr.bf16.mxu1 %v3787_v56  ;;  %v399_v31 = vshrl.u32 %v339_v29, 16  ;;  %v408_v33 = vshll.u32 %v340_v30, 16  ;;  %v404_v37 = vrot.slane %v402_v32, 5  ;;  %v422_v56 = vshll.u32 %v342_v50, 16  ;;  %v3802_v30 = vld [vmem:[%s4906_s2 + $0x220] sm:$0xff]   ;;  %v3805_v50 = vld [vmem:[%s4906_s2 + $0x228] sm:$0xff]  }
  0x26   : > { %3673 = vmatprep.subr.bf16.mxu0 %v3788_v11  ;;  %v3806_v54 = vld [vmem:[%s4906_s2 + $0xa8] sm:$0xff]  }
  0x27   : > { %1304 = vmatmul.mubr.bf16.vlgmr.msra.gmra.mrb[0].mxu1 %v3083_v7  ;;  %v401_v36 = vrot.slane %v399_v31, 4  ;;  %v410_v46 = vrot.slane %v408_v33, 5  ;;  %v424_v1 = vrot.slane %v422_v56, 5  ;;  %v430_v7 = vshll.u32 %v343_v3, 16  ;;  %v3803_v31 = vld [vmem:[%s4906_s2 + $0xa0] sm:$0xff]  }
  0x28   : > { %3370 = vmatpush3.bf16.msra.mxu1 %v3789_v19  ;;  %1434 = vmatmul.mubr.bf16.vlgmr.msra.gmra.mrb[0].mxu0 %v3096_v20  ;;  %v548_v19 = vld [vmem:[%s4069_s18 + $0x30] sm:$0xe]  ;;  %v549_v20 = vld [vmem:[%s4069_s18 + $0x34] sm:$0x1] }
  0x29   : > { %3371 = vmatprep.subr.bf16.mxu1 %v3790_v23  ;;  %3674 = vmatpush3.bf16.msra.mxu0 %v3788_v11  ;;  %v405_v45 = vor.u32 %v404_v37, %v401_v36  ;;  %v420_v11 = vrot.slane %v419_v5, 4  ;;  %v432_v13 = vrot.slane %v430_v7, 5  ;;  %v601_v29 = vrot.slane %v549_v20, 5  ;;  %v4221_v36 = vld [vmem:[%s4069_s18] sm:$0xe] }
  0x2a   : > { %3675 = vmatprep.subr.bf16.mxu0 %v3791_v26  ;;  %1441 = vmatprep.mubr.bf16.mxu0 %v3115_v52  ;;  %v4224_v37 = vld [vmem:[%s4069_s18 + $0x4] sm:$0x1]  ;;  %v552_v20 = vld [vmem:[%s4069_s18 + $0x40] sm:$0xe] }
  0x2b   : > { %v406_v51 = vrot.slane %v405_v45, 4  ;;  %v425_v23 = vsel %vm4089_vm3, %v420_v11, %v424_v1  ;;  %v433_v24 = vor.u32 %v432_v13, %v429_v12  ;;  %v3101_v1 = vrot.slane %v4221_v36, 9  ;;  %v3809_v11 = vld [vmem:[%s4906_s2 + $0x230] sm:$0xff]   ;;  %v550_v13 = vld [vmem:[%s4069_s18 + $0x38] sm:$0xe] }
  0x2c   : > { %3372 = vmatpush3.bf16.msra.mxu1 %v3792_v28  ;;  %v3107_v28 = vrot.slane %v548_v19, 9  ;;  %v350_v36 = vld [vmem:[%s4069_s18 + $0x44] sm:$0x1] }
  0x2d   : > { %3373 = vmatprep.subr.bf16.mxu1 %v3794_v34  ;;  %3676 = vmatpush3.bf16.msra.mxu0 %v3791_v26  ;;  %v411_v59 = vsel %vm4089_vm3, %v406_v51, %v410_v46  ;;  %v597_v26 = vrot.slane %v547_v18, 5  ;;  %v434_v32 = vrot.slane %v433_v24, 4  ;;  %v345_v34 = vld [vmem:[%s4069_s18 + $0x30] sm:$0xf]  ;;  %v3108_v24 = vrot.slane %v550_v13, 9  ;;  %v3829_v13 = vld [vmem:[%s4907_s3 + $0xd8] sm:$0xff]  }
  0x2e   : > { %3677 = vmatprep.subr.bf16.mxu0 %v3795_v44  ;;  %v4182_v0 = vcombine.low %v397_v17, %v411_v59  ;;  %v4199_v17 = vld [vmem:[%s4069_s18 + $0x28] sm:$0xf]  ;;  %v3097_v27 = vcombine.low %v411_v59, %v425_v23  ;;  %v4228_v38 = vsel %vm4105_vm5, %v3107_v28, %v601_v29  ;;  %v441_v43 = vshrl.u32 %v345_v34, 16  ;;  %v348_v59 = vld [vmem:[%s4069_s18 + $0x3c] sm:$0x1] }
  0x2f   : > { %v4214_v33 = vsel %vm4105_vm5, %v3106_v25, %v597_v26  ;;  %v439_v45 = vsel %vm4089_vm3, %v434_v32, %v438_v14  ;;  %v4235_v46 = vcombine.low %v4196_v16, %v4199_v17  ;;  %v464_v3 = vshll.u32 %v348_v59, 16  ;;  %v551_v14 = vld [vmem:[%s4069_s18 + $0x3c] sm:$0x1] }
  0x30   : > { %3374 = vmatpush3.bf16.msra.mxu1 %v3796_v47  ;;  %1311 = vmatprep.mubr.bf16.mxu1 %v4182_v0  ;;  %v3116_v47 = vcombine.low %v4214_v33, %v4228_v38  ;;  %v4242_v51 = vcombine.low %v425_v23, %v439_v45  ;;  %v443_v52 = vrot.slane %v441_v43, 4  ;;  %v553_v23 = vld [vmem:[%s4069_s18 + $0x44] sm:$0x1]  ;;  %v605_v25 = vrot.slane %v551_v14, 5 }
  0x31   : > { %3375 = vmatprep.subr.bf16.mxu1 %v3797_v55  ;;  %3678 = vmatpush3.bf16.msra.mxu0 %v3795_v44  ;;  %v444_v44 = vshll.u32 %v345_v34, 16  ;;  %v347_v55 = vld [vmem:[%s4069_s18 + $0x38] sm:$0xf]  ;;  %v466_v12 = vrot.slane %v464_v3, 5  ;;  %v631_v28 = vrot.slane %v553_v23, 5  ;;  %v3835_v14 = vld [vmem:[%s4906_s2 + $0x1a0] sm:$0xff]  }
  0x32   : > { %3679 = vmatprep.subr.bf16.mxu0 %v3798_v58  ;;  %1312 = vmatmul.mubr.bf16.gmra.mrb[4].mxu1 %v4180_v61  ;;  %v455_v62 = vshrl.u32 %v347_v55, 16  ;;  %v458_v63 = vshll.u32 %v347_v55, 16  ;;  %v3815_v55 = vld [vmem:[%s4906_s2 + $0x1c0] sm:$0xff]  }
  0x33   : > { %1442 = vmatmul.mubr.bf16.gmra.mrb[4].mxu0 %v3097_v27  ;;  %v446_v53 = vrot.slane %v444_v44, 5  ;;  %1319 = vmatprep.mubr.bf16.mxu1 %v4242_v51  ;;  %v3113_v27 = vrot.slane %v552_v20, 9  ;;  %v3834_v20 = vld [vmem:[%s4907_s3 + $0xe0] sm:$0xff]  }
  0x34   : > { %3376 = vmatpush3.bf16.msra.mxu1 %v3799_v2  ;;  %1449 = vmatprep.mubr.bf16.mxu0 %v3116_v47  ;;  %v577_v2 = vrot.slane %v4224_v37, 5  ;;  %v457_v6 = vrot.slane %v455_v62, 4  ;;  %v460_v7 = vrot.slane %v458_v63, 5  ;;  %v498_v47 = vshll.u32 %v350_v36, 16  ;;  %v3844_v36 = vld [vmem:[%s4906_s2 + $0x1b0] sm:$0xff]  }
  0x35   : > { %3377 = vmatprep.subr.bf16.mxu1 %v3801_v10  ;;  %3680 = vmatpush3.bf16.msra.mxu0 %v3798_v58  ;;  %v447_v56 = vor.u32 %v446_v53, %v443_v52  ;;  %v452_v58 = vrot.slane %v450_v49, 5  ;;  %v4260_v10 = vld [vmem:[%s4069_s18 + $0x38] sm:$0xf]  ;;  %v4285_v34 = vsel %vm4105_vm5, %v3113_v27, %v631_v28  ;;  %v3110_v63 = vcombine.low %v4126_v22, %v4148_v40  ;;  %v3821_v22 = vld [vmem:[%s4906_s2 + $0x188] sm:$0xff]   ;;  %v3824_v40 = vld [vmem:[%s4906_s2 + $0x1d0] sm:$0xff]  }
  0x36   : > { %3681 = vmatprep.subr.bf16.mxu0 %v3802_v30  ;;  %v461_v19 = vor.u32 %v460_v7, %v457_v6  ;;  %v4281_v32 = vcombine.low %v4257_v8, %v4260_v10  ;;  %v3812_v49 = vld [vmem:[%s4906_s2 + $0x238] sm:$0xff]   ;;  %v3826_v6 = vld [vmem:[%s4906_s2 + $0x190] sm:$0xff]  }
  0x37   : > { %v448_v5 = vrot.slane %v447_v56, 4  ;;  %v500_v56 = vrot.slane %v498_v47, 5  ;;  %v3828_v7 = vld [vmem:[%s4906_s2 + $0x1d8] sm:$0xff]   ;;  %v3842_v27 = vld [vmem:[%s4906_s2 + $0x1f0] sm:$0xff]  }
  0x38   : > { %3378 = vmatpush3.bf16.msra.mxu1 %v3803_v31  ;;  %v462_v29 = vrot.slane %v461_v19, 4  ;;  %v3811_v31 = vld [vmem:[%s4906_s2 + $0xf8] sm:$0xff]   ;;  %v4379_v19 = vld [vmem:[%s4069_s18 + $0x40] sm:$0xf]  ;;  %v4429_v47 = vld [vmem:[%s4417_s29 + $0x10] sm:$0xf] }
  0x39   : > { %3682 = vmatpush3.bf16.msra.mxu0 %v3802_v30  ;;  %3379 = vmatprep.subr.bf16.mxu1 %v3804_v35  ;;  %v453_v18 = vsel %vm4089_vm3, %v448_v5, %v452_v58  ;;  %v606_v30 = vsel %vm4105_vm5, %v3108_v24, %v605_v25  ;;  %v349_v35 = vld [vmem:[%s4069_s18 + $0x40] sm:$0xf]  ;;  %v3820_v5 = vld [vmem:[%s4907_s3 + $0xc8] sm:$0xff]   ;;  %v3090_v23 = vcombine.low %v4260_v10, %v4379_v19 }
  0x3a   : > { %3683 = vmatprep.subr.bf16.mxu0 %v3805_v50  ;;  %1320 = vmatmul.mubr.bf16.gmra.mrb[8].mxu1 %v4235_v46  ;;  %v3098_v26 = vcombine.low %v439_v45, %v453_v18  ;;  %v467_v37 = vsel %vm4089_vm3, %v462_v29, %v466_v12  ;;  %v3117_v39 = vcombine.low %v606_v30, %v4285_v34  ;;  %v489_v43 = vshrl.u32 %v349_v35, 16  ;;  %v3816_v58 = vld [vmem:[%s4907_s3 + $0xc0] sm:$0xff]   ;;  %v3825_v12 = vld [vmem:[%s4907_s3 + $0xd0] sm:$0xff]   ;;  %v554_v24 = vld [vmem:[%s4069_s18 + $0x48] sm:$0xe] }
  0x3b   : > { %v492_v44 = vshll.u32 %v349_v35, 16  ;;  %v4292_v45 = vcombine.low %v453_v18, %v467_v37  ;;  %v3837_v18 = vld [vmem:[%s4906_s2 + $0x1e8] sm:$0xff]   ;;  %v3118_v28 = vrot.slane %v554_v24, 9  ;;  %v3836_v10 = vld [vmem:[%s4907_s3 + $0xa0] sm:$0xff]  }
  0x3c   : > { %3380 = vmatpush3.bf16.msra.mxu1 %v3806_v54  ;;  %1450 = vmatmul.mubr.bf16.gmra.mrb[8].mxu0 %v3098_v26  ;;  %v491_v52 = vrot.slane %v489_v43, 4  ;;  %v3813_v54 = vld [vmem:[%s4906_s2 + $0xb8] sm:$0xff]   ;;  %v555_v25 = vld [vmem:[%s4069_s18 + $0x4c] sm:$0x1] }
  0x3d   : > { %3684 = vmatpush3.bf16.msra.mxu0 %v3805_v50  ;;  %3381 = vmatprep.subr.bf16.mxu1 %v3808_v4  ;;  %v3087_v50 = vcombine.low %v4094_v60, %v4151_v41  ;;  %v494_v53 = vrot.slane %v492_v44, 5  ;;  %v578_v41 = vsel %vm4105_vm5, %v3101_v1, %v577_v2  ;;  %v3817_v1 = vld [vmem:[%s4906_s2 + $0x180] sm:$0xff]   ;;  %v3088_v2 = vcombine.low %v4154_v42, %v4196_v16  ;;  %v3839_v26 = vld [vmem:[%s4906_s2 + $0x1a8] sm:$0xff]   ;;  %v3848_v43 = vld [vmem:[%s4906_s2 + $0x1b8] sm:$0xff]  }
  0x3e   : > { %3685 = vmatprep.subr.bf16.mxu0 %v3809_v11  ;;  %1457 = vmatprep.mubr.bf16.mxu0 %v3117_v39  ;;  %v3109_v62 = vcombine.low %v578_v41, %v4122_v21  ;;  %v3819_v21 = vld [vmem:[%s4906_s2 + $0x1c8] sm:$0xff]   ;;  %v3111_v42 = vcombine.low %v4164_v48, %v4214_v33  ;;  %v3818_v16 = vld [vmem:[%s4907_s3 + $0x80] sm:$0xff]   ;;  %v3089_v48 = vcombine.low %v4199_v17, %v4257_v8  ;;  %v3830_v17 = vld [vmem:[%s4906_s2 + $0x198] sm:$0xff]   ;;  %v650_v29 = vrot.slane %v555_v25, 5 }
  0x3f   : > { %1327 = vmatprep.mubr.bf16.mxu1 %v4292_v45  ;;  %v495_v60 = vor.u32 %v494_v53, %v491_v52  ;;  %v3822_v33 = vld [vmem:[%s4907_s3 + $0x88] sm:$0xff]   ;;  %v3833_v8 = vld [vmem:[%s4906_s2 + $0x1e0] sm:$0xff]   ;;  %v3846_v39 = vld [vmem:[%s4906_s2 + $0x1f8] sm:$0xff]  }
  0x40   : > { %3382 = vmatpush3.bf16.msra.mxu1 %v3810_v15  ;;  %v3831_v15 = vld [vmem:[%s4907_s3 + $0x98] sm:$0xff]   ;;  %v4426_v44 = vld [vmem:[%s4417_s29 + $0x8] sm:$0xf]  ;;  %v1864_v52 = vld [vmem:[%s4417_s29] sm:$0xe] }
  0x41   : > { %3686 = vmatpush3.bf16.msra.mxu0 %v3809_v11  ;;  %3383 = vmatprep.subr.bf16.mxu1 %v3811_v31  ;;  %v496_v59 = vrot.slane %v495_v60, 4  ;;  %v3112_v11 = vcombine.low %v4228_v38, %v606_v30  ;;  %v3827_v38 = vld [vmem:[%s4907_s3 + $0x90] sm:$0xff]   ;;  %v651_v30 = vsel %vm4105_vm5, %v3118_v28, %v650_v29  ;;  %v3838_v31 = vld [vmem:[%s4907_s3 + $0xe8] sm:$0xff]   ;;  %v1865_v53 = vld [vmem:[%s4417_s29 + $0x4] sm:$0x1]  ;;  %v3210_v60 = vrot.slane %v1864_v52, 9 }
  0x42   : > { %3687 = vmatprep.subr.bf16.mxu0 %v3812_v49  ;;  %1328 = vmatmul.mubr.bf16.gmra.mrb[12].mxu1 %v4281_v32  ;;  %v3119_v35 = vcombine.low %v4285_v34, %v651_v30  ;;  %v3843_v34 = vld [vmem:[%s4907_s3 + $0xf0] sm:$0xff]   ;;  %v1902_v41 = vrot.slane %v1865_v53, 5  ;;  %v3868_v25 = vld [vmem:[%s4907_s3 + $0x18] sm:$0xff]   ;;  %v1872_v30 = vld [vmem:[%s4417_s29 + $0x20] sm:$0xe] }
  0x43   : > { %1368 = vmatprep.mubr.bf16.mxu1 %v3087_v50  ;;  %v4317_v3 = vsel %vm4089_vm3, %v496_v59, %v500_v56  ;;  %v3852_v50 = vld [vmem:[%s4907_s3 + $0x40] sm:$0xff]   ;;  %v3845_v56 = vld [vmem:[%s4907_s3 + $0xb0] sm:$0xff]   ;;  %v3869_v28 = vld [vmem:[%s4907_s3 + $0x198] sm:$0xff]  }
  0x44   : > { %3384 = vmatpush3.bf16.msra.mxu1 %v3813_v54  ;;  %v3099_v4 = vcombine.low %v467_v37, %v4317_v3  ;;  %v3840_v37 = vld [vmem:[%s4907_s3 + $0xa8] sm:$0xff]  }
  0x45   : > { %3688 = vmatpush3.bf16.msra.mxu0 %v3812_v49  ;;  %3449 = vmatprep.subr.bf16.mxu1 %v3815_v55  ;;  %v3196_v49 = vcombine.low %v4426_v44, %v4429_v47  ;;  %v1866_v54 = vld [vmem:[%s4417_s29 + $0x8] sm:$0xe]  ;;  %v1867_v55 = vld [vmem:[%s4417_s29 + $0xc] sm:$0x1] }
  0x46   : > { %3541 = vmatprep.subr.bf16.mxu0 %v3816_v58  ;;  %1458 = vmatmul.mubr.bf16.gmra.mrb[12].mxu0 %v3099_v4  ;;  %v3847_v58 = vld [vmem:[%s4907_s3 + $0xf8] sm:$0xff]   ;;  %v3211_v59 = vrot.slane %v1866_v54, 9  ;;  %v3856_v4 = vld [vmem:[%s4907_s3 + $0x48] sm:$0xff]  }
  0x47   : > { %3689 = vmatprep.mubr.bf16.mxu0 %v3110_v63 }
  0x4a   : > { %1369 = vmatmul.mubr.bf16.vlgmr.msra.gmra.mrb[16].mxu1 %v3109_v62  ;;  %v1906_v62 = vrot.slane %v1867_v55, 5  ;;  %v3875_v55 = vld [vmem:[%s4907_s3 + $0x68] sm:$0xff]  }
  0x4b   : > { %3450 = vmatpush3.bf16.msra.mxu1 %v3817_v1  ;;  %1376 = vmatprep.mubr.bf16.mxu1 %v3088_v2  ;;  %v1903_v1 = vsel %vm4105_vm5, %v3210_v60, %v1902_v41  ;;  %v3878_v60 = vld [vmem:[%s4907_s3 + $0x1a8] sm:$0xff]  }
  0x4c   : > { %3451 = vmatprep.subr.bf16.mxu1 %v3819_v21  ;;  %v4461_v2 = vsel %vm4105_vm5, %v3211_v59, %v1906_v62  ;;  %v3853_v21 = vld [vmem:[%s4907_s3 + $0x1c0] sm:$0xff]   ;;  %v351_v41 = vld [vmem:[%s4069_s18 + $0x48] sm:$0xf]  ;;  %v352_v59 = vld [vmem:[%s4069_s18 + $0x4c] sm:$0x1] }
  0x4d   : > { %v516_v62 = vshrl.u32 %v351_v41, 16 }
  0x4e   : > { %3690 = vmatmul.mubr.bf16.vlgmr.msra.gmra.mrb[16].mxu0 %v3111_v42 }
  0x4f   : > { %3452 = vmatpush3.bf16.msra.mxu1 %v3821_v22  ;;  %3542 = vmatpush3.bf16.msra.mxu0 %v3818_v16  ;;  %v3855_v22 = vld [vmem:[%s4907_s3 + $0x180] sm:$0xff]   ;;  %v3857_v16 = vld [vmem:[%s4907_s3 + $0x1c8] sm:$0xff]  }
  0x50   : > { %3453 = vmatprep.subr.bf16.mxu1 %v3824_v40  ;;  %3543 = vmatprep.subr.bf16.mxu0 %v3820_v5  ;;  %v4474_v40 = vld [vmem:[%s4417_s29 + $0x18] sm:$0xf]  ;;  %v4481_v5 = vld [vmem:[%s4417_s29 + $0x20] sm:$0xf] }
  0x51   : > { %3693 = vmatprep.mubr.bf16.mxu0 %v3112_v11 }
  0x52   : > { %1377 = vmatmul.mubr.bf16.gmra.mrb[20].mxu1 %v3110_v63  ;;  %v3849_v63 = vld [vmem:[%s4907_s3 + $0xb8] sm:$0xff]  }
  0x53   : > { %3454 = vmatpush3.bf16.msra.mxu1 %v3826_v6  ;;  %1384 = vmatprep.mubr.bf16.mxu1 %v3089_v48  ;;  %v3197_v6 = vcombine.low %v4474_v40, %v4481_v5  ;;  %v1868_v48 = vld [vmem:[%s4417_s29 + $0x10] sm:$0xe] }
  0x54   : > { %3455 = vmatprep.subr.bf16.mxu1 %v3828_v7  ;;  %3544 = vmatpush3.bf16.msra.mxu0 %v3822_v33  ;;  %v3862_v7 = vld [vmem:[%s4907_s3 + $0x50] sm:$0xff]   ;;  %v1870_v33 = vld [vmem:[%s4417_s29 + $0x18] sm:$0xe] }
  0x55   : > { %3545 = vmatprep.subr.bf16.mxu0 %v3825_v12  ;;  %v3212_v12 = vrot.slane %v1868_v48, 9  ;;  %v1877_v48 = vld [vmem:[%s4417_s29 + $0x34] sm:$0x1] }
  0x56   : > { %3694 = vmatmul.mubr.bf16.gmra.mrb[20].mxu0 %v3119_v35  ;;  %v1874_v35 = vld [vmem:[%s4417_s29 + $0x28] sm:$0xe] }
  0x57   : > { %3456 = vmatpush3.bf16.msra.mxu1 %v3830_v17  ;;  %2693 = vmatprep.mubr.bf16.mxu0 %v3196_v49 }
  0x58   : > { %3457 = vmatprep.subr.bf16.mxu1 %v3833_v8  ;;  %3546 = vmatpush3.bf16.msra.mxu0 %v3827_v38  ;;  %v3213_v8 = vrot.slane %v1870_v33, 9 }
  0x59   : > { %3547 = vmatprep.subr.bf16.mxu0 %v3829_v13  ;;  %v3859_v13 = vld [vmem:[%s4907_s3 + $0x188] sm:$0xff]  }
  0x5a   : > { %1385 = vmatmul.mubr.bf16.gmra.mrb[24].mxu1 %v3111_v42  ;;  %v3218_v42 = vcombine.low %v1903_v1, %v4461_v2  ;;  %v4587_v1 = vld [vmem:[%s4417_s29 + $0x40] sm:$0xf] }
  0x5b   : > { %3458 = vmatpush3.bf16.msra.mxu1 %v3835_v14  ;;  %1392 = vmatprep.mubr.bf16.mxu1 %v3090_v23  ;;  %v3866_v23 = vld [vmem:[%s4907_s3 + $0x58] sm:$0xff]  }
  0x5c   : > { %3459 = vmatprep.subr.bf16.mxu1 %v3837_v18  ;;  %3548 = vmatpush3.bf16.msra.mxu0 %v3831_v15  ;;  %v3864_v18 = vld [vmem:[%s4907_s3 + $0x10] sm:$0xff]  }
  0x5d   : > { %3549 = vmatprep.subr.bf16.mxu0 %v3834_v20  ;;  %v3863_v20 = vld [vmem:[%s4907_s3 + $0x1d0] sm:$0xff]  }
  0x5f   : > { %3460 = vmatpush3.bf16.msra.mxu1 %v3839_v26  ;;  %v4528_v26 = vld [vmem:[%s4417_s29 + $0x28] sm:$0xf] }
  0x60   : > { %3461 = vmatprep.subr.bf16.mxu1 %v3842_v27  ;;  %3550 = vmatpush3.bf16.msra.mxu0 %v3836_v10  ;;  %v4531_v27 = vld [vmem:[%s4417_s29 + $0x30] sm:$0xf]  ;;  %v3871_v10 = vld [vmem:[%s4907_s3 + $0x60] sm:$0xff]  }
  0x61   : > { %3551 = vmatprep.subr.bf16.mxu0 %v3838_v31  ;;  %v3198_v29 = vcombine.low %v4528_v26, %v4531_v27  ;;  %v1873_v31 = vld [vmem:[%s4417_s29 + $0x24] sm:$0x1] }
  0x62   : > { %1393 = vmatmul.mubr.bf16.gmra.mrb[28].mxu1 %v3112_v11  ;;  %v1871_v11 = vld [vmem:[%s4417_s29 + $0x1c] sm:$0x1] }
  0x63   : > { %3462 = vmatpush3.bf16.msra.mxu1 %v3844_v36  ;;  %1498 = vmatprep.mubr.bf16.mxu1 %v4182_v0  ;;  %v3854_v0 = vld [vmem:[%s4907_s3] sm:$0xff]   ;;  %v1914_v38 = vrot.slane %v1871_v11, 5  ;;  %v1875_v36 = vld [vmem:[%s4417_s29 + $0x2c] sm:$0x1]  ;;  %v1878_v11 = vld [vmem:[%s4417_s29 + $0x38] sm:$0xe] }
  0x64   : > { %3463 = vmatprep.subr.bf16.mxu1 %v3846_v39  ;;  %3552 = vmatpush3.bf16.msra.mxu0 %v3840_v37  ;;  %v3214_v37 = vrot.slane %v1872_v30, 9  ;;  %v1918_v39 = vrot.slane %v1873_v31, 5  ;;  %v1922_v49 = vrot.slane %v1875_v36, 5  ;;  %v3886_v31 = vld [vmem:[%s4907_s3 + $0x1f8] sm:$0xff]   ;;  %v1665_v36 = vld [vmem:[%s4417_s29 + $0x4] sm:$0x1] }
  0x65   : > { %3553 = vmatprep.subr.bf16.mxu0 %v3843_v34  ;;  %v4501_v15 = vsel %vm4105_vm5, %v3213_v8, %v1914_v38  ;;  %v3215_v34 = vrot.slane %v1874_v35, 9  ;;  %v1926_v8 = vrot.slane %v1877_v48, 5  ;;  %v3217_v38 = vrot.slane %v1878_v11, 9  ;;  %v1664_v35 = vld [vmem:[%s4417_s29] sm:$0xf] }
  0x66   : > { %v4555_v52 = vsel %vm4105_vm5, %v3214_v37, %v1918_v39  ;;  %v1666_v37 = vld [vmem:[%s4417_s29 + $0x8] sm:$0xf]  ;;  %v1667_v39 = vld [vmem:[%s4417_s29 + $0xc] sm:$0x1] }
  0x67   : > { %3464 = vmatpush3.bf16.msra.mxu1 %v3848_v43  ;;  %v3872_v43 = vld [vmem:[%s4907_s3 + $0x1e0] sm:$0xff]   ;;  %v4559_v53 = vsel %vm4105_vm5, %v3215_v34, %v1922_v49  ;;  %v1685_v34 = vshrl.u32 %v1664_v35, 16  ;;  %v1694_v49 = vshll.u32 %v1665_v36, 16  ;;  %v3224_v57 = vcombine.low %v4501_v15, %v4555_v52 }
  0x68   : > { %3501 = vmatprep.subr.bf16.mxu1 %v3852_v50  ;;  %3554 = vmatpush3.bf16.msra.mxu0 %v3845_v56  ;;  %v3873_v50 = vld [vmem:[%s4907_s3 + $0x20] sm:$0xff]   ;;  %v4566_v54 = vcombine.low %v4555_v52, %v4559_v53  ;;  %v3876_v56 = vld [vmem:[%s4907_s3 + $0x1e8] sm:$0xff]  }
  0x69   : > { %3555 = vmatprep.subr.bf16.mxu0 %v3847_v58  ;;  %v3877_v58 = vld [vmem:[%s4907_s3 + $0x28] sm:$0xff]  }
  0x6a   : > { %1499 = vmatmul.mubr.bf16.vlgmr.msra.gmra.mrb[32].mxu1 %v4180_v61  ;;  %v3858_v61 = vld [vmem:[%s4907_s3 + $0x8] sm:$0xff]  }
  0x6b   : > { %3502 = vmatpush3.bf16.msra.mxu1 %v3854_v0  ;;  %1506 = vmatprep.mubr.bf16.mxu1 %v4242_v51  ;;  %v1869_v51 = vld [vmem:[%s4417_s29 + $0x14] sm:$0x1]  ;;  %v519_v0 = vshll.u32 %v351_v41, 16 }
  0x6c   : > { %3503 = vmatprep.subr.bf16.mxu1 %v3856_v4  ;;  %3556 = vmatpush3.bf16.msra.mxu0 %v3849_v63  ;;  %v1910_v17 = vrot.slane %v1869_v51, 5  ;;  %v4584_v63 = vld [vmem:[%s4417_s29 + $0x38] sm:$0xf]  ;;  %v525_v4 = vshll.u32 %v352_v59, 16  ;;  %v3882_v51 = vld [vmem:[%s4907_s3 + $0x1f0] sm:$0xff]   ;;  %v1696_v59 = vrot.slane %v1694_v49, 5  ;;  %v3193_v49 = vcombine.low %v4429_v47, %v4474_v40 }
  0x6d   : > { %3621 = vmatprep.subr.bf16.mxu0 %v3853_v21  ;;  %v3881_v21 = vld [vmem:[%s4907_s3 + $0x70] sm:$0xff]   ;;  %v3894_v47 = vld [vmem:[%s4907_s3 + $0x108] sm:$0xff]  }
  0x6e   : > { %v4497_v14 = vsel %vm4105_vm5, %v3212_v12, %v1910_v17  ;;  %v1879_v12 = vld [vmem:[%s4417_s29 + $0x3c] sm:$0x1] }
  0x6f   : > { %3504 = vmatpush3.bf16.msra.mxu1 %v3858_v61  ;;  %2694 = vmatmul.mubr.bf16.vlgmr.msra.gmra.mrb[24].mxu0 %v3218_v42  ;;  %v4516_v24 = vcombine.low %v4497_v14, %v4501_v15  ;;  %v518_v61 = vrot.slane %v516_v62, 4  ;;  %v3199_v42 = vcombine.low %v4584_v63, %v4587_v1 }
  0x70   : > { %3505 = vmatprep.subr.bf16.mxu1 %v3862_v7  ;;  %3622 = vmatpush3.bf16.msra.mxu0 %v3855_v22  ;;  %v521_v22 = vrot.slane %v519_v0, 5  ;;  %v1876_v7 = vld [vmem:[%s4417_s29 + $0x30] sm:$0xe]  ;;  %v1670_v0 = vld [vmem:[%s4417_s29 + $0x18] sm:$0xf] }
  0x71   : > { %2701 = vmatprep.mubr.bf16.mxu0 %v3197_v6  ;;  %3623 = vmatprep.subr.bf16.mxu0 %v3857_v16  ;;  %v527_v16 = vrot.slane %v525_v4, 5  ;;  %v282_v6 = vld [vmem:[%s4069_s18 + $0x48] sm:$0xf]  ;;  %v3216_v17 = vrot.slane %v1876_v7, 9  ;;  %v1727_v48 = vshrl.u32 %v1670_v0, 16  ;;  %s3305_s18 = sshll.u32 %s4916_s22, 5 }
  0x72   : > { %1507 = vmatmul.mubr.bf16.gmra.mrb[36].mxu1 %v4235_v46  ;;  %v3865_v46 = vld [vmem:[%s4907_s3 + $0x190] sm:$0xff]   ;;  %v522_v33 = vor.u32 %v521_v22, %v518_v61  ;;  %v1671_v61 = vld [vmem:[%s4417_s29 + $0x1c] sm:$0x1]  ;;  %s4871_s22 = scalar_lea.vmem %s4910_s6, %s3305_s18 }
  0x73   : > { %3506 = vmatpush3.bf16.msra.mxu1 %v3864_v18  ;;  %1514 = vmatprep.mubr.bf16.mxu1 %v4292_v45  ;;  %v3867_v45 = vld [vmem:[%s4907_s3 + $0x1d8] sm:$0xff]  }
  0x74   : > { %3624 = vmatpush3.bf16.msra.mxu0 %v3859_v13  ;;  %3507 = vmatprep.subr.bf16.mxu1 %v3866_v23  ;;  %v1930_v13 = vrot.slane %v1879_v12, 5  ;;  %v523_v18 = vrot.slane %v522_v33, 4  ;;  %v3883_v23 = vld [vmem:[%s4907_s3 + $0x30] sm:$0xff]   ;;  %v3889_v33 = vld [vmem:[%s4907_s3 + $0x140] sm:$0xff]  }
  0x75   : > { %3625 = vmatprep.subr.bf16.mxu0 %v3863_v20  ;;  %v4604_v20 = vsel %vm4105_vm5, %v3216_v17, %v1926_v8  ;;  %v1736_v8 = vshll.u32 %v1671_v61, 16 }
  0x76   : > { %v3225_v15 = vcombine.low %v4559_v53, %v4604_v20 }
  0x77   : > { %3508 = vmatpush3.bf16.msra.mxu1 %v3868_v25  ;;  %2702 = vmatmul.mubr.bf16.gmra.mrb[28].mxu0 %v4516_v24  ;;  %v3884_v25 = vld [vmem:[%s4907_s3 + $0x1b0] sm:$0xff]  }
  0x78   : > { %3626 = vmatpush3.bf16.msra.mxu0 %v3865_v46  ;;  %2709 = vmatprep.mubr.bf16.mxu0 %v3198_v29  ;;  %v4611_v46 = vsel %vm4105_vm5, %v3217_v38, %v1930_v13  ;;  %v3890_v38 = vld [vmem:[%s4907_s3 + $0x200] sm:$0xff]  }
  0x79   : > { %3627 = vmatprep.subr.bf16.mxu0 %v3867_v45  ;;  %3509 = vmatprep.subr.bf16.mxu1 %v3871_v10  ;;  %v528_v45 = vsel %vm4089_vm3, %v523_v18, %v527_v16  ;;  %v4621_v29 = vcombine.low %v4604_v20, %v4611_v46  ;;  %v3885_v10 = vld [vmem:[%s4907_s3 + $0x78] sm:$0xff]   ;;  %v1604_v16 = vld [vmem:[%s4417_s29] sm:$0xf]  ;;  %v1729_v18 = vrot.slane %v1727_v48, 4  ;;  %v3897_v48 = vld [vmem:[%s4907_s3 + $0x210] sm:$0xff]  }
  0x7a   : > { %1515 = vmatmul.mubr.bf16.gmra.mrb[40].mxu1 %v4281_v32  ;;  %v3874_v32 = vld [vmem:[%s4907_s3 + $0x1a0] sm:$0xff]   ;;  %v3100_v30 = vcombine.low %v4317_v3, %v528_v45  ;;  %v3888_v3 = vld [vmem:[%s4907_s3 + $0x1b8] sm:$0xff]  }
  0x7b   : > { %3510 = vmatpush3.bf16.msra.mxu1 %v3873_v50  ;;  %v1699_v50 = vshrl.u32 %v1666_v37, 16 }
  0x7c   : > { %3628 = vmatpush3.bf16.msra.mxu0 %v3869_v28  ;;  %3511 = vmatprep.subr.bf16.mxu1 %v3875_v55  ;;  %v3091_v28 = vcombine.low %v4379_v19, %v282_v6  ;;  %v3887_v19 = vld [vmem:[%s4907_s3 + $0x38] sm:$0xff]   ;;  %v1708_v55 = vshll.u32 %v1667_v39, 16  ;;  %v3891_v39 = vld [vmem:[%s4907_s3 + $0x100] sm:$0xff]  }
  0x7d   : > { %3629 = vmatprep.subr.bf16.mxu0 %v3872_v43  ;;  %1522 = vmatprep.mubr.bf16.mxu1 %v3100_v30  ;;  %v1688_v43 = vshll.u32 %v1664_v35, 16  ;;  %v1701_v62 = vrot.slane %v1699_v50, 4 }
  0x7f   : > { %2710 = vmatmul.mubr.bf16.gmra.mrb[32].mxu0 %v4566_v54  ;;  %3512 = vmatpush3.bf16.msra.mxu1 %v3877_v58  ;;  %v1669_v58 = vld [vmem:[%s4417_s29 + $0x14] sm:$0x1]  ;;  %v1690_v41 = vrot.slane %v1688_v43, 5  ;;  %v1672_v43 = vld [vmem:[%s4417_s29 + $0x20] sm:$0xf] }
  0x80   : > { %3630 = vmatpush3.bf16.msra.mxu0 %v3874_v32  ;;  %3513 = vmatprep.subr.bf16.mxu1 %v3881_v21  ;;  %v1702_v32 = vshll.u32 %v1666_v37, 16  ;;  %v1710_v21 = vrot.slane %v1708_v55, 5  ;;  %v1722_v7 = vshll.u32 %v1669_v58, 16  ;;  %v1674_v55 = vld [vmem:[%s4417_s29 + $0x28] sm:$0xf] }
  0x81   : > { %3631 = vmatprep.subr.bf16.mxu0 %v3876_v56  ;;  %2717 = vmatprep.mubr.bf16.mxu0 %v3199_v42  ;;  %v1668_v56 = vld [vmem:[%s4417_s29 + $0x10] sm:$0xf]  ;;  %v1755_v40 = vshrl.u32 %v1674_v55, 16 }
  0x82   : > { %1523 = vmatmul.mubr.bf16.gmra.mrb[44].mxu1 %v3091_v28  ;;  %v1704_v4 = vrot.slane %v1702_v32, 5  ;;  %v1713_v22 = vshrl.u32 %v1668_v56, 16  ;;  %v1716_v42 = vshll.u32 %v1668_v56, 16  ;;  %v1724_v28 = vrot.slane %v1722_v7, 5  ;;  %v1673_v32 = vld [vmem:[%s4417_s29 + $0x24] sm:$0x1] }
  0x83   : > { %3514 = vmatpush3.bf16.msra.mxu1 %v3883_v23  ;;  %v1675_v56 = vld [vmem:[%s4417_s29 + $0x2c] sm:$0x1] }
  0x84   : > { %3632 = vmatpush3.bf16.msra.mxu0 %v3878_v60  ;;  %3515 = vmatprep.subr.bf16.mxu1 %v3885_v10  ;;  %v1687_v60 = vrot.slane %v1685_v34, 4  ;;  %v1705_v11 = vor.u32 %v1704_v4, %v1701_v62  ;;  %v1715_v12 = vrot.slane %v1713_v22, 4  ;;  %v1718_v17 = vrot.slane %v1716_v42, 5  ;;  %v3895_v42 = vld [vmem:[%s4907_s3 + $0x150] sm:$0xff]  }
  0x85   : > { %3633 = vmatprep.subr.bf16.mxu0 %v3882_v51  ;;  %v1730_v51 = vshll.u32 %v1670_v0, 16  ;;  %v1750_v62 = vshll.u32 %v1673_v32, 16  ;;  %v1758_v0 = vshll.u32 %v1674_v55, 16  ;;  %v1764_v4 = vshll.u32 %v1675_v56, 16  ;;  %v3902_v32 = vld [vmem:[%s4907_s3 + $0x160] sm:$0xff]  }
  0x86   : > { %v1691_v6 = vor.u32 %v1690_v41, %v1687_v60  ;;  %v1719_v45 = vor.u32 %v1718_v17, %v1715_v12  ;;  %v3893_v60 = vld [vmem:[%s4907_s3 + $0x208] sm:$0xff]   ;;  %v1741_v41 = vshrl.u32 %v1672_v43, 16  ;;  %v3899_v17 = vld [vmem:[%s4907_s3 + $0x158] sm:$0xff]   ;;  %v3904_v55 = vld [vmem:[%s4907_s3 + $0x220] sm:$0xff]  }
  0x87   : > { %2718 = vmatmul.mubr.bf16.gmra.mrb[36].mxu0 %v4621_v29  ;;  %3516 = vmatpush3.bf16.msra.mxu1 %v3887_v19  ;;  %v1732_v23 = vrot.slane %v1730_v51, 5  ;;  %v3192_v19 = vcombine.low %v1604_v16, %v4426_v44  ;;  %v3892_v44 = vld [vmem:[%s4907_s3 + $0x148] sm:$0xff]   ;;  %v1752_v22 = vrot.slane %v1750_v62, 5  ;;  %v1757_v16 = vrot.slane %v1755_v40, 4  ;;  %v3898_v51 = vld [vmem:[%s4907_s3 + $0x110] sm:$0xff]   ;;  %v3905_v62 = vld [vmem:[%s4907_s3 + $0x120] sm:$0xff]  }
  0x88   : > { %3634 = vmatpush3.bf16.msra.mxu0 %v3884_v25  ;;  %v1692_v13 = vrot.slane %v1691_v6, 4  ;;  %3581 = vmatprep.subr.bf16.mxu1 %v3889_v33  ;;  %v1706_v25 = vrot.slane %v1705_v11, 4  ;;  %v1720_v35 = vrot.slane %v1719_v45, 4  ;;  %v1760_v6 = vrot.slane %v1758_v0, 5  ;;  %v1679_v45 = vld [vmem:[%s4417_s29 + $0x3c] sm:$0x1] }
  0x89   : > { %3635 = vmatprep.subr.bf16.mxu0 %v3886_v31  ;;  %v1733_v30 = vor.u32 %v1732_v23, %v1729_v18  ;;  %v1738_v31 = vrot.slane %v1736_v8, 5  ;;  %v1766_v7 = vrot.slane %v1764_v4, 5  ;;  %v1677_v18 = vld [vmem:[%s4417_s29 + $0x34] sm:$0x1]  ;;  %v3906_v40 = vld [vmem:[%s4907_s3 + $0x168] sm:$0xff]   ;;  %v3195_v4 = vcombine.low %v4531_v27, %v4584_v63 }
  0x8a   : > { %v1697_v10 = vsel %vm4089_vm3, %v1692_v13, %v1696_v59  ;;  %v4665_v34 = vsel %vm4089_vm3, %v1720_v35, %v1724_v28  ;;  %v1744_v59 = vshll.u32 %v1672_v43, 16  ;;  %v1761_v11 = vor.u32 %v1760_v6, %v1757_v16  ;;  %v1676_v13 = vld [vmem:[%s4417_s29 + $0x30] sm:$0xf]  ;;  %v3907_v16 = vld [vmem:[%s4907_s3 + $0x228] sm:$0xff]  }
  0x8b   : > { %v1734_v37 = vrot.slane %v1733_v30, 4  ;;  %v1769_v28 = vshrl.u32 %v1676_v13, 16  ;;  %v1683_v6 = vld [vmem:[%s4417_s29 + $0x4c] sm:$0x1] }
  0x8c   : > { %3636 = vmatpush3.bf16.msra.mxu0 %v3888_v3  ;;  %v4657_v3 = vsel %vm4089_vm3, %v1706_v25, %v1710_v21  ;;  %v1743_v21 = vrot.slane %v1741_v41, 4  ;;  %v1746_v61 = vrot.slane %v1744_v59, 5  ;;  %v1762_v8 = vrot.slane %v1761_v11, 4  ;;  %v1678_v25 = vld [vmem:[%s4417_s29 + $0x38] sm:$0xf]  ;;  %v3908_v27 = vld [vmem:[%s4907_s3 + $0x128] sm:$0xff]  }
  0x8d   : > { %3697 = vmatprep.subr.bf16.mxu0 %v3890_v38  ;;  %v3201_v36 = vcombine.low %v1697_v10, %v4657_v3  ;;  %v4675_v50 = vsel %vm4089_vm3, %v1734_v37, %v1738_v31  ;;  %v1772_v10 = vshll.u32 %v1676_v13, 16  ;;  %v3900_v31 = vld [vmem:[%s4907_s3 + $0x218] sm:$0xff]   ;;  %v1783_v35 = vshrl.u32 %v1678_v25, 16  ;;  %v3909_v13 = vld [vmem:[%s4907_s3 + $0x170] sm:$0xff]  }
  0x8e   : > { %v3202_v58 = vcombine.low %v4665_v34, %v4675_v50  ;;  %v1747_v33 = vor.u32 %v1746_v61, %v1743_v21  ;;  %v4712_v30 = vsel %vm4089_vm3, %v1762_v8, %v1766_v7  ;;  %v1771_v37 = vrot.slane %v1769_v28, 4  ;;  %v1680_v21 = vld [vmem:[%s4417_s29 + $0x40] sm:$0xf]  ;;  %v1681_v61 = vld [vmem:[%s4417_s29 + $0x44] sm:$0x1]  ;;  %v3911_v28 = vld [vmem:[%s4907_s3 + $0x230] sm:$0xff]  }
  0x8f   : > { %2628 = vmatprep.mubr.bf16.mxu1 %v3201_v36  ;;  %v1786_v36 = vshll.u32 %v1678_v25, 16  ;;  %v1785_v43 = vrot.slane %v1783_v35, 4  ;;  %v1817_v7 = vshrl.u32 %v1680_v21, 16  ;;  %v3223_v35 = vcombine.low %v4461_v2, %v4497_v14  ;;  %v3914_v2 = vld [vmem:[%s4907_s3 + $0x238] sm:$0xff]  }
  0x90   : > { %2629 = vmatmul.mubr.bf16.vlgmr.msra.gmra.mrb[48].mxu1 %v3192_v19  ;;  %2823 = vmatprep.mubr.bf16.mxu0 %v3202_v58  ;;  %v1748_v12 = vrot.slane %v1747_v33, 4  ;;  %v1778_v19 = vshll.u32 %v1677_v18, 16 }
  0x91   : > { %3582 = vmatpush3.bf16.msra.mxu1 %v3891_v39  ;;  %2824 = vmatmul.mubr.bf16.vlgmr.msra.gmra.mrb[40].mxu0 %v3193_v49  ;;  %v1774_v39 = vrot.slane %v1772_v10, 5  ;;  %v3912_v10 = vld [vmem:[%s4907_s3 + $0x130] sm:$0xff]  }
  0x92   : > { %3583 = vmatprep.subr.bf16.mxu1 %v3892_v44  ;;  %2636 = vmatprep.mubr.bf16.mxu1 %v3202_v58  ;;  %v4704_v23 = vsel %vm4089_vm3, %v1748_v12, %v1752_v22  ;;  %v1792_v44 = vshll.u32 %v1679_v45, 16  ;;  %v1780_v58 = vrot.slane %v1778_v19, 5  ;;  %v1682_v22 = vld [vmem:[%s4417_s29 + $0x48] sm:$0xf]  ;;  %v1853_v12 = vshll.u32 %v1683_v6, 16 }
  0x93   : > { %3698 = vmatpush3.bf16.msra.mxu0 %v3890_v38  ;;  %v3194_v38 = vcombine.low %v4481_v5, %v4528_v26  ;;  %v3203_v5 = vcombine.low %v4704_v23, %v4712_v30  ;;  %v3901_v26 = vld [vmem:[%s4907_s3 + $0x118] sm:$0xff]   ;;  %v1775_v56 = vor.u32 %v1774_v39, %v1771_v37  ;;  %v1844_v63 = vshrl.u32 %v1682_v22, 16  ;;  %v1613_v19 = vld [vmem:[%s4417_s29 + $0x48] sm:$0xf] }
  0x94   : > { %3699 = vmatprep.subr.bf16.mxu0 %v3893_v60  ;;  %v1847_v11 = vshll.u32 %v1682_v22, 16  ;;  %v1855_v45 = vrot.slane %v1853_v12, 5 }
  0x95   : > { %3584 = vmatpush3.bf16.msra.mxu1 %v3894_v47  ;;  %2831 = vmatprep.mubr.bf16.mxu0 %v3203_v5  ;;  %v1776_v59 = vrot.slane %v1775_v56, 4  ;;  %v1882_v56 = vld [vmem:[%s4417_s29 + $0x48] sm:$0xe] }
  0x96   : > { %3585 = vmatprep.subr.bf16.mxu1 %v3895_v42  ;;  %v1849_v25 = vrot.slane %v1847_v11, 5 }
  0x97   : > { %3700 = vmatpush3.bf16.msra.mxu0 %v3893_v60  ;;  %v1794_v60 = vrot.slane %v1792_v44, 5  ;;  %v4736_v0 = vsel %vm4089_vm3, %v1776_v59, %v1780_v58  ;;  %v3200_v44 = vcombine.low %v4587_v1, %v1613_v19  ;;  %v1880_v1 = vld [vmem:[%s4417_s29 + $0x40] sm:$0xe]  ;;  %v1883_v58 = vld [vmem:[%s4417_s29 + $0x4c] sm:$0x1]  ;;  %v3227_v59 = vrot.slane %v1882_v56, 9 }
  0x98   : > { %2637 = vmatmul.mubr.bf16.gmra.mrb[52].mxu1 %v3193_v49  ;;  %3701 = vmatprep.subr.bf16.mxu0 %v3897_v48  ;;  %v1788_v49 = vrot.slane %v1786_v36, 5 }
  0x99   : > { %3586 = vmatpush3.bf16.msra.mxu1 %v3898_v51  ;;  %2832 = vmatmul.mubr.bf16.gmra.mrb[44].mxu0 %v3194_v38  ;;  %v1826_v51 = vshll.u32 %v1681_v61, 16 }
  0x9a   : > { %3587 = vmatprep.subr.bf16.mxu1 %v3899_v17  ;;  %v1789_v41 = vor.u32 %v1788_v49, %v1785_v43  ;;  %2644 = vmatprep.mubr.bf16.mxu1 %v3203_v5  ;;  %v1819_v17 = vrot.slane %v1817_v7, 4  ;;  %v3915_v43 = vld [vmem:[%s4907_s3 + $0x138] sm:$0xff]  }
  0x9b   : > { %3702 = vmatpush3.bf16.msra.mxu0 %v3897_v48  ;;  %v1820_v48 = vshll.u32 %v1680_v21, 16  ;;  %v1828_v18 = vrot.slane %v1826_v51, 5 }
  0x9c   : > { %3703 = vmatprep.subr.bf16.mxu0 %v3900_v31  ;;  %v1790_v47 = vrot.slane %v1789_v41, 4 }
  0x9d   : > { %3588 = vmatpush3.bf16.msra.mxu1 %v3901_v26  ;;  %v1822_v8 = vrot.slane %v1820_v48, 5  ;;  %v3913_v26 = vld [vmem:[%s4907_s3 + $0x178] sm:$0xff]  }
  0x9e   : > { %3589 = vmatprep.subr.bf16.mxu1 %v3902_v32  ;;  %v4745_v42 = vsel %vm4089_vm3, %v1790_v47, %v1794_v60  ;;  %v3205_v32 = vcombine.low %v4657_v3, %v4665_v34  ;;  %v3222_v60 = vrot.slane %v1880_v1, 9  ;;  %v1975_v3 = vrot.slane %v1883_v58, 5 }
  0x9f   : > { %3704 = vmatpush3.bf16.msra.mxu0 %v3900_v31  ;;  %v3204_v33 = vcombine.low %v4736_v0, %v4745_v42  ;;  %v1823_v31 = vor.u32 %v1822_v8, %v1819_v17  ;;  %v3206_v34 = vcombine.low %v4675_v50, %v4704_v23  ;;  %v3207_v47 = vcombine.low %v4712_v30, %v4736_v0 }
  0xa0   : > { %2645 = vmatmul.mubr.bf16.gmra.mrb[56].mxu1 %v3194_v38  ;;  %3705 = vmatprep.subr.bf16.mxu0 %v3904_v55  ;;  %v1846_v38 = vrot.slane %v1844_v63, 4  ;;  %v1976_v52 = vsel %vm4105_vm5, %v3227_v59, %v1975_v3 }
  0xa1   : > { %3590 = vmatpush3.bf16.msra.mxu1 %v3905_v62  ;;  %2839 = vmatprep.mubr.bf16.mxu0 %v3204_v33  ;;  %v1824_v5 = vrot.slane %v1823_v31, 4 }
  0xa2   : > { %3591 = vmatprep.subr.bf16.mxu1 %v3906_v40  ;;  %2840 = vmatmul.mubr.bf16.gmra.mrb[48].mxu0 %v3195_v4  ;;  %v1850_v36 = vor.u32 %v1849_v25, %v1846_v38 }
  0xa3   : > { %3706 = vmatpush3.bf16.msra.mxu0 %v3904_v55  ;;  %2652 = vmatprep.mubr.bf16.mxu1 %v3204_v33  ;;  %v1829_v39 = vsel %vm4089_vm3, %v1824_v5, %v1828_v18  ;;  %v1881_v55 = vld [vmem:[%s4417_s29 + $0x44] sm:$0x1] }
  0xa4   : > { %3707 = vmatprep.subr.bf16.mxu0 %v3907_v16  ;;  %v1851_v37 = vrot.slane %v1850_v36, 4  ;;  %v1956_v41 = vrot.slane %v1881_v55, 5  ;;  %v3208_v53 = vcombine.low %v4745_v42, %v1829_v39 }
  0xa5   : > { %3592 = vmatpush3.bf16.msra.mxu1 %v3908_v27 }
  0xa6   : > { %3593 = vmatprep.subr.bf16.mxu1 %v3909_v13  ;;  %v1856_v14 = vsel %vm4089_vm3, %v1851_v37, %v1855_v45 }
  0xa7   : > { %3708 = vmatpush3.bf16.msra.mxu0 %v3907_v16  ;;  %v3209_v49 = vcombine.low %v1829_v39, %v1856_v14 }
  0xa8   : > { %2653 = vmatmul.mubr.bf16.gmra.mrb[60].mxu1 %v3195_v4  ;;  %3709 = vmatprep.subr.bf16.mxu0 %v3911_v28 }
  0xa9   : > { %2758 = vmatprep.mubr.bf16.mxu1 %v3223_v35  ;;  %3594 = vmatpush3.bf16.msra.mxu1 %v3912_v10 }
  0xaa   : > { %3595 = vmatprep.subr.bf16.mxu1 %v3913_v26  ;;  %2847 = vmatprep.mubr.bf16.mxu0 %v3209_v49 }
  0xab   : > { %3710 = vmatpush3.bf16.msra.mxu0 %v3911_v28 }
  0xac   : > { %3711 = vmatprep.subr.bf16.mxu0 %v3914_v2  ;;  %2848 = vmatmul.mubr.bf16.gmra.mrb[52].mxu0 %v3200_v44 }
  0xad   : > { %3596 = vmatpush3.bf16.msra.mxu1 %v3915_v43  ;;  %3713 = vmatprep.mubr.bf16.mxu0 %v4516_v24  ;;  %v1957_v24 = vsel %vm4105_vm5, %v3222_v60, %v1956_v41 }
  0xae   : > { %v3228_v62 = vcombine.low %v1957_v24, %v1976_v52 }
  0xaf   : > { %3712 = vmatpush3.bf16.msra.mxu0 %v3914_v2 }
  0xb0   : > { %2759 = vmatmul.mubr.bf16.vlgmr.msra.gmra.mrb[64].mxu1 %v3205_v32 }
  0xb1   : > { %2766 = vmatprep.mubr.bf16.mxu1 %v3224_v57 }
  0xb4   : > { %3714 = vmatmul.mubr.bf16.vlgmr.msra.gmra.mrb[16].mxu0 %v4566_v54  ;;  %v3226_v54 = vcombine.low %v4611_v46, %v1957_v24 }
  0xb5   : > { %3717 = vmatprep.mubr.bf16.mxu0 %v4621_v29 }
  0xb8   : > { %2767 = vmatmul.mubr.bf16.gmra.mrb[68].mxu1 %v3206_v34 }
  0xb9   : > { %2774 = vmatprep.mubr.bf16.mxu1 %v3225_v15 }
  0xbc   : > { %3718 = vmatmul.mubr.bf16.gmra.mrb[20].mxu0 %v3228_v62 }
  0xc0   : > { %2775 = vmatmul.mubr.bf16.gmra.mrb[72].mxu1 %v3207_v47 }
  0xc1   : > { %2782 = vmatprep.mubr.bf16.mxu1 %v3226_v54 }
  0xc8   : > { %2783 = vmatmul.mubr.bf16.gmra.mrb[76].mxu1 %v3208_v53 }
  0xfa   : > { %v3345_v20 = vpop.f32.mrb[0].mxu1 }
  0xfb   : > { %v3346_v29 = vpop.f32.mrb[1].mxu1  ;;  %v3425_v9 = vpop.f32.mrb[0].mxu0 }
  0xfc   : > { %v3347_v50 = vadd.f32 %v3346_v29, %v3345_v20  ;;  %v3348_v23 = vpop.f32.mrb[2].mxu1  ;;  %v3426_v4 = vpop.f32.mrb[1].mxu0 }
  0xfd   : > { %v3349_v40 = vpop.f32.mrb[3].mxu1  ;;  %v3427_v61 = vadd.f32 %v3426_v4, %v3425_v9  ;;  %v3428_v22 = vpop.f32.mrb[2].mxu0 }
  0xfe   : > { %v3350_v21 = vadd.f32 %v3349_v40, %v3348_v23  ;;  %v3429_v16 = vpop.f32.mrb[3].mxu0 }
  0xff   : > { %v3430_v30 = vadd.f32 %v3429_v16, %v3428_v22 }
 0x105   : > { %v3351_v0 = vpop.f32.mrb[4].mxu1 }
 0x106   : > { %v3352_v6 = vpop.f32.mrb[5].mxu1  ;;  %v3431_v42 = vpop.f32.mrb[4].mxu0 }
 0x107   : > { %v3353_v46 = vadd.f32 %v3352_v6, %v3351_v0  ;;  %v3354_v7 = vpop.f32.mrb[6].mxu1  ;;  %v3432_v33 = vpop.f32.mrb[5].mxu0 }
 0x108   : > { %v3355_v48 = vpop.f32.mrb[7].mxu1  ;;  %v3433_v27 = vadd.f32 %v3432_v33, %v3431_v42  ;;  %v3434_v63 = vpop.f32.mrb[6].mxu0 }
 0x109   : > { %v3356_v51 = vadd.f32 %v3355_v48, %v3354_v7  ;;  %v3435_v11 = vpop.f32.mrb[7].mxu0 }
 0x10a   : > { %v3436_v12 = vadd.f32 %v3435_v11, %v3434_v63 }
 0x10d   : > { %v3357_v17 = vpop.f32.mrb[8].mxu1 }
 0x10e   : > { %v3358_v8 = vpop.f32.mrb[9].mxu1 }
 0x10f   : > { %v3359_v13 = vadd.f32 %v3358_v8, %v3357_v17  ;;  %v3360_v18 = vpop.f32.mrb[10].mxu1  ;;  %v3437_v45 = vpop.f32.mrb[8].mxu0 }
 0x110   : > { %v3361_v38 = vpop.f32.mrb[11].mxu1  ;;  %v3438_v28 = vpop.f32.mrb[9].mxu0 }
 0x111   : > { %v3362_v25 = vadd.f32 %v3361_v38, %v3360_v18  ;;  %v3439_v10 = vadd.f32 %v3438_v28, %v3437_v45  ;;  %v3440_v31 = vpop.f32.mrb[10].mxu0 }
 0x112   : > { %v3441_v19 = vpop.f32.mrb[11].mxu0 }
 0x113   : > { %v3442_v35 = vadd.f32 %v3441_v19, %v3440_v31 }
 0x115   : > { %v3363_v36 = vpop.f32.mrb[12].mxu1 }
 0x116   : > { %v3364_v5 = vpop.f32.mrb[13].mxu1 }
 0x117   : > { %v3365_v26 = vadd.f32 %v3364_v5, %v3363_v36  ;;  %v3366_v37 = vpop.f32.mrb[14].mxu1 }
 0x118   : > { %v3367_v39 = vpop.f32.mrb[15].mxu1 }
 0x119   : > { %v3368_v2 = vadd.f32 %v3367_v39, %v3366_v37  ;;  %v3443_v14 = vpop.f32.mrb[12].mxu0 }
 0x11a   : > { %v3444_v43 = vpop.f32.mrb[13].mxu0 }
 0x11b   : > { %v3445_v32 = vadd.f32 %v3444_v43, %v3443_v14  ;;  %v3446_v57 = vpop.f32.mrb[14].mxu0 }
 0x11c   : > { %v3447_v56 = vpop.f32.mrb[15].mxu0 }
 0x11d   : > { %v3385_v44 = vpop.f32.mrb[16].mxu1  ;;  %v3448_v60 = vadd.f32 %v3447_v56, %v3446_v57 }
 0x11e   : > { %v3386_v49 = vpop.f32.mrb[17].mxu1 }
 0x11f   : > { %v3387_v1 = vadd.f32 %v3386_v49, %v3385_v44  ;;  %v3388_v55 = vpop.f32.mrb[18].mxu1 }
 0x120   : > { %v3389_v58 = vpop.f32.mrb[19].mxu1 }
 0x121   : > { %v1371_v41 = vadd.f32 %v3387_v1, %v3347_v50  ;;  %v3390_v59 = vadd.f32 %v3389_v58, %v3388_v55 }
 0x123   : > { %v1374_v3 = vadd.f32 %v3390_v59, %v3350_v21  ;;  %v1436_v34 = vadd.f32 %v3427_v61, %v1371_v41 }
 0x125   : > { %v3391_v15 = vpop.f32.mrb[20].mxu1  ;;  %v1439_v24 = vadd.f32 %v3430_v30, %v1374_v3 }
 0x126   : > { %v3392_v52 = vpop.f32.mrb[21].mxu1 }
 0x127   : > { %v3393_v62 = vadd.f32 %v3392_v52, %v3391_v15  ;;  %v3394_v47 = vpop.f32.mrb[22].mxu1 }
 0x128   : > { %v3395_v54 = vpop.f32.mrb[23].mxu1 }
 0x129   : > { %v1379_v53 = vadd.f32 %v3393_v62, %v3353_v46  ;;  %v3396_v20 = vadd.f32 %v3395_v54, %v3394_v47 }
 0x12b   : > { %v1382_v29 = vadd.f32 %v3396_v20, %v3356_v51  ;;  %v1444_v23 = vadd.f32 %v3433_v27, %v1379_v53 }
 0x12d   : > { %v3397_v9 = vpop.f32.mrb[24].mxu1  ;;  %v1447_v40 = vadd.f32 %v3436_v12, %v1382_v29 }
 0x12e   : > { %v3398_v4 = vpop.f32.mrb[25].mxu1 }
 0x12f   : > { %v3399_v22 = vadd.f32 %v3398_v4, %v3397_v9  ;;  %v3400_v16 = vpop.f32.mrb[26].mxu1 }
 0x130   : > { %v3401_v0 = vpop.f32.mrb[27].mxu1 }
 0x131   : > { %v1387_v50 = vadd.f32 %v3399_v22, %v3359_v13  ;;  %v3402_v6 = vadd.f32 %v3401_v0, %v3400_v16 }
 0x133   : > { %v1390_v21 = vadd.f32 %v3402_v6, %v3362_v25  ;;  %v1452_v61 = vadd.f32 %v3439_v10, %v1387_v50 }
 0x135   : > { %v3403_v7 = vpop.f32.mrb[28].mxu1  ;;  %v1455_v30 = vadd.f32 %v3442_v35, %v1390_v21 }
 0x136   : > { %v3404_v48 = vpop.f32.mrb[29].mxu1 }
 0x137   : > { %v3405_v42 = vadd.f32 %v3404_v48, %v3403_v7  ;;  %v3406_v33 = vpop.f32.mrb[30].mxu1 }
 0x138   : > { %v3407_v63 = vpop.f32.mrb[31].mxu1 }
 0x139   : > { %v1395_v46 = vadd.f32 %v3405_v42, %v3365_v26  ;;  %v3408_v11 = vadd.f32 %v3407_v63, %v3406_v33 }
 0x13b   : > { %v1398_v51 = vadd.f32 %v3408_v11, %v3368_v2  ;;  %v1460_v27 = vadd.f32 %v3445_v32, %v1395_v46 }
 0x13d   : > { %v3465_v17 = vpop.f32.mrb[32].mxu1  ;;  %v1463_v12 = vadd.f32 %v3448_v60, %v1398_v51 }
 0x13e   : > { %v3466_v8 = vpop.f32.mrb[33].mxu1 }
 0x13f   : > { %v3467_v18 = vadd.f32 %v3466_v8, %v3465_v17  ;;  %v3468_v38 = vpop.f32.mrb[34].mxu1 }
 0x140   : > { %v3469_v45 = vpop.f32.mrb[35].mxu1 }
 0x141   : > { %v4805_v13 = vadd.f32 %v3467_v18, %v1436_v34  ;;  %v3470_v25 = vadd.f32 %v3469_v45, %v3468_v38 }
 0x142   : > { %v3557_v10 = vpop.f32.mrb[24].mxu0 }
 0x143   : > { %v4807_v28 = vadd.f32 %v3470_v25, %v1439_v24  ;;  %v3558_v31 = vpop.f32.mrb[25].mxu0 }
 0x144   : > { %v3559_v35 = vadd.f32 %v3558_v31, %v3557_v10  ;;  %v3560_v36 = vpop.f32.mrb[26].mxu0 }
 0x145   : > { %v3471_v19 = vpop.f32.mrb[36].mxu1  ;;  %v3561_v26 = vpop.f32.mrb[27].mxu0 }
 0x146   : > { %v3472_v5 = vpop.f32.mrb[37].mxu1  ;;  %v3562_v2 = vadd.f32 %v3561_v26, %v3560_v36 }
 0x147   : > { %v3473_v37 = vadd.f32 %v3472_v5, %v3471_v19  ;;  %v3474_v39 = vpop.f32.mrb[38].mxu1 }
 0x148   : > { %v3475_v14 = vpop.f32.mrb[39].mxu1 }
 0x149   : > { %v4809_v44 = vadd.f32 %v3473_v37, %v1444_v23  ;;  %v3476_v43 = vadd.f32 %v3475_v14, %v3474_v39 }
 0x14a   : > { %v3563_v32 = vpop.f32.mrb[28].mxu0 }
 0x14b   : > { %v4811_v49 = vadd.f32 %v3476_v43, %v1447_v40  ;;  %v3564_v57 = vpop.f32.mrb[29].mxu0 }
 0x14c   : > { %v3565_v55 = vadd.f32 %v3564_v57, %v3563_v32  ;;  %v3566_v56 = vpop.f32.mrb[30].mxu0 }
 0x14d   : > { %v3477_v1 = vpop.f32.mrb[40].mxu1  ;;  %v3567_v60 = vpop.f32.mrb[31].mxu0 }
 0x14e   : > { %v3478_v58 = vpop.f32.mrb[41].mxu1  ;;  %v3568_v3 = vadd.f32 %v3567_v60, %v3566_v56 }
 0x14f   : > { %v3479_v41 = vadd.f32 %v3478_v58, %v3477_v1  ;;  %v3480_v59 = vpop.f32.mrb[42].mxu1 }
 0x150   : > { %v3481_v34 = vpop.f32.mrb[43].mxu1 }
 0x151   : > { %v4813_v15 = vadd.f32 %v3479_v41, %v1452_v61  ;;  %v3482_v24 = vadd.f32 %v3481_v34, %v3480_v59 }
 0x152   : > { %v3569_v62 = vpop.f32.mrb[32].mxu0 }
 0x153   : > { %v4815_v52 = vadd.f32 %v3482_v24, %v1455_v30  ;;  %v3570_v47 = vpop.f32.mrb[33].mxu0 }
 0x154   : > { %v3571_v54 = vadd.f32 %v3570_v47, %v3569_v62  ;;  %v3572_v53 = vpop.f32.mrb[34].mxu0 }
 0x155   : > { %v3573_v20 = vpop.f32.mrb[35].mxu0  ;;  %v3483_v40 = vpop.f32.mrb[44].mxu1 }
 0x156   : > { %v3574_v29 = vadd.f32 %v3573_v20, %v3572_v53  ;;  %v3484_v16 = vpop.f32.mrb[45].mxu1 }
 0x157   : > { %v3485_v50 = vadd.f32 %v3484_v16, %v3483_v40  ;;  %v3486_v6 = vpop.f32.mrb[46].mxu1 }
 0x158   : > { %v3487_v61 = vpop.f32.mrb[47].mxu1 }
 0x159   : > { %v4817_v7 = vadd.f32 %v3485_v50, %v1460_v27  ;;  %v3488_v30 = vadd.f32 %v3487_v61, %v3486_v6 }
 0x15a   : > { %v3575_v23 = vpop.f32.mrb[36].mxu0 }
 0x15b   : > { %v3576_v9 = vpop.f32.mrb[37].mxu0  ;;  %v4819_v48 = vadd.f32 %v3488_v30, %v1463_v12 }
 0x15c   : > { %v3577_v4 = vadd.f32 %v3576_v9, %v3575_v23  ;;  %v3578_v22 = vpop.f32.mrb[38].mxu0 }
 0x15d   : > { %v3579_v0 = vpop.f32.mrb[39].mxu0 }
 0x15e   : > { %v3580_v21 = vadd.f32 %v3579_v0, %v3578_v22 }
 0x163   : > { %v3517_v42 = vpop.f32.mrb[48].mxu1 }
 0x164   : > { %v3518_v33 = vpop.f32.mrb[49].mxu1  ;;  %v3637_v51 = vpop.f32.mrb[40].mxu0 }
 0x165   : > { %v3519_v63 = vadd.f32 %v3518_v33, %v3517_v42  ;;  %v3520_v46 = vpop.f32.mrb[50].mxu1  ;;  %v3638_v18 = vpop.f32.mrb[41].mxu0 }
 0x166   : > { %v3521_v11 = vpop.f32.mrb[51].mxu1  ;;  %v3639_v38 = vadd.f32 %v3638_v18, %v3637_v51  ;;  %v3640_v45 = vpop.f32.mrb[42].mxu0 }
 0x167   : > { %v2696_v17 = vadd.f32 %v3559_v35, %v3519_v63  ;;  %v3522_v8 = vadd.f32 %v3521_v11, %v3520_v46  ;;  %v3641_v10 = vpop.f32.mrb[43].mxu0 }
 0x168   : > { %v3642_v31 = vadd.f32 %v3641_v10, %v3640_v45 }
 0x169   : > { %v2699_v25 = vadd.f32 %v3562_v2, %v3522_v8 }
 0x16b   : > { %v3523_v19 = vpop.f32.mrb[52].mxu1 }
 0x16c   : > { %v3524_v27 = vpop.f32.mrb[53].mxu1  ;;  %v3643_v39 = vpop.f32.mrb[44].mxu0 }
 0x16d   : > { %v3525_v36 = vadd.f32 %v3524_v27, %v3523_v19  ;;  %v3526_v5 = vpop.f32.mrb[54].mxu1  ;;  %v3644_v43 = vpop.f32.mrb[45].mxu0 }
 0x16e   : > { %v3527_v12 = vpop.f32.mrb[55].mxu1  ;;  %v4825_v35 = vadd.f32 %v3644_v43, %v3643_v39  ;;  %v3646_v32 = vpop.f32.mrb[46].mxu0  ;;  %v4849_v39 = vld [vmem:[%s4908_s4] ss:$0 sm:$0xff] }
 0x16f   : > { %v4821_v26 = vadd.f32 %v3565_v55, %v3525_v36  ;;  %v3528_v37 = vadd.f32 %v3527_v12, %v3526_v5  ;;  %v3647_v1 = vpop.f32.mrb[47].mxu0 }
 0x170   : > { %v4827_v56 = vadd.f32 %v3647_v1, %v3646_v32 }
 0x171   : > { %v4823_v14 = vadd.f32 %v3568_v3, %v3528_v37 }
 0x173   : > { %v3529_v57 = vpop.f32.mrb[56].mxu1 }
 0x174   : > { %v3530_v2 = vpop.f32.mrb[57].mxu1 }
 0x175   : > { %v3531_v58 = vadd.f32 %v3530_v2, %v3529_v57  ;;  %v3532_v60 = vpop.f32.mrb[58].mxu1  ;;  %v3649_v34 = vpop.f32.mrb[48].mxu0 }
 0x176   : > { %v3533_v41 = vpop.f32.mrb[59].mxu1  ;;  %v3650_v3 = vpop.f32.mrb[49].mxu0 }
 0x177   : > { %v4829_v59 = vadd.f32 %v3571_v54, %v3531_v58  ;;  %v3534_v55 = vadd.f32 %v3533_v41, %v3532_v60  ;;  %v4833_v62 = vadd.f32 %v3650_v3, %v3649_v34  ;;  %v3652_v47 = vpop.f32.mrb[50].mxu0 }
 0x178   : > { %v3653_v20 = vpop.f32.mrb[51].mxu0 }
 0x179   : > { %v4831_v24 = vadd.f32 %v3574_v29, %v3534_v55  ;;  %v4835_v9 = vadd.f32 %v3653_v20, %v3652_v47 }
 0x17b   : > { %v3535_v53 = vpop.f32.mrb[60].mxu1 }
 0x17c   : > { %v3536_v23 = vpop.f32.mrb[61].mxu1 }
 0x17d   : > { %v3537_v40 = vadd.f32 %v3536_v23, %v3535_v53  ;;  %v3538_v22 = vpop.f32.mrb[62].mxu1 }
 0x17e   : > { %v3539_v16 = vpop.f32.mrb[63].mxu1 }
 0x17f   : > { %v4837_v0 = vadd.f32 %v3577_v4, %v3537_v40  ;;  %v3540_v54 = vadd.f32 %v3539_v16, %v3538_v22  ;;  %v3655_v6 = vpop.f32.mrb[52].mxu0 }
 0x180   : > { %v3656_v29 = vpop.f32.mrb[53].mxu0 }
 0x181   : > { %v4839_v50 = vadd.f32 %v3580_v21, %v3540_v54  ;;  %v4841_v61 = vadd.f32 %v3656_v29, %v3655_v6  ;;  %v3658_v30 = vpop.f32.mrb[54].mxu0 }
 0x182   : > { %v3659_v42 = vpop.f32.mrb[55].mxu0 }
 0x183   : > { %v3597_v33 = vpop.f32.mrb[64].mxu1  ;;  %v4843_v63 = vadd.f32 %v3659_v42, %v3658_v30 }
 0x184   : > { %v3598_v46 = vpop.f32.mrb[65].mxu1 }
 0x185   : > { %v3599_v11 = vadd.f32 %v3598_v46, %v3597_v33  ;;  %v3600_v51 = vpop.f32.mrb[66].mxu1 }
 0x186   : > { %v3601_v8 = vpop.f32.mrb[67].mxu1 }
 0x187   : > { %v2761_v18 = vadd.f32 %v3599_v11, %v2696_v17  ;;  %v3602_v45 = vadd.f32 %v3601_v8, %v3600_v51  ;;  %v3715_v4 = vpop.f32.mrb[16].mxu0 }
 0x188   : > { %v2890_v19 = vpop.f32.mrb[17].mxu0 }
 0x189   : > { %v2826_v10 = vadd.f32 %v3639_v38, %v2761_v18  ;;  %v2764_v21 = vadd.f32 %v3602_v45, %v2699_v25  ;;  %v3716_v27 = vpop.f32.mrb[18].mxu0  ;;  %v4855_v25 = vld [vmem:[%s4909_s5] ss:$0 sm:$0xff] }
 0x18a   : > { %v2893_v12 = vpop.f32.mrb[19].mxu0 }
 0x18b   : > { %v3723_v36 = vadd.f32 %v2826_v10, %v4805_v13  ;;  %v2829_v5 = vadd.f32 %v3642_v31, %v2764_v21  ;;  %v3603_v37 = vpop.f32.mrb[68].mxu1 }
 0x18c   : > { %v3604_v43 = vpop.f32.mrb[69].mxu1 }
 0x18d   : > { %v3724_v32 = vadd.f32 %v3723_v36, %v2890_v19  ;;  %v3727_v17 = vadd.f32 %v2829_v5, %v4807_v28  ;;  %v3605_v57 = vadd.f32 %v3604_v43, %v3603_v37  ;;  %v3606_v38 = vpop.f32.mrb[70].mxu1 }
 0x18e   : > { %v3607_v13 = vpop.f32.mrb[71].mxu1 }
 0x18f   : > { %v2960_v31 = vmul.f32 %v3724_v32, %v4849_v39  ;;  %v3728_v1 = vadd.f32 %v3727_v17, %v2893_v12  ;;  %v2769_v2 = vadd.f32 %v3605_v57, %v4821_v26  ;;  %v3608_v58 = vadd.f32 %v3607_v13, %v3606_v38  ;;  %v3719_v60 = vpop.f32.mrb[20].mxu0 }
 0x190   : > { %v2906_v34 = vpop.f32.mrb[21].mxu0 }
 0x191   : > { %v2975_v41 = vadd.f32 %v4855_v25, %v2960_v31  ;;  %v2961_v28 = vmul.f32 %v3728_v1, %v4849_v39  ;;  %v2834_v55 = vadd.f32 %v4825_v35, %v2769_v2  ;;  %v2772_v3 = vadd.f32 %v3608_v58, %v4823_v14  ;;  %v3720_v47 = vpop.f32.mrb[22].mxu0 }
 0x192   : > { %v2909_v26 = vpop.f32.mrb[23].mxu0 }
 0x193   : > { %v2976_v53 = vadd.f32 %v4855_v25, %v2961_v28  ;;  %v3721_v20 = vadd.f32 %v2834_v55, %v4809_v44  ;;  %v2837_v23 = vadd.f32 %v4827_v56, %v2772_v3  ;;  %v3609_v40 = vpop.f32.mrb[72].mxu1  ;;  %v2983_v22 = vmax.f32 %v2975_v41, 0.0 }
 0x194   : > { %v3610_v16 = vpop.f32.mrb[73].mxu1 }
 0x195   : > { %v2984_v54 = vmax.f32 %v2976_v53, 0.0  ;;  %v3722_v6 = vadd.f32 %v3721_v20, %v3715_v4  ;;  %v3725_v29 = vadd.f32 %v2837_v23, %v4811_v49  ;;  %v3611_v35 = vadd.f32 %v3610_v16, %v3609_v40  ;;  %v3612_v30 = vpop.f32.mrb[74].mxu1 }
 0x196   : > { %v3613_v14 = vpop.f32.mrb[75].mxu1 }
 0x197   : > { %v3309_v44 = vpack.c.bf16 %v2984_v54, %v2983_v22  ;;  %v2962_v56 = vmul.f32 %v3722_v6, %v4849_v39  ;;  %v3726_v42 = vadd.f32 %v3725_v29, %v3716_v27  ;;  %v2777_v33 = vadd.f32 %v3611_v35, %v4829_v59 }
 0x198   : > { %v3614_v46 = vadd.f32 %v3613_v14, %v3612_v30 }
 0x199   : > { %3310 = vst [vmem:[%s4871_s22] sm:$0xff] %v3309_v44   ;;  %v2977_v11 = vadd.f32 %v4855_v25, %v2962_v56  ;;  %v2963_v49 = vmul.f32 %v3726_v42, %v4849_v39  ;;  %v2842_v51 = vadd.f32 %v4833_v62, %v2777_v33 }
 0x19a   : > { %v2780_v8 = vadd.f32 %v3614_v46, %v4831_v24 }
 0x19b   : > { %v2978_v18 = vadd.f32 %v4855_v25, %v2963_v49  ;;  %v3731_v45 = vadd.f32 %v2842_v51, %v4813_v15  ;;  %v3615_v4 = vpop.f32.mrb[76].mxu1  ;;  %v2985_v59 = vmax.f32 %v2977_v11, 0.0 }
 0x19c   : > { %v2845_v10 = vadd.f32 %v4835_v9, %v2780_v8  ;;  %v3616_v19 = vpop.f32.mrb[77].mxu1 }
 0x19d   : > { %v2986_v21 = vmax.f32 %v2978_v18, 0.0  ;;  %v3732_v27 = vadd.f32 %v3731_v45, %v2906_v34  ;;  %v3617_v36 = vadd.f32 %v3616_v19, %v3615_v4  ;;  %v3618_v5 = vpop.f32.mrb[78].mxu1 }
 0x19e   : > { %v3735_v12 = vadd.f32 %v2845_v10, %v4815_v52  ;;  %v3619_v37 = vpop.f32.mrb[79].mxu1 }
 0x19f   : > { %v3314_v62 = vpack.c.bf16 %v2986_v21, %v2985_v59  ;;  %v2964_v24 = vmul.f32 %v3732_v27, %v4849_v39  ;;  %v2785_v43 = vadd.f32 %v3617_v36, %v4837_v0  ;;  %v3620_v32 = vadd.f32 %v3619_v37, %v3618_v5 }
 0x1a0   : > { %v3736_v15 = vadd.f32 %v3735_v12, %v2909_v26 }
 0x1a1   : > { %3326 = vst [vmem:[%s4871_s22 + $0x8] sm:$0xff] %v3314_v62   ;;  %v2850_v17 = vadd.f32 %v4841_v61, %v2785_v43  ;;  %v2788_v9 = vadd.f32 %v3620_v32, %v4839_v50  ;;  %v2979_v57 = vadd.f32 %v4855_v25, %v2964_v24 }
 0x1a2   : > { %v2965_v38 = vmul.f32 %v3736_v15, %v4849_v39 }
 0x1a3   : > { %v3729_v52 = vadd.f32 %v2850_v17, %v4817_v7  ;;  %v2853_v13 = vadd.f32 %v4843_v63, %v2788_v9  ;;  %v2987_v2 = vmax.f32 %v2979_v57, 0.0 }
 0x1a4   : > { %v2980_v31 = vadd.f32 %v4855_v25, %v2965_v38 }
 0x1a5   : > { %v3730_v0 = vadd.f32 %v3729_v52, %v3719_v60  ;;  %v3733_v1 = vadd.f32 %v2853_v13, %v4819_v48 }
 0x1a6   : > { %v2988_v58 = vmax.f32 %v2980_v31, 0.0 }
 0x1a7   : > { %v2966_v61 = vmul.f32 %v3730_v0, %v4849_v39  ;;  %v3734_v41 = vadd.f32 %v3733_v1, %v3720_v47 }
 0x1a8   : > { %v3319_v50 = vpack.c.bf16 %v2988_v58, %v2987_v2 }
 0x1a9   : > { %v2981_v28 = vadd.f32 %v4855_v25, %v2966_v61  ;;  %v2967_v55 = vmul.f32 %v3734_v41, %v4849_v39 }
 0x1aa   : > { %3327 = vst [vmem:[%s4871_s22 + $0x10] sm:$0xff] %v3319_v50  }
 0x1ab   : > { %v2982_v7 = vadd.f32 %v4855_v25, %v2967_v55  ;;  %v2989_v63 = vmax.f32 %v2981_v28, 0.0 }
 0x1ad   : > { %v2990_v34 = vmax.f32 %v2982_v7, 0.0 }
 0x1af   : > { %v3324_v3 = vpack.c.bf16 %v2990_v34, %v2989_v63 }
 0x1b1   : > { %3328 = vst [vmem:[%s4871_s22 + $0x18] sm:$0xff] %v3324_v3  }
 0x1b2 PF: > { %s16_s21 = sadd.s32 1, %s3922_s21  }
 0x1b3   : > { %p13_p4 = scmp.ge.s32.totalorder %s16_s21, 4  }
 0x1b5   :  { %15 = sbr.rel (!%p13_p4) target bundleno = 1 (0x1), region = 77 }

// kernel: decoder_forward.7
= control target key start
LH: loop header
LB: loop body
LE: loop exit
PB: predicated region body
PF: predicated region fallthrough
CT: control target
= control target key end

     0   :  { %s3975_s15 = smov 0   ;;  %s5171_s0 = inlined_call_operand.vmem [shape: bf16[2,18,18,128], index: 0, kind: input, shape index: {}]   ;;  %s5172_s1 = inlined_call_operand.vmem [shape: bf16[1152,128], index: 1, kind: input, shape index: {}]   ;;  %s5173_s2 = inlined_call_operand.vmem [shape: f32[1,128], index: 2, kind: input, shape index: {}]   ;;  %s5174_s3 = inlined_call_operand.vmem [shape: f32[1,128], index: 3, kind: input, shape index: {}]   ;;  %s5175_s4 = inlined_call_operand.vmem [shape: f32[2,16,16,128], index: 4, kind: output, shape index: {}]  }
   0x1 LB: > { %s3143_s16 = sadd.s32 4294967295, %s3948_s15   ;;  %p3147_p0 = scmp.ge.s32.totalorder %s3948_s15, 1  ;;  %s3948_s15 = sphi %s3975_s15, %s14_s15  }
   0x2   : > { %p162_p1 = scmp.lt.s32.totalorder %s3948_s15, 3 }
   0x4   : > { %p163_p2 = pnand %p3147_p0, %p162_p1 }
   0x5   : > { %v3845_v0 = vld [vmem:[%s5172_s1 + $0x40] sm:$0xff] (!%p163_p2)   ;;  %p188_p3 = scmp.lt.s32.totalorder (!%p163_p2), %s3143_s16, 1  ;;  %v3847_v2 = vld [vmem:[%s5172_s1 + $0x48] sm:$0xff] (!%p163_p2)   ;;  %v3849_v4 = vld [vmem:[%s5172_s1 + $0x50] sm:$0xff] (!%p163_p2)   ;;  %vm445_vm0 = vsmask.f32 (!%p163_p2), 3328 }
   0x6   : > { %166 = sbr.rel (%p163_p2) target bundleno = 546 (0x222), region = 36  ;;  %v3846_v1 = vld [vmem:[%s5172_s1] sm:$0xff] (!%p163_p2)   ;;  %3300 = vmatprep.subr.bf16.mxu0 (!%p163_p2), %v3845_v0  ;;  %3820 = vmatprep.subr.bf16.mxu1 (!%p163_p2), %v3845_v0  ;;  %v3848_v3 = vld [vmem:[%s5172_s1 + $0x8] sm:$0xff] (!%p163_p2)   ;;  %v3850_v5 = vld [vmem:[%s5172_s1 + $0x10] sm:$0xff] (!%p163_p2)   ;;  %vm446_vm1 = vsmask.f32 (!%p163_p2), 7440 }
   0x7   : > { %3301 = vmatpush3.bf16.msra.mxu0 (!%p163_p2), %v3846_v1  ;;  %3828 = vmatpush3.bf16.msra.mxu1 (!%p163_p2), %v3846_v1  ;;  %v3851_v6 = vld [vmem:[%s5172_s1 + $0x58] sm:$0xff] (!%p163_p2)   ;;  %v3853_v8 = vld [vmem:[%s5172_s1 + $0x60] sm:$0xff] (!%p163_p2)   ;;  %v3855_v10 = vld [vmem:[%s5172_s1 + $0x68] sm:$0xff] (!%p163_p2)   ;;  %vm1102_vm3 = vcmask (!%p163_p2), 1042432   ;;  %vm1103_vm4 = vcmask (!%p163_p2), 1046532  }
   0x8   : > { %3302 = vmatprep.subr.bf16.mxu0 (!%p163_p2), %v3847_v2  ;;  %3821 = vmatprep.subr.bf16.mxu1 (!%p163_p2), %v3847_v2  ;;  %v3852_v7 = vld [vmem:[%s5172_s1 + $0x18] sm:$0xff] (!%p163_p2)   ;;  %v3854_v9 = vld [vmem:[%s5172_s1 + $0x20] sm:$0xff] (!%p163_p2)   ;;  %v3856_v14 = vld [vmem:[%s5172_s1 + $0x28] sm:$0xff] (!%p163_p2)  }
   0x9   : > { %v3857_v17 = vld [vmem:[%s5172_s1 + $0x70] sm:$0xff] (!%p163_p2)   ;;  %vm4041_vm2 = vmor (!%p163_p2), %vm445_vm0, %vm446_vm1  ;;  %v3859_v43 = vld [vmem:[%s5172_s1 + $0x78] sm:$0xff] (!%p163_p2)  }
   0xa   : > { %v3858_v30 = vld [vmem:[%s5172_s1 + $0x30] sm:$0xff] (!%p163_p2)   ;;  %v3860_v50 = vld [vmem:[%s5172_s1 + $0x38] sm:$0xff] (!%p163_p2)   ;;  %v3863_v54 = vld [vmem:[%s5172_s1 + $0xc0] sm:$0xff] (!%p163_p2)  }
   0xb   : > { %3303 = vmatpush3.bf16.msra.mxu0 (!%p163_p2), %v3848_v3  ;;  %3829 = vmatpush3.bf16.msra.mxu1 (!%p163_p2), %v3848_v3  ;;  %v3864_v59 = vld [vmem:[%s5172_s1 + $0x80] sm:$0xff] (!%p163_p2)   ;;  %v3865_v63 = vld [vmem:[%s5172_s1 + $0xc8] sm:$0xff] (!%p163_p2)   ;;  %vm4212_vm5 = vmor (!%p163_p2), %vm1102_vm3, %vm1103_vm4 }
   0xc   : > { %3304 = vmatprep.subr.bf16.mxu0 (!%p163_p2), %v3849_v4  ;;  %3822 = vmatprep.subr.bf16.mxu1 (!%p163_p2), %v3849_v4  ;;  %v3866_v60 = vld [vmem:[%s5172_s1 + $0x140] sm:$0xff] (!%p163_p2)  }
   0xd   : > { %s5181_s16 = smov (!%p188_p3, %s3143_s16), 1  ;;  %v3868_v4 = vld [vmem:[%s5172_s1 + $0x100] sm:$0xff]  }
   0xe   : > { %s3836_s5 = smul.u32 216, %s5181_s16  ;;  %s3299_s29 = sshll.u32 %s5181_s16, 8 }
   0xf   : > { %3305 = vmatpush3.bf16.msra.mxu0 %v3850_v5  ;;  %3830 = vmatpush3.bf16.msra.mxu1 %v3850_v5  ;;  %s5031_s16 = scalar_lea.vmem %s5175_s4, %s3299_s29 }
  0x10   : > { %3306 = vmatprep.subr.bf16.mxu0 %v3851_v6  ;;  %3823 = vmatprep.subr.bf16.mxu1 %v3851_v6  ;;  %s4016_s12 = scalar_lea.vmem %s5171_s0, %s3836_s5 }
  0x11   : > { %v391_v11 = vld [vmem:[%s4016_s12] sm:$0xf]  ;;  %v392_v12 = vld [vmem:[%s4016_s12 + $0x4] sm:$0xf]  ;;  %v393_v13 = vld [vmem:[%s4016_s12 + $0x8] sm:$0x1] }
  0x12   : > { %v449_v15 = vshrl.u32 %v391_v11, 16  ;;  %v452_v16 = vshll.u32 %v391_v11, 16  ;;  %v458_v18 = vshll.u32 %v392_v12, 16  ;;  %v462_v19 = vshrl.u32 %v392_v12, 16  ;;  %v427_v21 = vld [vmem:[%s4016_s12 + $0x90] sm:$0xf] }
  0x13   : > { %3307 = vmatpush3.bf16.msra.mxu0 %v3852_v7  ;;  %3831 = vmatpush3.bf16.msra.mxu1 %v3852_v7  ;;  %v468_v20 = vshll.u32 %v393_v13, 16  ;;  %v428_v24 = vld [vmem:[%s4016_s12 + $0x94] sm:$0xf]  ;;  %v429_v25 = vld [vmem:[%s4016_s12 + $0x98] sm:$0x1]  ;;  %v737_v29 = vshrl.u32 %v427_v21, 16 }
  0x14   : > { %3308 = vmatprep.subr.bf16.mxu0 %v3853_v8  ;;  %3824 = vmatprep.subr.bf16.mxu1 %v3853_v8  ;;  %v451_v22 = vrot.slane %v449_v15, 4  ;;  %v454_v23 = vrot.slane %v452_v16, 5  ;;  %v460_v26 = vrot.slane %v458_v18, 5  ;;  %v464_v27 = vrot.slane %v462_v19, 4  ;;  %v3861_v55 = vld [vmem:[%s4016_s12] sm:$0xff]   ;;  %v3862_v56 = vld [vmem:[%s4016_s12 + $0x90] sm:$0xff]  }
  0x15   : > { %v470_v28 = vrot.slane %v468_v20, 5  ;;  %v740_v32 = vshll.u32 %v427_v21, 16  ;;  %v746_v33 = vshll.u32 %v428_v24, 16  ;;  %v750_v34 = vshrl.u32 %v428_v24, 16  ;;  %v394_v61 = vld [vmem:[%s4016_s12 + $0xc] sm:$0xf] }
  0x16   : > { %v455_v31 = vor.u32 %v454_v23, %v451_v22  ;;  %v465_v36 = vor.u32 %v464_v27, %v460_v26  ;;  %v739_v37 = vrot.slane %v737_v29, 4  ;;  %v756_v38 = vshll.u32 %v429_v25, 16  ;;  %v395_v0 = vld [vmem:[%s4016_s12 + $0x10] sm:$0xf]  ;;  %v396_v1 = vld [vmem:[%s4016_s12 + $0x14] sm:$0x1] }
  0x17   : > { %3309 = vmatpush3.bf16.msra.mxu0 %v3854_v9  ;;  %3832 = vmatpush3.bf16.msra.mxu1 %v3854_v9  ;;  %v742_v40 = vrot.slane %v740_v32, 5  ;;  %v748_v41 = vrot.slane %v746_v33, 5  ;;  %v752_v42 = vrot.slane %v750_v34, 4  ;;  %v473_v2 = vshrl.u32 %v394_v61, 16  ;;  %v430_v8 = vld [vmem:[%s4016_s12 + $0x9c] sm:$0xf] }
  0x18   : > { %3310 = vmatprep.subr.bf16.mxu0 %v3855_v10  ;;  %3825 = vmatprep.subr.bf16.mxu1 %v3855_v10  ;;  %v456_v39 = vrot.slane %v455_v31, 4  ;;  %v466_v44 = vrot.slane %v465_v36, 4  ;;  %v758_v45 = vrot.slane %v756_v38, 5  ;;  %v476_v3 = vshll.u32 %v394_v61, 16  ;;  %v431_v11 = vld [vmem:[%s4016_s12 + $0xa0] sm:$0xf] }
  0x19   : > { %v743_v47 = vor.u32 %v742_v40, %v739_v37  ;;  %v753_v48 = vor.u32 %v752_v42, %v748_v41  ;;  %v482_v5 = vshll.u32 %v395_v0, 16  ;;  %v486_v6 = vshrl.u32 %v395_v0, 16  ;;  %v432_v12 = vld [vmem:[%s4016_s12 + $0xa4] sm:$0x1]  ;;  %v4089_v31 = vld [vmem:[%s4016_s12 + $0xc] sm:$0xff]   ;;  %v3870_v42 = vld [vmem:[%s4016_s12 + $0x9c] sm:$0xff]  }
  0x1a   : > { %v461_v46 = vsel %vm4041_vm2, %v456_v39, %v460_v26  ;;  %v471_v49 = vsel %vm4041_vm2, %v466_v44, %v470_v28  ;;  %v492_v7 = vshll.u32 %v396_v1, 16  ;;  %v475_v9 = vrot.slane %v473_v2, 4  ;;  %v3871_v32 = vld [vmem:[%s5172_s1 + $0xd0] sm:$0xff]   ;;  %v397_v44 = vld [vmem:[%s4016_s12 + $0x18] sm:$0xf] }
  0x1b   : > { %3311 = vmatpush3.bf16.msra.mxu0 %v3856_v14  ;;  %3833 = vmatpush3.bf16.msra.mxu1 %v3856_v14  ;;  %v3169_v51 = vcombine.low %v461_v46, %v471_v49  ;;  %v744_v52 = vrot.slane %v743_v47, 4  ;;  %v754_v53 = vrot.slane %v753_v48, 4  ;;  %v478_v10 = vrot.slane %v476_v3, 5  ;;  %v3872_v38 = vld [vmem:[%s5172_s1 + $0x90] sm:$0xff]   ;;  %v399_v46 = vld [vmem:[%s4016_s12 + $0x20] sm:$0x1] }
  0x1c   : > { %3312 = vmatprep.subr.bf16.mxu0 %v3857_v17  ;;  %3826 = vmatprep.subr.bf16.mxu1 %v3857_v17  ;;  %v484_v13 = vrot.slane %v482_v5, 5  ;;  %v488_v14 = vrot.slane %v486_v6, 4  ;;  %v494_v15 = vrot.slane %v492_v7, 5  ;;  %v761_v16 = vshrl.u32 %v430_v8, 16  ;;  %v3867_v17 = vld [vmem:[%s5172_s1 + $0x88] sm:$0xff]  }
  0x1d   : > { %2109 = vmatprep.mubr.bf16.mxu0 %v3169_v51  ;;  %v749_v57 = vsel %vm4041_vm2, %v744_v52, %v748_v41  ;;  %v759_v58 = vsel %vm4041_vm2, %v754_v53, %v758_v45  ;;  %v479_v18 = vor.u32 %v478_v10, %v475_v9  ;;  %v764_v19 = vshll.u32 %v430_v8, 16  ;;  %v398_v45 = vld [vmem:[%s4016_s12 + $0x1c] sm:$0xf]  ;;  %v433_v51 = vld [vmem:[%s4016_s12 + $0xa8] sm:$0xf]  ;;  %v3877_v8 = vld [vmem:[%s5172_s1 + $0xe0] sm:$0xff]  }
  0x1e   : > { %v4071_v62 = vcombine.low %v749_v57, %v759_v58  ;;  %v770_v20 = vshll.u32 %v431_v11, 16  ;;  %v774_v21 = vshrl.u32 %v431_v11, 16  ;;  %v489_v22 = vor.u32 %v488_v14, %v484_v13  ;;  %v434_v52 = vld [vmem:[%s4016_s12 + $0xac] sm:$0xf]  ;;  %v435_v58 = vld [vmem:[%s4016_s12 + $0xb0] sm:$0x1] }
  0x1f   : > { %3313 = vmatpush3.bf16.msra.mxu0 %v3858_v30  ;;  %3834 = vmatpush3.bf16.msra.mxu1 %v3858_v30  ;;  %v763_v23 = vrot.slane %v761_v16, 4  ;;  %v780_v24 = vshll.u32 %v432_v12, 16  ;;  %v480_v25 = vrot.slane %v479_v18, 4  ;;  %v766_v26 = vrot.slane %v764_v19, 5  ;;  %v3878_v18 = vld [vmem:[%s5172_s1 + $0x148] sm:$0xff]   ;;  %v3879_v19 = vld [vmem:[%s5172_s1 + $0xa0] sm:$0xff]  }
  0x20   : > { %3314 = vmatprep.subr.bf16.mxu0 %v3859_v43  ;;  %3827 = vmatprep.subr.bf16.mxu1 %v3859_v43  ;;  %v772_v27 = vrot.slane %v770_v20, 5  ;;  %v776_v28 = vrot.slane %v774_v21, 4  ;;  %v490_v29 = vrot.slane %v489_v22, 4  ;;  %v3873_v43 = vld [vmem:[%s5172_s1 + $0xd8] sm:$0xff]   ;;  %v497_v49 = vshrl.u32 %v397_v44, 16 }
  0x21   : > { %2205 = vmatprep.mubr.bf16.mxu1 %v4071_v62  ;;  %v782_v30 = vrot.slane %v780_v24, 5  ;;  %v485_v33 = vsel %vm4041_vm2, %v480_v25, %v484_v13  ;;  %v767_v34 = vor.u32 %v766_v26, %v763_v23  ;;  %v516_v57 = vshll.u32 %v399_v46, 16  ;;  %v3880_v23 = vld [vmem:[%s5172_s1 + $0x108] sm:$0xff]  }
  0x22   : > { %v777_v36 = vor.u32 %v776_v28, %v772_v27  ;;  %v495_v37 = vsel %vm4041_vm2, %v490_v29, %v494_v15  ;;  %v785_v61 = vshrl.u32 %v433_v51, 16  ;;  %v794_v3 = vshll.u32 %v434_v52, 16  ;;  %v3876_v28 = vld [vmem:[%s4016_s12 + $0xa8] sm:$0xff]  }
  0x23   : > { %3315 = vmatpush3.bf16.msra.mxu0 %v3860_v50  ;;  %3835 = vmatpush3.bf16.msra.mxu1 %v3860_v50  ;;  %v4101_v39 = vcombine.low %v485_v33, %v495_v37  ;;  %v768_v40 = vrot.slane %v767_v34, 4  ;;  %v500_v50 = vshll.u32 %v397_v44, 16  ;;  %v518_v2 = vrot.slane %v516_v57, 5  ;;  %v3881_v29 = vld [vmem:[%s5172_s1 + $0xe8] sm:$0xff]   ;;  %v436_v44 = vld [vmem:[%s4016_s12 + $0xb4] sm:$0xf] }
  0x24   : > { %3412 = vmatprep.subr.bf16.mxu1 %v3863_v54  ;;  %3524 = vmatprep.subr.bf16.mxu0 %v3866_v60  ;;  %v778_v41 = vrot.slane %v777_v36, 4  ;;  %v3874_v54 = vld [vmem:[%s5172_s1 + $0x98] sm:$0xff]   ;;  %v787_v5 = vrot.slane %v785_v61, 4  ;;  %v798_v7 = vshrl.u32 %v434_v52, 16  ;;  %v796_v10 = vrot.slane %v794_v3, 5 }
  0x25   : > { %v773_v47 = vsel %vm4041_vm2, %v768_v40, %v772_v27  ;;  %v502_v60 = vrot.slane %v500_v50, 5  ;;  %v804_v11 = vshll.u32 %v435_v58, 16  ;;  %v401_v34 = vld [vmem:[%s4016_s12 + $0x28] sm:$0xf]  ;;  %v402_v36 = vld [vmem:[%s4016_s12 + $0x2c] sm:$0x1] }
  0x26   : > { %2110 = vmatmul.mubr.bf16.vlgmr.msra.gmra.mrb[0].mxu0 %v3861_v55  ;;  %2206 = vmatmul.mubr.bf16.vlgmr.msra.gmra.mrb[0].mxu1 %v3862_v56  ;;  %v783_v48 = vsel %vm4041_vm2, %v778_v41, %v782_v30  ;;  %v506_v55 = vshll.u32 %v398_v45, 16  ;;  %v510_v56 = vshrl.u32 %v398_v45, 16  ;;  %v800_v14 = vrot.slane %v798_v7, 4  ;;  %v3882_v30 = vld [vmem:[%s5172_s1 + $0xa8] sm:$0xff]  }
  0x27   : > { %3413 = vmatpush3.bf16.msra.mxu1 %v3864_v59  ;;  %3525 = vmatpush3.bf16.msra.mxu0 %v3868_v4  ;;  %v4117_v53 = vcombine.low %v773_v47, %v783_v48  ;;  %v499_v59 = vrot.slane %v497_v49, 4  ;;  %v806_v16 = vrot.slane %v804_v11, 5  ;;  %v530_v41 = vshll.u32 %v401_v34, 16  ;;  %v437_v47 = vld [vmem:[%s4016_s12 + $0xb8] sm:$0xf] }
  0x28   : > { %3414 = vmatprep.subr.bf16.mxu1 %v3865_v63  ;;  %2117 = vmatprep.mubr.bf16.mxu0 %v4101_v39  ;;  %v788_v63 = vshll.u32 %v433_v51, 16  ;;  %v508_v0 = vrot.slane %v506_v55, 5  ;;  %v512_v1 = vrot.slane %v510_v56, 4  ;;  %v801_v22 = vor.u32 %v800_v14, %v796_v10  ;;  %v438_v48 = vld [vmem:[%s4016_s12 + $0xbc] sm:$0x1] }
  0x29   : > { %2213 = vmatprep.mubr.bf16.mxu1 %v4117_v53  ;;  %v503_v4 = vor.u32 %v502_v60, %v499_v59  ;;  %3526 = vmatprep.subr.bf16.mxu0 %v3878_v18  ;;  %v532_v49 = vrot.slane %v530_v41, 5  ;;  %v809_v52 = vshrl.u32 %v436_v44, 16  ;;  %v812_v55 = vshll.u32 %v436_v44, 16  ;;  %v3887_v11 = vld [vmem:[%s5172_s1 + $0xf8] sm:$0xff]   ;;  %v1001_v41 = vld [vmem:[%s4016_s12 + $0x4] sm:$0xf] }
  0x2a   : > { %v790_v6 = vrot.slane %v788_v63, 5  ;;  %v513_v9 = vor.u32 %v512_v1, %v508_v0  ;;  %v802_v27 = vrot.slane %v801_v22, 4  ;;  %v818_v56 = vshll.u32 %v437_v47, 16  ;;  %v3889_v18 = vld [vmem:[%s5172_s1 + $0xb8] sm:$0xff]   ;;  %v403_v22 = vld [vmem:[%s4016_s12 + $0x30] sm:$0xf] }
  0x2b   : > { %3415 = vmatpush3.bf16.msra.mxu1 %v3867_v17  ;;  %v504_v12 = vrot.slane %v503_v4, 4  ;;  %v4129_v17 = vld [vmem:[%s4016_s12 + $0x18] sm:$0xff]   ;;  %3527 = vmatpush3.bf16.msra.mxu0 %v3880_v23  ;;  %v822_v57 = vshrl.u32 %v437_v47, 16  ;;  %v811_v59 = vrot.slane %v809_v52, 4  ;;  %v828_v60 = vshll.u32 %v438_v48, 16  ;;  %v4169_v4 = vld [vmem:[%s4016_s12 + $0x24] sm:$0xff]  }
  0x2c   : > { %3416 = vmatprep.subr.bf16.mxu1 %v3871_v32  ;;  %v791_v13 = vor.u32 %v790_v6, %v787_v5  ;;  %v514_v15 = vrot.slane %v513_v9, 4  ;;  %v400_v32 = vld [vmem:[%s4016_s12 + $0x24] sm:$0xf]  ;;  %v807_v33 = vsel %vm4041_vm2, %v802_v27, %v806_v16  ;;  %v814_v63 = vrot.slane %v812_v55, 5  ;;  %v3885_v5 = vld [vmem:[%s5172_s1 + $0xf0] sm:$0xff]  }
  0x2d   : > { %v509_v20 = vsel %vm4041_vm2, %v504_v12, %v508_v0  ;;  %v521_v37 = vshrl.u32 %v400_v32, 16  ;;  %v820_v0 = vrot.slane %v818_v56, 5  ;;  %v824_v1 = vrot.slane %v822_v57, 4  ;;  %v3886_v6 = vld [vmem:[%s5172_s1 + $0xb0] sm:$0xff]   ;;  %v3892_v47 = vld [vmem:[%s5172_s1 + $0x1c0] sm:$0xff]  }
  0x2e   : > { %2118 = vmatmul.mubr.bf16.gmra.mrb[4].mxu0 %v4089_v31  ;;  %2214 = vmatmul.mubr.bf16.gmra.mrb[4].mxu1 %v3870_v42  ;;  %v792_v21 = vrot.slane %v791_v13, 4  ;;  %v519_v24 = vsel %vm4041_vm2, %v514_v15, %v518_v2  ;;  %v534_v42 = vshrl.u32 %v401_v34, 16  ;;  %v830_v3 = vrot.slane %v828_v60, 5  ;;  %v3884_v15 = vld [vmem:[%s4016_s12 + $0xb4] sm:$0xff]   ;;  %v406_v55 = vld [vmem:[%s4016_s12 + $0x3c] sm:$0xf] }
  0x2f   : > { %3417 = vmatpush3.bf16.msra.mxu1 %v3872_v38  ;;  %v4144_v25 = vcombine.low %v509_v20, %v519_v24  ;;  %v524_v38 = vshll.u32 %v400_v32, 16  ;;  %v523_v45 = vrot.slane %v521_v37, 4  ;;  %v825_v9 = vor.u32 %v824_v1, %v820_v0  ;;  %v3888_v16 = vld [vmem:[%s5172_s1 + $0x150] sm:$0xff]   ;;  %v407_v57 = vld [vmem:[%s4016_s12 + $0x40] sm:$0xf] }
  0x30   : > { %3418 = vmatprep.subr.bf16.mxu1 %v3873_v43  ;;  %v797_v26 = vsel %vm4041_vm2, %v792_v21, %v796_v10  ;;  %v540_v43 = vshll.u32 %v402_v36, 16  ;;  %v536_v50 = vrot.slane %v534_v42, 4  ;;  %3528 = vmatprep.subr.bf16.mxu0 %v3888_v16  ;;  %v3890_v21 = vld [vmem:[%s5172_s1 + $0x110] sm:$0xff]   ;;  %v545_v27 = vshrl.u32 %v403_v22, 16  ;;  %v1000_v36 = vld [vmem:[%s4016_s12] sm:$0xe] }
  0x31   : > { %2125 = vmatprep.mubr.bf16.mxu0 %v4144_v25  ;;  %v4161_v40 = vcombine.low %v797_v26, %v807_v33  ;;  %v526_v46 = vrot.slane %v524_v38, 5  ;;  %v826_v14 = vrot.slane %v825_v9, 4  ;;  %v404_v24 = vld [vmem:[%s4016_s12 + $0x34] sm:$0xf]  ;;  %v405_v26 = vld [vmem:[%s4016_s12 + $0x38] sm:$0x1]  ;;  %3529 = vmatpush3.bf16.msra.mxu0 %v3890_v21 }
  0x32   : > { %v542_v51 = vrot.slane %v540_v43, 5  ;;  %v537_v58 = vor.u32 %v536_v50, %v532_v49  ;;  %v564_v32 = vshll.u32 %v405_v26, 16  ;;  %v547_v33 = vrot.slane %v545_v27, 4 }
  0x33   : > { %3419 = vmatpush3.bf16.msra.mxu1 %v3874_v54  ;;  %2221 = vmatprep.mubr.bf16.mxu1 %v4161_v40  ;;  %v527_v54 = vor.u32 %v526_v46, %v523_v45  ;;  %v831_v20 = vsel %vm4041_vm2, %v826_v14, %v830_v3  ;;  %v3187_v43 = vrot.slane %v1000_v36, 9  ;;  %v1002_v45 = vld [vmem:[%s4016_s12 + $0x8] sm:$0x1]  ;;  %v1107_v46 = vrot.slane %v1001_v41, 5  ;;  %v1004_v14 = vld [vmem:[%s4016_s12 + $0x10] sm:$0xf] }
  0x34   : > { %3420 = vmatprep.subr.bf16.mxu1 %v3877_v8  ;;  %v538_v2 = vrot.slane %v537_v58, 4  ;;  %v815_v8 = vor.u32 %v814_v63, %v811_v59  ;;  %v1110_v50 = vrot.slane %v1002_v45, 5  ;;  %v408_v58 = vld [vmem:[%s4016_s12 + $0x44] sm:$0x1]  ;;  %v569_v59 = vshrl.u32 %v406_v55, 16 }
  0x35   : > { %v528_v61 = vrot.slane %v527_v54, 4  ;;  %v1108_v52 = vsel %vm4212_vm5, %v3187_v43, %v1107_v46  ;;  %v1109_v54 = vrot.slane %v1107_v46, 4  ;;  %v572_v63 = vshll.u32 %v406_v55, 16 }
  0x36   : > { %2126 = vmatmul.mubr.bf16.gmra.mrb[8].mxu0 %v4129_v17  ;;  %2222 = vmatmul.mubr.bf16.gmra.mrb[8].mxu1 %v3876_v28  ;;  %v543_v10 = vsel %vm4041_vm2, %v538_v2, %v542_v51  ;;  %v816_v13 = vrot.slane %v815_v8, 4  ;;  %v548_v28 = vshll.u32 %v403_v22, 16  ;;  %v4236_v2 = vld [vmem:[%s4016_s12 + $0x30] sm:$0xff]   ;;  %v3895_v8 = vld [vmem:[%s5172_s1 + $0x158] sm:$0xff]  }
  0x37   : > { %3421 = vmatpush3.bf16.msra.mxu1 %v3879_v19  ;;  %v533_v7 = vsel %vm4041_vm2, %v528_v61, %v532_v49  ;;  %v566_v49 = vrot.slane %v564_v32, 5  ;;  %v1111_v61 = vsel %vm4212_vm5, %v1109_v54, %v1110_v50  ;;  %3530 = vmatprep.subr.bf16.mxu0 %v3895_v8  ;;  %v409_v32 = vld [vmem:[%s4016_s12 + $0x48] sm:$0xf]  ;;  %v1006_v54 = vld [vmem:[%s4016_s12 + $0x18] sm:$0xe] }
  0x38   : > { %3422 = vmatprep.subr.bf16.mxu1 %v3881_v29  ;;  %v4184_v12 = vcombine.low %v533_v7, %v543_v10  ;;  %v821_v19 = vsel %vm4041_vm2, %v816_v13, %v820_v0  ;;  %v554_v29 = vshll.u32 %v404_v24, 16  ;;  %v550_v34 = vrot.slane %v548_v28, 5  ;;  %v1003_v7 = vld [vmem:[%s4016_s12 + $0xc] sm:$0xe] }
  0x39   : > { %v4202_v23 = vcombine.low %v821_v19, %v831_v20  ;;  %v578_v0 = vshll.u32 %v407_v57, 16  ;;  %v3203_v3 = vcombine.low %v1108_v52, %v1111_v61  ;;  %v574_v10 = vrot.slane %v572_v63, 5 }
  0x3a   : > { %2133 = vmatprep.mubr.bf16.mxu0 %v4184_v12  ;;  %v556_v37 = vrot.slane %v554_v29, 5  ;;  %v551_v44 = vor.u32 %v550_v34, %v547_v33  ;;  %v588_v13 = vshll.u32 %v408_v58, 16  ;;  %v3188_v19 = vrot.slane %v1003_v7, 9  ;;  %v3898_v29 = vld [vmem:[%s5172_s1 + $0x1c8] sm:$0xff]   ;;  %v1007_v58 = vld [vmem:[%s4016_s12 + $0x1c] sm:$0xf] }
  0x3b   : > { %3423 = vmatpush3.bf16.msra.mxu1 %v3882_v30  ;;  %v558_v30 = vshrl.u32 %v404_v24, 16  ;;  %2229 = vmatprep.mubr.bf16.mxu1 %v4202_v23  ;;  %v1114_v20 = vrot.slane %v1004_v14, 5  ;;  %v410_v33 = vld [vmem:[%s4016_s12 + $0x4c] sm:$0xf]  ;;  %v593_v41 = vshrl.u32 %v409_v32, 16  ;;  %v596_v43 = vshll.u32 %v409_v32, 16 }
  0x3c   : > { %3424 = vmatprep.subr.bf16.mxu1 %v3885_v5  ;;  %v552_v51 = vrot.slane %v551_v44, 4  ;;  %v571_v5 = vrot.slane %v569_v59, 4  ;;  %v590_v22 = vrot.slane %v588_v13, 5  ;;  %v3899_v34 = vld [vmem:[%s5172_s1 + $0x188] sm:$0xff]   ;;  %v3900_v44 = vld [vmem:[%s5172_s1 + $0x160] sm:$0xff]   ;;  %v3189_v61 = vrot.slane %v1006_v54, 9 }
  0x3d   : > { %v560_v38 = vrot.slane %v558_v30, 4  ;;  %v1115_v27 = vsel %vm4212_vm5, %v3188_v19, %v1114_v20  ;;  %v1116_v28 = vrot.slane %v1114_v20, 4  ;;  %v595_v50 = vrot.slane %v593_v41, 4  ;;  %v1008_v59 = vld [vmem:[%s4016_s12 + $0x20] sm:$0x1]  ;;  %v4297_v13 = vld [vmem:[%s4016_s12 + $0x48] sm:$0xff]  }
  0x3e   : > { %2134 = vmatmul.mubr.bf16.gmra.mrb[12].mxu0 %v4169_v4  ;;  %2230 = vmatmul.mubr.bf16.gmra.mrb[12].mxu1 %v3884_v15  ;;  %v557_v60 = vsel %vm4041_vm2, %v552_v51, %v556_v37  ;;  %v3896_v15 = vld [vmem:[%s5172_s1 + $0x118] sm:$0xff]   ;;  %v575_v21 = vor.u32 %v574_v10, %v571_v5  ;;  %v598_v51 = vrot.slane %v596_v43, 5  ;;  %v1121_v63 = vrot.slane %v1007_v58, 5  ;;  %v3904_v10 = vld [vmem:[%s5172_s1 + $0x168] sm:$0xff]   ;;  %v412_v14 = vld [vmem:[%s4016_s12 + $0x54] sm:$0xf] }
  0x3f   : > { %3425 = vmatpush3.bf16.msra.mxu1 %v3886_v6  ;;  %2270 = vmatprep.mubr.bf16.mxu1 %v4089_v31  ;;  %v561_v48 = vor.u32 %v560_v38, %v556_v37  ;;  %v3893_v31 = vld [vmem:[%s5172_s1 + $0x180] sm:$0xff]   ;;  %v582_v6 = vshrl.u32 %v407_v57, 16  ;;  %v411_v38 = vld [vmem:[%s4016_s12 + $0x50] sm:$0x1]  ;;  %v414_v19 = vld [vmem:[%s4016_s12 + $0x5c] sm:$0x1] }
  0x40   : > { %3426 = vmatprep.subr.bf16.mxu1 %v3887_v11  ;;  %v580_v11 = vrot.slane %v578_v0, 5  ;;  %v576_v30 = vrot.slane %v575_v21, 4  ;;  %3531 = vmatpush3.bf16.msra.mxu0 %v3896_v15  ;;  %v4263_v37 = vld [vmem:[%s4016_s12 + $0x3c] sm:$0xff]   ;;  %v612_v52 = vshll.u32 %v411_v38, 16  ;;  %v1123_v7 = vrot.slane %v1121_v63, 4 }
  0x41   : > { %v562_v56 = vrot.slane %v561_v48, 4  ;;  %v584_v16 = vrot.slane %v582_v6, 4  ;;  %v606_v48 = vshrl.u32 %v410_v33, 16  ;;  %3532 = vmatprep.subr.bf16.mxu0 %v3900_v44  ;;  %v1122_v6 = vsel %vm4212_vm5, %v3189_v61, %v1121_v63  ;;  %v413_v15 = vld [vmem:[%s4016_s12 + $0x58] sm:$0xf] }
  0x42   : > { %v581_v45 = vsel %vm4041_vm2, %v576_v30, %v580_v11  ;;  %v617_v20 = vshrl.u32 %v412_v14, 16  ;;  %v620_v21 = vshll.u32 %v412_v14, 16  ;;  %v1009_v32 = vld [vmem:[%s4016_s12 + $0x24] sm:$0xe]  ;;  %v1011_v38 = vld [vmem:[%s4016_s12 + $0x2c] sm:$0x1] }
  0x43   : > { %3427 = vmatpush3.bf16.msra.mxu1 %v3889_v18  ;;  %v567_v1 = vsel %vm4041_vm2, %v562_v56, %v566_v49  ;;  %v1005_v18 = vld [vmem:[%s4016_s12 + $0x14] sm:$0x1]  ;;  %v585_v26 = vor.u32 %v584_v16, %v580_v11  ;;  %v608_v57 = vrot.slane %v606_v48, 4  ;;  %v3190_v41 = vrot.slane %v1009_v32, 9  ;;  %v416_v48 = vld [vmem:[%s4016_s12 + $0x64] sm:$0xf] }
  0x44   : > { %3636 = vmatprep.subr.bf16.mxu1 %v3892_v47  ;;  %v4242_v9 = vcombine.low %v557_v60, %v567_v1  ;;  %v1117_v24 = vrot.slane %v1005_v18, 5  ;;  %v602_v47 = vshll.u32 %v410_v33, 16  ;;  %v599_v60 = vor.u32 %v598_v51, %v595_v50  ;;  %v1010_v33 = vld [vmem:[%s4016_s12 + $0x28] sm:$0xf] }
  0x45   : > { %v586_v36 = vrot.slane %v585_v26, 4  ;;  %v614_v1 = vrot.slane %v612_v52, 5  ;;  %v630_v26 = vshrl.u32 %v413_v15, 16  ;;  %v622_v30 = vrot.slane %v620_v21, 5  ;;  %v417_v50 = vld [vmem:[%s4016_s12 + $0x68] sm:$0x1] }
  0x46   : > { %2271 = vmatmul.mubr.bf16.vlgmr.msra.gmra.mrb[16].mxu1 %v3203_v3  ;;  %2141 = vmatprep.mubr.bf16.mxu0 %v4242_v9  ;;  %v604_v56 = vrot.slane %v602_v47, 5  ;;  %v1124_v3 = vrot.slane %v1008_v59, 5  ;;  %v600_v5 = vrot.slane %v599_v60, 4  ;;  %v1128_v44 = vrot.slane %v1010_v33, 5  ;;  %v415_v47 = vld [vmem:[%s4016_s12 + $0x60] sm:$0xf] }
  0x47   : > { %3637 = vmatpush3.bf16.msra.mxu1 %v3893_v31  ;;  %2142 = vmatmul.mubr.bf16.gmra.mrb[16].mxu0 %v4236_v2  ;;  %v591_v49 = vsel %vm4041_vm2, %v586_v36, %v590_v22  ;;  %v3901_v31 = vld [vmem:[%s5172_s1 + $0x120] sm:$0xff]   ;;  %v632_v36 = vrot.slane %v630_v26, 4  ;;  %v641_v51 = vshrl.u32 %v415_v47, 16  ;;  %v644_v52 = vshll.u32 %v415_v47, 16  ;;  %v3907_v59 = vld [vmem:[%s5172_s1 + $0x190] sm:$0xff]  }
  0x48   : > { %2278 = vmatprep.mubr.bf16.mxu1 %v4129_v17  ;;  %v1118_v17 = vsel %vm4212_vm5, %v1116_v28, %v1117_v24  ;;  %3638 = vmatprep.subr.bf16.mxu1 %v3898_v29  ;;  %v4281_v55 = vcombine.low %v581_v45, %v591_v49  ;;  %v609_v0 = vor.u32 %v608_v57, %v604_v56  ;;  %v626_v24 = vshll.u32 %v413_v15, 16  ;;  %v3905_v28 = vld [vmem:[%s5172_s1 + $0x1d0] sm:$0xff]   ;;  %v1014_v15 = vld [vmem:[%s4016_s12 + $0x38] sm:$0x1]  ;;  %v418_v33 = vld [vmem:[%s4016_s12 + $0x6c] sm:$0xf] }
  0x49   : > { %v4273_v46 = vcombine.low %v1115_v27, %v1118_v17  ;;  %3533 = vmatpush3.bf16.msra.mxu0 %v3901_v31  ;;  %v605_v11 = vsel %vm4041_vm2, %v600_v5, %v604_v56  ;;  %v636_v27 = vshll.u32 %v414_v19, 16  ;;  %v619_v29 = vrot.slane %v617_v20, 4  ;;  %v3906_v31 = vld [vmem:[%s5172_s1 + $0x128] sm:$0xff]  }
  0x4a   : > { %2149 = vmatprep.mubr.bf16.mxu0 %v4281_v55  ;;  %v610_v8 = vrot.slane %v609_v0, 4  ;;  %3534 = vmatprep.subr.bf16.mxu0 %v3904_v10  ;;  %v1131_v45 = vrot.slane %v1011_v38, 5  ;;  %v650_v54 = vshll.u32 %v416_v48, 16  ;;  %v1130_v57 = vrot.slane %v1128_v44, 4  ;;  %v420_v38 = vld [vmem:[%s4016_s12 + $0x74] sm:$0x1] }
  0x4b   : > { %3639 = vmatpush3.bf16.msra.mxu1 %v3899_v34  ;;  %v628_v34 = vrot.slane %v626_v24, 5  ;;  %v638_v17 = vrot.slane %v636_v27, 5  ;;  %v623_v43 = vor.u32 %v622_v30, %v619_v29  ;;  %v654_v58 = vshrl.u32 %v416_v48, 16 }
  0x4c   : > { %v615_v16 = vsel %vm4041_vm2, %v610_v8, %v614_v1  ;;  %3640 = vmatprep.subr.bf16.mxu1 %v3905_v28  ;;  %v643_v61 = vrot.slane %v641_v51, 4  ;;  %v646_v63 = vrot.slane %v644_v52, 5  ;;  %v652_v0 = vrot.slane %v650_v54, 5  ;;  %v1013_v8 = vld [vmem:[%s4016_s12 + $0x34] sm:$0xf] }
  0x4d   : > { %v4308_v22 = vcombine.low %v605_v11, %v615_v16  ;;  %v633_v49 = vor.u32 %v632_v36, %v628_v34  ;;  %v624_v56 = vrot.slane %v623_v43, 4  ;;  %3535 = vmatpush3.bf16.msra.mxu0 %v3906_v31  ;;  %v656_v5 = vrot.slane %v654_v58, 4  ;;  %v4340_v11 = vld [vmem:[%s4016_s12 + $0x54] sm:$0xff]   ;;  %v1016_v31 = vld [vmem:[%s4016_s12 + $0x40] sm:$0xf] }
  0x4e   : > { %2279 = vmatmul.mubr.bf16.gmra.mrb[20].mxu1 %v4273_v46  ;;  %v647_v14 = vor.u32 %v646_v63, %v643_v61  ;;  %v1135_v24 = vrot.slane %v1013_v8, 5  ;;  %v1138_v27 = vrot.slane %v1014_v15, 5  ;;  %v668_v43 = vshll.u32 %v418_v33, 16  ;;  %v1017_v58 = vld [vmem:[%s4016_s12 + $0x44] sm:$0x1] }
  0x4f   : > { %2286 = vmatprep.mubr.bf16.mxu1 %v4169_v4  ;;  %2150 = vmatmul.mubr.bf16.gmra.mrb[20].mxu0 %v4263_v37  ;;  %v1125_v4 = vsel %vm4212_vm5, %v1123_v7, %v1124_v3  ;;  %v634_v60 = vrot.slane %v633_v49, 4  ;;  %v629_v1 = vsel %vm4041_vm2, %v624_v56, %v628_v34  ;;  %v1132_v3 = vsel %vm4212_vm5, %v1130_v57, %v1131_v45  ;;  %v1012_v7 = vld [vmem:[%s4016_s12 + $0x30] sm:$0xe]  ;;  %v4365_v45 = vld [vmem:[%s4016_s12 + $0x60] sm:$0xff]   ;;  %v421_v8 = vld [vmem:[%s4016_s12 + $0x78] sm:$0xf] }
  0x50   : > { %v4305_v18 = vcombine.low %v1122_v6, %v1125_v4  ;;  %2157 = vmatprep.mubr.bf16.mxu0 %v4308_v22  ;;  %v660_v6 = vshll.u32 %v417_v50, 16  ;;  %3641 = vmatpush3.bf16.msra.mxu1 %v3907_v59  ;;  %v3191_v16 = vrot.slane %v1012_v7, 9  ;;  %v657_v20 = vor.u32 %v656_v5, %v652_v0  ;;  %v419_v34 = vld [vmem:[%s4016_s12 + $0x70] sm:$0xf]  ;;  %v1015_v50 = vld [vmem:[%s4016_s12 + $0x3c] sm:$0xe] }
  0x51   : > { %v639_v10 = vsel %vm4041_vm2, %v634_v60, %v638_v17  ;;  %v648_v26 = vrot.slane %v647_v14, 4  ;;  %v1137_v30 = vrot.slane %v1135_v24, 4  ;;  %v674_v48 = vshll.u32 %v419_v34, 16  ;;  %v3909_v60 = vld [vmem:[%s5172_s1 + $0x170] sm:$0xff]  }
  0x52   : > { %v4345_v19 = vcombine.low %v629_v1, %v639_v10  ;;  %v662_v21 = vrot.slane %v660_v6, 5  ;;  %v658_v28 = vrot.slane %v657_v20, 4  ;;  %v1136_v29 = vsel %vm4212_vm5, %v3191_v16, %v1135_v24  ;;  %3536 = vmatprep.subr.bf16.mxu0 %v3909_v60  ;;  %v3910_v6 = vld [vmem:[%s5172_s1 + $0x130] sm:$0xff]   ;;  %v422_v10 = vld [vmem:[%s4016_s12 + $0x7c] sm:$0xf] }
  0x53   : > { %v653_v32 = vsel %vm4041_vm2, %v648_v26, %v652_v0  ;;  %v1139_v17 = vsel %vm4212_vm5, %v1137_v30, %v1138_v27  ;;  %v678_v49 = vshrl.u32 %v419_v34, 16  ;;  %v670_v52 = vrot.slane %v668_v43, 5  ;;  %v423_v16 = vld [vmem:[%s4016_s12 + $0x80] sm:$0x1]  ;;  %v3912_v24 = vld [vmem:[%s5172_s1 + $0x1d8] sm:$0xff]   ;;  %3537 = vmatpush3.bf16.msra.mxu0 %v3910_v6 }
  0x54   : > { %v663_v36 = vsel %vm4041_vm2, %v658_v28, %v662_v21  ;;  %v4367_v47 = vcombine.low %v1136_v29, %v1139_v17  ;;  %v684_v54 = vshll.u32 %v420_v38, 16  ;;  %v3192_v56 = vrot.slane %v1015_v50, 9  ;;  %3642 = vmatprep.subr.bf16.mxu1 %v3912_v24  ;;  %v3913_v17 = vld [vmem:[%s5172_s1 + $0x198] sm:$0xff]   ;;  %v4407_v50 = vld [vmem:[%s4016_s12 + $0x6c] sm:$0xff]  }
  0x55   : > { %v680_v57 = vrot.slane %v678_v49, 4  ;;  %v1142_v59 = vrot.slane %v1016_v31, 5  ;;  %v1145_v0 = vrot.slane %v1017_v58, 5  ;;  %v689_v20 = vshrl.u32 %v421_v8, 16  ;;  %v1020_v49 = vld [vmem:[%s4016_s12 + $0x50] sm:$0x1]  ;;  %3643 = vmatpush3.bf16.msra.mxu1 %v3913_v17 }
  0x56   : > { %2287 = vmatmul.mubr.bf16.gmra.mrb[24].mxu1 %v4305_v18  ;;  %v686_v63 = vrot.slane %v684_v54, 5  ;;  %v692_v21 = vshll.u32 %v421_v8, 16  ;;  %v698_v28 = vshll.u32 %v422_v10, 16  ;;  %v702_v29 = vshrl.u32 %v422_v10, 16 }
  0x57   : > { %2294 = vmatprep.mubr.bf16.mxu1 %v4236_v2  ;;  %2158 = vmatmul.mubr.bf16.gmra.mrb[24].mxu0 %v4297_v13  ;;  %v1129_v2 = vsel %vm4212_vm5, %v3190_v41, %v1128_v44  ;;  %v665_v41 = vshrl.u32 %v418_v33, 16  ;;  %v4362_v44 = vcombine.low %v653_v32, %v663_v36  ;;  %v1144_v5 = vrot.slane %v1142_v59, 4  ;;  %v1018_v36 = vld [vmem:[%s4016_s12 + $0x48] sm:$0xe] }
  0x58   : > { %v4342_v4 = vcombine.low %v1129_v2, %v1132_v3  ;;  %2165 = vmatprep.mubr.bf16.mxu0 %v4345_v19  ;;  %v676_v2 = vrot.slane %v674_v48, 5  ;;  %v1143_v3 = vsel %vm4212_vm5, %v3192_v56, %v1142_v59  ;;  %v691_v32 = vrot.slane %v689_v20, 4  ;;  %v1019_v48 = vld [vmem:[%s4016_s12 + $0x4c] sm:$0xf]  ;;  %v1021_v20 = vld [vmem:[%s4016_s12 + $0x54] sm:$0xe] }
  0x59   : > { %v667_v51 = vrot.slane %v665_v41, 4  ;;  %v1146_v15 = vsel %vm4212_vm5, %v1144_v5, %v1145_v0  ;;  %v694_v33 = vrot.slane %v692_v21, 5  ;;  %v708_v34 = vshll.u32 %v423_v16, 16  ;;  %v425_v0 = vld [vmem:[%s4016_s12 + $0x88] sm:$0xf] }
  0x5a   : > { %v681_v1 = vor.u32 %v680_v57, %v676_v2  ;;  %v4394_v27 = vcombine.low %v1143_v3, %v1146_v15  ;;  %v700_v41 = vrot.slane %v698_v28, 5  ;;  %v704_v43 = vrot.slane %v702_v29, 4  ;;  %v3915_v57 = vld [vmem:[%s5172_s1 + $0x178] sm:$0xff]  }
  0x5b   : > { %v671_v61 = vor.u32 %v670_v52, %v667_v51  ;;  %v695_v51 = vor.u32 %v694_v33, %v691_v32  ;;  %v710_v52 = vrot.slane %v708_v34, 5  ;;  %v3193_v54 = vrot.slane %v1018_v36, 9  ;;  %3538 = vmatprep.subr.bf16.mxu0 %v3915_v57  ;;  %v1022_v21 = vld [vmem:[%s4016_s12 + $0x58] sm:$0xf]  ;;  %v1023_v32 = vld [vmem:[%s4016_s12 + $0x5c] sm:$0x1] }
  0x5c   : > { %v682_v14 = vrot.slane %v681_v1, 4  ;;  %v1149_v31 = vrot.slane %v1019_v48, 5  ;;  %v705_v56 = vor.u32 %v704_v43, %v700_v41  ;;  %v426_v1 = vld [vmem:[%s4016_s12 + $0x8c] sm:$0x1]  ;;  %v722_v8 = vshll.u32 %v425_v0, 16  ;;  %v3916_v33 = vld [vmem:[%s5172_s1 + $0x138] sm:$0xff]  }
  0x5d   : > { %v672_v7 = vrot.slane %v671_v61, 4  ;;  %v696_v58 = vrot.slane %v695_v51, 4  ;;  %v424_v61 = vld [vmem:[%s4016_s12 + $0x84] sm:$0xf]  ;;  %v726_v16 = vshrl.u32 %v425_v0, 16  ;;  %v3194_v36 = vrot.slane %v1021_v20, 9  ;;  %3539 = vmatpush3.bf16.msra.mxu0 %v3916_v33 }
  0x5e   : > { %2295 = vmatmul.mubr.bf16.gmra.mrb[28].mxu1 %v4342_v4  ;;  %v687_v30 = vsel %vm4041_vm2, %v682_v14, %v686_v63  ;;  %v1150_v59 = vsel %vm4212_vm5, %v3193_v54, %v1149_v31  ;;  %v1151_v60 = vrot.slane %v1149_v31, 4  ;;  %v706_v63 = vrot.slane %v705_v56, 4  ;;  %v3917_v48 = vld [vmem:[%s5172_s1 + $0x1e0] sm:$0xff]   ;;  %v1026_v57 = vld [vmem:[%s4016_s12 + $0x68] sm:$0x1] }
  0x5f   : > { %2302 = vmatprep.mubr.bf16.mxu1 %v4263_v37  ;;  %2166 = vmatmul.mubr.bf16.gmra.mrb[28].mxu0 %v4340_v11  ;;  %v677_v26 = vsel %vm4041_vm2, %v672_v7, %v676_v2  ;;  %v1152_v2 = vrot.slane %v1020_v49, 5  ;;  %v713_v3 = vshrl.u32 %v424_v61, 16  ;;  %v701_v5 = vsel %vm4041_vm2, %v696_v58, %v700_v41  ;;  %v3918_v54 = vld [vmem:[%s5172_s1 + $0x1a0] sm:$0xff]   ;;  %v1028_v20 = vld [vmem:[%s4016_s12 + $0x70] sm:$0xf] }
  0x60   : > { %2173 = vmatprep.mubr.bf16.mxu0 %v4362_v44  ;;  %v4402_v38 = vcombine.low %v677_v26, %v687_v30  ;;  %v716_v7 = vshll.u32 %v424_v61, 16  ;;  %v711_v10 = vsel %vm4041_vm2, %v706_v63, %v710_v52  ;;  %v4434_v26 = vld [vmem:[%s4016_s12 + $0x78] sm:$0xff]   ;;  %v724_v29 = vrot.slane %v722_v8, 5  ;;  %v1024_v56 = vld [vmem:[%s4016_s12 + $0x60] sm:$0xe]  ;;  %3644 = vmatprep.subr.bf16.mxu1 %v3917_v48 }
  0x61   : > { %v1153_v6 = vsel %vm4212_vm5, %v1151_v60, %v1152_v2  ;;  %v715_v15 = vrot.slane %v713_v3, 4  ;;  %v4431_v24 = vcombine.low %v701_v5, %v711_v10  ;;  %v732_v30 = vshll.u32 %v426_v1, 16  ;;  %v1025_v2 = vld [vmem:[%s4016_s12 + $0x64] sm:$0xf]  ;;  %3645 = vmatpush3.bf16.msra.mxu1 %v3918_v54  ;;  %v3920_v3 = vld [vmem:[%s5172_s1 + $0x1e8] sm:$0xff]  }
  0x62   : > { %v4427_v14 = vcombine.low %v1150_v59, %v1153_v6  ;;  %v718_v28 = vrot.slane %v716_v7, 5  ;;  %v728_v34 = vrot.slane %v726_v16, 4  ;;  %v1156_v17 = vrot.slane %v1022_v21, 5  ;;  %v3919_v63 = vld [vmem:[%s5172_s1 + $0x200] sm:$0xff]   ;;  %3646 = vmatprep.subr.bf16.mxu1 %v3920_v3  ;;  %v3923_v21 = vld [vmem:[%s5172_s1 + $0x1f0] sm:$0xff]  }
  0x63   : > { %v1159_v41 = vrot.slane %v1023_v32, 5  ;;  %v734_v51 = vrot.slane %v732_v30, 5  ;;  %v1163_v61 = vrot.slane %v1025_v2, 5  ;;  %3772 = vmatprep.subr.bf16.mxu0 %v3919_v63  ;;  %v3195_v7 = vrot.slane %v1024_v56, 9  ;;  %v4476_v16 = vld [vmem:[%s4016_s12 + $0x84] sm:$0xff]   ;;  %v3924_v32 = vld [vmem:[%s5172_s1 + $0x1b0] sm:$0xff]  }
  0x64   : > { %v719_v43 = vor.u32 %v718_v28, %v715_v15  ;;  %v729_v49 = vor.u32 %v728_v34, %v724_v29  ;;  %v1158_v52 = vrot.slane %v1156_v17, 4  ;;  %v1157_v59 = vsel %vm4212_vm5, %v3194_v36, %v1156_v17  ;;  %v3921_v15 = vld [vmem:[%s5172_s1 + $0x1a8] sm:$0xff]   ;;  %v1029_v34 = vld [vmem:[%s4016_s12 + $0x74] sm:$0x1]  ;;  %v1031_v17 = vld [vmem:[%s4016_s12 + $0x7c] sm:$0xf] }
  0x65   : > { %v1165_v8 = vrot.slane %v1163_v61, 4  ;;  %v1166_v10 = vrot.slane %v1026_v57, 5  ;;  %3647 = vmatpush3.bf16.msra.mxu1 %v3921_v15  ;;  %v1164_v28 = vsel %vm4212_vm5, %v3195_v7, %v1163_v61  ;;  %v1170_v30 = vrot.slane %v1028_v20, 5  ;;  %v1027_v33 = vld [vmem:[%s4016_s12 + $0x6c] sm:$0xe]  ;;  %v3930_v15 = vld [vmem:[%s5172_s1 + $0x220] sm:$0xff]  }
  0x66   : > { %2303 = vmatmul.mubr.bf16.gmra.mrb[32].mxu1 %v4367_v47  ;;  %v720_v31 = vrot.slane %v719_v43, 4  ;;  %v730_v58 = vrot.slane %v729_v49, 4  ;;  %v1160_v60 = vsel %vm4212_vm5, %v1158_v52, %v1159_v41  ;;  %3648 = vmatprep.subr.bf16.mxu1 %v3923_v21  ;;  %v3926_v41 = vld [vmem:[%s5172_s1 + $0x1f8] sm:$0xff]   ;;  %v3196_v43 = vrot.slane %v1027_v33, 9  ;;  %v1032_v54 = vld [vmem:[%s4016_s12 + $0x80] sm:$0x1] }
  0x67   : > { %2310 = vmatprep.mubr.bf16.mxu1 %v4297_v13  ;;  %2174 = vmatmul.mubr.bf16.gmra.mrb[32].mxu0 %v4365_v45  ;;  %v4469_v6 = vcombine.low %v1157_v59, %v1160_v60  ;;  %v1172_v48 = vrot.slane %v1170_v30, 4  ;;  %v1173_v49 = vrot.slane %v1029_v34, 5  ;;  %v1177_v52 = vrot.slane %v1031_v17, 5  ;;  %v3925_v60 = vld [vmem:[%s5172_s1 + $0x210] sm:$0xff]  }
  0x68   : > { %2181 = vmatprep.mubr.bf16.mxu0 %v4402_v38  ;;  %v725_v0 = vsel %vm4041_vm2, %v720_v31, %v724_v29  ;;  %v735_v1 = vsel %vm4041_vm2, %v730_v58, %v734_v51  ;;  %v1167_v29 = vsel %vm4212_vm5, %v1165_v8, %v1166_v10  ;;  %v3927_v51 = vld [vmem:[%s5172_s1 + $0x1b8] sm:$0xff]   ;;  %v3922_v31 = vld [vmem:[%s5172_s1 + $0x208] sm:$0xff]   ;;  %v1171_v56 = vsel %vm4212_vm5, %v3196_v43, %v1170_v30 }
  0x69   : > { %v4467_v5 = vcombine.low %v725_v0, %v735_v1  ;;  %3649 = vmatpush3.bf16.msra.mxu1 %v3924_v32  ;;  %v4495_v36 = vcombine.low %v1164_v28, %v1167_v29  ;;  %v1174_v2 = vsel %vm4212_vm5, %v1172_v48, %v1173_v49  ;;  %v1179_v58 = vrot.slane %v1177_v52, 4  ;;  %v1034_v0 = vld [vmem:[%s4016_s12 + $0x88] sm:$0xf]  ;;  %v1033_v1 = vld [vmem:[%s4016_s12 + $0x84] sm:$0xe]  ;;  %v4547_v32 = vld [vmem:[%s4016_s12 + $0x90] sm:$0xff]  }
  0x6a   : > { %3650 = vmatprep.subr.bf16.mxu1 %v3926_v41  ;;  %v1180_v59 = vrot.slane %v1032_v54, 5  ;;  %v4520_v61 = vcombine.low %v1171_v56, %v1174_v2  ;;  %v1035_v8 = vld [vmem:[%s4016_s12 + $0x8c] sm:$0x1]  ;;  %v3198_v20 = vrot.slane %v1033_v1, 9  ;;  %v1037_v29 = vld [vmem:[%s4016_s12 + $0x94] sm:$0xf] }
  0x6b   : > { %v1187_v28 = vrot.slane %v1035_v8, 5  ;;  %v3931_v30 = vld [vmem:[%s5172_s1 + $0x228] sm:$0xff]   ;;  %v1191_v17 = vrot.slane %v1037_v29, 5  ;;  %v1036_v41 = vld [vmem:[%s4016_s12 + $0x90] sm:$0xe]  ;;  %v4569_v56 = vld [vmem:[%s4016_s12 + $0x9c] sm:$0xff]  }
  0x6c   : > { %v1181_v7 = vsel %vm4212_vm5, %v1179_v58, %v1180_v59  ;;  %v1038_v43 = vld [vmem:[%s4016_s12 + $0x98] sm:$0x1]  ;;  %v3932_v49 = vld [vmem:[%s5172_s1 + $0x230] sm:$0xff]   ;;  %v1040_v54 = vld [vmem:[%s4016_s12 + $0xa0] sm:$0xf] }
  0x6d   : > { %3651 = vmatpush3.bf16.msra.mxu1 %v3927_v51  ;;  %v3199_v51 = vrot.slane %v1036_v41, 9  ;;  %v1198_v58 = vrot.slane %v1040_v54, 5  ;;  %v1039_v59 = vld [vmem:[%s4016_s12 + $0x9c] sm:$0xe]  ;;  %v4601_v41 = vld [vmem:[%s4016_s12 + $0xb4] sm:$0xff]  }
  0x6e   : > { %2311 = vmatmul.mubr.bf16.gmra.mrb[36].mxu1 %v4394_v27  ;;  %v3200_v1 = vrot.slane %v1039_v59, 9 }
  0x6f   : > { %2318 = vmatprep.mubr.bf16.mxu1 %v4340_v11  ;;  %2182 = vmatmul.mubr.bf16.gmra.mrb[36].mxu0 %v4407_v50  ;;  %v1192_v2 = vsel %vm4212_vm5, %v3199_v51, %v1191_v17 }
  0x70   : > { %2189 = vmatprep.mubr.bf16.mxu0 %v4431_v24  ;;  %v1199_v8 = vsel %vm4212_vm5, %v3200_v1, %v1198_v58 }
  0x76   : > { %2319 = vmatmul.mubr.bf16.gmra.mrb[40].mxu1 %v4427_v14 }
  0x77   : > { %2326 = vmatprep.mubr.bf16.mxu1 %v4365_v45  ;;  %2190 = vmatmul.mubr.bf16.gmra.mrb[40].mxu0 %v4434_v26 }
  0x78   : > { %2197 = vmatprep.mubr.bf16.mxu0 %v4467_v5 }
  0x7e   : > { %2327 = vmatmul.mubr.bf16.gmra.mrb[44].mxu1 %v4469_v6 }
  0x7f   : > { %2334 = vmatprep.mubr.bf16.mxu1 %v4407_v50  ;;  %2198 = vmatmul.mubr.bf16.gmra.mrb[44].mxu0 %v4476_v16 }
  0x80   : > { %2431 = vmatprep.mubr.bf16.mxu0 %v4273_v46  ;;  %v1030_v46 = vld [vmem:[%s4016_s12 + $0x78] sm:$0xe] }
  0x81   : > { %v3197_v57 = vrot.slane %v1030_v46, 9  ;;  %v1194_v46 = vrot.slane %v1038_v43, 5 }
  0x83   : > { %v1178_v3 = vsel %vm4212_vm5, %v3197_v57, %v1177_v52  ;;  %v1193_v52 = vrot.slane %v1191_v17, 4  ;;  %v1046_v17 = vld [vmem:[%s4016_s12 + $0xb8] sm:$0xf] }
  0x84   : > { %v4536_v10 = vcombine.low %v1178_v3, %v1181_v7  ;;  %v1043_v3 = vld [vmem:[%s4016_s12 + $0xac] sm:$0xf]  ;;  %v1212_v51 = vrot.slane %v1046_v17, 5 }
  0x85   : > { %v1195_v57 = vsel %vm4212_vm5, %v1193_v52, %v1194_v46  ;;  %v4585_v7 = vld [vmem:[%s4016_s12 + $0xa8] sm:$0xff]   ;;  %v1045_v52 = vld [vmem:[%s4016_s12 + $0xb4] sm:$0xe]  ;;  %v1047_v46 = vld [vmem:[%s4016_s12 + $0xbc] sm:$0x1] }
  0x86   : > { %2335 = vmatmul.mubr.bf16.gmra.mrb[48].mxu1 %v4495_v36 }
  0x87   : > { %2342 = vmatprep.mubr.bf16.mxu1 %v4434_v26  ;;  %2432 = vmatmul.mubr.bf16.vlgmr.msra.gmra.mrb[48].mxu0 %v4101_v39  ;;  %v1184_v39 = vrot.slane %v1034_v0, 5  ;;  %v4580_v0 = vcombine.low %v1192_v2, %v1195_v57  ;;  %v3202_v2 = vrot.slane %v1045_v52, 9  ;;  %v1214_v57 = vrot.slane %v1212_v51, 4 }
  0x88   : > { %3773 = vmatpush3.bf16.msra.mxu0 %v3919_v63  ;;  %2439 = vmatprep.mubr.bf16.mxu0 %v4305_v18  ;;  %v3928_v63 = vld [vmem:[%s5172_s1 + $0x218] sm:$0xff]  }
  0x89   : > { %3774 = vmatprep.subr.bf16.mxu0 %v3922_v31  ;;  %v1186_v21 = vrot.slane %v1184_v39, 4  ;;  %v1185_v33 = vsel %vm4212_vm5, %v3198_v20, %v1184_v39  ;;  %v1200_v39 = vrot.slane %v1198_v58, 4  ;;  %v1205_v20 = vrot.slane %v1043_v3, 5 }
  0x8a   : > { %v1215_v58 = vrot.slane %v1047_v46, 5  ;;  %v1213_v59 = vsel %vm4212_vm5, %v3202_v2, %v1212_v51 }
  0x8b   : > { %v1188_v34 = vsel %vm4212_vm5, %v1186_v21, %v1187_v28  ;;  %v1042_v21 = vld [vmem:[%s4016_s12 + $0xa8] sm:$0xe]  ;;  %v1044_v28 = vld [vmem:[%s4016_s12 + $0xb0] sm:$0x1] }
  0x8c   : > { %3775 = vmatpush3.bf16.msra.mxu0 %v3922_v31  ;;  %v4558_v48 = vcombine.low %v1185_v33, %v1188_v34  ;;  %v3933_v31 = vld [vmem:[%s5172_s1 + $0x238] sm:$0xff]   ;;  %v1207_v33 = vrot.slane %v1205_v20, 4  ;;  %v1208_v34 = vrot.slane %v1044_v28, 5  ;;  %v441_v28 = vld [vmem:[%s4016_s12 + $0xc8] sm:$0x1] }
  0x8d   : > { %3776 = vmatprep.subr.bf16.mxu0 %v3925_v60 }
  0x8e   : > { %2343 = vmatmul.mubr.bf16.gmra.mrb[52].mxu1 %v4520_v61 }
  0x8f   : > { %2350 = vmatprep.mubr.bf16.mxu1 %v4476_v16  ;;  %2440 = vmatmul.mubr.bf16.gmra.mrb[52].mxu0 %v4144_v25 }
  0x90   : > { %2447 = vmatprep.mubr.bf16.mxu0 %v4342_v4  ;;  %3777 = vmatpush3.bf16.msra.mxu0 %v3925_v60  ;;  %v1041_v60 = vld [vmem:[%s4016_s12 + $0xa4] sm:$0x1] }
  0x91   : > { %3778 = vmatprep.subr.bf16.mxu0 %v3928_v63 }
  0x94   : > { %3779 = vmatpush3.bf16.msra.mxu0 %v3928_v63  ;;  %v1201_v63 = vrot.slane %v1041_v60, 5  ;;  %v1216_v60 = vsel %vm4212_vm5, %v1214_v57, %v1215_v58 }
  0x95   : > { %3780 = vmatprep.subr.bf16.mxu0 %v3930_v15  ;;  %v4625_v1 = vcombine.low %v1213_v59, %v1216_v60 }
  0x96   : > { %2351 = vmatmul.mubr.bf16.gmra.mrb[56].mxu1 %v4536_v10 }
  0x97   : > { %2358 = vmatprep.mubr.bf16.mxu1 %v4547_v32  ;;  %2448 = vmatmul.mubr.bf16.gmra.mrb[56].mxu0 %v4184_v12 }
  0x98   : > { %2455 = vmatprep.mubr.bf16.mxu0 %v4367_v47  ;;  %3781 = vmatpush3.bf16.msra.mxu0 %v3930_v15  ;;  %v1202_v15 = vsel %vm4212_vm5, %v1200_v39, %v1201_v63  ;;  %v3939_v39 = vld [vmem:[%s4016_s12 + $0x18] sm:$0xff]   ;;  %v3940_v63 = vld [vmem:[%s4016_s12 + $0x24] sm:$0xff]  }
  0x99   : > { %3782 = vmatprep.subr.bf16.mxu0 %v3931_v30  ;;  %v4596_v29 = vcombine.low %v1199_v8, %v1202_v15 }
  0x9c   : > { %3783 = vmatpush3.bf16.msra.mxu0 %v3931_v30  ;;  %v3201_v30 = vrot.slane %v1042_v21, 9  ;;  %v1050_v21 = vld [vmem:[%s4016_s12 + $0xc8] sm:$0x1] }
  0x9d   : > { %3784 = vmatprep.subr.bf16.mxu0 %v3932_v49  ;;  %v1305_v46 = vrot.slane %v1050_v21, 5 }
  0x9e   : > { %2359 = vmatmul.mubr.bf16.gmra.mrb[60].mxu1 %v4558_v48  ;;  %v1206_v43 = vsel %vm4212_vm5, %v3201_v30, %v1205_v20  ;;  %v1048_v20 = vld [vmem:[%s4016_s12 + $0xc0] sm:$0xe] }
  0x9f   : > { %2366 = vmatprep.mubr.bf16.mxu1 %v4569_v56  ;;  %2456 = vmatmul.mubr.bf16.gmra.mrb[60].mxu0 %v4242_v9  ;;  %v3219_v51 = vrot.slane %v1048_v20, 9 }
  0xa0   : > { %2463 = vmatprep.mubr.bf16.mxu0 %v4394_v27  ;;  %3785 = vmatpush3.bf16.msra.mxu0 %v3932_v49  ;;  %v1209_v49 = vsel %vm4212_vm5, %v1207_v33, %v1208_v34 }
  0xa1   : > { %3786 = vmatprep.subr.bf16.mxu0 %v3933_v31  ;;  %v4612_v54 = vcombine.low %v1206_v43, %v1209_v49 }
  0xa4   : > { %3787 = vmatpush3.bf16.msra.mxu0 %v3933_v31  ;;  %v4615_v31 = vld [vmem:[%s4016_s12 + $0xc0] sm:$0xff]  }
  0xa6   : > { %2367 = vmatmul.mubr.bf16.gmra.mrb[64].mxu1 %v4580_v0 }
  0xa7   : > { %2374 = vmatprep.mubr.bf16.mxu1 %v4585_v7  ;;  %2464 = vmatmul.mubr.bf16.gmra.mrb[64].mxu0 %v4281_v55 }
  0xa8   : > { %2471 = vmatprep.mubr.bf16.mxu0 %v4427_v14 }
  0xae   : > { %2375 = vmatmul.mubr.bf16.gmra.mrb[68].mxu1 %v4596_v29 }
  0xaf   : > { %2382 = vmatprep.mubr.bf16.mxu1 %v4601_v41  ;;  %2472 = vmatmul.mubr.bf16.gmra.mrb[68].mxu0 %v4308_v22 }
  0xb0   : > { %2479 = vmatprep.mubr.bf16.mxu0 %v4469_v6 }
  0xb6   : > { %2383 = vmatmul.mubr.bf16.gmra.mrb[72].mxu1 %v4612_v54 }
  0xb7   : > { %2390 = vmatprep.mubr.bf16.mxu1 %v4615_v31  ;;  %2480 = vmatmul.mubr.bf16.gmra.mrb[72].mxu0 %v4345_v19 }
  0xb8   : > { %2487 = vmatprep.mubr.bf16.mxu0 %v4495_v36 }
  0xbe   : > { %2391 = vmatmul.mubr.bf16.gmra.mrb[76].mxu1 %v4625_v1 }
  0xbf   : > { %2592 = vmatprep.mubr.bf16.mxu1 %v4144_v25  ;;  %2488 = vmatmul.mubr.bf16.gmra.mrb[76].mxu0 %v4362_v44  ;;  %v3941_v25 = vld [vmem:[%s4016_s12 + $0x30] sm:$0xff]  }
  0xc0   : > { %2495 = vmatprep.mubr.bf16.mxu0 %v4520_v61 }
  0xc6   : > { %2593 = vmatmul.mubr.bf16.vlgmr.msra.gmra.mrb[80].mxu1 %v3939_v39 }
  0xc7   : > { %2600 = vmatprep.mubr.bf16.mxu1 %v4184_v12  ;;  %2496 = vmatmul.mubr.bf16.gmra.mrb[80].mxu0 %v4402_v38  ;;  %v439_v12 = vld [vmem:[%s4016_s12 + $0xc0] sm:$0xf] }
  0xc8   : > { %2503 = vmatprep.mubr.bf16.mxu0 %v4536_v10  ;;  %v916_v3 = vshll.u32 %v439_v12, 16 }
  0xca   : > { %v918_v34 = vrot.slane %v916_v3, 5 }
  0xce   : > { %2601 = vmatmul.mubr.bf16.gmra.mrb[84].mxu1 %v3940_v63  ;;  %v932_v63 = vshll.u32 %v441_v28, 16 }
  0xcf   : > { %2608 = vmatprep.mubr.bf16.mxu1 %v4242_v9  ;;  %2504 = vmatmul.mubr.bf16.gmra.mrb[84].mxu0 %v4431_v24  ;;  %v440_v9 = vld [vmem:[%s4016_s12 + $0xc4] sm:$0xf] }
  0xd0   : > { %2511 = vmatprep.mubr.bf16.mxu0 %v4558_v48  ;;  %v926_v8 = vshrl.u32 %v440_v9, 16 }
  0xd2   : > { %v928_v43 = vrot.slane %v926_v8, 4  ;;  %v934_v8 = vrot.slane %v932_v63, 5 }
  0xd6   : > { %2609 = vmatmul.mubr.bf16.gmra.mrb[88].mxu1 %v3941_v25 }
  0xd7   : > { %2616 = vmatprep.mubr.bf16.mxu1 %v4281_v55  ;;  %2512 = vmatmul.mubr.bf16.gmra.mrb[88].mxu0 %v4467_v5  ;;  %v1049_v55 = vld [vmem:[%s4016_s12 + $0xc4] sm:$0xf] }
  0xd8   : > { %2519 = vmatprep.mubr.bf16.mxu0 %v4580_v0  ;;  %v1302_v15 = vrot.slane %v1049_v55, 5 }
  0xda   : > { %v1304_v52 = vrot.slane %v1302_v15, 4 }
  0xdc   : > { %v1306_v55 = vsel %vm4212_vm5, %v1304_v52, %v1305_v46 }
  0xde   : > { %2617 = vmatmul.mubr.bf16.gmra.mrb[92].mxu1 %v4263_v37  ;;  %v913_v37 = vshrl.u32 %v439_v12, 16 }
  0xdf   : > { %2624 = vmatprep.mubr.bf16.mxu1 %v4308_v22  ;;  %2520 = vmatmul.mubr.bf16.gmra.mrb[92].mxu0 %v4071_v62  ;;  %v922_v22 = vshll.u32 %v440_v9, 16 }
  0xe0   : > { %2527 = vmatprep.mubr.bf16.mxu0 %v4596_v29 }
  0xe1   : > { %v924_v17 = vrot.slane %v922_v22, 5 }
  0xe3   : > { %v929_v9 = vor.u32 %v928_v43, %v924_v17 }
  0xe5   : > { %v930_v22 = vrot.slane %v929_v9, 4 }
  0xe6   : > { %2625 = vmatmul.mubr.bf16.gmra.mrb[96].mxu1 %v4297_v13  ;;  %v915_v13 = vrot.slane %v913_v37, 4 }
  0xe7   : > { %2632 = vmatprep.mubr.bf16.mxu1 %v4345_v19  ;;  %2528 = vmatmul.mubr.bf16.gmra.mrb[96].mxu0 %v4117_v53 }
  0xe8   : > { %2535 = vmatprep.mubr.bf16.mxu0 %v4612_v54  ;;  %v919_v12 = vor.u32 %v918_v34, %v915_v13 }
  0xea   : > { %v920_v3 = vrot.slane %v919_v12, 4 }
  0xee   : > { %2633 = vmatmul.mubr.bf16.gmra.mrb[100].mxu1 %v4340_v11 }
  0xef   : > { %2640 = vmatprep.mubr.bf16.mxu1 %v4362_v44  ;;  %2536 = vmatmul.mubr.bf16.gmra.mrb[100].mxu0 %v4161_v40  ;;  %v1303_v44 = vsel %vm4212_vm5, %v3219_v51, %v1302_v15  ;;  %v925_v15 = vsel %vm4041_vm2, %v920_v3, %v924_v17 }
  0xf0   : > { %2543 = vmatprep.mubr.bf16.mxu0 %v4625_v1  ;;  %v4673_v37 = vcombine.low %v1303_v44, %v1306_v55 }
  0xf6   : > { %2641 = vmatmul.mubr.bf16.gmra.mrb[104].mxu1 %v4365_v45 }
  0xf7   : > { %2648 = vmatprep.mubr.bf16.mxu1 %v4402_v38  ;;  %2544 = vmatmul.mubr.bf16.gmra.mrb[104].mxu0 %v4202_v23 }
  0xf8   : > { %2551 = vmatprep.mubr.bf16.mxu0 %v4673_v37 }
  0xf9   : > { %v3388_v30 = vpop.f32.mrb[0].mxu1  ;;  %v3316_v33 = vpop.f32.mrb[0].mxu0 }
  0xfa   : > { %v3389_v19 = vpop.f32.mrb[1].mxu1  ;;  %v3317_v49 = vpop.f32.mrb[1].mxu0 }
  0xfb   : > { %v4659_v2 = vadd.f32 %v3389_v19, %v3388_v30  ;;  %v3391_v57 = vpop.f32.mrb[2].mxu1  ;;  %v4661_v58 = vadd.f32 %v3317_v49, %v3316_v33  ;;  %v3319_v59 = vpop.f32.mrb[2].mxu0  ;;  %v935_v33 = vsel %vm4041_vm2, %v930_v22, %v934_v8 }
  0xfc   : > { %v3392_v60 = vpop.f32.mrb[3].mxu1  ;;  %v3320_v39 = vpop.f32.mrb[3].mxu0  ;;  %v4689_v49 = vcombine.low %v925_v15, %v935_v33 }
  0xfd   : > { %v4665_v11 = vadd.f32 %v3392_v60, %v3391_v57  ;;  %v4667_v25 = vadd.f32 %v3320_v39, %v3319_v59 }
  0xfe   : > { %2649 = vmatmul.mubr.bf16.gmra.mrb[108].mxu1 %v4407_v50 }
  0xff   : > { %2656 = vmatprep.mubr.bf16.mxu1 %v4431_v24  ;;  %2552 = vmatmul.mubr.bf16.gmra.mrb[108].mxu0 %v4689_v49 }
 0x100   : > { %3788 = vmatprep.mubr.bf16.mxu0 %v4305_v18 }
 0x101   : > { %v3322_v20 = vpop.f32.mrb[4].mxu0  ;;  %v3394_v13 = vpop.f32.mrb[4].mxu1 }
 0x102   : > { %v3323_v21 = vpop.f32.mrb[5].mxu0  ;;  %v3395_v45 = vpop.f32.mrb[5].mxu1 }
 0x103   : > { %v4678_v28 = vadd.f32 %v3323_v21, %v3322_v20  ;;  %v3325_v30 = vpop.f32.mrb[6].mxu0  ;;  %v4687_v38 = vadd.f32 %v3395_v45, %v3394_v13  ;;  %v3397_v19 = vpop.f32.mrb[6].mxu1 }
 0x104   : > { %v3326_v34 = vpop.f32.mrb[7].mxu0  ;;  %v3398_v51 = vpop.f32.mrb[7].mxu1 }
 0x105   : > { %v4685_v43 = vadd.f32 %v3326_v34, %v3325_v30  ;;  %v4691_v52 = vadd.f32 %v3398_v51, %v3397_v19  ;;  %v442_v51 = vld [vmem:[%s4016_s12 + $0xcc] sm:$0xf] }
 0x106   : > { %2657 = vmatmul.mubr.bf16.gmra.mrb[112].mxu1 %v4434_v26 }
 0x107   : > { %2664 = vmatprep.mubr.bf16.mxu1 %v4467_v5  ;;  %3789 = vmatmul.mubr.bf16.vlgmr.msra.gmra.mrb[112].mxu0 %v4342_v4 }
 0x108   : > { %3792 = vmatprep.mubr.bf16.mxu0 %v4367_v47 }
 0x109   : > { %v3328_v17 = vpop.f32.mrb[8].mxu0  ;;  %v3400_v60 = vpop.f32.mrb[8].mxu1 }
 0x10a   : > { %v3329_v46 = vpop.f32.mrb[9].mxu0  ;;  %v3401_v63 = vpop.f32.mrb[9].mxu1 }
 0x10b   : > { %v4697_v57 = vadd.f32 %v3329_v46, %v3328_v17  ;;  %v3331_v59 = vpop.f32.mrb[10].mxu0  ;;  %v4702_v9 = vadd.f32 %v3401_v63, %v3400_v60  ;;  %v3403_v50 = vpop.f32.mrb[10].mxu1  ;;  %v960_v46 = vshll.u32 %v442_v51, 16 }
 0x10c   : > { %v3332_v39 = vpop.f32.mrb[11].mxu0  ;;  %v3404_v18 = vpop.f32.mrb[11].mxu1 }
 0x10d   : > { %v4700_v12 = vadd.f32 %v3332_v39, %v3331_v59  ;;  %v4706_v24 = vadd.f32 %v3404_v18, %v3403_v50 }
 0x10e   : > { %2665 = vmatmul.mubr.bf16.gmra.mrb[116].mxu1 %v4476_v16 }
 0x10f   : > { %2672 = vmatprep.mubr.bf16.mxu1 %v4071_v62  ;;  %3793 = vmatmul.mubr.bf16.gmra.mrb[116].mxu0 %v4394_v27 }
 0x110   : > { %3796 = vmatprep.mubr.bf16.mxu0 %v4427_v14 }
 0x111   : > { %v3334_v44 = vpop.f32.mrb[12].mxu0  ;;  %v3406_v22 = vpop.f32.mrb[12].mxu1 }
 0x112   : > { %v3335_v55 = vpop.f32.mrb[13].mxu0  ;;  %v3407_v5 = vpop.f32.mrb[13].mxu1 }
 0x113   : > { %v4712_v26 = vadd.f32 %v3335_v55, %v3334_v44  ;;  %v3337_v3 = vpop.f32.mrb[14].mxu0  ;;  %v4717_v20 = vadd.f32 %v3407_v5, %v3406_v22  ;;  %v3409_v47 = vpop.f32.mrb[14].mxu1 }
 0x114   : > { %v3338_v4 = vpop.f32.mrb[15].mxu0  ;;  %v3410_v16 = vpop.f32.mrb[15].mxu1 }
 0x115   : > { %v4715_v8 = vadd.f32 %v3338_v4, %v3337_v3  ;;  %v4719_v21 = vadd.f32 %v3410_v16, %v3409_v47  ;;  %v962_v3 = vrot.slane %v960_v46, 5  ;;  %v444_v16 = vld [vmem:[%s4016_s12 + $0xd4] sm:$0x1] }
 0x116   : > { %2673 = vmatmul.mubr.bf16.gmra.mrb[120].mxu1 %v4547_v32 }
 0x117   : > { %2680 = vmatprep.mubr.bf16.mxu1 %v4117_v53  ;;  %3797 = vmatmul.mubr.bf16.gmra.mrb[120].mxu0 %v4469_v6  ;;  %v443_v53 = vld [vmem:[%s4016_s12 + $0xd0] sm:$0xf] }
 0x118   : > { %3800 = vmatprep.mubr.bf16.mxu0 %v4495_v36  ;;  %v966_v59 = vshll.u32 %v443_v53, 16  ;;  %v970_v60 = vshrl.u32 %v443_v53, 16 }
 0x119   : > { %v3428_v62 = vpop.f32.mrb[16].mxu1 }
 0x11a   : > { %v3429_v27 = vpop.f32.mrb[17].mxu1  ;;  %v3340_v30 = vpop.f32.mrb[16].mxu0  ;;  %v968_v22 = vrot.slane %v966_v59, 5  ;;  %v1052_v59 = vld [vmem:[%s4016_s12 + $0xd0] sm:$0xf] }
 0x11b   : > { %v3430_v14 = vadd.f32 %v3429_v27, %v3428_v62  ;;  %v3431_v15 = vpop.f32.mrb[18].mxu1  ;;  %v3341_v33 = vpop.f32.mrb[17].mxu0 }
 0x11c   : > { %v3432_v13 = vpop.f32.mrb[19].mxu1  ;;  %v4728_v45 = vadd.f32 %v3341_v33, %v3340_v30  ;;  %v3343_v19 = vpop.f32.mrb[18].mxu0  ;;  %v976_v30 = vshll.u32 %v444_v16, 16 }
 0x11d   : > { %v4726_v34 = vadd.f32 %v3430_v14, %v4661_v58  ;;  %v3433_v32 = vadd.f32 %v3432_v13, %v3431_v15  ;;  %v3344_v17 = vpop.f32.mrb[19].mxu0  ;;  %v957_v58 = vshrl.u32 %v442_v51, 16 }
 0x11e   : > { %2681 = vmatmul.mubr.bf16.gmra.mrb[124].mxu1 %v4569_v56  ;;  %v4736_v36 = vadd.f32 %v3344_v17, %v3343_v19  ;;  %v978_v17 = vrot.slane %v976_v30, 5 }
 0x11f   : > { %v4734_v6 = vadd.f32 %v3433_v32, %v4667_v25  ;;  %2688 = vmatprep.mubr.bf16.mxu1 %v4161_v40  ;;  %3801 = vmatmul.mubr.bf16.gmra.mrb[124].mxu0 %v4520_v61  ;;  %v959_v55 = vrot.slane %v957_v58, 4  ;;  %v972_v40 = vrot.slane %v970_v60, 4 }
 0x120   : > { %3804 = vmatprep.mubr.bf16.mxu0 %v4536_v10 }
 0x121   : > { %v3434_v39 = vpop.f32.mrb[20].mxu1  ;;  %v963_v14 = vor.u32 %v962_v3, %v959_v55 }
 0x122   : > { %v3435_v63 = vpop.f32.mrb[21].mxu1  ;;  %v3346_v56 = vpop.f32.mrb[20].mxu0 }
 0x123   : > { %v3436_v50 = vadd.f32 %v3435_v63, %v3434_v39  ;;  %v3437_v18 = vpop.f32.mrb[22].mxu1  ;;  %v3347_v25 = vpop.f32.mrb[21].mxu0  ;;  %v964_v51 = vrot.slane %v963_v14, 4 }
 0x124   : > { %v3438_v44 = vpop.f32.mrb[23].mxu1  ;;  %v4744_v4 = vadd.f32 %v3347_v25, %v3346_v56  ;;  %v3349_v47 = vpop.f32.mrb[22].mxu0 }
 0x125   : > { %v4742_v61 = vadd.f32 %v3436_v50, %v4678_v28  ;;  %v3439_v5 = vadd.f32 %v3438_v44, %v3437_v18  ;;  %v3350_v62 = vpop.f32.mrb[23].mxu0  ;;  %v973_v28 = vor.u32 %v972_v40, %v968_v22  ;;  %v1332_v50 = vrot.slane %v1052_v59, 5 }
 0x126   : > { %2689 = vmatmul.mubr.bf16.gmra.mrb[128].mxu1 %v4585_v7  ;;  %v4751_v27 = vadd.f32 %v3350_v62, %v3349_v47 }
 0x127   : > { %v4749_v10 = vadd.f32 %v3439_v5, %v4685_v43  ;;  %2696 = vmatprep.mubr.bf16.mxu1 %v4202_v23  ;;  %3805 = vmatmul.mubr.bf16.gmra.mrb[128].mxu0 %v4558_v48  ;;  %v974_v53 = vrot.slane %v973_v28, 4  ;;  %v1334_v5 = vrot.slane %v1332_v50, 4 }
 0x128   : > { %3808 = vmatprep.mubr.bf16.mxu0 %v4580_v0 }
 0x129   : > { %v3440_v15 = vpop.f32.mrb[24].mxu1  ;;  %v979_v63 = vsel %vm4041_vm2, %v974_v53, %v978_v17 }
 0x12a   : > { %v3441_v33 = vpop.f32.mrb[25].mxu1  ;;  %v3352_v32 = vpop.f32.mrb[24].mxu0 }
 0x12b   : > { %v3442_v13 = vadd.f32 %v3441_v33, %v3440_v15  ;;  %v3443_v7 = vpop.f32.mrb[26].mxu1  ;;  %v3353_v19 = vpop.f32.mrb[25].mxu0 }
 0x12c   : > { %v3444_v43 = vpop.f32.mrb[27].mxu1  ;;  %v4759_v48 = vadd.f32 %v3353_v19, %v3352_v32  ;;  %v3355_v46 = vpop.f32.mrb[26].mxu0 }
 0x12d   : > { %v4757_v23 = vadd.f32 %v3442_v13, %v4697_v57  ;;  %v3445_v58 = vadd.f32 %v3444_v43, %v3443_v7  ;;  %v3356_v0 = vpop.f32.mrb[27].mxu0  ;;  %v969_v57 = vsel %vm4041_vm2, %v964_v51, %v968_v22  ;;  %v3934_v13 = vld [vmem:[%s4016_s12 + $0xcc] sm:$0xff]  }
 0x12e   : > { %2697 = vmatmul.mubr.bf16.gmra.mrb[132].mxu1 %v4601_v41  ;;  %v4766_v39 = vadd.f32 %v3356_v0, %v3355_v46  ;;  %v1051_v41 = vld [vmem:[%s4016_s12 + $0xcc] sm:$0xe]  ;;  %v3186_v3 = vcombine.low %v969_v57, %v979_v63 }
 0x12f   : > { %v4764_v60 = vadd.f32 %v3445_v58, %v4700_v12  ;;  %2704 = vmatprep.mubr.bf16.mxu1 %v4689_v49  ;;  %3809 = vmatmul.mubr.bf16.gmra.mrb[132].mxu0 %v4596_v29  ;;  %v1053_v12 = vld [vmem:[%s4016_s12 + $0xd4] sm:$0x1]  ;;  %v3221_v29 = vrot.slane %v1051_v41, 9 }
 0x130   : > { %3812 = vmatprep.mubr.bf16.mxu0 %v4612_v54  ;;  %v1335_v54 = vrot.slane %v1053_v12, 5 }
 0x131   : > { %v3446_v56 = vpop.f32.mrb[28].mxu1 }
 0x132   : > { %v3447_v18 = vpop.f32.mrb[29].mxu1  ;;  %v3358_v44 = vpop.f32.mrb[28].mxu0  ;;  %v1336_v15 = vsel %vm4212_vm5, %v1334_v5, %v1335_v54 }
 0x133   : > { %v3448_v25 = vadd.f32 %v3447_v18, %v3446_v56  ;;  %v3449_v55 = vpop.f32.mrb[30].mxu1  ;;  %v3359_v49 = vpop.f32.mrb[29].mxu0 }
 0x134   : > { %v3450_v40 = vpop.f32.mrb[31].mxu1  ;;  %v4780_v35 = vadd.f32 %v3359_v49, %v3358_v44  ;;  %v3361_v16 = vpop.f32.mrb[30].mxu0 }
 0x135   : > { %v4778_v22 = vadd.f32 %v3448_v25, %v4712_v26  ;;  %v3451_v47 = vadd.f32 %v3450_v40, %v3449_v55  ;;  %v3362_v62 = vpop.f32.mrb[31].mxu0  ;;  %v1333_v26 = vsel %vm4212_vm5, %v3221_v29, %v1332_v50 }
 0x136   : > { %2705 = vmatmul.mubr.bf16.gmra.mrb[136].mxu1 %v4615_v31  ;;  %v4786_v28 = vadd.f32 %v3362_v62, %v3361_v16  ;;  %v3222_v43 = vcombine.low %v1333_v26, %v1336_v15 }
 0x137   : > { %v4784_v14 = vadd.f32 %v3451_v47, %v4715_v8  ;;  %2712 = vmatprep.mubr.bf16.mxu1 %v3186_v3  ;;  %3813 = vmatmul.mubr.bf16.gmra.mrb[136].mxu0 %v4625_v1 }
 0x138   : > { %3816 = vmatprep.mubr.bf16.mxu0 %v4673_v37 }
 0x139   : > { %v3452_v30 = vpop.f32.mrb[32].mxu1 }
 0x13a   : > { %v3453_v33 = vpop.f32.mrb[33].mxu1  ;;  %v3364_v32 = vpop.f32.mrb[32].mxu0 }
 0x13b   : > { %v3454_v31 = vadd.f32 %v3453_v33, %v3452_v30  ;;  %v3455_v8 = vpop.f32.mrb[34].mxu1  ;;  %v3365_v7 = vpop.f32.mrb[33].mxu0 }
 0x13c   : > { %v3456_v19 = vpop.f32.mrb[35].mxu1  ;;  %v3366_v1 = vadd.f32 %v3365_v7, %v3364_v32  ;;  %v3367_v37 = vpop.f32.mrb[34].mxu0 }
 0x13d   : > { %v4796_v51 = vadd.f32 %v3454_v31, %v4728_v45  ;;  %v3457_v53 = vadd.f32 %v3456_v19, %v3455_v8  ;;  %v3368_v17 = vpop.f32.mrb[35].mxu0 }
 0x13e   : > { %2713 = vmatmul.mubr.bf16.gmra.mrb[140].mxu1 %v3934_v13  ;;  %v3369_v42 = vadd.f32 %v3368_v17, %v3367_v37 }
 0x13f   : > { %v4799_v58 = vadd.f32 %v3457_v53, %v4736_v36  ;;  %3817 = vmatmul.mubr.bf16.gmra.mrb[140].mxu0 %v3222_v43 }
 0x141   : > { %v3458_v46 = vpop.f32.mrb[36].mxu1 }
 0x142   : > { %v3459_v59 = vpop.f32.mrb[37].mxu1  ;;  %v3370_v57 = vpop.f32.mrb[36].mxu0 }
 0x143   : > { %v3460_v0 = vadd.f32 %v3459_v59, %v3458_v46  ;;  %v3461_v63 = vpop.f32.mrb[38].mxu1  ;;  %v3371_v50 = vpop.f32.mrb[37].mxu0 }
 0x144   : > { %v3462_v56 = vpop.f32.mrb[39].mxu1  ;;  %v3372_v41 = vadd.f32 %v3371_v50, %v3370_v57  ;;  %v3373_v12 = vpop.f32.mrb[38].mxu0 }
 0x145   : > { %v4802_v45 = vadd.f32 %v3460_v0, %v4744_v4  ;;  %v3463_v18 = vadd.f32 %v3462_v56, %v3461_v63  ;;  %v3374_v25 = vpop.f32.mrb[39].mxu0 }
 0x146   : > { %v3375_v36 = vadd.f32 %v3374_v25, %v3373_v12 }
 0x147   : > { %v4805_v44 = vadd.f32 %v3463_v18, %v4751_v27 }
 0x149   : > { %v3464_v55 = vpop.f32.mrb[40].mxu1 }
 0x14a   : > { %v3465_v3 = vpop.f32.mrb[41].mxu1  ;;  %v3376_v40 = vpop.f32.mrb[40].mxu0 }
 0x14b   : > { %v3466_v49 = vadd.f32 %v3465_v3, %v3464_v55  ;;  %v3467_v29 = vpop.f32.mrb[42].mxu1  ;;  %v3377_v5 = vpop.f32.mrb[41].mxu0 }
 0x14c   : > { %v3468_v47 = vpop.f32.mrb[43].mxu1  ;;  %v3378_v4 = vadd.f32 %v3377_v5, %v3376_v40  ;;  %v3379_v62 = vpop.f32.mrb[42].mxu0 }
 0x14d   : > { %v4808_v16 = vadd.f32 %v3466_v49, %v4759_v48  ;;  %v3469_v54 = vadd.f32 %v3468_v47, %v3467_v29  ;;  %v3380_v30 = vpop.f32.mrb[43].mxu0 }
 0x14e   : > { %v3381_v27 = vadd.f32 %v3380_v30, %v3379_v62 }
 0x14f   : > { %v4811_v26 = vadd.f32 %v3469_v54, %v4766_v39 }
 0x151   : > { %v3470_v15 = vpop.f32.mrb[44].mxu1 }
 0x152   : > { %v3471_v33 = vpop.f32.mrb[45].mxu1  ;;  %v3382_v31 = vpop.f32.mrb[44].mxu0 }
 0x153   : > { %v3472_v13 = vadd.f32 %v3471_v33, %v3470_v15  ;;  %v3473_v32 = vpop.f32.mrb[46].mxu1  ;;  %v3383_v8 = vpop.f32.mrb[45].mxu0 }
 0x154   : > { %v3474_v7 = vpop.f32.mrb[47].mxu1  ;;  %v3384_v48 = vadd.f32 %v3383_v8, %v3382_v31  ;;  %v3385_v53 = vpop.f32.mrb[46].mxu0 }
 0x155   : > { %v4814_v19 = vadd.f32 %v3472_v13, %v4780_v35  ;;  %v3475_v43 = vadd.f32 %v3474_v7, %v3473_v32  ;;  %v3386_v37 = vpop.f32.mrb[47].mxu0 }
 0x156   : > { %v3387_v39 = vadd.f32 %v3386_v37, %v3385_v53 }
 0x157   : > { %v4817_v17 = vadd.f32 %v3475_v43, %v4786_v28 }
 0x159   : > { %v3476_v46 = vpop.f32.mrb[48].mxu1 }
 0x15a   : > { %v3477_v59 = vpop.f32.mrb[49].mxu1  ;;  %v3540_v0 = vpop.f32.mrb[48].mxu0 }
 0x15b   : > { %v3478_v57 = vadd.f32 %v3477_v59, %v3476_v46  ;;  %v3479_v63 = vpop.f32.mrb[50].mxu1  ;;  %v3541_v50 = vpop.f32.mrb[49].mxu0 }
 0x15c   : > { %v3480_v56 = vpop.f32.mrb[51].mxu1  ;;  %v3542_v12 = vadd.f32 %v3541_v50, %v3540_v0  ;;  %v3543_v35 = vpop.f32.mrb[50].mxu0 }
 0x15d   : > { %v4819_v18 = vadd.f32 %v3478_v57, %v3366_v1  ;;  %v3481_v25 = vadd.f32 %v3480_v56, %v3479_v63  ;;  %v3544_v55 = vpop.f32.mrb[51].mxu0 }
 0x15e   : > { %v4822_v3 = vadd.f32 %v3542_v12, %v4726_v34  ;;  %v3545_v28 = vadd.f32 %v3544_v55, %v3543_v35 }
 0x15f   : > { %v4824_v49 = vadd.f32 %v3481_v25, %v3369_v42 }
 0x160   : > { %v4827_v40 = vadd.f32 %v3545_v28, %v4734_v6 }
 0x161   : > { %v3482_v29 = vpop.f32.mrb[52].mxu1 }
 0x162   : > { %v3483_v5 = vpop.f32.mrb[53].mxu1  ;;  %v3546_v47 = vpop.f32.mrb[52].mxu0 }
 0x163   : > { %v3484_v54 = vadd.f32 %v3483_v5, %v3482_v29  ;;  %v3485_v62 = vpop.f32.mrb[54].mxu1  ;;  %v3547_v1 = vpop.f32.mrb[53].mxu0 }
 0x164   : > { %v3486_v30 = vpop.f32.mrb[55].mxu1  ;;  %v3548_v33 = vadd.f32 %v3547_v1, %v3546_v47  ;;  %v3549_v13 = vpop.f32.mrb[54].mxu0 }
 0x165   : > { %v4829_v15 = vadd.f32 %v3484_v54, %v3372_v41  ;;  %v3487_v31 = vadd.f32 %v3486_v30, %v3485_v62  ;;  %v3550_v34 = vpop.f32.mrb[55].mxu0 }
 0x166   : > { %v4832_v42 = vadd.f32 %v3548_v33, %v4742_v61  ;;  %v3551_v6 = vadd.f32 %v3550_v34, %v3549_v13 }
 0x167   : > { %v4834_v32 = vadd.f32 %v3487_v31, %v3375_v36 }
 0x168   : > { %v4837_v8 = vadd.f32 %v3551_v6, %v4749_v10 }
 0x169   : > { %v3488_v7 = vpop.f32.mrb[56].mxu1 }
 0x16a   : > { %v3489_v43 = vpop.f32.mrb[57].mxu1  ;;  %v3552_v53 = vpop.f32.mrb[56].mxu0 }
 0x16b   : > { %v3490_v37 = vadd.f32 %v3489_v43, %v3488_v7  ;;  %v3491_v46 = vpop.f32.mrb[58].mxu1  ;;  %v3553_v41 = vpop.f32.mrb[57].mxu0 }
 0x16c   : > { %v3492_v59 = vpop.f32.mrb[59].mxu1  ;;  %v3554_v57 = vadd.f32 %v3553_v41, %v3552_v53  ;;  %v3555_v63 = vpop.f32.mrb[58].mxu0 }
 0x16d   : > { %v4839_v0 = vadd.f32 %v3490_v37, %v3378_v4  ;;  %v3493_v50 = vadd.f32 %v3492_v59, %v3491_v46  ;;  %v3556_v61 = vpop.f32.mrb[59].mxu0 }
 0x16e   : > { %v4842_v36 = vadd.f32 %v3554_v57, %v4757_v23  ;;  %v3557_v10 = vadd.f32 %v3556_v61, %v3555_v63 }
 0x16f   : > { %v4844_v56 = vadd.f32 %v3493_v50, %v3381_v27 }
 0x170   : > { %v4847_v12 = vadd.f32 %v3557_v10, %v4764_v60 }
 0x171   : > { %v3494_v35 = vpop.f32.mrb[60].mxu1 }
 0x172   : > { %v3495_v25 = vpop.f32.mrb[61].mxu1  ;;  %v3558_v55 = vpop.f32.mrb[60].mxu0 }
 0x173   : > { %v3496_v28 = vadd.f32 %v3495_v25, %v3494_v35  ;;  %v3497_v29 = vpop.f32.mrb[62].mxu1  ;;  %v3559_v4 = vpop.f32.mrb[61].mxu0 }
 0x174   : > { %v3498_v5 = vpop.f32.mrb[63].mxu1  ;;  %v3560_v54 = vadd.f32 %v3559_v4, %v3558_v55  ;;  %v3561_v62 = vpop.f32.mrb[62].mxu0 }
 0x175   : > { %v4849_v47 = vadd.f32 %v3496_v28, %v3384_v48  ;;  %v3499_v1 = vadd.f32 %v3498_v5, %v3497_v29  ;;  %v3562_v23 = vpop.f32.mrb[63].mxu0 }
 0x176   : > { %v4852_v27 = vadd.f32 %v3560_v54, %v4778_v22  ;;  %v3563_v60 = vadd.f32 %v3562_v23, %v3561_v62 }
 0x177   : > { %v4854_v30 = vadd.f32 %v3499_v1, %v3387_v39 }
 0x178   : > { %v4857_v33 = vadd.f32 %v3563_v60, %v4784_v14 }
 0x179   : > { %v3500_v13 = vpop.f32.mrb[64].mxu1 }
 0x17a   : > { %v3501_v31 = vpop.f32.mrb[65].mxu1  ;;  %v3564_v34 = vpop.f32.mrb[64].mxu0 }
 0x17b   : > { %v3502_v6 = vadd.f32 %v3501_v31, %v3500_v13  ;;  %v3503_v7 = vpop.f32.mrb[66].mxu1  ;;  %v3565_v48 = vpop.f32.mrb[65].mxu0 }
 0x17c   : > { %v3504_v43 = vpop.f32.mrb[67].mxu1  ;;  %v3566_v37 = vadd.f32 %v3565_v48, %v3564_v34  ;;  %v3567_v46 = vpop.f32.mrb[66].mxu0 }
 0x17d   : > { %v4860_v53 = vadd.f32 %v3502_v6, %v4659_v2  ;;  %v3505_v22 = vadd.f32 %v3504_v43, %v3503_v7  ;;  %v3568_v41 = vpop.f32.mrb[67].mxu0 }
 0x17e   : > { %v4863_v39 = vadd.f32 %v3566_v37, %v4796_v51  ;;  %v3569_v59 = vadd.f32 %v3568_v41, %v3567_v46 }
 0x17f   : > { %v4866_v14 = vadd.f32 %v3505_v22, %v4665_v11 }
 0x180   : > { %v4869_v57 = vadd.f32 %v3569_v59, %v4799_v58 }
 0x181   : > { %v3506_v63 = vpop.f32.mrb[68].mxu1 }
 0x182   : > { %v3507_v50 = vpop.f32.mrb[69].mxu1  ;;  %v3570_v61 = vpop.f32.mrb[68].mxu0 }
 0x183   : > { %v3508_v10 = vadd.f32 %v3507_v50, %v3506_v63  ;;  %v3509_v2 = vpop.f32.mrb[70].mxu1  ;;  %v3571_v35 = vpop.f32.mrb[69].mxu0 }
 0x184   : > { %v3510_v25 = vpop.f32.mrb[71].mxu1  ;;  %v3572_v28 = vadd.f32 %v3571_v35, %v3570_v61  ;;  %v3573_v51 = vpop.f32.mrb[70].mxu0 }
 0x185   : > { %v4872_v55 = vadd.f32 %v3508_v10, %v4687_v38  ;;  %v3511_v29 = vadd.f32 %v3510_v25, %v3509_v2  ;;  %v3574_v4 = vpop.f32.mrb[71].mxu0 }
 0x186   : > { %v4875_v11 = vadd.f32 %v3572_v28, %v4802_v45  ;;  %v3575_v5 = vadd.f32 %v3574_v4, %v3573_v51 }
 0x187   : > { %v4878_v58 = vadd.f32 %v3511_v29, %v4691_v52 }
 0x188   : > { %v4881_v54 = vadd.f32 %v3575_v5, %v4805_v44 }
 0x189   : > { %v3512_v62 = vpop.f32.mrb[72].mxu1 }
 0x18a   : > { %v3513_v1 = vpop.f32.mrb[73].mxu1  ;;  %v3576_v23 = vpop.f32.mrb[72].mxu0 }
 0x18b   : > { %v3514_v60 = vadd.f32 %v3513_v1, %v3512_v62  ;;  %v3515_v38 = vpop.f32.mrb[74].mxu1  ;;  %v3577_v13 = vpop.f32.mrb[73].mxu0 }
 0x18c   : > { %v3516_v31 = vpop.f32.mrb[75].mxu1  ;;  %v3578_v6 = vadd.f32 %v3577_v13, %v3576_v23  ;;  %v3579_v45 = vpop.f32.mrb[74].mxu0 }
 0x18d   : > { %v4884_v34 = vadd.f32 %v3514_v60, %v4702_v9  ;;  %v3517_v7 = vadd.f32 %v3516_v31, %v3515_v38  ;;  %v3580_v48 = vpop.f32.mrb[75].mxu0 }
 0x18e   : > { %v4887_v52 = vadd.f32 %v3578_v6, %v4808_v16  ;;  %v3581_v43 = vadd.f32 %v3580_v48, %v3579_v45 }
 0x18f   : > { %v4890_v44 = vadd.f32 %v3517_v7, %v4706_v24 }
 0x190   : > { %v4893_v37 = vadd.f32 %v3581_v43, %v4811_v26 }
 0x191   : > { %v3518_v46 = vpop.f32.mrb[76].mxu1 }
 0x192   : > { %v3519_v22 = vpop.f32.mrb[77].mxu1  ;;  %v3582_v41 = vpop.f32.mrb[76].mxu0 }
 0x193   : > { %v3520_v59 = vadd.f32 %v3519_v22, %v3518_v46  ;;  %v3521_v9 = vpop.f32.mrb[78].mxu1  ;;  %v3583_v63 = vpop.f32.mrb[77].mxu0 }
 0x194   : > { %v3522_v50 = vpop.f32.mrb[79].mxu1  ;;  %v3584_v10 = vadd.f32 %v3583_v63, %v3582_v41  ;;  %v3585_v16 = vpop.f32.mrb[78].mxu0 }
 0x195   : > { %v4896_v61 = vadd.f32 %v3520_v59, %v4717_v20  ;;  %v3523_v2 = vadd.f32 %v3522_v50, %v3521_v9  ;;  %v3586_v35 = vpop.f32.mrb[79].mxu0 }
 0x196   : > { %v4899_v24 = vadd.f32 %v3584_v10, %v4814_v19  ;;  %v3587_v25 = vadd.f32 %v3586_v35, %v3585_v16 }
 0x197   : > { %v4902_v26 = vadd.f32 %v3523_v2, %v4719_v21 }
 0x198   : > { %v4905_v28 = vadd.f32 %v3587_v25, %v4817_v17 }
 0x199   : > { %v3652_v51 = vpop.f32.mrb[80].mxu1 }
 0x19a   : > { %v3653_v29 = vpop.f32.mrb[81].mxu1  ;;  %v3588_v4 = vpop.f32.mrb[80].mxu0 }
 0x19b   : > { %v3654_v5 = vadd.f32 %v3653_v29, %v3652_v51  ;;  %v3655_v20 = vpop.f32.mrb[82].mxu1  ;;  %v3589_v62 = vpop.f32.mrb[81].mxu0 }
 0x19c   : > { %v3656_v1 = vpop.f32.mrb[83].mxu1  ;;  %v3590_v23 = vadd.f32 %v3589_v62, %v3588_v4  ;;  %v3591_v60 = vpop.f32.mrb[82].mxu0 }
 0x19d   : > { %v3657_v38 = vadd.f32 %v3656_v1, %v3655_v20  ;;  %v4908_v19 = vadd.f32 %v3654_v5, %v4822_v3  ;;  %v3592_v13 = vpop.f32.mrb[83].mxu0 }
 0x19e   : > { %v4911_v21 = vadd.f32 %v3590_v23, %v4819_v18  ;;  %v3593_v31 = vadd.f32 %v3592_v13, %v3591_v60 }
 0x19f   : > { %v4914_v17 = vadd.f32 %v3657_v38, %v4827_v40 }
 0x1a0   : > { %v4917_v6 = vadd.f32 %v3593_v31, %v4824_v49 }
 0x1a1   : > { %v3658_v45 = vpop.f32.mrb[84].mxu1 }
 0x1a2   : > { %v3659_v7 = vpop.f32.mrb[85].mxu1  ;;  %v3594_v48 = vpop.f32.mrb[84].mxu0 }
 0x1a3   : > { %v3660_v43 = vadd.f32 %v3659_v7, %v3658_v45  ;;  %v3661_v46 = vpop.f32.mrb[86].mxu1  ;;  %v3595_v22 = vpop.f32.mrb[85].mxu0 }
 0x1a4   : > { %v3662_v41 = vpop.f32.mrb[87].mxu1  ;;  %v3596_v3 = vadd.f32 %v3595_v22, %v3594_v48  ;;  %v3597_v59 = vpop.f32.mrb[86].mxu0 }
 0x1a5   : > { %v3663_v9 = vadd.f32 %v3662_v41, %v3661_v46  ;;  %v4920_v18 = vadd.f32 %v3660_v43, %v4832_v42  ;;  %v3598_v63 = vpop.f32.mrb[87].mxu0 }
 0x1a6   : > { %v4923_v40 = vadd.f32 %v3596_v3, %v4829_v15  ;;  %v3599_v50 = vadd.f32 %v3598_v63, %v3597_v59 }
 0x1a7   : > { %v4926_v49 = vadd.f32 %v3663_v9, %v4837_v8 }
 0x1a8   : > { %v4929_v10 = vadd.f32 %v3599_v50, %v4834_v32 }
 0x1a9   : > { %v3664_v16 = vpop.f32.mrb[88].mxu1 }
 0x1aa   : > { %v3665_v2 = vpop.f32.mrb[89].mxu1  ;;  %v3600_v35 = vpop.f32.mrb[88].mxu0 }
 0x1ab   : > { %v3666_v25 = vadd.f32 %v3665_v2, %v3664_v16  ;;  %v3667_v51 = vpop.f32.mrb[90].mxu1  ;;  %v3601_v29 = vpop.f32.mrb[89].mxu0 }
 0x1ac   : > { %v3668_v4 = vpop.f32.mrb[91].mxu1  ;;  %v3602_v42 = vadd.f32 %v3601_v29, %v3600_v35  ;;  %v3603_v5 = vpop.f32.mrb[90].mxu0 }
 0x1ad   : > { %v3669_v20 = vadd.f32 %v3668_v4, %v3667_v51  ;;  %v4932_v15 = vadd.f32 %v3666_v25, %v4842_v36  ;;  %v3604_v62 = vpop.f32.mrb[91].mxu0 }
 0x1ae   : > { %v4935_v8 = vadd.f32 %v3602_v42, %v4839_v0  ;;  %v3605_v1 = vadd.f32 %v3604_v62, %v3603_v5 }
 0x1af   : > { %v4938_v32 = vadd.f32 %v3669_v20, %v4847_v12 }
 0x1b0   : > { %v4941_v23 = vadd.f32 %v3605_v1, %v4844_v56 }
 0x1b1   : > { %v3670_v60 = vpop.f32.mrb[92].mxu1 }
 0x1b2   : > { %v3671_v38 = vpop.f32.mrb[93].mxu1  ;;  %v3606_v13 = vpop.f32.mrb[92].mxu0 }
 0x1b3   : > { %v3672_v31 = vadd.f32 %v3671_v38, %v3670_v60  ;;  %v3673_v45 = vpop.f32.mrb[94].mxu1  ;;  %v3607_v7 = vpop.f32.mrb[93].mxu0 }
 0x1b4   : > { %v3674_v48 = vpop.f32.mrb[95].mxu1  ;;  %v3608_v36 = vadd.f32 %v3607_v7, %v3606_v13  ;;  %v3609_v43 = vpop.f32.mrb[94].mxu0 }
 0x1b5   : > { %v3675_v46 = vadd.f32 %v3674_v48, %v3673_v45  ;;  %v4944_v0 = vadd.f32 %v3672_v31, %v4852_v27  ;;  %v3610_v22 = vpop.f32.mrb[95].mxu0 }
 0x1b6   : > { %v4947_v12 = vadd.f32 %v3608_v36, %v4849_v47  ;;  %v3611_v41 = vadd.f32 %v3610_v22, %v3609_v43 }
 0x1b7   : > { %v4950_v56 = vadd.f32 %v3675_v46, %v4857_v33 }
 0x1b8   : > { %v4953_v3 = vadd.f32 %v3611_v41, %v4854_v30 }
 0x1b9   : > { %v3676_v59 = vpop.f32.mrb[96].mxu1 }
 0x1ba   : > { %v3677_v9 = vpop.f32.mrb[97].mxu1  ;;  %v3612_v63 = vpop.f32.mrb[96].mxu0 }
 0x1bb   : > { %v3678_v50 = vadd.f32 %v3677_v9, %v3676_v59  ;;  %v3679_v16 = vpop.f32.mrb[98].mxu1  ;;  %v3613_v2 = vpop.f32.mrb[97].mxu0 }
 0x1bc   : > { %v3680_v35 = vpop.f32.mrb[99].mxu1  ;;  %v3614_v27 = vadd.f32 %v3613_v2, %v3612_v63  ;;  %v3615_v25 = vpop.f32.mrb[98].mxu0 }
 0x1bd   : > { %v3681_v51 = vadd.f32 %v3680_v35, %v3679_v16  ;;  %v4956_v47 = vadd.f32 %v3678_v50, %v4863_v39  ;;  %v3616_v29 = vpop.f32.mrb[99].mxu0 }
 0x1be   : > { %v4959_v33 = vadd.f32 %v3614_v27, %v4860_v53  ;;  %v3617_v4 = vadd.f32 %v3616_v29, %v3615_v25 }
 0x1bf   : > { %v4962_v30 = vadd.f32 %v3681_v51, %v4869_v57 }
 0x1c0   : > { %v4965_v42 = vadd.f32 %v3617_v4, %v4866_v14 }
 0x1c1   : > { %v3682_v5 = vpop.f32.mrb[100].mxu1 }
 0x1c2   : > { %v3683_v20 = vpop.f32.mrb[101].mxu1  ;;  %v3618_v62 = vpop.f32.mrb[100].mxu0 }
 0x1c3   : > { %v3684_v1 = vadd.f32 %v3683_v20, %v3682_v5  ;;  %v3685_v60 = vpop.f32.mrb[102].mxu1  ;;  %v3619_v38 = vpop.f32.mrb[101].mxu0 }
 0x1c4   : > { %v3686_v13 = vpop.f32.mrb[103].mxu1  ;;  %v3620_v39 = vadd.f32 %v3619_v38, %v3618_v62  ;;  %v3621_v31 = vpop.f32.mrb[102].mxu0 }
 0x1c5   : > { %v3687_v45 = vadd.f32 %v3686_v13, %v3685_v60  ;;  %v4968_v53 = vadd.f32 %v3684_v1, %v4875_v11  ;;  %v3622_v7 = vpop.f32.mrb[103].mxu0 }
 0x1c6   : > { %v4971_v57 = vadd.f32 %v3620_v39, %v4872_v55  ;;  %v3623_v48 = vadd.f32 %v3622_v7, %v3621_v31 }
 0x1c7   : > { %v4974_v14 = vadd.f32 %v3687_v45, %v4881_v54 }
 0x1c8   : > { %v4977_v36 = vadd.f32 %v3623_v48, %v4878_v58 }
 0x1c9   : > { %v3688_v43 = vpop.f32.mrb[104].mxu1 }
 0x1ca   : > { %v3689_v46 = vpop.f32.mrb[105].mxu1  ;;  %v3624_v22 = vpop.f32.mrb[104].mxu0 }
 0x1cb   : > { %v3690_v41 = vadd.f32 %v3689_v46, %v3688_v43  ;;  %v3691_v59 = vpop.f32.mrb[106].mxu1  ;;  %v3625_v9 = vpop.f32.mrb[105].mxu0 }
 0x1cc   : > { %v3692_v63 = vpop.f32.mrb[107].mxu1  ;;  %v3626_v11 = vadd.f32 %v3625_v9, %v3624_v22  ;;  %v3627_v50 = vpop.f32.mrb[106].mxu0 }
 0x1cd   : > { %v3693_v16 = vadd.f32 %v3692_v63, %v3691_v59  ;;  %v4980_v55 = vadd.f32 %v3690_v41, %v4887_v52  ;;  %v3628_v2 = vpop.f32.mrb[107].mxu0 }
 0x1ce   : > { %v4983_v54 = vadd.f32 %v3626_v11, %v4884_v34  ;;  %v3629_v35 = vadd.f32 %v3628_v2, %v3627_v50 }
 0x1cf   : > { %v4986_v58 = vadd.f32 %v3693_v16, %v4893_v37 }
 0x1d0   : > { %v4989_v27 = vadd.f32 %v3629_v35, %v4890_v44 }
 0x1d1   : > { %v3694_v25 = vpop.f32.mrb[108].mxu1 }
 0x1d2   : > { %v3695_v51 = vpop.f32.mrb[109].mxu1  ;;  %v3630_v29 = vpop.f32.mrb[108].mxu0 }
 0x1d3   : > { %v3696_v4 = vadd.f32 %v3695_v51, %v3694_v25  ;;  %v3697_v5 = vpop.f32.mrb[110].mxu1  ;;  %v3631_v20 = vpop.f32.mrb[109].mxu0 }
 0x1d4   : > { %v3698_v62 = vpop.f32.mrb[111].mxu1  ;;  %v3632_v52 = vadd.f32 %v3631_v20, %v3630_v29  ;;  %v3633_v1 = vpop.f32.mrb[110].mxu0 }
 0x1d5   : > { %v3699_v60 = vadd.f32 %v3698_v62, %v3697_v5  ;;  %v4992_v34 = vadd.f32 %v3696_v4, %v4899_v24  ;;  %v3634_v38 = vpop.f32.mrb[111].mxu0  ;;  %v5006_v24 = vld [vmem:[%s5173_s2] ss:$0 sm:$0xff] }
 0x1d6   : > { %v4995_v37 = vadd.f32 %v3632_v52, %v4896_v61  ;;  %v3635_v13 = vadd.f32 %v3634_v38, %v3633_v1 }
 0x1d7   : > { %v4998_v44 = vadd.f32 %v3699_v60, %v4905_v28  ;;  %v5012_v28 = vld [vmem:[%s5174_s3] ss:$0 sm:$0xff] }
 0x1d8   : > { %v5001_v39 = vadd.f32 %v3635_v13, %v4902_v26 }
 0x1d9   : > { %v3700_v31 = vpop.f32.mrb[112].mxu1 }
 0x1da   : > { %v3701_v45 = vpop.f32.mrb[113].mxu1  ;;  %v3790_v7 = vpop.f32.mrb[112].mxu0 }
 0x1db   : > { %v3702_v48 = vadd.f32 %v3701_v45, %v3700_v31  ;;  %v3703_v43 = vpop.f32.mrb[114].mxu1  ;;  %v2764_v61 = vadd.f32 %v3790_v7, %v4920_v18  ;;  %v2755_v46 = vpop.f32.mrb[113].mxu0 }
 0x1dc   : > { %v3704_v22 = vpop.f32.mrb[115].mxu1  ;;  %v2756_v26 = vadd.f32 %v2755_v46, %v4908_v19  ;;  %v3791_v41 = vpop.f32.mrb[114].mxu0 }
 0x1dd   : > { %v3705_v59 = vadd.f32 %v3704_v22, %v3703_v43  ;;  %v5016_v9 = vadd.f32 %v3702_v48, %v4911_v21  ;;  %v2955_v63 = vmul.f32 %v5006_v24, %v2764_v61  ;;  %v2767_v11 = vadd.f32 %v3791_v41, %v4926_v49  ;;  %v2758_v18 = vpop.f32.mrb[115].mxu0 }
 0x1de   : > { %v2953_v50 = vmul.f32 %v5006_v24, %v2756_v26  ;;  %v2759_v16 = vadd.f32 %v2758_v18, %v4914_v17 }
 0x1df   : > { %v5024_v2 = vadd.f32 %v3705_v59, %v4917_v6  ;;  %v2994_v19 = vadd.f32 %v5012_v28, %v2955_v63  ;;  %v2956_v35 = vmul.f32 %v5006_v24, %v2767_v11 }
 0x1e0   : > { %v2992_v21 = vadd.f32 %v5012_v28, %v2953_v50  ;;  %v2954_v49 = vmul.f32 %v5006_v24, %v2759_v16 }
 0x1e1   : > { %v3706_v25 = vpop.f32.mrb[116].mxu1  ;;  %v3026_v17 = vmax.f32 %v2994_v19, 0.0  ;;  %v2995_v6 = vadd.f32 %v5012_v28, %v2956_v35 }
 0x1e2   : > { %v3707_v51 = vpop.f32.mrb[117].mxu1  ;;  %v3024_v29 = vmax.f32 %v2992_v21, 0.0  ;;  %v2993_v4 = vadd.f32 %v5012_v28, %v2954_v49  ;;  %v3794_v5 = vpop.f32.mrb[116].mxu0 }
 0x1e3   : > { %v3708_v20 = vadd.f32 %v3707_v51, %v3706_v25  ;;  %v3709_v62 = vpop.f32.mrb[118].mxu1  ;;  %3058 = vst [vmem:[%s5031_s16 + $0x10] sm:$0xff] %v3026_v17  ;;  %v3027_v52 = vmax.f32 %v2995_v6, 0.0  ;;  %v2780_v1 = vadd.f32 %v3794_v5, %v4944_v0  ;;  %v2771_v60 = vpop.f32.mrb[117].mxu0 }
 0x1e4   : > { %v3710_v38 = vpop.f32.mrb[119].mxu1  ;;  %3056 = vst [vmem:[%s5031_s16] sm:$0xff] %v3024_v29  ;;  %v3025_v13 = vmax.f32 %v2993_v4, 0.0  ;;  %v2772_v31 = vadd.f32 %v2771_v60, %v4932_v15  ;;  %v3795_v45 = vpop.f32.mrb[118].mxu0 }
 0x1e5   : > { %v3711_v7 = vadd.f32 %v3710_v38, %v3709_v62  ;;  %v5042_v48 = vadd.f32 %v3708_v20, %v4923_v40  ;;  %3059 = vst [vmem:[%s5031_s16 + $0x18] sm:$0xff] %v3027_v52  ;;  %v2959_v43 = vmul.f32 %v5006_v24, %v2780_v1  ;;  %v2783_v61 = vadd.f32 %v3795_v45, %v4950_v56  ;;  %v2774_v46 = vpop.f32.mrb[119].mxu0 }
 0x1e6   : > { %3057 = vst [vmem:[%s5031_s16 + $0x8] sm:$0xff] %v3025_v13  ;;  %v2957_v0 = vmul.f32 %v5006_v24, %v2772_v31  ;;  %v2775_v22 = vadd.f32 %v2774_v46, %v4938_v32 }
 0x1e7   : > { %v5051_v26 = vadd.f32 %v3711_v7, %v4929_v10  ;;  %v2998_v15 = vadd.f32 %v5012_v28, %v2959_v43  ;;  %v2960_v40 = vmul.f32 %v5006_v24, %v2783_v61 }
 0x1e8   : > { %v2996_v41 = vadd.f32 %v5012_v28, %v2957_v0  ;;  %v2958_v59 = vmul.f32 %v5006_v24, %v2775_v22 }
 0x1e9   : > { %v3712_v56 = vpop.f32.mrb[120].mxu1  ;;  %v3030_v63 = vmax.f32 %v2998_v15, 0.0  ;;  %v2999_v11 = vadd.f32 %v5012_v28, %v2960_v40 }
 0x1ea   : > { %v3713_v18 = vpop.f32.mrb[121].mxu1  ;;  %v3028_v50 = vmax.f32 %v2996_v41, 0.0  ;;  %v2997_v32 = vadd.f32 %v5012_v28, %v2958_v59  ;;  %v3798_v10 = vpop.f32.mrb[120].mxu0 }
 0x1eb   : > { %v3714_v16 = vadd.f32 %v3713_v18, %v3712_v56  ;;  %v3715_v19 = vpop.f32.mrb[122].mxu1  ;;  %3062 = vst [vmem:[%s5031_s16 + $0x30] sm:$0xff] %v3030_v63  ;;  %v3031_v35 = vmax.f32 %v2999_v11, 0.0  ;;  %v2796_v21 = vadd.f32 %v3798_v10, %v4968_v53  ;;  %v2787_v49 = vpop.f32.mrb[121].mxu0 }
 0x1ec   : > { %v3716_v25 = vpop.f32.mrb[123].mxu1  ;;  %3060 = vst [vmem:[%s5031_s16 + $0x20] sm:$0xff] %v3028_v50  ;;  %v3029_v17 = vmax.f32 %v2997_v32, 0.0  ;;  %v2788_v6 = vadd.f32 %v2787_v49, %v4956_v47  ;;  %v3799_v51 = vpop.f32.mrb[122].mxu0 }
 0x1ed   : > { %v3717_v29 = vadd.f32 %v3716_v25, %v3715_v19  ;;  %v5064_v4 = vadd.f32 %v3714_v16, %v4935_v8  ;;  %3063 = vst [vmem:[%s5031_s16 + $0x38] sm:$0xff] %v3031_v35  ;;  %v2963_v5 = vmul.f32 %v5006_v24, %v2796_v21  ;;  %v2799_v20 = vadd.f32 %v3799_v51, %v4974_v14  ;;  %v2790_v62 = vpop.f32.mrb[123].mxu0 }
 0x1ee   : > { %3061 = vst [vmem:[%s5031_s16 + $0x28] sm:$0xff] %v3029_v17  ;;  %v2961_v53 = vmul.f32 %v5006_v24, %v2788_v6  ;;  %v2791_v52 = vadd.f32 %v2790_v62, %v4962_v30 }
 0x1ef   : > { %v5073_v1 = vadd.f32 %v3717_v29, %v4941_v23  ;;  %v3002_v47 = vadd.f32 %v5012_v28, %v2963_v5  ;;  %v2964_v8 = vmul.f32 %v5006_v24, %v2799_v20 }
 0x1f0   : > { %v3000_v60 = vadd.f32 %v5012_v28, %v2961_v53  ;;  %v2962_v38 = vmul.f32 %v5006_v24, %v2791_v52 }
 0x1f1   : > { %v3718_v14 = vpop.f32.mrb[124].mxu1  ;;  %v3034_v13 = vmax.f32 %v3002_v47, 0.0  ;;  %v3003_v31 = vadd.f32 %v5012_v28, %v2964_v8 }
 0x1f2   : > { %v3719_v45 = vpop.f32.mrb[125].mxu1  ;;  %v3032_v7 = vmax.f32 %v3000_v60, 0.0  ;;  %v3001_v30 = vadd.f32 %v5012_v28, %v2962_v38  ;;  %v3802_v23 = vpop.f32.mrb[124].mxu0 }
 0x1f3   : > { %v3720_v43 = vadd.f32 %v3719_v45, %v3718_v14  ;;  %v3721_v61 = vpop.f32.mrb[126].mxu1  ;;  %3066 = vst [vmem:[%s5031_s16 + $0x50] sm:$0xff] %v3034_v13  ;;  %v3035_v46 = vmax.f32 %v3003_v31, 0.0  ;;  %v2812_v0 = vadd.f32 %v3802_v23, %v4992_v34  ;;  %v2803_v22 = vpop.f32.mrb[125].mxu0 }
 0x1f4   : > { %v3722_v15 = vpop.f32.mrb[127].mxu1  ;;  %3064 = vst [vmem:[%s5031_s16 + $0x40] sm:$0xff] %v3032_v7  ;;  %v3033_v40 = vmax.f32 %v3001_v30, 0.0  ;;  %v2804_v41 = vadd.f32 %v2803_v22, %v4980_v55  ;;  %v3803_v59 = vpop.f32.mrb[126].mxu0 }
 0x1f5   : > { %v3723_v56 = vadd.f32 %v3722_v15, %v3721_v61  ;;  %v2683_v63 = vadd.f32 %v3720_v43, %v4947_v12  ;;  %3067 = vst [vmem:[%s5031_s16 + $0x58] sm:$0xff] %v3035_v46  ;;  %v2967_v11 = vmul.f32 %v5006_v24, %v2812_v0  ;;  %v2815_v18 = vadd.f32 %v3803_v59, %v4998_v44  ;;  %v2806_v50 = vpop.f32.mrb[127].mxu0 }
 0x1f6   : > { %3065 = vst [vmem:[%s5031_s16 + $0x48] sm:$0xff] %v3033_v40  ;;  %v2965_v32 = vmul.f32 %v5006_v24, %v2804_v41  ;;  %v2807_v34 = vadd.f32 %v2806_v50, %v4986_v58 }
 0x1f7   : > { %v2686_v10 = vadd.f32 %v3723_v56, %v4953_v3  ;;  %v3006_v55 = vadd.f32 %v5012_v28, %v2967_v11  ;;  %v2968_v16 = vmul.f32 %v5006_v24, %v2815_v18 }
 0x1f8   : > { %v3004_v12 = vadd.f32 %v5012_v28, %v2965_v32  ;;  %v2966_v19 = vmul.f32 %v5006_v24, %v2807_v34 }
 0x1f9   : > { %v3724_v35 = vpop.f32.mrb[128].mxu1  ;;  %v3038_v44 = vmax.f32 %v3006_v55, 0.0  ;;  %v3007_v21 = vadd.f32 %v5012_v28, %v2968_v16 }
 0x1fa   : > { %v3725_v49 = vpop.f32.mrb[129].mxu1  ;;  %v3036_v25 = vmax.f32 %v3004_v12, 0.0  ;;  %v3005_v58 = vadd.f32 %v5012_v28, %v2966_v19  ;;  %v3806_v17 = vpop.f32.mrb[128].mxu0 }
 0x1fb   : > { %v3726_v3 = vadd.f32 %v3725_v49, %v3724_v35  ;;  %v3727_v6 = vpop.f32.mrb[130].mxu1  ;;  %3070 = vst [vmem:[%s5031_s16 + $0x70] sm:$0xff] %v3038_v44  ;;  %v3039_v51 = vmax.f32 %v3007_v21, 0.0  ;;  %v2828_v29 = vadd.f32 %v3806_v17, %v5042_v48  ;;  %v2819_v5 = vpop.f32.mrb[129].mxu0 }
 0x1fc   : > { %v3728_v20 = vpop.f32.mrb[131].mxu1  ;;  %3068 = vst [vmem:[%s5031_s16 + $0x60] sm:$0xff] %v3036_v25  ;;  %v3037_v62 = vmax.f32 %v3005_v58, 0.0  ;;  %v2820_v53 = vadd.f32 %v2819_v5, %v5016_v9  ;;  %v3807_v52 = vpop.f32.mrb[130].mxu0 }
 0x1fd   : > { %v3729_v47 = vadd.f32 %v3728_v20, %v3727_v6  ;;  %v2691_v8 = vadd.f32 %v3726_v3, %v4959_v33  ;;  %3071 = vst [vmem:[%s5031_s16 + $0x78] sm:$0xff] %v3039_v51  ;;  %v2971_v60 = vmul.f32 %v5006_v24, %v2828_v29  ;;  %v2831_v38 = vadd.f32 %v3807_v52, %v5051_v26  ;;  %v2822_v14 = vpop.f32.mrb[131].mxu0 }
 0x1fe   : > { %3069 = vst [vmem:[%s5031_s16 + $0x68] sm:$0xff] %v3037_v62  ;;  %v2969_v13 = vmul.f32 %v5006_v24, %v2820_v53  ;;  %v2823_v48 = vadd.f32 %v2822_v14, %v5024_v2 }
 0x1ff   : > { %v5111_v31 = vadd.f32 %v3729_v47, %v4965_v42  ;;  %v3010_v9 = vadd.f32 %v5012_v28, %v2971_v60  ;;  %v2972_v45 = vmul.f32 %v5006_v24, %v2831_v38 }
 0x200   : > { %v3008_v33 = vadd.f32 %v5012_v28, %v2969_v13  ;;  %v2970_v7 = vmul.f32 %v5006_v24, %v2823_v48 }
 0x201   : > { %v3730_v26 = vpop.f32.mrb[132].mxu1  ;;  %v3042_v30 = vmax.f32 %v3010_v9, 0.0  ;;  %v3011_v23 = vadd.f32 %v5012_v28, %v2972_v45 }
 0x202   : > { %v3731_v43 = vpop.f32.mrb[133].mxu1  ;;  %v3040_v61 = vmax.f32 %v3008_v33, 0.0  ;;  %v3009_v2 = vadd.f32 %v5012_v28, %v2970_v7  ;;  %v3810_v42 = vpop.f32.mrb[132].mxu0 }
 0x203   : > { %v3732_v46 = vadd.f32 %v3731_v43, %v3730_v26  ;;  %v3733_v0 = vpop.f32.mrb[134].mxu1  ;;  %3074 = vst [vmem:[%s5031_s16 + $0x90] sm:$0xff] %v3042_v30  ;;  %v3043_v22 = vmax.f32 %v3011_v23, 0.0  ;;  %v2844_v15 = vadd.f32 %v3810_v42, %v2683_v63  ;;  %v2835_v40 = vpop.f32.mrb[133].mxu0 }
 0x204   : > { %v3734_v41 = vpop.f32.mrb[135].mxu1  ;;  %3072 = vst [vmem:[%s5031_s16 + $0x80] sm:$0xff] %v3040_v61  ;;  %v3041_v59 = vmax.f32 %v3009_v2, 0.0  ;;  %v2836_v56 = vadd.f32 %v2835_v40, %v5064_v4  ;;  %v3811_v11 = vpop.f32.mrb[134].mxu0 }
 0x205   : > { %v3735_v18 = vadd.f32 %v3734_v41, %v3733_v0  ;;  %v2699_v50 = vadd.f32 %v3732_v46, %v4971_v57  ;;  %3075 = vst [vmem:[%s5031_s16 + $0x98] sm:$0xff] %v3043_v22  ;;  %v2975_v32 = vmul.f32 %v5006_v24, %v2844_v15  ;;  %v2847_v34 = vadd.f32 %v3811_v11, %v2686_v10  ;;  %v2838_v55 = vpop.f32.mrb[135].mxu0 }
 0x206   : > { %3073 = vst [vmem:[%s5031_s16 + $0x88] sm:$0xff] %v3041_v59  ;;  %v2973_v16 = vmul.f32 %v5006_v24, %v2836_v56  ;;  %v2839_v63 = vadd.f32 %v2838_v55, %v5073_v1 }
 0x207   : > { %v2702_v12 = vadd.f32 %v3735_v18, %v4977_v36  ;;  %v3014_v19 = vadd.f32 %v5012_v28, %v2975_v32  ;;  %v2976_v4 = vmul.f32 %v5006_v24, %v2847_v34 }
 0x208   : > { %v3012_v35 = vadd.f32 %v5012_v28, %v2973_v16  ;;  %v2974_v57 = vmul.f32 %v5006_v24, %v2839_v63 }
 0x209   : > { %v3736_v44 = vpop.f32.mrb[136].mxu1  ;;  %v3046_v10 = vmax.f32 %v3014_v19, 0.0  ;;  %v3015_v21 = vadd.f32 %v5012_v28, %v2976_v4 }
 0x20a   : > { %v3737_v49 = vpop.f32.mrb[137].mxu1  ;;  %v3044_v25 = vmax.f32 %v3012_v35, 0.0  ;;  %v3013_v1 = vadd.f32 %v5012_v28, %v2974_v57  ;;  %v3814_v58 = vpop.f32.mrb[136].mxu0 }
 0x20b   : > { %v3738_v36 = vadd.f32 %v3737_v49, %v3736_v44  ;;  %v3739_v17 = vpop.f32.mrb[138].mxu1  ;;  %3078 = vst [vmem:[%s5031_s16 + $0xb0] sm:$0xff] %v3046_v10  ;;  %v3047_v3 = vmax.f32 %v3015_v21, 0.0  ;;  %v2860_v6 = vadd.f32 %v3814_v58, %v2699_v50  ;;  %v2851_v51 = vpop.f32.mrb[137].mxu0 }
 0x20c   : > { %v3740_v29 = vpop.f32.mrb[139].mxu1  ;;  %3076 = vst [vmem:[%s5031_s16 + $0xa0] sm:$0xff] %v3044_v25  ;;  %v3045_v5 = vmax.f32 %v3013_v1, 0.0  ;;  %v2852_v20 = vadd.f32 %v2851_v51, %v2691_v8  ;;  %v3815_v62 = vpop.f32.mrb[138].mxu0 }
 0x20d   : > { %v3741_v53 = vadd.f32 %v3740_v29, %v3739_v17  ;;  %v2707_v52 = vadd.f32 %v3738_v36, %v4983_v54  ;;  %3079 = vst [vmem:[%s5031_s16 + $0xb8] sm:$0xff] %v3047_v3  ;;  %v2979_v47 = vmul.f32 %v5006_v24, %v2860_v6  ;;  %v2863_v60 = vadd.f32 %v3815_v62, %v2702_v12  ;;  %v2854_v38 = vpop.f32.mrb[139].mxu0 }
 0x20e   : > { %3077 = vst [vmem:[%s5031_s16 + $0xa8] sm:$0xff] %v3045_v5  ;;  %v2977_v14 = vmul.f32 %v5006_v24, %v2852_v20  ;;  %v2855_v13 = vadd.f32 %v2854_v38, %v5111_v31 }
 0x20f   : > { %v2710_v48 = vadd.f32 %v3741_v53, %v4989_v27  ;;  %v3018_v9 = vadd.f32 %v5012_v28, %v2979_v47  ;;  %v2980_v8 = vmul.f32 %v5006_v24, %v2863_v60 }
 0x210   : > { %v3016_v54 = vadd.f32 %v5012_v28, %v2977_v14  ;;  %v2978_v45 = vmul.f32 %v5006_v24, %v2855_v13 }
 0x211   : > { %v3742_v33 = vpop.f32.mrb[140].mxu1  ;;  %v3050_v7 = vmax.f32 %v3018_v9, 0.0  ;;  %v3019_v26 = vadd.f32 %v5012_v28, %v2980_v8 }
 0x212   : > { %v3743_v30 = vpop.f32.mrb[141].mxu1  ;;  %v3048_v23 = vmax.f32 %v3016_v54, 0.0  ;;  %v3017_v31 = vadd.f32 %v5012_v28, %v2978_v45  ;;  %v3818_v27 = vpop.f32.mrb[140].mxu0 }
 0x213   : > { %v3744_v43 = vadd.f32 %v3743_v30, %v3742_v33  ;;  %v3745_v61 = vpop.f32.mrb[142].mxu1  ;;  %3082 = vst [vmem:[%s5031_s16 + $0xd0] sm:$0xff] %v3050_v7  ;;  %v3051_v2 = vmax.f32 %v3019_v26, 0.0  ;;  %v2867_v42 = vpop.f32.mrb[141].mxu0 }
 0x214   : > { %v3746_v46 = vpop.f32.mrb[143].mxu1  ;;  %3080 = vst [vmem:[%s5031_s16 + $0xc0] sm:$0xff] %v3048_v23  ;;  %v3049_v0 = vmax.f32 %v3017_v31, 0.0  ;;  %v2868_v15 = vadd.f32 %v2867_v42, %v2707_v52  ;;  %v3819_v40 = vpop.f32.mrb[142].mxu0 }
 0x215   : > { %v2715_v22 = vadd.f32 %v3744_v43, %v4995_v37  ;;  %v3747_v41 = vadd.f32 %v3746_v46, %v3745_v61  ;;  %3083 = vst [vmem:[%s5031_s16 + $0xd8] sm:$0xff] %v3051_v2  ;;  %v2870_v59 = vpop.f32.mrb[143].mxu0 }
 0x216   : > { %3081 = vst [vmem:[%s5031_s16 + $0xc8] sm:$0xff] %v3049_v0  ;;  %v2981_v11 = vmul.f32 %v5006_v24, %v2868_v15  ;;  %v2871_v50 = vadd.f32 %v2870_v59, %v2710_v48 }
 0x217   : > { %v2876_v56 = vadd.f32 %v3818_v27, %v2715_v22  ;;  %v2718_v18 = vadd.f32 %v3747_v41, %v5001_v39 }
 0x218   : > { %v3020_v37 = vadd.f32 %v5012_v28, %v2981_v11  ;;  %v2982_v55 = vmul.f32 %v5006_v24, %v2871_v50 }
 0x219   : > { %v2983_v32 = vmul.f32 %v5006_v24, %v2876_v56  ;;  %v2879_v34 = vadd.f32 %v3819_v40, %v2718_v18 }
 0x21a   : > { %v3052_v63 = vmax.f32 %v3020_v37, 0.0  ;;  %v3021_v19 = vadd.f32 %v5012_v28, %v2982_v55 }
 0x21b   : > { %v3022_v16 = vadd.f32 %v5012_v28, %v2983_v32  ;;  %v2984_v12 = vmul.f32 %v5006_v24, %v2879_v34 }
 0x21c   : > { %3084 = vst [vmem:[%s5031_s16 + $0xe0] sm:$0xff] %v3052_v63  ;;  %v3053_v35 = vmax.f32 %v3021_v19, 0.0 }
 0x21d   : > { %v3054_v4 = vmax.f32 %v3022_v16, 0.0  ;;  %v3023_v39 = vadd.f32 %v5012_v28, %v2984_v12 }
 0x21e   : > { %3085 = vst [vmem:[%s5031_s16 + $0xe8] sm:$0xff] %v3053_v35 }
 0x21f   : > { %3086 = vst [vmem:[%s5031_s16 + $0xf0] sm:$0xff] %v3054_v4  ;;  %v3055_v57 = vmax.f32 %v3023_v39, 0.0 }
 0x221   : > { %3087 = vst [vmem:[%s5031_s16 + $0xf8] sm:$0xff] %v3055_v57 }
 0x222 PF: > { %s14_s15 = sadd.s32 1, %s3948_s15  }
 0x223   : > { %p11_p4 = scmp.ge.s32.totalorder %s14_s15, 4  }
 0x225   :  { %13 = sbr.rel (!%p11_p4) target bundleno = 1 (0x1), region = 66 }

// kernel: decoder_forward.6
= control target key start
LH: loop header
LB: loop body
LE: loop exit
PB: predicated region body
PF: predicated region fallthrough
CT: control target
= control target key end

     0   :  { %s8004_s21 = smov 0   ;;  %s10362_s0 = inlined_call_operand.vmem [shape: bf16[2,18,18,128], index: 0, kind: input, shape index: {}]   ;;  %s10363_s1 = inlined_call_operand.vmem [shape: bf16[2,18,18,128], index: 1, kind: input, shape index: {}]   ;;  %s10364_s2 = inlined_call_operand.vmem [shape: bf16[1152,128], index: 2, kind: input, shape index: {}]   ;;  %s10365_s3 = inlined_call_operand.vmem [shape: bf16[1152,128], index: 3, kind: input, shape index: {}]   ;;  %s10366_s4 = inlined_call_operand.vmem [shape: f32[1,128], index: 4, kind: input, shape index: {}]   ;;  %s10367_s5 = inlined_call_operand.vmem [shape: f32[1,128], index: 5, kind: input, shape index: {}]   ;;  %s10368_s6 = inlined_call_operand.vmem [shape: bf16[2,16,16,128], index: 6, kind: output, shape index: {}]  }
   0x1 LB: > { %s6130_s22 = sadd.s32 4294967295, %s7967_s21   ;;  %p6134_p0 = scmp.ge.s32.totalorder %s7967_s21, 1  ;;  %s7967_s21 = sphi %s8004_s21, %s16_s21  }
   0x2   : > { %p222_p1 = scmp.lt.s32.totalorder %s7967_s21, 3 }
   0x4   : > { %p223_p2 = pnand %p6134_p0, %p222_p1 }
   0x6   : > { %226 = sbr.rel (%p223_p2) target bundleno = 856 (0x358), region = 44 }
   0xd   : > { %v7752_v0 = vld [vmem:[%s10364_s2 + $0x40] sm:$0xff]   ;;  %p257_p3 = scmp.lt.s32.totalorder %s6130_s22, 1  ;;  %v7754_v2 = vld [vmem:[%s10364_s2 + $0x48] sm:$0xff]   ;;  %v7756_v4 = vld [vmem:[%s10364_s2 + $0x50] sm:$0xff]   ;;  %vm519_vm0 = vsmask.f32 3328 }
   0xe   : > { %v7753_v1 = vld [vmem:[%s10364_s2] sm:$0xff]   ;;  %6591 = vmatprep.subr.bf16.mxu0 %v7752_v0  ;;  %7631 = vmatprep.subr.bf16.mxu1 %v7752_v0  ;;  %v7755_v3 = vld [vmem:[%s10364_s2 + $0x8] sm:$0xff]   ;;  %v7757_v5 = vld [vmem:[%s10364_s2 + $0x10] sm:$0xff]   ;;  %vm520_vm1 = vsmask.f32 7440  ;;  %vm1176_vm3 = vcmask 1042432  }
   0xf   : > { %6592 = vmatpush3.bf16.msra.mxu0 %v7753_v1  ;;  %7639 = vmatpush3.bf16.msra.mxu1 %v7753_v1  ;;  %s10558_s22 = smov (!%p257_p3, %s6130_s22), 1  ;;  %v7758_v6 = vld [vmem:[%s10364_s2 + $0x58] sm:$0xff]   ;;  %v7760_v8 = vld [vmem:[%s10364_s2 + $0x60] sm:$0xff]   ;;  %v7762_v10 = vld [vmem:[%s10364_s2 + $0x68] sm:$0xff]   ;;  %vm1177_vm4 = vcmask 1046532  }
  0x10   : > { %6593 = vmatprep.subr.bf16.mxu0 %v7754_v2  ;;  %7632 = vmatprep.subr.bf16.mxu1 %v7754_v2  ;;  %s7743_s13 = smul.u32 216, %s10558_s22  ;;  %v7759_v7 = vld [vmem:[%s10364_s2 + $0x18] sm:$0xff]   ;;  %v7761_v9 = vld [vmem:[%s10364_s2 + $0x20] sm:$0xff]   ;;  %v7763_v14 = vld [vmem:[%s10364_s2 + $0x28] sm:$0xff]   ;;  %s6463_s14 = sshll.u32 %s10558_s22, 7 }
  0x11   : > { %v7764_v17 = vld [vmem:[%s10364_s2 + $0x70] sm:$0xff]   ;;  %vm8072_vm2 = vmor %vm519_vm0, %vm520_vm1  ;;  %v7766_v43 = vld [vmem:[%s10364_s2 + $0x78] sm:$0xff]   ;;  %s10220_s22 = scalar_lea.vmem %s10368_s6, %s6463_s14 }
  0x12   : > { %s8047_s20 = scalar_lea.vmem %s10362_s0, %s7743_s13  ;;  %v7765_v30 = vld [vmem:[%s10364_s2 + $0x30] sm:$0xff]   ;;  %v7767_v46 = vld [vmem:[%s10364_s2 + $0x38] sm:$0xff]   ;;  %v7770_v59 = vld [vmem:[%s10364_s2 + $0xc0] sm:$0xff]   ;;  %s8607_s11 = scalar_lea.vmem %s10363_s1, %s7743_s13 }
  0x13   : > { %6594 = vmatpush3.bf16.msra.mxu0 %v7755_v3  ;;  %7640 = vmatpush3.bf16.msra.mxu1 %v7755_v3  ;;  %v465_v11 = vld [vmem:[%s8047_s20] sm:$0xf]  ;;  %v466_v12 = vld [vmem:[%s8047_s20 + $0x4] sm:$0xf]  ;;  %v467_v13 = vld [vmem:[%s8047_s20 + $0x8] sm:$0x1] }
  0x14   : > { %6595 = vmatprep.subr.bf16.mxu0 %v7756_v4  ;;  %7633 = vmatprep.subr.bf16.mxu1 %v7756_v4  ;;  %v523_v15 = vshrl.u32 %v465_v11, 16  ;;  %v526_v16 = vshll.u32 %v465_v11, 16  ;;  %v532_v18 = vshll.u32 %v466_v12, 16  ;;  %v536_v19 = vshrl.u32 %v466_v12, 16  ;;  %v489_v21 = vld [vmem:[%s8047_s20 + $0x60] sm:$0xf]  ;;  %vm8334_vm5 = vmor %vm1176_vm3, %vm1177_vm4 }
  0x15   : > { %v542_v20 = vshll.u32 %v467_v13, 16  ;;  %v490_v24 = vld [vmem:[%s8047_s20 + $0x64] sm:$0xf]  ;;  %v491_v25 = vld [vmem:[%s8047_s20 + $0x68] sm:$0x1]  ;;  %v715_v29 = vshrl.u32 %v489_v21, 16 }
  0x16   : > { %v525_v22 = vrot.slane %v523_v15, 4  ;;  %v528_v23 = vrot.slane %v526_v16, 5  ;;  %v534_v26 = vrot.slane %v532_v18, 5  ;;  %v538_v27 = vrot.slane %v536_v19, 4  ;;  %v468_v50 = vld [vmem:[%s8047_s20 + $0xc] sm:$0xf] }
  0x17   : > { %6596 = vmatpush3.bf16.msra.mxu0 %v7757_v5  ;;  %7641 = vmatpush3.bf16.msra.mxu1 %v7757_v5  ;;  %v544_v28 = vrot.slane %v542_v20, 5  ;;  %v718_v32 = vshll.u32 %v489_v21, 16  ;;  %v724_v33 = vshll.u32 %v490_v24, 16  ;;  %v728_v34 = vshrl.u32 %v490_v24, 16  ;;  %v469_v52 = vld [vmem:[%s8047_s20 + $0x10] sm:$0xf] }
  0x18   : > { %6597 = vmatprep.subr.bf16.mxu0 %v7758_v6  ;;  %7634 = vmatprep.subr.bf16.mxu1 %v7758_v6  ;;  %v529_v31 = vor.u32 %v528_v23, %v525_v22  ;;  %v539_v36 = vor.u32 %v538_v27, %v534_v26  ;;  %v717_v37 = vrot.slane %v715_v29, 4  ;;  %v734_v38 = vshll.u32 %v491_v25, 16  ;;  %v470_v53 = vld [vmem:[%s8047_s20 + $0x14] sm:$0x1]  ;;  %v492_v61 = vld [vmem:[%s8047_s20 + $0x6c] sm:$0xf] }
  0x19   : > { %v720_v40 = vrot.slane %v718_v32, 5  ;;  %v726_v41 = vrot.slane %v724_v33, 5  ;;  %v730_v42 = vrot.slane %v728_v34, 4  ;;  %v547_v54 = vshrl.u32 %v468_v50, 16  ;;  %v7768_v62 = vld [vmem:[%s8047_s20] sm:$0xff]   ;;  %v7774_v22 = vld [vmem:[%s10364_s2 + $0xc8] sm:$0xff]  }
  0x1a   : > { %v530_v39 = vrot.slane %v529_v31, 4  ;;  %v540_v44 = vrot.slane %v539_v36, 4  ;;  %v736_v45 = vrot.slane %v734_v38, 5  ;;  %v550_v55 = vshll.u32 %v468_v50, 16  ;;  %v7769_v63 = vld [vmem:[%s8047_s20 + $0x60] sm:$0xff]   ;;  %v7776_v32 = vld [vmem:[%s10364_s2 + $0x88] sm:$0xff]  }
  0x1b   : > { %6598 = vmatpush3.bf16.msra.mxu0 %v7759_v7  ;;  %7642 = vmatpush3.bf16.msra.mxu1 %v7759_v7  ;;  %v721_v48 = vor.u32 %v720_v40, %v717_v37  ;;  %v731_v49 = vor.u32 %v730_v42, %v726_v41  ;;  %v556_v60 = vshll.u32 %v469_v52, 16  ;;  %v549_v0 = vrot.slane %v547_v54, 4  ;;  %v493_v4 = vld [vmem:[%s8047_s20 + $0x70] sm:$0xf]  ;;  %v7771_v11 = vld [vmem:[%s10364_s2 + $0x80] sm:$0xff]  }
  0x1c   : > { %6599 = vmatprep.subr.bf16.mxu0 %v7760_v8  ;;  %7635 = vmatprep.subr.bf16.mxu1 %v7760_v8  ;;  %v535_v47 = vsel %vm8072_vm2, %v530_v39, %v534_v26  ;;  %v545_v51 = vsel %vm8072_vm2, %v540_v44, %v544_v28  ;;  %v552_v1 = vrot.slane %v550_v55, 5  ;;  %v560_v2 = vshrl.u32 %v469_v52, 16  ;;  %v494_v8 = vld [vmem:[%s8047_s20 + $0x74] sm:$0x1]  ;;  %v7775_v26 = vld [vmem:[%s10364_s2 + $0x140] sm:$0xff]   ;;  %v8121_v34 = vld [vmem:[%s8047_s20 + $0xc] sm:$0xff]  }
  0x1d   : > { %v6157_v56 = vcombine.low %v535_v47, %v545_v51  ;;  %v722_v57 = vrot.slane %v721_v48, 4  ;;  %v732_v58 = vrot.slane %v731_v49, 4  ;;  %v566_v3 = vshll.u32 %v470_v53, 16  ;;  %v7777_v36 = vld [vmem:[%s10364_s2 + $0x100] sm:$0xff]   ;;  %v471_v40 = vld [vmem:[%s8047_s20 + $0x18] sm:$0xf] }
  0x1e   : > { %v558_v7 = vrot.slane %v556_v60, 5  ;;  %v553_v12 = vor.u32 %v552_v1, %v549_v0  ;;  %v562_v13 = vrot.slane %v560_v2, 4  ;;  %v742_v15 = vshll.u32 %v492_v61, 16  ;;  %v473_v42 = vld [vmem:[%s8047_s20 + $0x20] sm:$0x1]  ;;  %v7773_v49 = vld [vmem:[%s8047_s20 + $0x6c] sm:$0xff]  }
  0x1f   : > { %6600 = vmatpush3.bf16.msra.mxu0 %v7761_v9  ;;  %7643 = vmatpush3.bf16.msra.mxu1 %v7761_v9  ;;  %v727_v5 = vsel %vm8072_vm2, %v722_v57, %v726_v41  ;;  %v737_v6 = vsel %vm8072_vm2, %v732_v58, %v736_v45  ;;  %v739_v9 = vshrl.u32 %v492_v61, 16  ;;  %v748_v16 = vshll.u32 %v493_v4, 16  ;;  %v472_v41 = vld [vmem:[%s8047_s20 + $0x1c] sm:$0xf]  ;;  %v495_v51 = vld [vmem:[%s8047_s20 + $0x78] sm:$0xf] }
  0x20   : > { %6601 = vmatprep.subr.bf16.mxu0 %v7762_v10  ;;  %7636 = vmatprep.subr.bf16.mxu1 %v7762_v10  ;;  %v8101_v10 = vcombine.low %v727_v5, %v737_v6  ;;  %v554_v18 = vrot.slane %v553_v12, 4  ;;  %v563_v19 = vor.u32 %v562_v13, %v558_v7  ;;  %v568_v20 = vrot.slane %v566_v3, 5  ;;  %v496_v52 = vld [vmem:[%s8047_s20 + $0x7c] sm:$0xf]  ;;  %v497_v57 = vld [vmem:[%s8047_s20 + $0x80] sm:$0x1] }
  0x21   : > { %2183 = vmatprep.mubr.bf16.mxu0 %v6157_v56  ;;  %v758_v21 = vshll.u32 %v494_v8, 16  ;;  %v744_v23 = vrot.slane %v742_v15, 5  ;;  %v750_v24 = vrot.slane %v748_v16, 5  ;;  %v574_v44 = vshll.u32 %v471_v40, 16  ;;  %v7780_v2 = vld [vmem:[%s10364_s2 + $0xd0] sm:$0xff]   ;;  %v8148_v13 = vld [vmem:[%s8047_s20 + $0x18] sm:$0xff]  }
  0x22   : > { %2247 = vmatprep.mubr.bf16.mxu1 %v8101_v10  ;;  %v559_v27 = vsel %vm8072_vm2, %v554_v18, %v558_v7  ;;  %v564_v28 = vrot.slane %v563_v19, 4  ;;  %v580_v45 = vshll.u32 %v472_v41, 16  ;;  %v590_v50 = vshll.u32 %v473_v42, 16  ;;  %v7782_v19 = vld [vmem:[%s10364_s2 + $0x90] sm:$0xff]  }
  0x23   : > { %6602 = vmatpush3.bf16.msra.mxu0 %v7763_v14  ;;  %7644 = vmatpush3.bf16.msra.mxu1 %v7763_v14  ;;  %v741_v14 = vrot.slane %v739_v9, 4  ;;  %v760_v31 = vrot.slane %v758_v21, 5  ;;  %v576_v55 = vrot.slane %v574_v44, 5  ;;  %v763_v60 = vshrl.u32 %v495_v51, 16 }
  0x24   : > { %6603 = vmatprep.subr.bf16.mxu0 %v7764_v17  ;;  %7637 = vmatprep.subr.bf16.mxu1 %v7764_v17  ;;  %v752_v17 = vshrl.u32 %v493_v4, 16  ;;  %v569_v33 = vsel %vm8072_vm2, %v564_v28, %v568_v20  ;;  %v582_v56 = vrot.slane %v580_v45, 5  ;;  %v766_v61 = vshll.u32 %v495_v51, 16 }
  0x25   : > { %v745_v29 = vor.u32 %v744_v23, %v741_v14  ;;  %v8126_v37 = vcombine.low %v559_v27, %v569_v33  ;;  %v776_v0 = vshrl.u32 %v496_v52, 16  ;;  %v782_v1 = vshll.u32 %v497_v57, 16  ;;  %v7781_v14 = vld [vmem:[%s10364_s2 + $0x148] sm:$0xff]   ;;  %v474_v23 = vld [vmem:[%s8047_s20 + $0x24] sm:$0xf] }
  0x26   : > { %v754_v25 = vrot.slane %v752_v17, 4  ;;  %v765_v4 = vrot.slane %v763_v60, 4  ;;  %v768_v5 = vrot.slane %v766_v61, 5  ;;  %v476_v27 = vld [vmem:[%s8047_s20 + $0x2c] sm:$0x1]  ;;  %v595_v28 = vshrl.u32 %v474_v23, 16 }
  0x27   : > { %6604 = vmatpush3.bf16.msra.mxu0 %v7765_v30  ;;  %7645 = vmatpush3.bf16.msra.mxu1 %v7765_v30  ;;  %v746_v38 = vrot.slane %v745_v29, 4  ;;  %v778_v8 = vrot.slane %v776_v0, 4  ;;  %v784_v9 = vrot.slane %v782_v1, 5  ;;  %v598_v29 = vshll.u32 %v474_v23, 16  ;;  %v7787_v0 = vld [vmem:[%s10364_s2 + $0x150] sm:$0xff]  }
  0x28   : > { %6605 = vmatprep.subr.bf16.mxu0 %v7766_v43  ;;  %7638 = vmatprep.subr.bf16.mxu1 %v7766_v43  ;;  %v755_v30 = vor.u32 %v754_v25, %v750_v24  ;;  %v571_v43 = vshrl.u32 %v471_v40, 16  ;;  %v769_v12 = vor.u32 %v768_v5, %v765_v4  ;;  %v614_v33 = vshll.u32 %v476_v27, 16  ;;  %v7788_v5 = vld [vmem:[%s10364_s2 + $0x98] sm:$0xff]   ;;  %v501_v23 = vld [vmem:[%s8047_s20 + $0x90] sm:$0xf] }
  0x29   : > { %v751_v47 = vsel %vm8072_vm2, %v746_v38, %v750_v24  ;;  %v475_v24 = vld [vmem:[%s8047_s20 + $0x28] sm:$0xf]  ;;  %v597_v40 = vrot.slane %v595_v28, 4 }
  0x2a   : > { %v756_v39 = vrot.slane %v755_v30, 4  ;;  %v573_v54 = vrot.slane %v571_v43, 4  ;;  %v770_v18 = vrot.slane %v769_v12, 4  ;;  %v604_v30 = vshll.u32 %v475_v24, 16  ;;  %v499_v38 = vld [vmem:[%s8047_s20 + $0x88] sm:$0xf] }
  0x2b   : > { %6606 = vmatpush3.bf16.msra.mxu0 %v7767_v46  ;;  %7646 = vmatpush3.bf16.msra.mxu1 %v7767_v46  ;;  %v584_v46 = vshrl.u32 %v472_v41, 16  ;;  %v600_v41 = vrot.slane %v598_v29, 5  ;;  %v500_v43 = vld [vmem:[%s8047_s20 + $0x8c] sm:$0x1]  ;;  %v616_v45 = vrot.slane %v614_v33, 5  ;;  %v814_v33 = vshll.u32 %v501_v23, 16 }
  0x2c   : > { %6703 = vmatprep.subr.bf16.mxu1 %v7770_v59  ;;  %6815 = vmatprep.subr.bf16.mxu0 %v7775_v26  ;;  %v761_v48 = vsel %vm8072_vm2, %v756_v39, %v760_v31  ;;  %v592_v59 = vrot.slane %v590_v50, 5  ;;  %v7779_v26 = vld [vmem:[%s8047_s20 + $0x78] sm:$0xff]   ;;  %v606_v42 = vrot.slane %v604_v30, 5  ;;  %v800_v50 = vshrl.u32 %v499_v38, 16 }
  0x2d   : > { %v8139_v53 = vcombine.low %v751_v47, %v761_v48  ;;  %v586_v58 = vrot.slane %v584_v46, 4  ;;  %v601_v48 = vor.u32 %v600_v41, %v597_v40  ;;  %v806_v51 = vshll.u32 %v500_v43, 16  ;;  %v503_v29 = vld [vmem:[%s8047_s20 + $0x98] sm:$0x1] }
  0x2e   : > { %2184 = vmatmul.mubr.bf16.vlgmr.msra.gmra.mrb[0].mxu0 %v7768_v62  ;;  %2248 = vmatmul.mubr.bf16.vlgmr.msra.gmra.mrb[0].mxu1 %v7769_v63  ;;  %v577_v62 = vor.u32 %v576_v55, %v573_v54  ;;  %v772_v63 = vshll.u32 %v496_v52, 16  ;;  %v7786_v52 = vld [vmem:[%s10364_s2 + $0xd8] sm:$0xff]   ;;  %v830_v41 = vshll.u32 %v503_v29, 16 }
  0x2f   : > { %6704 = vmatpush3.bf16.msra.mxu1 %v7771_v11  ;;  %6816 = vmatpush3.bf16.msra.mxu0 %v7777_v36  ;;  %v587_v3 = vor.u32 %v586_v58, %v582_v56  ;;  %v498_v36 = vld [vmem:[%s8047_s20 + $0x84] sm:$0xf]  ;;  %v602_v57 = vrot.slane %v601_v48, 4  ;;  %v808_v60 = vrot.slane %v806_v51, 5 }
  0x30   : > { %6705 = vmatprep.subr.bf16.mxu1 %v7774_v22  ;;  %2191 = vmatprep.mubr.bf16.mxu0 %v8126_v37  ;;  %v578_v6 = vrot.slane %v577_v62, 4  ;;  %v774_v7 = vrot.slane %v772_v63, 5  ;;  %v7783_v22 = vld [vmem:[%s10364_s2 + $0x108] sm:$0xff]   ;;  %v787_v46 = vshrl.u32 %v498_v36, 16  ;;  %v790_v47 = vshll.u32 %v498_v36, 16 }
  0x31   : > { %2255 = vmatprep.mubr.bf16.mxu1 %v8139_v53  ;;  %v588_v11 = vrot.slane %v587_v3, 4  ;;  %6817 = vmatprep.subr.bf16.mxu0 %v7781_v14  ;;  %v8185_v63 = vld [vmem:[%s8047_s20 + $0x24] sm:$0xff]   ;;  %v607_v1 = vsel %vm8072_vm2, %v602_v57, %v606_v42 }
  0x32   : > { %v583_v15 = vsel %vm8072_vm2, %v578_v6, %v582_v56  ;;  %v779_v16 = vor.u32 %v778_v8, %v774_v7  ;;  %v775_v25 = vsel %vm8072_vm2, %v770_v18, %v774_v7  ;;  %v789_v55 = vrot.slane %v787_v46, 4  ;;  %v7789_v8 = vld [vmem:[%s10364_s2 + $0x110] sm:$0xff]   ;;  %v7785_v14 = vld [vmem:[%s8047_s20 + $0x84] sm:$0xff]  }
  0x33   : > { %6706 = vmatpush3.bf16.msra.mxu1 %v7776_v32  ;;  %v593_v17 = vsel %vm8072_vm2, %v588_v11, %v592_v59  ;;  %6818 = vmatpush3.bf16.msra.mxu0 %v7783_v22  ;;  %v608_v32 = vshrl.u32 %v475_v24, 16  ;;  %v792_v56 = vrot.slane %v790_v47, 5  ;;  %v802_v59 = vrot.slane %v800_v50, 4  ;;  %v478_v11 = vld [vmem:[%s8047_s20 + $0x34] sm:$0xf] }
  0x34   : > { %6707 = vmatprep.subr.bf16.mxu1 %v7780_v2  ;;  %v8160_v20 = vcombine.low %v583_v15, %v593_v17  ;;  %v780_v21 = vrot.slane %v779_v16, 4  ;;  %6819 = vmatprep.subr.bf16.mxu0 %v7787_v0  ;;  %v479_v15 = vld [vmem:[%s8047_s20 + $0x38] sm:$0x1]  ;;  %v628_v18 = vshll.u32 %v478_v11, 16  ;;  %v502_v24 = vld [vmem:[%s8047_s20 + $0x94] sm:$0xf] }
  0x35   : > { %v610_v44 = vrot.slane %v608_v32, 4  ;;  %v793_v62 = vor.u32 %v792_v56, %v789_v55  ;;  %v638_v22 = vshll.u32 %v479_v15, 16  ;;  %v811_v32 = vshrl.u32 %v501_v23, 16  ;;  %v480_v0 = vld [vmem:[%s8047_s20 + $0x3c] sm:$0xf] }
  0x36   : > { %2192 = vmatmul.mubr.bf16.gmra.mrb[4].mxu0 %v8121_v34  ;;  %2256 = vmatmul.mubr.bf16.gmra.mrb[4].mxu1 %v7773_v49  ;;  %v785_v31 = vsel %vm8072_vm2, %v780_v21, %v784_v9  ;;  %v796_v49 = vshll.u32 %v499_v38, 16  ;;  %v477_v9 = vld [vmem:[%s8047_s20 + $0x30] sm:$0xf]  ;;  %v632_v21 = vshrl.u32 %v478_v11, 16  ;;  %v630_v28 = vrot.slane %v628_v18, 5 }
  0x37   : > { %6708 = vmatpush3.bf16.msra.mxu1 %v7782_v19  ;;  %2199 = vmatprep.mubr.bf16.mxu0 %v8160_v20  ;;  %v8176_v39 = vcombine.low %v775_v25, %v785_v31  ;;  %v611_v54 = vor.u32 %v610_v44, %v606_v42  ;;  %v794_v4 = vrot.slane %v793_v62, 4  ;;  %v619_v16 = vshrl.u32 %v477_v9, 16  ;;  %v7792_v42 = vld [vmem:[%s10364_s2 + $0xe0] sm:$0xff]   ;;  %v7795_v62 = vld [vmem:[%s10364_s2 + $0x118] sm:$0xff]  }
  0x38   : > { %v798_v58 = vrot.slane %v796_v49, 5  ;;  %6709 = vmatprep.subr.bf16.mxu1 %v7786_v52  ;;  %v622_v17 = vshll.u32 %v477_v9, 16  ;;  %6820 = vmatpush3.bf16.msra.mxu0 %v7789_v8  ;;  %v634_v30 = vrot.slane %v632_v21, 4  ;;  %v640_v31 = vrot.slane %v638_v22, 5  ;;  %v8222_v52 = vld [vmem:[%s8047_s20 + $0x30] sm:$0xff]  }
  0x39   : > { %2263 = vmatprep.mubr.bf16.mxu1 %v8176_v39  ;;  %v612_v61 = vrot.slane %v611_v54, 4  ;;  %v820_v38 = vshll.u32 %v502_v24, 16  ;;  %v824_v40 = vshrl.u32 %v502_v24, 16  ;;  %v813_v44 = vrot.slane %v811_v32, 4  ;;  %v7793_v54 = vld [vmem:[%s10364_s2 + $0x158] sm:$0xff]  }
  0x3a   : > { %v803_v2 = vor.u32 %v802_v59, %v798_v58  ;;  %v799_v12 = vsel %vm8072_vm2, %v794_v4, %v798_v58  ;;  %v624_v27 = vrot.slane %v622_v17, 5  ;;  %v635_v43 = vor.u32 %v634_v30, %v630_v28  ;;  %6821 = vmatprep.subr.bf16.mxu0 %v7793_v54  ;;  %v7794_v59 = vld [vmem:[%s10364_s2 + $0xa0] sm:$0xff]  }
  0x3b   : > { %v617_v3 = vsel %vm8072_vm2, %v612_v61, %v616_v45  ;;  %6710 = vmatpush3.bf16.msra.mxu1 %v7788_v5  ;;  %v816_v45 = vrot.slane %v814_v33, 5  ;;  %v822_v47 = vrot.slane %v820_v38, 5  ;;  %v826_v48 = vrot.slane %v824_v40, 4  ;;  %v482_v4 = vld [vmem:[%s8047_s20 + $0x44] sm:$0x1] }
  0x3c   : > { %v8197_v6 = vcombine.low %v607_v1, %v617_v3  ;;  %v804_v7 = vrot.slane %v803_v2, 4  ;;  %v832_v49 = vrot.slane %v830_v41, 5  ;;  %6711 = vmatprep.subr.bf16.mxu1 %v7792_v42  ;;  %v636_v50 = vrot.slane %v635_v43, 4  ;;  %v481_v1 = vld [vmem:[%s8047_s20 + $0x40] sm:$0xf]  ;;  %v7791_v3 = vld [vmem:[%s8047_s20 + $0x90] sm:$0xff]   ;;  %6822 = vmatpush3.bf16.msra.mxu0 %v7795_v62 }
  0x3d   : > { %v817_v51 = vor.u32 %v816_v45, %v813_v44  ;;  %v827_v56 = vor.u32 %v826_v48, %v822_v47  ;;  %v643_v5 = vshrl.u32 %v480_v0, 16  ;;  %v652_v8 = vshll.u32 %v481_v1, 16  ;;  %v505_v15 = vld [vmem:[%s8047_s20 + $0xa0] sm:$0xf]  ;;  %v506_v21 = vld [vmem:[%s8047_s20 + $0xa4] sm:$0x1] }
  0x3e   : > { %2200 = vmatmul.mubr.bf16.gmra.mrb[8].mxu0 %v8148_v13  ;;  %2264 = vmatmul.mubr.bf16.gmra.mrb[8].mxu1 %v7779_v26  ;;  %v809_v19 = vsel %vm8072_vm2, %v804_v7, %v808_v60  ;;  %v621_v26 = vrot.slane %v619_v16, 4  ;;  %v641_v57 = vsel %vm8072_vm2, %v636_v50, %v640_v31  ;;  %v646_v7 = vshll.u32 %v480_v0, 16  ;;  %v7798_v31 = vld [vmem:[%s10364_s2 + $0xe8] sm:$0xff]   ;;  %v8259_v45 = vld [vmem:[%s8047_s20 + $0x3c] sm:$0xff]   ;;  %v485_v62 = vld [vmem:[%s8047_s20 + $0x50] sm:$0x1] }
  0x3f   : > { %2207 = vmatprep.mubr.bf16.mxu0 %v8197_v6  ;;  %v8213_v25 = vcombine.low %v799_v12, %v809_v19  ;;  %v818_v58 = vrot.slane %v817_v51, 4  ;;  %v828_v61 = vrot.slane %v827_v56, 4  ;;  %6712 = vmatpush3.bf16.msra.mxu1 %v7794_v59  ;;  %v656_v11 = vshrl.u32 %v481_v1, 16  ;;  %v7800_v51 = vld [vmem:[%s10364_s2 + $0xa8] sm:$0xff]   ;;  %v7801_v56 = vld [vmem:[%s10364_s2 + $0x120] sm:$0xff]  }
  0x40   : > { %v625_v36 = vor.u32 %v624_v27, %v621_v26  ;;  %v662_v12 = vshll.u32 %v482_v4, 16  ;;  %v645_v17 = vrot.slane %v643_v5, 4  ;;  %v648_v18 = vrot.slane %v646_v7, 5  ;;  %6713 = vmatprep.subr.bf16.mxu1 %v7798_v31  ;;  %v507_v7 = vld [vmem:[%s8047_s20 + $0xa8] sm:$0xf] }
  0x41   : > { %2271 = vmatprep.mubr.bf16.mxu1 %v8213_v25  ;;  %v823_v2 = vsel %vm8072_vm2, %v818_v58, %v822_v47  ;;  %v833_v9 = vsel %vm8072_vm2, %v828_v61, %v832_v49  ;;  %v654_v19 = vrot.slane %v652_v8, 5  ;;  %v658_v22 = vrot.slane %v656_v11, 4  ;;  %v484_v58 = vld [vmem:[%s8047_s20 + $0x4c] sm:$0xf]  ;;  %v7797_v61 = vld [vmem:[%s8047_s20 + $0x9c] sm:$0xff]  }
  0x42   : > { %v626_v46 = vrot.slane %v625_v36, 4  ;;  %v8250_v16 = vcombine.low %v823_v2, %v833_v9  ;;  %v664_v23 = vrot.slane %v662_v12, 5  ;;  %v649_v27 = vor.u32 %v648_v18, %v645_v17  ;;  %v508_v8 = vld [vmem:[%s8047_s20 + $0xac] sm:$0xf] }
  0x43   : > { %v848_v29 = vshrl.u32 %v505_v15, 16  ;;  %v854_v30 = vshll.u32 %v506_v21, 16  ;;  %v659_v32 = vor.u32 %v658_v22, %v654_v19  ;;  %6714 = vmatpush3.bf16.msra.mxu1 %v7800_v51  ;;  %v676_v2 = vshll.u32 %v484_v58, 16  ;;  %v7807_v51 = vld [vmem:[%s10364_s2 + $0x128] sm:$0xff]  }
  0x44   : > { %v631_v55 = vsel %vm8072_vm2, %v626_v46, %v630_v28  ;;  %v844_v28 = vshll.u32 %v505_v15, 16  ;;  %v650_v38 = vrot.slane %v649_v27, 4  ;;  %v7799_v46 = vld [vmem:[%s10364_s2 + $0x160] sm:$0xff]   ;;  %v680_v4 = vshrl.u32 %v484_v58, 16  ;;  %v509_v15 = vld [vmem:[%s8047_s20 + $0xb0] sm:$0x1] }
  0x45   : > { %v8234_v60 = vcombine.low %v631_v55, %v641_v57  ;;  %v850_v41 = vrot.slane %v848_v29, 4  ;;  %v856_v42 = vrot.slane %v854_v30, 5  ;;  %v660_v43 = vrot.slane %v659_v32, 4  ;;  %6823 = vmatprep.subr.bf16.mxu0 %v7799_v46  ;;  %v483_v57 = vld [vmem:[%s8047_s20 + $0x48] sm:$0xf]  ;;  %v7804_v27 = vld [vmem:[%s10364_s2 + $0xf0] sm:$0xff]  }
  0x46   : > { %2208 = vmatmul.mubr.bf16.gmra.mrb[12].mxu0 %v8185_v63  ;;  %2272 = vmatmul.mubr.bf16.gmra.mrb[12].mxu1 %v7785_v14  ;;  %v504_v14 = vld [vmem:[%s8047_s20 + $0x9c] sm:$0xf]  ;;  %v846_v40 = vrot.slane %v844_v28, 5  ;;  %v655_v47 = vsel %vm8072_vm2, %v650_v38, %v654_v19  ;;  %v667_v0 = vshrl.u32 %v483_v57, 16  ;;  %v670_v1 = vshll.u32 %v483_v57, 16  ;;  %v7803_v58 = vld [vmem:[%s8047_s20 + $0xa8] sm:$0xff]  }
  0x47   : > { %2215 = vmatprep.mubr.bf16.mxu0 %v8234_v60  ;;  %v835_v24 = vshrl.u32 %v504_v14, 16  ;;  %v838_v26 = vshll.u32 %v504_v14, 16  ;;  %2279 = vmatprep.mubr.bf16.mxu1 %v8250_v16  ;;  %v665_v49 = vsel %vm8072_vm2, %v660_v43, %v664_v23  ;;  %v686_v5 = vshll.u32 %v485_v62, 16 }
  0x48   : > { %v851_v48 = vor.u32 %v850_v41, %v846_v40  ;;  %v8271_v54 = vcombine.low %v655_v47, %v665_v49  ;;  %6824 = vmatpush3.bf16.msra.mxu0 %v7801_v56  ;;  %v669_v11 = vrot.slane %v667_v0, 4  ;;  %v672_v12 = vrot.slane %v670_v1, 5  ;;  %6715 = vmatprep.subr.bf16.mxu1 %v7804_v27  ;;  %v8296_v41 = vld [vmem:[%s8047_s20 + $0x48] sm:$0xff]   ;;  %v487_v56 = vld [vmem:[%s8047_s20 + $0x58] sm:$0xf] }
  0x49   : > { %v837_v33 = vrot.slane %v835_v24, 4  ;;  %v840_v36 = vrot.slane %v838_v26, 5  ;;  %v678_v14 = vrot.slane %v676_v2, 5  ;;  %v682_v17 = vrot.slane %v680_v4, 4  ;;  %v510_v4 = vld [vmem:[%s8047_s20 + $0xb4] sm:$0xf] }
  0x4a   : > { %v852_v55 = vrot.slane %v851_v48, 4  ;;  %v688_v18 = vrot.slane %v686_v5, 5  ;;  %v859_v19 = vshrl.u32 %v507_v7, 16  ;;  %v862_v21 = vshll.u32 %v507_v7, 16  ;;  %v7806_v48 = vld [vmem:[%s10364_s2 + $0xb0] sm:$0xff]  }
  0x4b   : > { %v841_v44 = vor.u32 %v840_v36, %v837_v33  ;;  %v673_v22 = vor.u32 %v672_v12, %v669_v11  ;;  %v868_v23 = vshll.u32 %v508_v8, 16  ;;  %v872_v24 = vshrl.u32 %v508_v8, 16  ;;  %6716 = vmatpush3.bf16.msra.mxu1 %v7806_v48  ;;  %v511_v5 = vld [vmem:[%s8047_s20 + $0xb8] sm:$0xf] }
  0x4c   : > { %v878_v26 = vshll.u32 %v509_v15, 16  ;;  %v683_v28 = vor.u32 %v682_v17, %v678_v14  ;;  %v861_v29 = vrot.slane %v859_v19, 4  ;;  %v864_v30 = vrot.slane %v862_v21, 5 }
  0x4d   : > { %v842_v50 = vrot.slane %v841_v44, 4  ;;  %v674_v31 = vrot.slane %v673_v22, 4  ;;  %v870_v32 = vrot.slane %v868_v23, 5  ;;  %v874_v33 = vrot.slane %v872_v24, 4 }
  0x4e   : > { %2216 = vmatmul.mubr.bf16.gmra.mrb[16].mxu0 %v8222_v52  ;;  %2280 = vmatmul.mubr.bf16.gmra.mrb[16].mxu1 %v7791_v3  ;;  %v857_v3 = vsel %vm8072_vm2, %v852_v55, %v856_v42  ;;  %v880_v36 = vrot.slane %v878_v26, 5  ;;  %v684_v38 = vrot.slane %v683_v28, 4  ;;  %v7805_v42 = vld [vmem:[%s10364_s2 + $0x168] sm:$0xff]   ;;  %v486_v55 = vld [vmem:[%s8047_s20 + $0x54] sm:$0xf]  ;;  %v700_v0 = vshll.u32 %v487_v56, 16 }
  0x4f   : > { %v847_v59 = vsel %vm8072_vm2, %v842_v50, %v846_v40  ;;  %2223 = vmatprep.mubr.bf16.mxu0 %v8271_v54  ;;  %v865_v40 = vor.u32 %v864_v30, %v861_v29  ;;  %v679_v43 = vsel %vm8072_vm2, %v674_v31, %v678_v14  ;;  %v875_v44 = vor.u32 %v874_v33, %v870_v32  ;;  %v512_v14 = vld [vmem:[%s8047_s20 + $0xbc] sm:$0x1] }
  0x50   : > { %v8287_v9 = vcombine.low %v847_v59, %v857_v3  ;;  %v689_v46 = vsel %vm8072_vm2, %v684_v38, %v688_v18  ;;  %6825 = vmatprep.subr.bf16.mxu0 %v7805_v42  ;;  %v488_v59 = vld [vmem:[%s8047_s20 + $0x5c] sm:$0x1]  ;;  %v694_v62 = vshll.u32 %v486_v55, 16  ;;  %v704_v2 = vshrl.u32 %v487_v56, 16  ;;  %v8339_v42 = vld [vmem:[%s8047_s20 + $0x54] sm:$0xff]  }
  0x51   : > { %v866_v47 = vrot.slane %v865_v40, 4  ;;  %v8308_v49 = vcombine.low %v679_v43, %v689_v46  ;;  %v876_v50 = vrot.slane %v875_v44, 4  ;;  %6826 = vmatpush3.bf16.msra.mxu0 %v7807_v51  ;;  %v710_v3 = vshll.u32 %v488_v59, 16  ;;  %v7810_v26 = vld [vmem:[%s10364_s2 + $0xf8] sm:$0xff]   ;;  %v7811_v43 = vld [vmem:[%s10364_s2 + $0x170] sm:$0xff]  }
  0x52   : > { %2287 = vmatprep.mubr.bf16.mxu1 %v8287_v9  ;;  %v696_v11 = vrot.slane %v694_v62, 5  ;;  %v702_v12 = vrot.slane %v700_v0, 5  ;;  %v706_v15 = vrot.slane %v704_v2, 4  ;;  %v883_v18 = vshrl.u32 %v510_v4, 16  ;;  %6717 = vmatprep.subr.bf16.mxu1 %v7810_v26  ;;  %v8354_v56 = vld [vmem:[%s8047_s20 + $0xb4] sm:$0xff]  }
  0x53   : > { %v871_v57 = vsel %vm8072_vm2, %v866_v47, %v870_v32  ;;  %v881_v1 = vsel %vm8072_vm2, %v876_v50, %v880_v36  ;;  %v712_v17 = vrot.slane %v710_v3, 5  ;;  %v886_v19 = vshll.u32 %v510_v4, 16  ;;  %6827 = vmatprep.subr.bf16.mxu0 %v7811_v43  ;;  %v7812_v50 = vld [vmem:[%s10364_s2 + $0xb8] sm:$0xff]   ;;  %v1077_v0 = vld [vmem:[%s8047_s20 + $0xc] sm:$0xe] }
  0x54   : > { %v8324_v7 = vcombine.low %v871_v57, %v881_v1  ;;  %v892_v22 = vshll.u32 %v511_v5, 16  ;;  %v896_v23 = vshrl.u32 %v511_v5, 16  ;;  %v902_v24 = vshll.u32 %v512_v14, 16  ;;  %v7813_v57 = vld [vmem:[%s10364_s2 + $0x130] sm:$0xff]   ;;  %6718 = vmatpush3.bf16.msra.mxu1 %v7812_v50  ;;  %v7814_v59 = vld [vmem:[%s10364_s2 + $0x178] sm:$0xff]  }
  0x55   : > { %v707_v27 = vor.u32 %v706_v15, %v702_v12  ;;  %v885_v28 = vrot.slane %v883_v18, 4  ;;  %v888_v29 = vrot.slane %v886_v19, 5  ;;  %v10403_v36 = vmov 0  ;;  %6828 = vmatpush3.bf16.msra.mxu0 %v7813_v57  ;;  %v7815_v62 = vld [vmem:[%s10364_s2 + $0x138] sm:$0xff]   ;;  %v1078_v1 = vld [vmem:[%s8047_s20 + $0x10] sm:$0xf] }
  0x56   : > { %2224 = vmatmul.mubr.bf16.gmra.mrb[20].mxu0 %v8259_v45  ;;  %2288 = vmatmul.mubr.bf16.gmra.mrb[20].mxu1 %v7797_v61  ;;  %v691_v61 = vshrl.u32 %v486_v55, 16  ;;  %v894_v31 = vrot.slane %v892_v22, 5  ;;  %v898_v32 = vrot.slane %v896_v23, 4  ;;  %v904_v33 = vrot.slane %v902_v24, 5  ;;  %v1079_v3 = vld [vmem:[%s8047_s20 + $0x14] sm:$0x1] }
  0x57   : > { %2231 = vmatprep.mubr.bf16.mxu0 %v8308_v49  ;;  %2295 = vmatprep.mubr.bf16.mxu1 %v8324_v7  ;;  %v10404_v36 = vsel %vm8334_vm5, 4294967295, %v10403_v36  ;;  %v708_v38 = vrot.slane %v707_v27, 4  ;;  %v889_v40 = vor.u32 %v888_v29, %v885_v28  ;;  %v6176_v4 = vrot.slane %v1077_v0, 9  ;;  %v1076_v14 = vld [vmem:[%s8047_s20 + $0x8] sm:$0x1]  ;;  %v7816_v22 = vld [vmem:[%s10364_s2 + $0x1c0] sm:$0xff]  }
  0x58   : > { %v693_v8 = vrot.slane %v691_v61, 4  ;;  %10405 = vst [vmem:[#allocation5_spill] sm:$0xff] %v10404_v36  ;;  %v899_v46 = vor.u32 %v898_v32, %v894_v31  ;;  %6829 = vmatprep.subr.bf16.mxu0 %v7814_v59  ;;  %v1188_v5 = vrot.slane %v1078_v1, 5  ;;  %6927 = vmatprep.subr.bf16.mxu1 %v7816_v22  ;;  %v1080_v27 = vld [vmem:[%s8047_s20 + $0x18] sm:$0xe] }
  0x59   : > { %v713_v47 = vsel %vm8072_vm2, %v708_v38, %v712_v17  ;;  %v890_v48 = vrot.slane %v889_v40, 4  ;;  %6830 = vmatpush3.bf16.msra.mxu0 %v7815_v62  ;;  %v1081_v28 = vld [vmem:[%s8047_s20 + $0x1c] sm:$0xf]  ;;  %v7818_v40 = vld [vmem:[%s10364_s2 + $0x200] sm:$0xff]   ;;  %v1085_v50 = vld [vmem:[%s8047_s20 + $0x2c] sm:$0x1] }
  0x5a   : > { %v697_v21 = vor.u32 %v696_v11, %v693_v8  ;;  %v900_v55 = vrot.slane %v899_v46, 4  ;;  %v1074_v8 = vld [vmem:[%s8047_s20] sm:$0xe]  ;;  %v1191_v11 = vrot.slane %v1079_v3, 5  ;;  %v1189_v17 = vsel %vm8334_vm5, %v6176_v4, %v1188_v5  ;;  %v1083_v43 = vld [vmem:[%s8047_s20 + $0x24] sm:$0xe]  ;;  %7535 = vmatprep.subr.bf16.mxu0 %v7818_v40 }
  0x5b   : > { %v6175_v15 = vrot.slane %v1074_v8, 9  ;;  %v1190_v18 = vrot.slane %v1188_v5, 4  ;;  %v1195_v32 = vrot.slane %v1081_v28, 5  ;;  %v1086_v3 = vld [vmem:[%s8047_s20 + $0x30] sm:$0xe] }
  0x5c   : > { %v698_v30 = vrot.slane %v697_v21, 4  ;;  %v905_v61 = vsel %vm8072_vm2, %v900_v55, %v904_v33  ;;  %v1184_v21 = vrot.slane %v1076_v14, 5  ;;  %v6178_v55 = vrot.slane %v1083_v43, 9  ;;  %v1087_v4 = vld [vmem:[%s8047_s20 + $0x34] sm:$0xf] }
  0x5d   : > { %v1192_v23 = vsel %vm8334_vm5, %v1190_v18, %v1191_v11  ;;  %v1209_v5 = vrot.slane %v1087_v4, 5  ;;  %v7820_v11 = vld [vmem:[%s10364_s2 + $0x188] sm:$0xff]   ;;  %v1090_v18 = vld [vmem:[%s8047_s20 + $0x40] sm:$0xf]  ;;  %v1091_v28 = vld [vmem:[%s8047_s20 + $0x44] sm:$0x1] }
  0x5e   : > { %2232 = vmatmul.mubr.bf16.gmra.mrb[24].mxu0 %v8296_v41  ;;  %2296 = vmatmul.mubr.bf16.gmra.mrb[24].mxu1 %v7803_v58  ;;  %v703_v44 = vsel %vm8072_vm2, %v698_v30, %v702_v12  ;;  %v895_v58 = vsel %vm8072_vm2, %v890_v48, %v894_v31  ;;  %v1075_v12 = vld [vmem:[%s8047_s20 + $0x4] sm:$0xf]  ;;  %v6192_v29 = vcombine.low %v1189_v17, %v1192_v23  ;;  %v1082_v30 = vld [vmem:[%s8047_s20 + $0x20] sm:$0x1]  ;;  %v6177_v31 = vrot.slane %v1080_v27, 9 }
  0x5f   : > { %v8351_v51 = vcombine.low %v703_v44, %v713_v47  ;;  %v8372_v2 = vcombine.low %v895_v58, %v905_v61  ;;  %v1181_v19 = vrot.slane %v1075_v12, 5  ;;  %v1198_v38 = vrot.slane %v1082_v30, 5  ;;  %v1084_v48 = vld [vmem:[%s8047_s20 + $0x28] sm:$0xf]  ;;  %v1089_v27 = vld [vmem:[%s8047_s20 + $0x3c] sm:$0xe] }
  0x60   : > { %v1196_v46 = vsel %vm8334_vm5, %v6177_v31, %v1195_v32  ;;  %v1197_v47 = vrot.slane %v1195_v32, 4  ;;  %v1202_v57 = vrot.slane %v1084_v48, 5  ;;  %v1205_v58 = vrot.slane %v1085_v50, 5  ;;  %v7819_v61 = vld [vmem:[%s10364_s2 + $0x1c8] sm:$0xff]   ;;  %v7825_v31 = vld [vmem:[%s10364_s2 + $0x1d8] sm:$0xff]   ;;  %v7828_v48 = vld [vmem:[%s10364_s2 + $0x1e0] sm:$0xff]  }
  0x61   : > { %2239 = vmatprep.mubr.bf16.mxu0 %v8351_v51  ;;  %2303 = vmatprep.mubr.bf16.mxu1 %v8372_v2  ;;  %v1182_v24 = vsel %vm8334_vm5, %v6175_v15, %v1181_v19  ;;  %v1183_v26 = vrot.slane %v1181_v19, 4  ;;  %v7821_v12 = vld [vmem:[%s10364_s2 + $0x208] sm:$0xff]   ;;  %v6179_v15 = vrot.slane %v1086_v3, 9  ;;  %v1211_v17 = vrot.slane %v1209_v5, 4  ;;  %v7822_v19 = vld [vmem:[%s10364_s2 + $0x1d0] sm:$0xff]   ;;  %v7829_v50 = vld [vmem:[%s10364_s2 + $0x1a0] sm:$0xff]  }
  0x62   : > { %v1199_v59 = vsel %vm8334_vm5, %v1197_v47, %v1198_v38  ;;  %v1203_v0 = vsel %vm8334_vm5, %v6178_v55, %v1202_v57  ;;  %v1204_v1 = vrot.slane %v1202_v57, 4  ;;  %v6180_v32 = vrot.slane %v1089_v27, 9  ;;  %v1093_v38 = vld [vmem:[%s8047_s20 + $0x4c] sm:$0xf]  ;;  %v1094_v43 = vld [vmem:[%s8047_s20 + $0x50] sm:$0x1] }
  0x63   : > { %v1185_v33 = vsel %vm8334_vm5, %v1183_v26, %v1184_v21  ;;  %v8413_v62 = vcombine.low %v1196_v46, %v1199_v59  ;;  %v7823_v21 = vld [vmem:[%s10364_s2 + $0x190] sm:$0xff]   ;;  %v1210_v22 = vsel %vm8334_vm5, %v6179_v15, %v1209_v5  ;;  %v1223_v47 = vrot.slane %v1093_v38, 5  ;;  %v1097_v5 = vld [vmem:[%s8047_s20 + $0x5c] sm:$0x1] }
  0x64   : > { %v6191_v44 = vcombine.low %v1182_v24, %v1185_v33  ;;  %v1206_v8 = vsel %vm8334_vm5, %v1204_v1, %v1205_v58  ;;  %v1216_v24 = vrot.slane %v1090_v18, 5  ;;  %v7824_v26 = vld [vmem:[%s10364_s2 + $0x210] sm:$0xff]   ;;  %v1226_v58 = vrot.slane %v1094_v43, 5  ;;  %v7831_v1 = vld [vmem:[%s10364_s2 + $0x1e8] sm:$0xff]   ;;  %v1099_v18 = vld [vmem:[%s8047_s20 + $0x64] sm:$0xf] }
  0x65   : > { %v8430_v14 = vcombine.low %v1203_v0, %v1206_v8  ;;  %v1225_v59 = vrot.slane %v1223_v47, 4  ;;  %v7830_v0 = vld [vmem:[%s10364_s2 + $0x220] sm:$0xff]   ;;  %v7832_v8 = vld [vmem:[%s10364_s2 + $0x1a8] sm:$0xff]   ;;  %v7836_v27 = vld [vmem:[%s10364_s2 + $0x230] sm:$0xff]  }
  0x66   : > { %2240 = vmatmul.mubr.bf16.gmra.mrb[28].mxu0 %v8339_v42  ;;  %2304 = vmatmul.mubr.bf16.gmra.mrb[28].mxu1 %v8354_v56  ;;  %v1218_v33 = vrot.slane %v1216_v24, 4  ;;  %v7838_v38 = vld [vmem:[%s10364_s2 + $0x1b8] sm:$0xff]  }
  0x67   : > { %2344 = vmatprep.mubr.bf16.mxu1 %v8121_v34  ;;  %v7817_v34 = vld [vmem:[%s10364_s2 + $0x180] sm:$0xff]   ;;  %2505 = vmatprep.mubr.bf16.mxu0 %v6192_v29  ;;  %v1227_v4 = vsel %vm8334_vm5, %v1225_v59, %v1226_v58  ;;  %v1105_v59 = vld [vmem:[%s8047_s20 + $0x7c] sm:$0xf] }
  0x6e   : > { %2506 = vmatmul.mubr.bf16.vlgmr.msra.gmra.mrb[32].mxu0 %v8126_v37  ;;  %2345 = vmatmul.mubr.bf16.vlgmr.msra.gmra.mrb[32].mxu1 %v6191_v44  ;;  %v1088_v37 = vld [vmem:[%s8047_s20 + $0x38] sm:$0x1]  ;;  %v1217_v44 = vsel %vm8334_vm5, %v6180_v32, %v1216_v24  ;;  %v1100_v24 = vld [vmem:[%s8047_s20 + $0x68] sm:$0x1] }
  0x6f   : > { %7536 = vmatpush3.bf16.msra.mxu0 %v7818_v40  ;;  %6928 = vmatpush3.bf16.msra.mxu1 %v7817_v34  ;;  %v1219_v34 = vrot.slane %v1091_v28, 5  ;;  %v1092_v40 = vld [vmem:[%s8047_s20 + $0x48] sm:$0xe] }
  0x70   : > { %2352 = vmatprep.mubr.bf16.mxu1 %v8148_v13  ;;  %2513 = vmatprep.mubr.bf16.mxu0 %v8413_v62  ;;  %v1212_v13 = vrot.slane %v1088_v37, 5  ;;  %v6181_v57 = vrot.slane %v1092_v40, 9  ;;  %v1095_v37 = vld [vmem:[%s8047_s20 + $0x54] sm:$0xe] }
  0x71   : > { %6929 = vmatprep.subr.bf16.mxu1 %v7819_v61  ;;  %7537 = vmatprep.subr.bf16.mxu0 %v7821_v12  ;;  %v1220_v46 = vsel %vm8334_vm5, %v1218_v33, %v1219_v34  ;;  %v1096_v61 = vld [vmem:[%s8047_s20 + $0x58] sm:$0xf]  ;;  %v6182_v15 = vrot.slane %v1095_v37, 9  ;;  %v1240_v33 = vrot.slane %v1100_v24, 5 }
  0x72   : > { %v1213_v23 = vsel %vm8334_vm5, %v1211_v17, %v1212_v13  ;;  %v8479_v55 = vcombine.low %v1217_v44, %v1220_v46  ;;  %v1224_v3 = vsel %vm8334_vm5, %v6181_v57, %v1223_v47  ;;  %v1233_v13 = vrot.slane %v1097_v5, 5  ;;  %v7837_v34 = vld [vmem:[%s10364_s2 + $0x1f8] sm:$0xff]   ;;  %v1103_v44 = vld [vmem:[%s8047_s20 + $0x74] sm:$0x1]  ;;  %v7841_v47 = vld [vmem:[%s10365_s3 + $0x40] sm:$0xff]  }
  0x73   : > { %7538 = vmatpush3.bf16.msra.mxu0 %v7821_v12  ;;  %6930 = vmatpush3.bf16.msra.mxu1 %v7820_v11  ;;  %v8451_v30 = vcombine.low %v1210_v22, %v1213_v23  ;;  %v7833_v11 = vld [vmem:[%s10364_s2 + $0x228] sm:$0xff]   ;;  %v8504_v12 = vcombine.low %v1224_v3, %v1227_v4  ;;  %v7840_v46 = vld [vmem:[%s10364_s2 + $0x238] sm:$0xff]   ;;  %v1247_v58 = vrot.slane %v1103_v44, 5  ;;  %v1106_v3 = vld [vmem:[%s8047_s20 + $0x80] sm:$0x1] }
  0x74   : > { %6931 = vmatprep.subr.bf16.mxu1 %v7822_v19  ;;  %7539 = vmatprep.subr.bf16.mxu0 %v7824_v26  ;;  %v7834_v19 = vld [vmem:[%s10364_s2 + $0x1f0] sm:$0xff]   ;;  %v8567_v4 = vld [vmem:[%s8047_s20 + $0x60] sm:$0xff]  }
  0x75   : > { %v1114_v44 = vld [vmem:[%s8047_s20 + $0xa0] sm:$0xf] }
  0x76   : > { %2514 = vmatmul.mubr.bf16.gmra.mrb[36].mxu0 %v8160_v20  ;;  %2353 = vmatmul.mubr.bf16.gmra.mrb[36].mxu1 %v6192_v29  ;;  %v7826_v29 = vld [vmem:[%s10364_s2 + $0x198] sm:$0xff]  }
  0x77   : > { %2521 = vmatprep.mubr.bf16.mxu0 %v8430_v14  ;;  %2360 = vmatprep.mubr.bf16.mxu1 %v8185_v63  ;;  %v7827_v63 = vld [vmem:[%s10364_s2 + $0x218] sm:$0xff]  }
  0x78   : > { %6932 = vmatpush3.bf16.msra.mxu1 %v7823_v21  ;;  %7540 = vmatpush3.bf16.msra.mxu0 %v7824_v26  ;;  %v7835_v21 = vld [vmem:[%s10364_s2 + $0x1b0] sm:$0xff]   ;;  %v1237_v26 = vrot.slane %v1099_v18, 5 }
  0x79   : > { %6933 = vmatprep.subr.bf16.mxu1 %v7825_v31  ;;  %7541 = vmatprep.subr.bf16.mxu0 %v7827_v63  ;;  %v1102_v31 = vld [vmem:[%s8047_s20 + $0x70] sm:$0xf] }
  0x7c   : > { %6934 = vmatpush3.bf16.msra.mxu1 %v7826_v29  ;;  %7542 = vmatpush3.bf16.msra.mxu0 %v7827_v63  ;;  %v1239_v29 = vrot.slane %v1237_v26, 4  ;;  %v1244_v63 = vrot.slane %v1102_v31, 5 }
  0x7d   : > { %6935 = vmatprep.subr.bf16.mxu1 %v7828_v48  ;;  %7543 = vmatprep.subr.bf16.mxu0 %v7830_v0 }
  0x7e   : > { %2522 = vmatmul.mubr.bf16.gmra.mrb[40].mxu0 %v8197_v6  ;;  %2361 = vmatmul.mubr.bf16.gmra.mrb[40].mxu1 %v8413_v62  ;;  %v1241_v43 = vsel %vm8334_vm5, %v1239_v29, %v1240_v33  ;;  %v1246_v57 = vrot.slane %v1244_v63, 4  ;;  %v1112_v29 = vld [vmem:[%s8047_s20 + $0x98] sm:$0x1] }
  0x7f   : > { %2529 = vmatprep.mubr.bf16.mxu0 %v8451_v30  ;;  %2368 = vmatprep.mubr.bf16.mxu1 %v8222_v52  ;;  %v1230_v52 = vrot.slane %v1096_v61, 5  ;;  %v7843_v61 = vld [vmem:[%s10365_s3 + $0xc0] sm:$0xff]  }
  0x80   : > { %6936 = vmatpush3.bf16.msra.mxu1 %v7829_v50  ;;  %7544 = vmatpush3.bf16.msra.mxu0 %v7830_v0  ;;  %v1104_v0 = vld [vmem:[%s8047_s20 + $0x78] sm:$0xe] }
  0x81   : > { %6937 = vmatprep.subr.bf16.mxu1 %v7831_v1  ;;  %v1232_v17 = vrot.slane %v1230_v52, 4  ;;  %7545 = vmatprep.subr.bf16.mxu0 %v7833_v11  ;;  %v1231_v22 = vsel %vm8334_vm5, %v6182_v15, %v1230_v52  ;;  %v1248_v1 = vsel %vm8334_vm5, %v1246_v57, %v1247_v58  ;;  %v6185_v37 = vrot.slane %v1104_v0, 9  ;;  %v1108_v15 = vld [vmem:[%s8047_s20 + $0x88] sm:$0xf]  ;;  %v1115_v58 = vld [vmem:[%s8047_s20 + $0xa4] sm:$0x1] }
  0x83   : > { %v1234_v23 = vsel %vm8334_vm5, %v1232_v17, %v1233_v13  ;;  %v1107_v17 = vld [vmem:[%s8047_s20 + $0x84] sm:$0xe]  ;;  %v1258_v13 = vrot.slane %v1108_v15, 5  ;;  %v1118_v15 = vld [vmem:[%s8047_s20 + $0xb0] sm:$0x1] }
  0x84   : > { %6938 = vmatpush3.bf16.msra.mxu1 %v7832_v8  ;;  %7546 = vmatpush3.bf16.msra.mxu0 %v7833_v11  ;;  %v8527_v32 = vcombine.low %v1231_v22, %v1234_v23  ;;  %v1254_v11 = vrot.slane %v1106_v3, 5  ;;  %v6186_v22 = vrot.slane %v1107_v17, 9  ;;  %v1116_v3 = vld [vmem:[%s8047_s20 + $0xa8] sm:$0xe]  ;;  %v8638_v17 = vld [vmem:[%s8047_s20 + $0x90] sm:$0xff]  }
  0x85   : > { %6939 = vmatprep.subr.bf16.mxu1 %v7834_v19  ;;  %7547 = vmatprep.subr.bf16.mxu0 %v7836_v27  ;;  %v1260_v24 = vrot.slane %v1258_v13, 4 }
  0x86   : > { %2530 = vmatmul.mubr.bf16.gmra.mrb[44].mxu0 %v8234_v60  ;;  %2369 = vmatmul.mubr.bf16.gmra.mrb[44].mxu1 %v8430_v14  ;;  %v1259_v33 = vsel %vm8334_vm5, %v6186_v22, %v1258_v13  ;;  %v1282_v22 = vrot.slane %v1118_v15, 5 }
  0x87   : > { %2537 = vmatprep.mubr.bf16.mxu0 %v8479_v55  ;;  %2376 = vmatprep.mubr.bf16.mxu1 %v8259_v45  ;;  %v1098_v45 = vld [vmem:[%s8047_s20 + $0x60] sm:$0xe] }
  0x88   : > { %6940 = vmatpush3.bf16.msra.mxu1 %v7835_v21  ;;  %v6183_v28 = vrot.slane %v1098_v45, 9  ;;  %7548 = vmatpush3.bf16.msra.mxu0 %v7836_v27  ;;  %v1109_v45 = vld [vmem:[%s8047_s20 + $0x8c] sm:$0x1]  ;;  %v1111_v27 = vld [vmem:[%s8047_s20 + $0x94] sm:$0xf] }
  0x89   : > { %6941 = vmatprep.subr.bf16.mxu1 %v7837_v34  ;;  %7549 = vmatprep.subr.bf16.mxu0 %v7840_v46  ;;  %v8583_v21 = vld [vmem:[%s8047_s20 + $0x6c] sm:$0xff]   ;;  %v1265_v31 = vrot.slane %v1111_v27, 5 }
  0x8a   : > { %v1238_v40 = vsel %vm8334_vm5, %v6183_v28, %v1237_v26  ;;  %v1261_v26 = vrot.slane %v1109_v45, 5  ;;  %v1110_v28 = vld [vmem:[%s8047_s20 + $0x90] sm:$0xe] }
  0x8b   : > { %v8551_v50 = vcombine.low %v1238_v40, %v1241_v43  ;;  %v1267_v40 = vrot.slane %v1265_v31, 4  ;;  %v1268_v43 = vrot.slane %v1112_v29, 5  ;;  %v8656_v29 = vld [vmem:[%s8047_s20 + $0x9c] sm:$0xff]  }
  0x8c   : > { %6942 = vmatpush3.bf16.msra.mxu1 %v7838_v38  ;;  %7550 = vmatpush3.bf16.msra.mxu0 %v7840_v46  ;;  %v1262_v34 = vsel %vm8334_vm5, %v1260_v24, %v1261_v26  ;;  %v8599_v38 = vld [vmem:[%s8047_s20 + $0x78] sm:$0xff]   ;;  %v1119_v24 = vld [vmem:[%s8047_s20 + $0xb4] sm:$0xe] }
  0x8d   : > { %7063 = vmatprep.subr.bf16.mxu1 %v7841_v47  ;;  %7175 = vmatprep.subr.bf16.mxu0 %v7843_v61  ;;  %v1113_v46 = vld [vmem:[%s8047_s20 + $0x9c] sm:$0xe]  ;;  %v1272_v47 = vrot.slane %v1114_v44, 5  ;;  %v1269_v57 = vsel %vm8334_vm5, %v1267_v40, %v1268_v43  ;;  %v1121_v26 = vld [vmem:[%s8047_s20 + $0xbc] sm:$0x1] }
  0x8e   : > { %2538 = vmatmul.mubr.bf16.gmra.mrb[48].mxu0 %v8271_v54  ;;  %2377 = vmatmul.mubr.bf16.gmra.mrb[48].mxu1 %v8451_v30  ;;  %v6188_v61 = vrot.slane %v1113_v46, 9  ;;  %v1289_v44 = vrot.slane %v1121_v26, 5  ;;  %v514_v46 = vld [vmem:[%s8047_s20 + $0xc4] sm:$0xf] }
  0x8f   : > { %2545 = vmatprep.mubr.bf16.mxu0 %v8504_v12  ;;  %2384 = vmatprep.mubr.bf16.mxu1 %v8296_v41  ;;  %v1101_v41 = vld [vmem:[%s8047_s20 + $0x6c] sm:$0xe] }
  0x90   : > { %v6184_v48 = vrot.slane %v1101_v41, 9  ;;  %v6187_v41 = vrot.slane %v1110_v28, 9  ;;  %v1123_v28 = vld [vmem:[%s8047_s20 + $0xc4] sm:$0xf] }
  0x92   : > { %v1245_v52 = vsel %vm8334_vm5, %v6184_v48, %v1244_v63  ;;  %v8609_v63 = vcombine.low %v1259_v33, %v1262_v34  ;;  %v1266_v48 = vsel %vm8334_vm5, %v6187_v41, %v1265_v31  ;;  %v513_v34 = vld [vmem:[%s8047_s20 + $0xc0] sm:$0xf]  ;;  %v6190_v41 = vrot.slane %v1119_v24, 9 }
  0x93   : > { %v8570_v5 = vcombine.low %v1245_v52, %v1248_v1  ;;  %v8625_v0 = vcombine.low %v1266_v48, %v1269_v57  ;;  %v1275_v52 = vrot.slane %v1115_v58, 5  ;;  %v1117_v1 = vld [vmem:[%s8047_s20 + $0xac] sm:$0xf]  ;;  %v987_v48 = vshrl.u32 %v513_v34, 16 }
  0x94   : > { %v990_v57 = vshll.u32 %v513_v34, 16  ;;  %v996_v58 = vshll.u32 %v514_v46, 16 }
  0x95   : > { %v989_v15 = vrot.slane %v987_v48, 4  ;;  %v7839_v48 = vld [vmem:[%s8047_s20 + $0xc0] sm:$0xff]  }
  0x96   : > { %2546 = vmatmul.mubr.bf16.gmra.mrb[52].mxu0 %v8308_v49  ;;  %2385 = vmatmul.mubr.bf16.gmra.mrb[52].mxu1 %v8479_v55 }
  0x97   : > { %2553 = vmatprep.mubr.bf16.mxu0 %v8527_v32  ;;  %2392 = vmatprep.mubr.bf16.mxu1 %v8339_v42  ;;  %v1251_v42 = vrot.slane %v1105_v59, 5  ;;  %v8622_v59 = vld [vmem:[%s8047_s20 + $0x84] sm:$0xff]  }
  0x99   : > { %v1253_v8 = vrot.slane %v1251_v42, 4  ;;  %v1252_v18 = vsel %vm8334_vm5, %v6185_v37, %v1251_v42  ;;  %v1274_v42 = vrot.slane %v1272_v47, 4  ;;  %v1273_v37 = vsel %vm8334_vm5, %v6188_v61, %v1272_v47 }
  0x9a   : > { %v1376_v47 = vrot.slane %v1123_v28, 5  ;;  %v1000_v61 = vshrl.u32 %v514_v46, 16 }
  0x9b   : > { %v1255_v19 = vsel %vm8334_vm5, %v1253_v8, %v1254_v11  ;;  %v1276_v8 = vsel %vm8334_vm5, %v1274_v42, %v1275_v52  ;;  %v1279_v11 = vrot.slane %v1117_v1, 5  ;;  %v1122_v1 = vld [vmem:[%s8047_s20 + $0xc0] sm:$0xe] }
  0x9c   : > { %v8586_v23 = vcombine.low %v1252_v18, %v1255_v19  ;;  %v8641_v13 = vcombine.low %v1273_v37, %v1276_v8  ;;  %v6189_v18 = vrot.slane %v1116_v3, 9  ;;  %v1120_v19 = vld [vmem:[%s8047_s20 + $0xb8] sm:$0xf]  ;;  %v1124_v3 = vld [vmem:[%s8047_s20 + $0xc8] sm:$0x1]  ;;  %v1378_v24 = vrot.slane %v1376_v47, 4 }
  0x9d   : > { %v1281_v45 = vrot.slane %v1279_v11, 4  ;;  %v1286_v27 = vrot.slane %v1120_v19, 5  ;;  %v8672_v37 = vld [vmem:[%s8047_s20 + $0xa8] sm:$0xff]   ;;  %v998_v19 = vrot.slane %v996_v58, 5  ;;  %v1379_v26 = vrot.slane %v1124_v3, 5  ;;  %v7844_v58 = vld [vmem:[%s10365_s3 + $0x80] sm:$0xff]  }
  0x9e   : > { %2554 = vmatmul.mubr.bf16.gmra.mrb[56].mxu0 %v8351_v51  ;;  %2393 = vmatmul.mubr.bf16.gmra.mrb[56].mxu1 %v8504_v12  ;;  %v1280_v31 = vsel %vm8334_vm5, %v6189_v18, %v1279_v11  ;;  %v515_v11 = vld [vmem:[%s8047_s20 + $0xc8] sm:$0x1]  ;;  %v992_v18 = vrot.slane %v990_v57, 5 }
  0x9f   : > { %2561 = vmatprep.mubr.bf16.mxu0 %v8551_v50  ;;  %2400 = vmatprep.mubr.bf16.mxu1 %v8567_v4  ;;  %v1283_v33 = vsel %vm8334_vm5, %v1281_v45, %v1282_v22  ;;  %v1288_v43 = vrot.slane %v1286_v27, 4  ;;  %v1287_v42 = vsel %vm8334_vm5, %v6190_v41, %v1286_v27  ;;  %v1002_v45 = vrot.slane %v1000_v61, 4  ;;  %v7846_v61 = vld [vmem:[%s10365_s3 + $0xc8] sm:$0xff]  }
  0xa0   : > { %v8659_v40 = vcombine.low %v1280_v31, %v1283_v33  ;;  %v6207_v22 = vrot.slane %v1122_v1, 9  ;;  %v1006_v27 = vshll.u32 %v515_v11, 16  ;;  %v993_v28 = vor.u32 %v992_v18, %v989_v15 }
  0xa1   : > { %v1290_v52 = vsel %vm8334_vm5, %v1288_v43, %v1289_v44  ;;  %v1003_v31 = vor.u32 %v1002_v45, %v998_v19  ;;  %v1380_v34 = vsel %vm8334_vm5, %v1378_v24, %v1379_v26  ;;  %v7850_v45 = vld [vmem:[%s10365_s3 + $0x90] sm:$0xff]  }
  0xa2   : > { %v8675_v8 = vcombine.low %v1287_v42, %v1290_v52  ;;  %v1377_v33 = vsel %vm8334_vm5, %v6207_v22, %v1376_v47  ;;  %v994_v43 = vrot.slane %v993_v28, 4  ;;  %v1008_v46 = vrot.slane %v1006_v27, 5  ;;  %v7842_v42 = vld [vmem:[%s10365_s3] sm:$0xff]   ;;  %v7939_v52 = vld [vmem:[%s8047_s20 + $0x18] sm:$0xff]   ;;  %v7851_v27 = vld [vmem:[%s10365_s3 + $0x50] sm:$0xff]  }
  0xa3   : > { %v8686_v41 = vcombine.low %v1377_v33, %v1380_v34  ;;  %v1004_v44 = vrot.slane %v1003_v31, 4  ;;  %v7852_v28 = vld [vmem:[%s10365_s3 + $0xd8] sm:$0xff]   ;;  %v7853_v34 = vld [vmem:[%s10365_s3 + $0x10] sm:$0xff]  }
  0xa4   : > { %v999_v47 = vsel %vm8072_vm2, %v994_v43, %v998_v19  ;;  %v7854_v43 = vld [vmem:[%s10365_s3 + $0x98] sm:$0xff]  }
  0xa5   : > { %v1009_v57 = vsel %vm8072_vm2, %v1004_v44, %v1008_v46  ;;  %v7857_v44 = vld [vmem:[%s10365_s3 + $0x58] sm:$0xff]   ;;  %v7940_v46 = vld [vmem:[%s8047_s20 + $0x24] sm:$0xff]  }
  0xa6   : > { %2562 = vmatmul.mubr.bf16.gmra.mrb[60].mxu0 %v8101_v10  ;;  %2401 = vmatmul.mubr.bf16.gmra.mrb[60].mxu1 %v8527_v32 }
  0xa7   : > { %2569 = vmatprep.mubr.bf16.mxu0 %v8570_v5  ;;  %2408 = vmatprep.mubr.bf16.mxu1 %v8583_v21 }
  0xae   : > { %2570 = vmatmul.mubr.bf16.gmra.mrb[64].mxu0 %v8139_v53  ;;  %2409 = vmatmul.mubr.bf16.gmra.mrb[64].mxu1 %v8551_v50 }
  0xaf   : > { %2577 = vmatprep.mubr.bf16.mxu0 %v8586_v23  ;;  %2416 = vmatprep.mubr.bf16.mxu1 %v8599_v38 }
  0xb6   : > { %2578 = vmatmul.mubr.bf16.gmra.mrb[68].mxu0 %v8176_v39  ;;  %2417 = vmatmul.mubr.bf16.gmra.mrb[68].mxu1 %v8570_v5 }
  0xb7   : > { %2585 = vmatprep.mubr.bf16.mxu0 %v8609_v63  ;;  %2424 = vmatprep.mubr.bf16.mxu1 %v8622_v59 }
  0xbe   : > { %2586 = vmatmul.mubr.bf16.gmra.mrb[72].mxu0 %v8213_v25  ;;  %2425 = vmatmul.mubr.bf16.gmra.mrb[72].mxu1 %v8586_v23 }
  0xbf   : > { %2593 = vmatprep.mubr.bf16.mxu0 %v8625_v0  ;;  %2432 = vmatprep.mubr.bf16.mxu1 %v8638_v17 }
  0xc6   : > { %2594 = vmatmul.mubr.bf16.gmra.mrb[76].mxu0 %v8250_v16  ;;  %2433 = vmatmul.mubr.bf16.gmra.mrb[76].mxu1 %v8609_v63 }
  0xc7   : > { %2601 = vmatprep.mubr.bf16.mxu0 %v8641_v13  ;;  %2440 = vmatprep.mubr.bf16.mxu1 %v8656_v29 }
  0xce   : > { %2602 = vmatmul.mubr.bf16.gmra.mrb[80].mxu0 %v8287_v9  ;;  %2441 = vmatmul.mubr.bf16.gmra.mrb[80].mxu1 %v8625_v0 }
  0xcf   : > { %2609 = vmatprep.mubr.bf16.mxu0 %v8659_v40  ;;  %2448 = vmatprep.mubr.bf16.mxu1 %v8672_v37 }
  0xd6   : > { %2610 = vmatmul.mubr.bf16.gmra.mrb[84].mxu0 %v8324_v7  ;;  %2449 = vmatmul.mubr.bf16.gmra.mrb[84].mxu1 %v8641_v13 }
  0xd7   : > { %2617 = vmatprep.mubr.bf16.mxu0 %v8675_v8  ;;  %2456 = vmatprep.mubr.bf16.mxu1 %v8354_v56  ;;  %v8696_v56 = vcombine.low %v999_v47, %v1009_v57  ;;  %v7859_v57 = vld [vmem:[%s10365_s3 + $0x18] sm:$0xff]  }
  0xde   : > { %2618 = vmatmul.mubr.bf16.gmra.mrb[88].mxu0 %v8372_v2  ;;  %2457 = vmatmul.mubr.bf16.gmra.mrb[88].mxu1 %v8659_v40 }
  0xdf   : > { %2625 = vmatprep.mubr.bf16.mxu0 %v8686_v41  ;;  %2464 = vmatprep.mubr.bf16.mxu1 %v7839_v48 }
  0xe6   : > { %2626 = vmatmul.mubr.bf16.gmra.mrb[92].mxu0 %v8696_v56  ;;  %2465 = vmatmul.mubr.bf16.gmra.mrb[92].mxu1 %v8675_v8 }
  0xe7   : > { %7551 = vmatprep.mubr.bf16.mxu0 %v8413_v62  ;;  %2666 = vmatprep.mubr.bf16.mxu1 %v8160_v20  ;;  %v7845_v20 = vld [vmem:[%s10365_s3 + $0x48] sm:$0xff]  }
  0xe8   : > { %v7848_v62 = vld [vmem:[%s10365_s3 + $0x88] sm:$0xff]  }
  0xee   : > { %7552 = vmatmul.mubr.bf16.vlgmr.msra.gmra.mrb[96].mxu0 %v8430_v14  ;;  %v7849_v14 = vld [vmem:[%s10365_s3 + $0xd0] sm:$0xff]   ;;  %2667 = vmatmul.mubr.bf16.vlgmr.msra.gmra.mrb[96].mxu1 %v7939_v52  ;;  %v7858_v52 = vld [vmem:[%s10365_s3 + $0xe8] sm:$0xff]  }
  0xef   : > { %7555 = vmatprep.mubr.bf16.mxu0 %v8451_v30  ;;  %7176 = vmatpush3.bf16.msra.mxu0 %v7844_v58  ;;  %v7847_v30 = vld [vmem:[%s10365_s3 + $0x8] sm:$0xff]  }
  0xf0   : > { %7177 = vmatprep.subr.bf16.mxu0 %v7846_v61  ;;  %7064 = vmatpush3.bf16.msra.mxu1 %v7842_v42 }
  0xf1   : > { %2674 = vmatprep.mubr.bf16.mxu1 %v8197_v6  ;;  %7065 = vmatprep.subr.bf16.mxu1 %v7845_v20  ;;  %v7856_v20 = vld [vmem:[%s10365_s3 + $0xa0] sm:$0xff]  }
  0xf3   : > { %7178 = vmatpush3.bf16.msra.mxu0 %v7848_v62 }
  0xf4   : > { %7179 = vmatprep.subr.bf16.mxu0 %v7849_v14  ;;  %7066 = vmatpush3.bf16.msra.mxu1 %v7847_v30 }
  0xf5   : > { %7067 = vmatprep.subr.bf16.mxu1 %v7851_v27  ;;  %v7862_v27 = vld [vmem:[%s10365_s3 + $0xb0] sm:$0xff]  }
  0xf6   : > { %7556 = vmatmul.mubr.bf16.gmra.mrb[100].mxu0 %v8479_v55  ;;  %v7855_v55 = vld [vmem:[%s10365_s3 + $0xe0] sm:$0xff]   ;;  %2675 = vmatmul.mubr.bf16.gmra.mrb[100].mxu1 %v7940_v46 }
  0xf7   : > { %7559 = vmatprep.mubr.bf16.mxu0 %v8504_v12  ;;  %7180 = vmatpush3.bf16.msra.mxu0 %v7850_v45  ;;  %v7872_v45 = vld [vmem:[%s10365_s3 + $0x68] sm:$0xff]  }
  0xf8   : > { %7181 = vmatprep.subr.bf16.mxu0 %v7852_v28  ;;  %2682 = vmatprep.mubr.bf16.mxu1 %v8234_v60 }
  0xf9   : > { %7068 = vmatpush3.bf16.msra.mxu1 %v7853_v34 }
  0xfa   : > { %7069 = vmatprep.subr.bf16.mxu1 %v7857_v44 }
  0xfb   : > { %7182 = vmatpush3.bf16.msra.mxu0 %v7854_v43  ;;  %v7878_v43 = vld [vmem:[%s10365_s3 + $0x70] sm:$0xff]  }
  0xfc   : > { %7183 = vmatprep.subr.bf16.mxu0 %v7855_v55 }
  0xfd   : > { %7070 = vmatpush3.bf16.msra.mxu1 %v7859_v57 }
  0xfe   : > { %7560 = vmatmul.mubr.bf16.gmra.mrb[104].mxu0 %v8527_v32  ;;  %v7861_v32 = vld [vmem:[%s10365_s3 + $0xf0] sm:$0xff]  }
  0xff   : > { %7563 = vmatprep.mubr.bf16.mxu0 %v8551_v50  ;;  %7184 = vmatpush3.bf16.msra.mxu0 %v7856_v20  ;;  %v7873_v50 = vld [vmem:[%s10365_s3 + $0x28] sm:$0xff]   ;;  %v7869_v20 = vld [vmem:[%s10365_s3 + $0x1c0] sm:$0xff]  }
 0x100   : > { %7185 = vmatprep.subr.bf16.mxu0 %v7858_v52  ;;  %v7892_v52 = vld [vmem:[%s10365_s3 + $0x140] sm:$0xff]  }
 0x101   : > { %v6655_v1 = vpop.f32.mrb[0].mxu1  ;;  %v6607_v3 = vpop.f32.mrb[0].mxu0 }
 0x102   : > { %v6656_v11 = vpop.f32.mrb[1].mxu1  ;;  %v6608_v15 = vpop.f32.mrb[1].mxu0 }
 0x103   : > { %v8727_v18 = vadd.f32 %v6656_v11, %v6655_v1  ;;  %v6658_v19 = vpop.f32.mrb[2].mxu1  ;;  %v8732_v22 = vadd.f32 %v6608_v15, %v6607_v3  ;;  %v6610_v24 = vpop.f32.mrb[2].mxu0  ;;  %v7866_v1 = vld [vmem:[%s10365_s3 + $0x60] sm:$0xff]   ;;  %v7860_v15 = vld [vmem:[%s10365_s3 + $0xa8] sm:$0xff]  }
 0x104   : > { %v6659_v26 = vpop.f32.mrb[3].mxu1  ;;  %v6611_v6 = vpop.f32.mrb[3].mxu0  ;;  %7071 = vmatprep.subr.bf16.mxu1 %v7866_v1  ;;  %7186 = vmatpush3.bf16.msra.mxu0 %v7860_v15 }
 0x105   : > { %v8740_v31 = vadd.f32 %v6659_v26, %v6658_v19  ;;  %v8742_v33 = vadd.f32 %v6611_v6, %v6610_v24  ;;  %v7867_v19 = vld [vmem:[%s10365_s3 + $0x20] sm:$0xff]   ;;  %v7941_v24 = vld [vmem:[%s8047_s20 + $0x30] sm:$0xff]   ;;  %7187 = vmatprep.subr.bf16.mxu0 %v7861_v32  ;;  %v7943_v32 = vld [vmem:[%s8047_s20 + $0x48] sm:$0xff]  }
 0x106   : > { %2683 = vmatmul.mubr.bf16.gmra.mrb[104].mxu1 %v7941_v24  ;;  %7564 = vmatmul.mubr.bf16.gmra.mrb[108].mxu0 %v8570_v5  ;;  %v7884_v5 = vld [vmem:[%s10365_s3 + $0x78] sm:$0xff]  }
 0x107   : > { %2690 = vmatprep.mubr.bf16.mxu1 %v8271_v54  ;;  %7072 = vmatpush3.bf16.msra.mxu1 %v7867_v19  ;;  %v7863_v54 = vld [vmem:[%s10365_s3 + $0xf8] sm:$0xff]  }
 0x108   : > { %7073 = vmatprep.subr.bf16.mxu1 %v7872_v45  ;;  %7567 = vmatprep.mubr.bf16.mxu0 %v8586_v23  ;;  %v7885_v23 = vld [vmem:[%s10365_s3 + $0x38] sm:$0xff]  }
 0x109   : > { %v6613_v48 = vpop.f32.mrb[4].mxu0  ;;  %v6661_v12 = vpop.f32.mrb[4].mxu1  ;;  %7188 = vmatpush3.bf16.msra.mxu0 %v7862_v27  ;;  %v1126_v27 = vld [vmem:[%s8047_s20 + $0xd0] sm:$0xf] }
 0x10a   : > { %v6614_v47 = vpop.f32.mrb[5].mxu0  ;;  %v6662_v58 = vpop.f32.mrb[5].mxu1  ;;  %7189 = vmatprep.subr.bf16.mxu0 %v7863_v54  ;;  %v1125_v54 = vld [vmem:[%s8047_s20 + $0xcc] sm:$0xe] }
 0x10b   : > { %v8763_v61 = vadd.f32 %v6614_v47, %v6613_v48  ;;  %v6616_v42 = vpop.f32.mrb[6].mxu0  ;;  %v8768_v62 = vadd.f32 %v6662_v58, %v6661_v12  ;;  %v6664_v60 = vpop.f32.mrb[6].mxu1  ;;  %v7864_v12 = vld [vmem:[%s10365_s3 + $0xb8] sm:$0xff]   ;;  %7074 = vmatpush3.bf16.msra.mxu1 %v7873_v50  ;;  %v7879_v47 = vld [vmem:[%s10365_s3 + $0x30] sm:$0xff]  }
 0x10c   : > { %v6617_v14 = vpop.f32.mrb[7].mxu0  ;;  %v6665_v3 = vpop.f32.mrb[7].mxu1  ;;  %7075 = vmatprep.subr.bf16.mxu1 %v7878_v43  ;;  %v1127_v43 = vld [vmem:[%s8047_s20 + $0xd4] sm:$0x1] }
 0x10d   : > { %v8776_v30 = vadd.f32 %v6617_v14, %v6616_v42  ;;  %v8779_v11 = vadd.f32 %v6665_v3, %v6664_v60  ;;  %v7942_v60 = vld [vmem:[%s8047_s20 + $0x3c] sm:$0xff]   ;;  %7190 = vmatpush3.bf16.msra.mxu0 %v7864_v12 }
 0x10e   : > { %2691 = vmatmul.mubr.bf16.gmra.mrb[108].mxu1 %v7942_v60  ;;  %7399 = vmatprep.subr.bf16.mxu0 %v7869_v20  ;;  %v3787_v60 = vld [vmem:[%s8607_s11 + $0x4] sm:$0xf] }
 0x10f   : > { %2698 = vmatprep.mubr.bf16.mxu1 %v8308_v49  ;;  %7076 = vmatpush3.bf16.msra.mxu1 %v7879_v47 }
 0x110   : > { %7077 = vmatprep.subr.bf16.mxu1 %v7884_v5  ;;  %7568 = vmatmul.mubr.bf16.gmra.mrb[112].mxu0 %v8609_v63 }
 0x111   : > { %v6619_v26 = vpop.f32.mrb[8].mxu0  ;;  %v6667_v44 = vpop.f32.mrb[8].mxu1  ;;  %7571 = vmatprep.mubr.bf16.mxu0 %v8625_v0 }
 0x112   : > { %v6620_v6 = vpop.f32.mrb[9].mxu0  ;;  %v6668_v46 = vpop.f32.mrb[9].mxu1 }
 0x113   : > { %v8802_v28 = vadd.f32 %v6620_v6, %v6619_v26  ;;  %v6622_v34 = vpop.f32.mrb[10].mxu0  ;;  %v8820_v57 = vadd.f32 %v6668_v46, %v6667_v44  ;;  %v6670_v58 = vpop.f32.mrb[10].mxu1  ;;  %7078 = vmatpush3.bf16.msra.mxu1 %v7885_v23 }
 0x114   : > { %v6623_v55 = vpop.f32.mrb[11].mxu0  ;;  %v6671_v42 = vpop.f32.mrb[11].mxu1  ;;  %7287 = vmatprep.subr.bf16.mxu1 %v7892_v52 }
 0x115   : > { %v8811_v48 = vadd.f32 %v6623_v55, %v6622_v34  ;;  %v8829_v14 = vadd.f32 %v6671_v42, %v6670_v58  ;;  %v1406_v34 = vrot.slane %v1126_v27, 5  ;;  %v7944_v55 = vld [vmem:[%s8047_s20 + $0x54] sm:$0xff]   ;;  %v6209_v58 = vrot.slane %v1125_v54, 9 }
 0x116   : > { %2699 = vmatmul.mubr.bf16.gmra.mrb[112].mxu1 %v7943_v32  ;;  %v3788_v32 = vld [vmem:[%s8607_s11 + $0x8] sm:$0x1] }
 0x117   : > { %2706 = vmatprep.mubr.bf16.mxu1 %v8351_v51  ;;  %v1408_v5 = vrot.slane %v1406_v34, 4  ;;  %v3893_v27 = vrot.slane %v3788_v32, 5  ;;  %v7870_v32 = vld [vmem:[%s10365_s3 + $0x180] sm:$0xff]  }
 0x118   : > { %7572 = vmatmul.mubr.bf16.gmra.mrb[116].mxu0 %v8641_v13  ;;  %v1409_v13 = vrot.slane %v1127_v43, 5 }
 0x119   : > { %v6625_v1 = vpop.f32.mrb[12].mxu0  ;;  %v6673_v19 = vpop.f32.mrb[12].mxu1  ;;  %7575 = vmatprep.mubr.bf16.mxu0 %v8659_v40 }
 0x11a   : > { %v6626_v3 = vpop.f32.mrb[13].mxu0  ;;  %v6674_v24 = vpop.f32.mrb[13].mxu1 }
 0x11b   : > { %v8840_v49 = vadd.f32 %v6626_v3, %v6625_v1  ;;  %v6628_v15 = vpop.f32.mrb[14].mxu0  ;;  %v8846_v63 = vadd.f32 %v6674_v24, %v6673_v19  ;;  %v6676_v50 = vpop.f32.mrb[14].mxu1  ;;  %v1407_v3 = vsel %vm8334_vm5, %v6209_v58, %v1406_v34  ;;  %v3890_v19 = vrot.slane %v3787_v60, 5  ;;  %v8877_v24 = vld [vmem:[%s8607_s11 + $0xc] sm:$0xff]  }
 0x11c   : > { %v6629_v45 = vpop.f32.mrb[15].mxu0  ;;  %v6677_v0 = vpop.f32.mrb[15].mxu1  ;;  %v3790_v34 = vld [vmem:[%s8607_s11 + $0x10] sm:$0xf] }
 0x11d   : > { %v8843_v26 = vadd.f32 %v6629_v45, %v6628_v15  ;;  %v8848_v6 = vadd.f32 %v6677_v0, %v6676_v50  ;;  %v1410_v15 = vsel %vm8334_vm5, %v1408_v5, %v1409_v13  ;;  %v3786_v45 = vld [vmem:[%s8607_s11] sm:$0xe]  ;;  %v3892_v0 = vrot.slane %v3890_v19, 4 }
 0x11e   : > { %2707 = vmatmul.mubr.bf16.gmra.mrb[116].mxu1 %v7944_v55  ;;  %v6319_v50 = vrot.slane %v3786_v45, 9  ;;  %v3897_v58 = vrot.slane %v3790_v34, 5  ;;  %v7876_v34 = vld [vmem:[%s10365_s3 + $0x188] sm:$0xff]  }
 0x11f   : > { %2714 = vmatprep.mubr.bf16.mxu1 %v8101_v10 }
 0x120   : > { %7576 = vmatmul.mubr.bf16.gmra.mrb[120].mxu0 %v8675_v8  ;;  %v6210_v8 = vcombine.low %v1407_v3, %v1410_v15  ;;  %v7868_v3 = vld [vmem:[%s8607_s11 + $0x18] sm:$0xff]  }
 0x121   : > { %v6631_v44 = vpop.f32.mrb[16].mxu0  ;;  %v6679_v47 = vpop.f32.mrb[16].mxu1  ;;  %7579 = vmatprep.mubr.bf16.mxu0 %v8686_v41 }
 0x122   : > { %v6632_v46 = vpop.f32.mrb[17].mxu0  ;;  %v6680_v42 = vpop.f32.mrb[17].mxu1 }
 0x123   : > { %v8857_v51 = vadd.f32 %v6632_v46, %v6631_v44  ;;  %v6634_v12 = vpop.f32.mrb[18].mxu0  ;;  %v8862_v23 = vadd.f32 %v6680_v42, %v6679_v47  ;;  %v6682_v52 = vpop.f32.mrb[18].mxu1  ;;  %v3791_v42 = vld [vmem:[%s8607_s11 + $0x14] sm:$0x1] }
 0x124   : > { %v6635_v40 = vpop.f32.mrb[19].mxu0  ;;  %v6683_v10 = vpop.f32.mrb[19].mxu1  ;;  %v3900_v45 = vrot.slane %v3791_v42, 5 }
 0x125   : > { %v8859_v20 = vadd.f32 %v6635_v40, %v6634_v12  ;;  %v8865_v1 = vadd.f32 %v6683_v10, %v6682_v52  ;;  %v3894_v12 = vsel %vm8334_vm5, %v3892_v0, %v3893_v27  ;;  %v3789_v40 = vld [vmem:[%s8607_s11 + $0xc] sm:$0xe]  ;;  %v3792_v0 = vld [vmem:[%s8607_s11 + $0x18] sm:$0xe] }
 0x126   : > { %2715 = vmatmul.mubr.bf16.gmra.mrb[120].mxu1 %v8567_v4  ;;  %v6320_v15 = vrot.slane %v3789_v40, 9 }
 0x127   : > { %2722 = vmatprep.mubr.bf16.mxu1 %v8139_v53  ;;  %v3891_v53 = vsel %vm8334_vm5, %v6319_v50, %v3890_v19  ;;  %v3899_v19 = vrot.slane %v3897_v58, 4 }
 0x128   : > { %7580 = vmatmul.mubr.bf16.gmra.mrb[124].mxu0 %v6210_v8  ;;  %v6335_v10 = vcombine.low %v3891_v53, %v3894_v12  ;;  %v3793_v8 = vld [vmem:[%s8607_s11 + $0x1c] sm:$0xf] }
 0x129   : > { %v6637_v41 = vpop.f32.mrb[20].mxu0  ;;  %v6685_v55 = vpop.f32.mrb[20].mxu1  ;;  %5053 = vmatprep.mubr.bf16.mxu0 %v8877_v24  ;;  %v3901_v27 = vsel %vm8334_vm5, %v3899_v19, %v3900_v45 }
 0x12a   : > { %v6638_v54 = vpop.f32.mrb[21].mxu0  ;;  %v6686_v4 = vpop.f32.mrb[21].mxu1 }
 0x12b   : > { %v8880_v43 = vadd.f32 %v6638_v54, %v6637_v41  ;;  %v6640_v44 = vpop.f32.mrb[22].mxu0  ;;  %v8889_v5 = vadd.f32 %v6686_v4, %v6685_v55  ;;  %v6688_v13 = vpop.f32.mrb[22].mxu1  ;;  %v3904_v54 = vrot.slane %v3793_v8, 5  ;;  %v7881_v4 = vld [vmem:[%s10365_s3 + $0x1d0] sm:$0xff]  }
 0x12c   : > { %v6641_v46 = vpop.f32.mrb[23].mxu0  ;;  %v6689_v60 = vpop.f32.mrb[23].mxu1 }
 0x12d   : > { %v8887_v47 = vadd.f32 %v6641_v46, %v6640_v44  ;;  %10406 = vst [vmem:[#allocation6_spill] sm:$0xff] %v8889_v5  ;;  %v8894_v52 = vadd.f32 %v6689_v60, %v6688_v13  ;;  %v3794_v46 = vld [vmem:[%s8607_s11 + $0x20] sm:$0x1]  ;;  %v6321_v60 = vrot.slane %v3792_v0, 9 }
 0x12e   : > { %2723 = vmatmul.mubr.bf16.gmra.mrb[124].mxu1 %v8583_v21  ;;  %v7875_v21 = vld [vmem:[%s10365_s3 + $0x1c8] sm:$0xff]   ;;  %v3907_v19 = vrot.slane %v3794_v46, 5 }
 0x12f   : > { %10407 = vst [vmem:[#allocation7_spill] sm:$0xff] %v8894_v52  ;;  %2730 = vmatprep.mubr.bf16.mxu1 %v8176_v39  ;;  %v3898_v39 = vsel %vm8334_vm5, %v6320_v15, %v3897_v58  ;;  %v7871_v58 = vld [vmem:[%s8607_s11 + $0x24] sm:$0xff]   ;;  %v3906_v15 = vrot.slane %v3904_v54, 4  ;;  %v3905_v0 = vsel %vm8334_vm5, %v6321_v60, %v3904_v54 }
 0x130   : > { %5054 = vmatmul.mubr.bf16.vlgmr.msra.gmra.mrb[128].mxu0 %v6335_v10  ;;  %v8922_v40 = vcombine.low %v3898_v39, %v3901_v27 }
 0x131   : > { %v6643_v50 = vpop.f32.mrb[24].mxu0  ;;  %5061 = vmatprep.mubr.bf16.mxu0 %v7868_v3  ;;  %7400 = vmatpush3.bf16.msra.mxu0 %v7870_v32  ;;  %v6691_v53 = vpop.f32.mrb[24].mxu1  ;;  %v7888_v32 = vld [vmem:[%s10365_s3 + $0x1d8] sm:$0xff]   ;;  %v3908_v39 = vsel %vm8334_vm5, %v3906_v15, %v3907_v19  ;;  %v7901_v19 = vld [vmem:[%s10365_s3 + $0x1e8] sm:$0xff]  }
 0x132   : > { %v6644_v41 = vpop.f32.mrb[25].mxu0  ;;  %7401 = vmatprep.subr.bf16.mxu0 %v7875_v21  ;;  %v6692_v13 = vpop.f32.mrb[25].mxu1  ;;  %10408 = vst [vmem:[#allocation8_spill] sm:$0xff] %v8922_v40  ;;  %v3795_v21 = vld [vmem:[%s8607_s11 + $0x24] sm:$0xe]  ;;  %v8953_v54 = vcombine.low %v3905_v0, %v3908_v39 }
 0x133   : > { %v8913_v44 = vadd.f32 %v6644_v41, %v6643_v50  ;;  %v6646_v55 = vpop.f32.mrb[26].mxu0  ;;  %v8926_v10 = vadd.f32 %v6692_v13, %v6691_v53  ;;  %v6694_v3 = vpop.f32.mrb[26].mxu1  ;;  %v3797_v50 = vld [vmem:[%s8607_s11 + $0x2c] sm:$0x1]  ;;  %v7889_v41 = vld [vmem:[%s10365_s3 + $0x198] sm:$0xff]   ;;  %v6322_v13 = vrot.slane %v3795_v21, 9 }
 0x134   : > { %v6647_v12 = vpop.f32.mrb[27].mxu0  ;;  %v6695_v45 = vpop.f32.mrb[27].mxu1  ;;  %10411 = vst [vmem:[#allocation11_spill] sm:$0xff] %v8953_v54  ;;  %v3800_v0 = vld [vmem:[%s8607_s11 + $0x38] sm:$0x1] }
 0x135   : > { %v8924_v42 = vadd.f32 %v6647_v12, %v6646_v55  ;;  %10409 = vst [vmem:[#allocation9_spill] sm:$0xff] %v8926_v10  ;;  %7402 = vmatpush3.bf16.msra.mxu0 %v7876_v34  ;;  %v8935_v8 = vadd.f32 %v6695_v45, %v6694_v3  ;;  %v3799_v34 = vld [vmem:[%s8607_s11 + $0x34] sm:$0xf]  ;;  %v7895_v55 = vld [vmem:[%s10365_s3 + $0x1e0] sm:$0xff]   ;;  %v3914_v3 = vrot.slane %v3797_v50, 5 }
 0x136   : > { %2731 = vmatmul.mubr.bf16.gmra.mrb[128].mxu1 %v8599_v38  ;;  %v7882_v38 = vld [vmem:[%s10365_s3 + $0x190] sm:$0xff]   ;;  %7403 = vmatprep.subr.bf16.mxu0 %v7881_v4  ;;  %v3805_v10 = vld [vmem:[%s8607_s11 + $0x4c] sm:$0xf] }
 0x137   : > { %2738 = vmatprep.mubr.bf16.mxu1 %v8213_v25  ;;  %v3796_v25 = vld [vmem:[%s8607_s11 + $0x28] sm:$0xf]  ;;  %10410 = vst [vmem:[#allocation10_spill] sm:$0xff] %v8935_v8 }
 0x138   : > { %5062 = vmatmul.mubr.bf16.gmra.mrb[132].mxu0 %v8922_v40  ;;  %v3911_v27 = vrot.slane %v3796_v25, 5  ;;  %v3798_v25 = vld [vmem:[%s8607_s11 + $0x30] sm:$0xe] }
 0x139   : > { %5069 = vmatprep.mubr.bf16.mxu0 %v7871_v58  ;;  %7404 = vmatpush3.bf16.msra.mxu0 %v7882_v38  ;;  %v6649_v46 = vpop.f32.mrb[28].mxu0  ;;  %v7874_v58 = vld [vmem:[%s8607_s11 + $0x30] sm:$0xff]   ;;  %v6697_v15 = vpop.f32.mrb[28].mxu1 }
 0x13a   : > { %7405 = vmatprep.subr.bf16.mxu0 %v7888_v32  ;;  %v6650_v4 = vpop.f32.mrb[29].mxu0  ;;  %v3913_v60 = vrot.slane %v3911_v27, 4  ;;  %v6698_v38 = vpop.f32.mrb[29].mxu1  ;;  %v3918_v32 = vrot.slane %v3799_v34, 5  ;;  %v7902_v34 = vld [vmem:[%s10365_s3 + $0x1a8] sm:$0xff]  }
 0x13b   : > { %v8955_v53 = vadd.f32 %v6650_v4, %v6649_v46  ;;  %v6652_v12 = vpop.f32.mrb[30].mxu0  ;;  %v8967_v21 = vadd.f32 %v6698_v38, %v6697_v15  ;;  %v6700_v50 = vpop.f32.mrb[30].mxu1  ;;  %v3802_v46 = vld [vmem:[%s8607_s11 + $0x40] sm:$0xf]  ;;  %v3801_v15 = vld [vmem:[%s8607_s11 + $0x3c] sm:$0xe] }
 0x13c   : > { %v6701_v39 = vpop.f32.mrb[31].mxu1  ;;  %v516_v38 = vld [vmem:[%s8047_s20 + $0xcc] sm:$0xf] }
 0x13d   : > { %7406 = vmatpush3.bf16.msra.mxu0 %v7889_v41  ;;  %10412 = vst [vmem:[#allocation12_spill] sm:$0xff] %v8967_v21  ;;  %v3912_v41 = vsel %vm8334_vm5, %v6322_v13, %v3911_v27  ;;  %v8979_v4 = vadd.f32 %v6701_v39, %v6700_v50  ;;  %v7907_v27 = vld [vmem:[%s10365_s3 + $0x1f0] sm:$0xff]   ;;  %v3920_v13 = vrot.slane %v3918_v32, 4  ;;  %v7877_v50 = vld [vmem:[%s8607_s11 + $0x3c] sm:$0xff]   ;;  %v3803_v39 = vld [vmem:[%s8607_s11 + $0x44] sm:$0x1] }
 0x13e   : > { %2739 = vmatmul.mubr.bf16.gmra.mrb[132].mxu1 %v8622_v59  ;;  %v7896_v59 = vld [vmem:[%s10365_s3 + $0x1a0] sm:$0xff]   ;;  %7407 = vmatprep.subr.bf16.mxu0 %v7895_v55  ;;  %v3915_v55 = vsel %vm8334_vm5, %v3913_v60, %v3914_v3  ;;  %v3921_v60 = vrot.slane %v3800_v0, 5  ;;  %v3928_v8 = vrot.slane %v3803_v39, 5  ;;  %v7880_v39 = vld [vmem:[%s8607_s11 + $0x48] sm:$0xff]  }
 0x13f   : > { %2746 = vmatprep.mubr.bf16.mxu1 %v8250_v16  ;;  %v6653_v16 = vpop.f32.mrb[31].mxu0  ;;  %10413 = vst [vmem:[#allocation13_spill] sm:$0xff] %v8979_v4 }
 0x140   : > { %v8964_v45 = vadd.f32 %v6653_v16, %v6652_v12  ;;  %5070 = vmatmul.mubr.bf16.gmra.mrb[136].mxu0 %v8953_v54  ;;  %v6323_v12 = vrot.slane %v3798_v25, 9  ;;  %v3925_v16 = vrot.slane %v3802_v46, 5 }
 0x141   : > { %5077 = vmatprep.mubr.bf16.mxu0 %v7874_v58  ;;  %7408 = vmatpush3.bf16.msra.mxu0 %v7896_v59  ;;  %v6831_v58 = vpop.f32.mrb[32].mxu0  ;;  %v8986_v59 = vcombine.low %v3912_v41, %v3915_v55  ;;  %v6719_v54 = vpop.f32.mrb[32].mxu1  ;;  %v7913_v41 = vld [vmem:[%s10365_s3 + $0x1f8] sm:$0xff]  }
 0x142   : > { %7409 = vmatprep.subr.bf16.mxu0 %v7901_v19  ;;  %v6832_v3 = vpop.f32.mrb[33].mxu0  ;;  %v3919_v40 = vsel %vm8334_vm5, %v6323_v12, %v3918_v32  ;;  %v6720_v55 = vpop.f32.mrb[33].mxu1  ;;  %v3922_v32 = vsel %vm8334_vm5, %v3920_v13, %v3921_v60  ;;  %v3927_v12 = vrot.slane %v3925_v16, 4  ;;  %v7917_v13 = vld [vmem:[%s10365_s3 + $0x200] sm:$0xff]  }
 0x143   : > { %10414 = vst [vmem:[#allocation14_spill] sm:$0xff] %v8986_v59  ;;  %v6833_v25 = vadd.f32 %v6832_v3, %v6831_v58  ;;  %v6834_v19 = vpop.f32.mrb[34].mxu0  ;;  %v6324_v58 = vrot.slane %v3801_v15, 9  ;;  %v1034_v3 = vshll.u32 %v516_v38, 16  ;;  %v6721_v4 = vadd.f32 %v6720_v55, %v6719_v54  ;;  %v6722_v21 = vpop.f32.mrb[34].mxu1  ;;  %v7914_v15 = vld [vmem:[%s10365_s3 + $0x1b8] sm:$0xff]  }
 0x144   : > { %v6835_v0 = vpop.f32.mrb[35].mxu0  ;;  %v9027_v55 = vld [vmem:[%s8607_s11 + $0x58] sm:$0xf] }
 0x145   : > { %7410 = vmatpush3.bf16.msra.mxu0 %v7902_v34  ;;  %v6836_v46 = vadd.f32 %v6835_v0, %v6834_v19  ;;  %v1031_v34 = vshrl.u32 %v516_v38, 16  ;;  %v2347_v54 = vadd.f32 %v6721_v4, %v8732_v22  ;;  %v3804_v19 = vld [vmem:[%s8607_s11 + $0x48] sm:$0xe] }
 0x146   : > { %2747 = vmatmul.mubr.bf16.gmra.mrb[136].mxu1 %v8638_v17  ;;  %v7908_v17 = vld [vmem:[%s10365_s3 + $0x1b0] sm:$0xff]   ;;  %7411 = vmatprep.subr.bf16.mxu0 %v7907_v27  ;;  %v6723_v27 = vpop.f32.mrb[35].mxu1 }
 0x147   : > { %2754 = vmatprep.mubr.bf16.mxu1 %v8287_v9  ;;  %v517_v9 = vld [vmem:[%s8047_s20 + $0xd0] sm:$0xf]  ;;  %v6724_v38 = vadd.f32 %v6723_v27, %v6722_v21  ;;  %v1033_v22 = vrot.slane %v1031_v34, 4  ;;  %v1036_v21 = vrot.slane %v1034_v3, 5  ;;  %v9020_v0 = vadd.f32 %v6833_v25, %v2347_v54  ;;  %v3180_v54 = vld [vmem:[%s8607_s11] sm:$0xf] }
 0x148   : > { %5078 = vmatmul.mubr.bf16.gmra.mrb[140].mxu0 %v8986_v59  ;;  %v1040_v52 = vshll.u32 %v517_v9, 16  ;;  %v1044_v5 = vshrl.u32 %v517_v9, 16 }
 0x149   : > { %5085 = vmatprep.mubr.bf16.mxu0 %v7877_v50  ;;  %7412 = vmatpush3.bf16.msra.mxu0 %v7908_v17  ;;  %v6837_v60 = vpop.f32.mrb[36].mxu0  ;;  %v9014_v50 = vcombine.low %v3919_v40, %v3922_v32  ;;  %v3926_v17 = vsel %vm8334_vm5, %v6324_v58, %v3925_v16  ;;  %v2350_v4 = vadd.f32 %v6724_v38, %v8742_v33  ;;  %v518_v40 = vld [vmem:[%s8047_s20 + $0xd4] sm:$0x1]  ;;  %v3806_v16 = vld [vmem:[%s8607_s11 + $0x50] sm:$0x1]  ;;  %v6325_v58 = vrot.slane %v3804_v19, 9 }
 0x14a   : > { %7413 = vmatprep.subr.bf16.mxu0 %v7913_v41  ;;  %10416 = vst [vmem:[#allocation16_spill] sm:$0xff] %v9020_v0  ;;  %v6838_v9 = vpop.f32.mrb[37].mxu0  ;;  %v3932_v41 = vrot.slane %v3805_v10, 5  ;;  %v9030_v34 = vrot.slane %v1040_v52, 5  ;;  %v1046_v33 = vrot.slane %v1044_v5, 4  ;;  %v6725_v3 = vpop.f32.mrb[36].mxu1 }
 0x14b   : > { %10415 = vst [vmem:[#allocation15_spill] sm:$0xff] %v9014_v50  ;;  %v6839_v32 = vadd.f32 %v6838_v9, %v6837_v60  ;;  %v6840_v27 = vpop.f32.mrb[38].mxu0  ;;  %v9032_v25 = vadd.f32 %v6836_v46, %v2350_v4  ;;  %v6726_v10 = vpop.f32.mrb[37].mxu1  ;;  %v1050_v38 = vshll.u32 %v518_v40, 16  ;;  %v3939_v60 = vrot.slane %v9027_v55, 5 }
 0x14c   : > { %v3181_v9 = vld [vmem:[%s8607_s11 + $0x4] sm:$0xf]  ;;  %v6727_v19 = vadd.f32 %v6726_v10, %v6725_v3  ;;  %v6728_v52 = vpop.f32.mrb[38].mxu1  ;;  %v3934_v46 = vrot.slane %v3932_v41, 4  ;;  %v3807_v4 = vld [vmem:[%s8607_s11 + $0x54] sm:$0xe] }
 0x14d   : > { %7414 = vmatpush3.bf16.msra.mxu0 %v7914_v15  ;;  %10417 = vst [vmem:[#allocation17_spill] sm:$0xff] %v9032_v25  ;;  %v3935_v15 = vrot.slane %v3806_v16, 5  ;;  %v6729_v59 = vpop.f32.mrb[39].mxu1  ;;  %v3235_v40 = vshrl.u32 %v3180_v54, 16  ;;  %v3238_v55 = vshll.u32 %v3180_v54, 16  ;;  %v9050_v10 = vrot.slane %v1050_v38, 5 }
 0x14e   : > { %2755 = vmatmul.mubr.bf16.gmra.mrb[140].mxu1 %v8656_v29  ;;  %v3929_v29 = vsel %vm8334_vm5, %v3927_v12, %v3928_v8  ;;  %7583 = vmatprep.subr.bf16.mxu0 %v7917_v13  ;;  %v1037_v12 = vor.u32 %v1036_v21, %v1033_v22  ;;  %v3933_v13 = vsel %vm8334_vm5, %v6325_v58, %v3932_v41  ;;  %v3809_v21 = vld [vmem:[%s8607_s11 + $0x5c] sm:$0x1]  ;;  %v6326_v41 = vrot.slane %v3807_v4, 9  ;;  %v9063_v25 = vld [vmem:[%s8607_s11 + $0x64] sm:$0xf] }
 0x14f   : > { %2762 = vmatprep.mubr.bf16.mxu1 %v8324_v7  ;;  %v6841_v7 = vpop.f32.mrb[39].mxu0  ;;  %v9038_v5 = vcombine.low %v3926_v17, %v3929_v29  ;;  %v1047_v22 = vor.u32 %v1046_v33, %v9030_v34  ;;  %v6730_v3 = vadd.f32 %v6729_v59, %v6728_v52  ;;  %v3244_v17 = vshll.u32 %v3181_v9, 16 }
 0x150   : > { %v6842_v8 = vadd.f32 %v6841_v7, %v6840_v27  ;;  %5086 = vmatmul.mubr.bf16.gmra.mrb[144].mxu0 %v9014_v50  ;;  %v2355_v27 = vadd.f32 %v6727_v19, %v8763_v61  ;;  %v3248_v29 = vshrl.u32 %v3181_v9, 16  ;;  %v7883_v7 = vld [vmem:[%s8607_s11 + $0x54] sm:$0xff]   ;;  %v3941_v58 = vrot.slane %v3939_v60, 4  ;;  %v3182_v9 = vld [vmem:[%s8607_s11 + $0x8] sm:$0x1] }
 0x151   : > { %10418 = vst [vmem:[#allocation18_spill] sm:$0xff] %v9038_v5  ;;  %5093 = vmatprep.mubr.bf16.mxu0 %v7880_v39  ;;  %v6843_v16 = vpop.f32.mrb[40].mxu0  ;;  %v9048_v39 = vrot.slane %v1037_v12, 4  ;;  %v2358_v33 = vadd.f32 %v6730_v3, %v8776_v30  ;;  %v3942_v59 = vrot.slane %v3809_v21, 5  ;;  %v3183_v12 = vld [vmem:[%s8607_s11 + $0xc] sm:$0xf] }
 0x152   : > { %v9053_v54 = vadd.f32 %v6839_v32, %v2355_v27  ;;  %v6844_v61 = vpop.f32.mrb[41].mxu0  ;;  %v9060_v52 = vrot.slane %v1047_v22, 4  ;;  %v3237_v4 = vrot.slane %v3235_v40, 4  ;;  %v3240_v50 = vrot.slane %v3238_v55, 5  ;;  %v6731_v32 = vpop.f32.mrb[40].mxu1 }
 0x153   : > { %v6845_v19 = vadd.f32 %v6844_v61, %v6843_v16  ;;  %v6846_v38 = vpop.f32.mrb[42].mxu0  ;;  %v9065_v30 = vadd.f32 %v6842_v8, %v2358_v33  ;;  %v3250_v3 = vrot.slane %v3248_v29, 4  ;;  %v3254_v21 = vshll.u32 %v3182_v9, 16  ;;  %v3810_v9 = vld [vmem:[%s8607_s11 + $0x60] sm:$0xe] }
 0x154   : > { %10419 = vst [vmem:[#allocation19_spill] sm:$0xff] %v9053_v54  ;;  %v6847_v27 = vpop.f32.mrb[43].mxu0  ;;  %v3184_v54 = vld [vmem:[%s8607_s11 + $0x10] sm:$0xf]  ;;  %v3259_v16 = vshrl.u32 %v3183_v12, 16  ;;  %v3262_v61 = vshll.u32 %v3183_v12, 16  ;;  %v1043_v40 = vsel %vm8072_vm2, %v9048_v39, %v9030_v34  ;;  %v3940_v29 = vsel %vm8334_vm5, %v6326_v41, %v3939_v60 }
 0x155   : > { %v3946_v55 = vrot.slane %v9063_v25, 5  ;;  %v3943_v33 = vsel %vm8334_vm5, %v3941_v58, %v3942_v59  ;;  %v3268_v12 = vshll.u32 %v3184_v54, 16  ;;  %v3812_v39 = vld [vmem:[%s8607_s11 + $0x68] sm:$0x1]  ;;  %v7945_v25 = vld [vmem:[%s8047_s20 + $0xb4] sm:$0xff]   ;;  %v1053_v60 = vsel %vm8072_vm2, %v9060_v52, %v9050_v10  ;;  %v7886_v59 = vld [vmem:[%s8607_s11 + $0x60] sm:$0xff]  }
 0x156   : > { %2763 = vmatmul.mubr.bf16.gmra.mrb[144].mxu1 %v8672_v37  ;;  %v3936_v37 = vsel %vm8334_vm5, %v3934_v46, %v3935_v15  ;;  %v6732_v46 = vpop.f32.mrb[41].mxu1  ;;  %v6848_v15 = vadd.f32 %v6847_v27, %v6846_v38  ;;  %v3272_v38 = vshrl.u32 %v3184_v54, 16  ;;  %v9091_v41 = vrot.slane %v3254_v21, 5 }
 0x157   : > { %2770 = vmatprep.mubr.bf16.mxu1 %v8372_v2  ;;  %v9067_v2 = vrot.slane %v3244_v17, 5  ;;  %v6733_v22 = vadd.f32 %v6732_v46, %v6731_v32  ;;  %v6734_v0 = vpop.f32.mrb[42].mxu1  ;;  %v9071_v8 = vcombine.low %v3933_v13, %v3936_v37  ;;  %v3241_v32 = vor.u32 %v3240_v50, %v3237_v4 }
 0x158   : > { %5094 = vmatmul.mubr.bf16.gmra.mrb[148].mxu0 %v9038_v5  ;;  %v6735_v17 = vpop.f32.mrb[43].mxu1  ;;  %v3261_v58 = vrot.slane %v3259_v16, 4  ;;  %v3264_v54 = vrot.slane %v3262_v61, 5  ;;  %v6327_v4 = vrot.slane %v3810_v9, 9  ;;  %v3948_v27 = vrot.slane %v3946_v55, 4 }
 0x159   : > { %10420 = vst [vmem:[#allocation20_spill] sm:$0xff] %v9071_v8  ;;  %5101 = vmatprep.mubr.bf16.mxu0 %v7883_v7  ;;  %v2363_v13 = vadd.f32 %v6733_v22, %v8802_v28  ;;  %v6736_v37 = vadd.f32 %v6735_v17, %v6734_v0  ;;  %v3251_v34 = vor.u32 %v3250_v3, %v9067_v2  ;;  %v6849_v7 = vpop.f32.mrb[44].mxu0  ;;  %v3949_v10 = vrot.slane %v3812_v39, 5  ;;  %v3186_v16 = vld [vmem:[%s8607_s11 + $0x18] sm:$0xf] }
 0x15a   : > { %v6850_v50 = vpop.f32.mrb[45].mxu0  ;;  %v9098_v52 = vrot.slane %v3268_v12, 5  ;;  %v3274_v21 = vrot.slane %v3272_v38, 4  ;;  %v3242_v22 = vrot.slane %v3241_v32, 4  ;;  %v9104_v9 = vcombine.low %v3940_v29, %v3943_v33  ;;  %v3187_v38 = vld [vmem:[%s8607_s11 + $0x1c] sm:$0xf] }
 0x15b   : > { %v2366_v28 = vadd.f32 %v6736_v37, %v8811_v48  ;;  %v9094_v0 = vadd.f32 %v6845_v19, %v2363_v13  ;;  %v6851_v3 = vadd.f32 %v6850_v50, %v6849_v7  ;;  %v6852_v46 = vpop.f32.mrb[46].mxu0  ;;  %v6737_v48 = vpop.f32.mrb[44].mxu1  ;;  %v3252_v17 = vrot.slane %v3251_v34, 4  ;;  %v3185_v13 = vld [vmem:[%s8607_s11 + $0x14] sm:$0x1] }
 0x15c   : > { %v6853_v19 = vpop.f32.mrb[47].mxu0  ;;  %10421 = vst [vmem:[#allocation21_spill] sm:$0xff] %v9104_v9  ;;  %v9107_v7 = vld [vmem:[%s8607_s11 + $0x70] sm:$0xf]  ;;  %v3286_v32 = vshll.u32 %v3186_v16, 16  ;;  %v3947_v29 = vsel %vm8334_vm5, %v6327_v4, %v3946_v55  ;;  %v3950_v33 = vsel %vm8334_vm5, %v3948_v27, %v3949_v10  ;;  %v7946_v4 = vld [vmem:[%s8047_s20 + $0xc0] sm:$0xff]  }
 0x15d   : > { %v9101_v61 = vadd.f32 %v6848_v15, %v2366_v28  ;;  %v6854_v37 = vadd.f32 %v6853_v19, %v6852_v46  ;;  %v6174_v15 = vcombine.low %v1043_v40, %v1053_v60  ;;  %v3283_v28 = vshrl.u32 %v3186_v16, 16  ;;  %v3815_v55 = vld [vmem:[%s8607_s11 + $0x74] sm:$0x1] }
 0x15e   : > { %2771 = vmatmul.mubr.bf16.gmra.mrb[148].mxu1 %v7945_v25  ;;  %v3265_v25 = vor.u32 %v3264_v54, %v3261_v58  ;;  %v3275_v58 = vor.u32 %v3274_v21, %v9098_v52  ;;  %v3278_v54 = vshll.u32 %v3185_v13, 16  ;;  %v3247_v40 = vsel %vm8072_vm2, %v3242_v22, %v9067_v2 }
 0x15f   : > { %2778 = vmatprep.mubr.bf16.mxu1 %v8696_v56  ;;  %v6738_v56 = vpop.f32.mrb[45].mxu1  ;;  %v3257_v60 = vsel %vm8072_vm2, %v3252_v17, %v9091_v41  ;;  %v3292_v21 = vshll.u32 %v3187_v38, 16  ;;  %v3296_v16 = vshrl.u32 %v3187_v38, 16  ;;  %v7890_v41 = vld [vmem:[%s8607_s11 + $0x6c] sm:$0xff]   ;;  %v3285_v22 = vrot.slane %v3283_v28, 4 }
 0x160   : > { %v6739_v39 = vadd.f32 %v6738_v56, %v6737_v48  ;;  %v6740_v12 = vpop.f32.mrb[46].mxu1  ;;  %5102 = vmatmul.mubr.bf16.gmra.mrb[152].mxu0 %v9071_v8  ;;  %v9126_v10 = vrot.slane %v3265_v25, 4  ;;  %v3288_v17 = vrot.slane %v3286_v32, 5  ;;  %v9133_v25 = vrot.slane %v3275_v58, 4 }
 0x161   : > { %v6741_v34 = vpop.f32.mrb[47].mxu1  ;;  %5109 = vmatprep.mubr.bf16.mxu0 %v7886_v59  ;;  %v3813_v59 = vld [vmem:[%s8607_s11 + $0x6c] sm:$0xe]  ;;  %v6855_v27 = vpop.f32.mrb[48].mxu0  ;;  %v9143_v28 = vcombine.low %v3947_v29, %v3950_v33  ;;  %v3956_v32 = vrot.slane %v3815_v55, 5 }
 0x162   : > { %v2371_v50 = vadd.f32 %v6739_v39, %v8840_v49  ;;  %v6742_v46 = vadd.f32 %v6741_v34, %v6740_v12  ;;  %v3953_v49 = vrot.slane %v9107_v7, 5  ;;  %v6856_v19 = vpop.f32.mrb[49].mxu0  ;;  %v9135_v39 = vrot.slane %v3278_v54, 5  ;;  %v9138_v12 = vld [vmem:[%s8607_s11 + $0x7c] sm:$0xf] }
 0x163   : > { %v6857_v13 = vadd.f32 %v6856_v19, %v6855_v27  ;;  %v6858_v56 = vpop.f32.mrb[50].mxu0  ;;  %v6328_v7 = vrot.slane %v3813_v59, 9  ;;  %v6301_v34 = vcombine.low %v3247_v40, %v3257_v60  ;;  %10422 = vst [vmem:[#allocation22_spill] sm:$0xff] %v9143_v28  ;;  %v3298_v59 = vrot.slane %v3296_v16, 4  ;;  %v3190_v27 = vld [vmem:[%s8607_s11 + $0x28] sm:$0xf] }
 0x164   : > { %v2374_v48 = vadd.f32 %v6742_v46, %v8843_v26  ;;  %v9130_v2 = vadd.f32 %v6851_v3, %v2371_v50  ;;  %v6743_v3 = vpop.f32.mrb[48].mxu1  ;;  %v6859_v38 = vpop.f32.mrb[51].mxu0  ;;  %v3189_v50 = vld [vmem:[%s8607_s11 + $0x24] sm:$0xf]  ;;  %v3955_v54 = vrot.slane %v3953_v49, 4  ;;  %v3271_v29 = vsel %vm8072_vm2, %v9126_v10, %v9098_v52 }
 0x165   : > { %v6744_v58 = vpop.f32.mrb[49].mxu1  ;;  %v6860_v46 = vadd.f32 %v6859_v38, %v6858_v56  ;;  %v3188_v33 = vld [vmem:[%s8607_s11 + $0x20] sm:$0x1]  ;;  %v3289_v40 = vor.u32 %v3288_v17, %v3285_v22  ;;  %v3816_v60 = vld [vmem:[%s8607_s11 + $0x78] sm:$0xe]  ;;  %v3960_v55 = vrot.slane %v9138_v12, 5  ;;  %v3954_v16 = vsel %vm8334_vm5, %v6328_v7, %v3953_v49 }
 0x166   : > { %2779 = vmatmul.mubr.bf16.gmra.mrb[152].mxu1 %v7946_v4  ;;  %v9140_v26 = vadd.f32 %v6854_v37, %v2374_v48  ;;  %v9146_v4 = vrot.slane %v3292_v21, 5  ;;  %v6745_v19 = vadd.f32 %v6744_v58, %v6743_v3  ;;  %v6746_v37 = vpop.f32.mrb[50].mxu1  ;;  %v3281_v21 = vsel %vm8072_vm2, %v9133_v25, %v9135_v39  ;;  %v3818_v22 = vld [vmem:[%s8607_s11 + $0x80] sm:$0x1]  ;;  %v7894_v58 = vld [vmem:[%s8607_s11 + $0x78] sm:$0xff]  }
 0x167   : > { %2786 = vmatprep.mubr.bf16.mxu1 %v6174_v15  ;;  %v7887_v15 = vld [vmem:[%s8047_s20 + $0xcc] sm:$0xff]   ;;  %v6747_v48 = vpop.f32.mrb[51].mxu1  ;;  %v3307_v56 = vshrl.u32 %v3189_v50, 16  ;;  %v3310_v3 = vshll.u32 %v3189_v50, 16  ;;  %v3316_v17 = vshll.u32 %v3190_v27, 16  ;;  %v3320_v12 = vshrl.u32 %v3190_v27, 16 }
 0x168   : > { %5110 = vmatmul.mubr.bf16.gmra.mrb[156].mxu0 %v9104_v9  ;;  %v2379_v52 = vadd.f32 %v6745_v19, %v8857_v51  ;;  %v6748_v10 = vadd.f32 %v6747_v48, %v6746_v37  ;;  %v3957_v38 = vsel %vm8334_vm5, %v3955_v54, %v3956_v32  ;;  %v3299_v25 = vor.u32 %v3298_v59, %v9146_v4  ;;  %v3191_v27 = vld [vmem:[%s8607_s11 + $0x2c] sm:$0x1] }
 0x169   : > { %5117 = vmatprep.mubr.bf16.mxu0 %v7890_v41  ;;  %v6861_v41 = vpop.f32.mrb[52].mxu0  ;;  %v3302_v39 = vshll.u32 %v3188_v33, 16  ;;  %v6329_v49 = vrot.slane %v3816_v60, 9  ;;  %v9172_v19 = vrot.slane %v3289_v40, 4  ;;  %v3963_v32 = vrot.slane %v3818_v22, 5 }
 0x16a   : > { %v2382_v7 = vadd.f32 %v6748_v10, %v8859_v20  ;;  %v9169_v50 = vadd.f32 %v6857_v13, %v2379_v52  ;;  %v6862_v51 = vpop.f32.mrb[53].mxu0  ;;  %v3309_v54 = vrot.slane %v3307_v56, 4  ;;  %v3312_v59 = vrot.slane %v3310_v3, 5  ;;  %v9176_v33 = vld [vmem:[%s8607_s11 + $0x88] sm:$0xf]  ;;  %v6749_v20 = vpop.f32.mrb[52].mxu1 }
 0x16b   : > { %v6863_v37 = vadd.f32 %v6862_v51, %v6861_v41  ;;  %v6864_v48 = vpop.f32.mrb[54].mxu0  ;;  %v7891_v52 = vld [vmem:[%s8607_s11] sm:$0xff]   ;;  %v3322_v40 = vrot.slane %v3320_v12, 4  ;;  %v6750_v10 = vpop.f32.mrb[53].mxu1  ;;  %v9183_v8 = vrot.slane %v3299_v25, 4  ;;  %v9185_v41 = vrot.slane %v3302_v39, 5 }
 0x16c   : > { %v9178_v60 = vadd.f32 %v6860_v46, %v2382_v7  ;;  %v6865_v13 = vpop.f32.mrb[55].mxu0  ;;  %v3326_v22 = vshll.u32 %v3191_v27, 16  ;;  %v3192_v56 = vld [vmem:[%s8607_s11 + $0x30] sm:$0xf]  ;;  %v6751_v3 = vadd.f32 %v6750_v10, %v6749_v20  ;;  %v6752_v51 = vpop.f32.mrb[54].mxu1  ;;  %v7893_v46 = vld [vmem:[%s10365_s3 + $0x100] sm:$0xff]   ;;  %v9194_v12 = vcombine.low %v3954_v16, %v3957_v38 }
 0x16d   : > { %v6866_v9 = vadd.f32 %v6865_v13, %v6864_v48  ;;  %v9197_v25 = vld [vmem:[%s8607_s11 + $0x84] sm:$0xe]  ;;  %v3967_v39 = vrot.slane %v9176_v33, 5  ;;  %v6753_v7 = vpop.f32.mrb[55].mxu1  ;;  %v3295_v27 = vsel %vm8072_vm2, %v9172_v19, %v9146_v4  ;;  %v3961_v48 = vsel %vm8334_vm5, %v6329_v49, %v3960_v55  ;;  %v3193_v38 = vld [vmem:[%s8607_s11 + $0x34] sm:$0xf] }
 0x16e   : > { %2787 = vmatmul.mubr.bf16.gmra.mrb[156].mxu1 %v7887_v15  ;;  %v3962_v15 = vrot.slane %v3960_v55, 4  ;;  %10424 = vst [vmem:[#allocation24_spill] sm:$0xff] %v9194_v12  ;;  %v3313_v16 = vor.u32 %v3312_v59, %v3309_v54  ;;  %v2387_v33 = vadd.f32 %v6751_v3, %v8880_v43  ;;  %v3821_v13 = vld [vmem:[%s8607_s11 + $0x8c] sm:$0x1]  ;;  %v3331_v4 = vshrl.u32 %v3192_v56, 16 }
 0x16f   : > { %4892 = vmatprep.mubr.bf16.mxu1 %v6301_v34  ;;  %v9181_v34 = vrot.slane %v3316_v17, 5  ;;  %v9192_v17 = vcombine.low %v3271_v29, %v3281_v21  ;;  %v7898_v21 = vld [vmem:[%s10365_s3 + $0x148] sm:$0xff]   ;;  %v3305_v55 = vsel %vm8072_vm2, %v9183_v8, %v9185_v41  ;;  %v9219_v49 = vrot.slane %v3326_v22, 5  ;;  %v3195_v10 = vld [vmem:[%s8607_s11 + $0x3c] sm:$0xf] }
 0x170   : > { %5118 = vmatmul.mubr.bf16.gmra.mrb[160].mxu0 %v9143_v28  ;;  %v3964_v29 = vsel %vm8334_vm5, %v3962_v15, %v3963_v32  ;;  %v6330_v15 = vrot.slane %v9197_v25, 9  ;;  %v3334_v32 = vshll.u32 %v3192_v56, 16  ;;  %v9223_v54 = vadd.f32 %v6863_v37, %v2387_v33  ;;  %v7897_v56 = vld [vmem:[%s8607_s11 + $0x84] sm:$0xff]  }
 0x171   : > { %10423 = vst [vmem:[#allocation23_spill] sm:$0xff] %v9192_v17  ;;  %5125 = vmatprep.mubr.bf16.mxu0 %v7894_v58  ;;  %v6754_v58 = vadd.f32 %v6753_v7, %v6752_v51  ;;  %v3323_v20 = vor.u32 %v3322_v40, %v9181_v34  ;;  %v6867_v19 = vpop.f32.mrb[56].mxu0  ;;  %v3969_v40 = vrot.slane %v3967_v39, 4  ;;  %v3340_v8 = vshll.u32 %v3193_v38, 16  ;;  %v7904_v51 = vld [vmem:[%s10365_s3 + $0x150] sm:$0xff]   ;;  %v6755_v25 = vpop.f32.mrb[56].mxu1 }
 0x172   : > { %v6868_v59 = vpop.f32.mrb[57].mxu0  ;;  %v3970_v37 = vrot.slane %v3821_v13, 5  ;;  %v3344_v3 = vshrl.u32 %v3193_v38, 16  ;;  %v3336_v5 = vrot.slane %v3334_v32, 5  ;;  %v3358_v13 = vshll.u32 %v3195_v10, 16 }
 0x173   : > { %v2390_v43 = vadd.f32 %v6754_v58, %v8887_v47  ;;  %v6869_v41 = vadd.f32 %v6868_v59, %v6867_v19  ;;  %v6870_v22 = vpop.f32.mrb[58].mxu0  ;;  %v9231_v47 = vrot.slane %v3313_v16, 4  ;;  %v9238_v33 = vrot.slane %v3323_v20, 4  ;;  %v3194_v58 = vld [vmem:[%s8607_s11 + $0x38] sm:$0x1]  ;;  %v6756_v59 = vpop.f32.mrb[57].mxu1 }
 0x174   : > { %v6871_v7 = vpop.f32.mrb[59].mxu0  ;;  %v3333_v19 = vrot.slane %v3331_v4, 4  ;;  %v3355_v16 = vshrl.u32 %v3195_v10, 16  ;;  %v6757_v38 = vadd.f32 %v6756_v59, %v6755_v25  ;;  %v9249_v20 = vrot.slane %v3340_v8, 5  ;;  %v7905_v4 = vld [vmem:[%s10365_s3 + $0x110] sm:$0xff]   ;;  %v7915_v59 = vld [vmem:[%s10365_s3 + $0x160] sm:$0xff]  }
 0x175   : > { %v6872_v28 = vadd.f32 %v6871_v7, %v6870_v22  ;;  %v3319_v10 = vsel %vm8072_vm2, %v9231_v47, %v9181_v34  ;;  %v3822_v25 = vld [vmem:[%s8607_s11 + $0x90] sm:$0xe] }
 0x176   : > { %4893 = vmatmul.mubr.bf16.vlgmr.msra.gmra.mrb[160].mxu1 %v7891_v52  ;;  %v7899_v52 = vld [vmem:[%s10365_s3 + $0x108] sm:$0xff]   ;;  %v2395_v8 = vadd.f32 %v6757_v38, %v8913_v44  ;;  %v3337_v47 = vor.u32 %v3336_v5, %v3333_v19  ;;  %v9277_v44 = vrot.slane %v3358_v13, 5  ;;  %v7911_v5 = vld [vmem:[%s10365_s3 + $0x118] sm:$0xff]  }
 0x177   : > { %7288 = vmatpush3.bf16.msra.mxu1 %v7893_v46  ;;  %4900 = vmatprep.mubr.bf16.mxu1 %v9192_v17  ;;  %v9236_v46 = vadd.f32 %v6866_v9, %v2390_v43  ;;  %v6758_v17 = vpop.f32.mrb[58].mxu1  ;;  %v9245_v9 = vcombine.low %v3295_v27, %v3305_v55  ;;  %v9247_v43 = vcombine.low %v3961_v48, %v3964_v29  ;;  %v3346_v48 = vrot.slane %v3344_v3, 4  ;;  %v3196_v55 = vld [vmem:[%s8607_s11 + $0x40] sm:$0xf]  ;;  %v3824_v3 = vld [vmem:[%s8607_s11 + $0x98] sm:$0x1] }
 0x178   : > { %7289 = vmatprep.subr.bf16.mxu1 %v7898_v21  ;;  %v9242_v21 = vld [vmem:[%s8607_s11 + $0x94] sm:$0xf]  ;;  %5126 = vmatmul.mubr.bf16.gmra.mrb[164].mxu0 %v9194_v12  ;;  %v6759_v32 = vpop.f32.mrb[59].mxu1  ;;  %v3968_v27 = vsel %vm8334_vm5, %v6330_v15, %v3967_v39  ;;  %v3350_v29 = vshll.u32 %v3194_v58, 16  ;;  %v3329_v15 = vsel %vm8072_vm2, %v9238_v33, %v9219_v49  ;;  %v3368_v7 = vshrl.u32 %v3196_v55, 16 }
 0x179   : > { %10425 = vst [vmem:[#allocation25_spill] sm:$0xff] %v9247_v43  ;;  %5133 = vmatprep.mubr.bf16.mxu0 %v7897_v56  ;;  %v6760_v22 = vadd.f32 %v6759_v32, %v6758_v17  ;;  %v3971_v56 = vsel %vm8334_vm5, %v3969_v40, %v3970_v37  ;;  %v3974_v34 = vrot.slane %v9242_v21, 5  ;;  %v6873_v39 = vpop.f32.mrb[60].mxu0  ;;  %v9280_v40 = vadd.f32 %v6869_v41, %v2395_v8  ;;  %v9287_v58 = vld [vmem:[%s8607_s11 + $0x90] sm:$0xff]   ;;  %v3198_v32 = vld [vmem:[%s8607_s11 + $0x48] sm:$0xf] }
 0x17a   : > { %v6874_v37 = vpop.f32.mrb[61].mxu0  ;;  %v3347_v19 = vor.u32 %v3346_v48, %v9249_v20  ;;  %v6331_v41 = vrot.slane %v3822_v25, 9  ;;  %v9298_v8 = vcombine.low %v3319_v10, %v3329_v15  ;;  %v9306_v25 = vld [vmem:[%s8607_s11 + $0xa0] sm:$0xf]  ;;  %v3199_v10 = vld [vmem:[%s8607_s11 + $0x4c] sm:$0xf] }
 0x17b   : > { %7290 = vmatpush3.bf16.msra.mxu1 %v7899_v52  ;;  %v7910_v52 = vld [vmem:[%s10365_s3 + $0x158] sm:$0xff]   ;;  %v2398_v17 = vadd.f32 %v6760_v22, %v8924_v42  ;;  %v6875_v49 = vadd.f32 %v6874_v37, %v6873_v39  ;;  %v6876_v33 = vpop.f32.mrb[62].mxu0  ;;  %v9290_v42 = vrot.slane %v3350_v29, 5  ;;  %v3976_v38 = vrot.slane %v3974_v34, 4 }
 0x17c   : > { %7291 = vmatprep.subr.bf16.mxu1 %v7904_v51  ;;  %v9275_v51 = vrot.slane %v3355_v16, 4  ;;  %v6761_v16 = vpop.f32.mrb[60].mxu1  ;;  %v6877_v13 = vpop.f32.mrb[63].mxu0  ;;  %v9300_v29 = vcombine.low %v3968_v27, %v3971_v56  ;;  %v9302_v22 = vrot.slane %v3337_v47, 4  ;;  %v3370_v37 = vrot.slane %v3368_v7, 4  ;;  %v7916_v27 = vld [vmem:[%s10365_s3 + $0x120] sm:$0xff]  }
 0x17d   : > { %v9295_v21 = vadd.f32 %v6872_v28, %v2398_v17  ;;  %v6878_v48 = vadd.f32 %v6877_v13, %v6876_v33  ;;  %v3348_v15 = vrot.slane %v3347_v19, 4  ;;  %v3975_v47 = vsel %vm8334_vm5, %v6331_v41, %v3974_v34  ;;  %v9326_v13 = vld [vmem:[%s8607_s11 + $0x18] sm:$0xff]  }
 0x17e   : > { %4901 = vmatmul.mubr.bf16.gmra.mrb[164].mxu1 %v8877_v24  ;;  %v3364_v24 = vshll.u32 %v3196_v55, 16  ;;  %v6762_v55 = vpop.f32.mrb[61].mxu1  ;;  %10427 = vst [vmem:[#allocation27_spill] sm:$0xff] %v9300_v29  ;;  %v3361_v17 = vor.u32 %v9277_v44, %v9275_v51  ;;  %v3379_v33 = vshrl.u32 %v3198_v32, 16  ;;  %v3382_v51 = vshll.u32 %v3198_v32, 16  ;;  %v7918_v44 = vld [vmem:[%s10365_s3 + $0x168] sm:$0xff]  }
 0x17f   : > { %4908 = vmatprep.mubr.bf16.mxu1 %v9245_v9  ;;  %7292 = vmatpush3.bf16.msra.mxu1 %v7905_v4  ;;  %10426 = vst [vmem:[#allocation26_spill] sm:$0xff] %v9295_v21  ;;  %v3977_v4 = vrot.slane %v3824_v3, 5  ;;  %v6763_v39 = vadd.f32 %v6762_v55, %v6761_v16  ;;  %v6764_v28 = vpop.f32.mrb[62].mxu1  ;;  %v3981_v16 = vrot.slane %v9306_v25, 5  ;;  %v3343_v19 = vsel %vm8072_vm2, %v9302_v22, %v9249_v20  ;;  %v3827_v22 = vld [vmem:[%s8607_s11 + $0xa4] sm:$0x1] }
 0x180   : > { %7293 = vmatprep.subr.bf16.mxu1 %v7910_v52  ;;  %v3197_v52 = vld [vmem:[%s8607_s11 + $0x44] sm:$0x1]  ;;  %5134 = vmatmul.mubr.bf16.gmra.mrb[168].mxu0 %v9247_v43  ;;  %v9311_v3 = vrot.slane %v3364_v24, 5  ;;  %v6765_v56 = vpop.f32.mrb[63].mxu1  ;;  %v3392_v32 = vshrl.u32 %v3199_v10, 16 }
 0x181   : > { %5141 = vmatprep.mubr.bf16.mxu0 %v9287_v58  ;;  %v2403_v24 = vadd.f32 %v6763_v39, %v8955_v53  ;;  %v6766_v7 = vadd.f32 %v6765_v56, %v6764_v28  ;;  %v6879_v34 = vpop.f32.mrb[64].mxu0  ;;  %v3978_v41 = vsel %vm8334_vm5, %v3976_v38, %v3977_v4  ;;  %v3825_v53 = vld [vmem:[%s8607_s11 + $0x9c] sm:$0xe]  ;;  %v9343_v28 = vrot.slane %v3361_v17, 4  ;;  %v7919_v38 = vld [vmem:[%s10365_s3 + $0x128] sm:$0xff]   ;;  %v7921_v17 = vld [vmem:[%s10365_s3 + $0x170] sm:$0xff]  }
 0x182   : > { %v6880_v25 = vpop.f32.mrb[65].mxu0  ;;  %v9341_v39 = vld [vmem:[%s8607_s11 + $0x9c] sm:$0xff]   ;;  %v3371_v20 = vor.u32 %v3370_v37, %v9311_v3  ;;  %v3381_v56 = vrot.slane %v3379_v33, 4  ;;  %v3983_v43 = vrot.slane %v3981_v16, 4  ;;  %v3394_v33 = vrot.slane %v3392_v32, 4 }
 0x183   : > { %7294 = vmatpush3.bf16.msra.mxu1 %v7911_v5  ;;  %v3374_v5 = vshll.u32 %v3197_v52, 16  ;;  %v2406_v55 = vadd.f32 %v6766_v7, %v8964_v45  ;;  %v9337_v52 = vadd.f32 %v6875_v49, %v2403_v24  ;;  %v6881_v4 = vadd.f32 %v6880_v25, %v6879_v34  ;;  %v3200_v49 = vld [vmem:[%s8607_s11 + $0x50] sm:$0x1] }
 0x184   : > { %7295 = vmatprep.subr.bf16.mxu1 %v7915_v59  ;;  %v3388_v59 = vshll.u32 %v3199_v10, 16  ;;  %v6882_v10 = vpop.f32.mrb[66].mxu0  ;;  %v3353_v45 = vsel %vm8072_vm2, %v3348_v15, %v9290_v42  ;;  %v3384_v24 = vrot.slane %v3382_v51, 5  ;;  %v6332_v25 = vrot.slane %v3825_v53, 9  ;;  %v9364_v51 = vld [vmem:[%s8607_s11 + $0xac] sm:$0xf] }
 0x185   : > { %10428 = vst [vmem:[#allocation28_spill] sm:$0xff] %v9337_v52  ;;  %v9357_v37 = vadd.f32 %v6878_v48, %v2406_v55  ;;  %v6883_v7 = vpop.f32.mrb[67].mxu0  ;;  %v9359_v34 = vrot.slane %v3374_v5, 5  ;;  %v3984_v15 = vrot.slane %v3827_v22, 5  ;;  %v9367_v48 = vcombine.low %v3343_v19, %v3353_v45  ;;  %v3201_v53 = vld [vmem:[%s8607_s11 + $0x54] sm:$0xf] }
 0x186   : > { %4909 = vmatmul.mubr.bf16.gmra.mrb[168].mxu1 %v9326_v13  ;;  %v6884_v42 = vadd.f32 %v6883_v7, %v6882_v10  ;;  %v9361_v52 = vrot.slane %v3388_v59, 5  ;;  %v3372_v55 = vrot.slane %v3371_v20, 4  ;;  %v3398_v5 = vshll.u32 %v3200_v49, 16  ;;  %v7922_v59 = vld [vmem:[%s10365_s3 + $0x130] sm:$0xff]   ;;  %v7924_v22 = vld [vmem:[%s10365_s3 + $0x178] sm:$0xff]  }
 0x187   : > { %4916 = vmatprep.mubr.bf16.mxu1 %v9298_v8  ;;  %7296 = vmatpush3.bf16.msra.mxu1 %v7916_v27  ;;  %10429 = vst [vmem:[#allocation29_spill] sm:$0xff] %v9357_v37  ;;  %v6767_v27 = vpop.f32.mrb[64].mxu1  ;;  %v3367_v19 = vsel %vm8072_vm2, %v9343_v28, %v9311_v3  ;;  %v3385_v20 = vor.u32 %v3384_v24, %v3381_v56  ;;  %v3202_v49 = vld [vmem:[%s8607_s11 + $0x58] sm:$0xf]  ;;  %v3406_v24 = vshll.u32 %v3201_v53, 16 }
 0x188   : > { %7297 = vmatprep.subr.bf16.mxu1 %v7918_v44  ;;  %v6768_v12 = vpop.f32.mrb[65].mxu1  ;;  %5142 = vmatmul.mubr.bf16.gmra.mrb[172].mxu0 %v9300_v29  ;;  %v3982_v45 = vsel %vm8334_vm5, %v6332_v25, %v3981_v16  ;;  %v3985_v28 = vsel %vm8334_vm5, %v3983_v43, %v3984_v15  ;;  %v3395_v56 = vor.u32 %v3394_v33, %v9361_v52  ;;  %v7925_v43 = vld [vmem:[%s10365_s3 + $0x138] sm:$0xff]  }
 0x189   : > { %v6769_v44 = vadd.f32 %v6768_v12, %v6767_v27  ;;  %v6770_v21 = vpop.f32.mrb[66].mxu1  ;;  %5149 = vmatprep.mubr.bf16.mxu0 %v9341_v39  ;;  %v9374_v12 = vcombine.low %v3975_v47, %v3978_v41  ;;  %v3828_v47 = vld [vmem:[%s8607_s11 + $0xa8] sm:$0xe]  ;;  %v3988_v41 = vrot.slane %v9364_v51, 5  ;;  %v6885_v3 = vpop.f32.mrb[68].mxu0  ;;  %v3377_v25 = vsel %vm8072_vm2, %v3372_v55, %v9359_v34 }
 0x18a   : > { %v6771_v32 = vpop.f32.mrb[67].mxu1  ;;  %v9390_v27 = vld [vmem:[%s8607_s11 + $0x24] sm:$0xff]   ;;  %v6886_v7 = vpop.f32.mrb[69].mxu0  ;;  %v9404_v51 = vrot.slane %v3398_v5, 5  ;;  %v6333_v55 = vrot.slane %v3828_v47, 9  ;;  %v9419_v47 = vcombine.low %v3982_v45, %v3985_v28 }
 0x18b   : > { %7298 = vmatpush3.bf16.msra.mxu1 %v7919_v38  ;;  %10430 = vst [vmem:[#allocation30_spill] sm:$0xff] %v9374_v12  ;;  %v2411_v38 = vadd.f32 %v6769_v44, %v8727_v18  ;;  %v6772_v10 = vadd.f32 %v6771_v32, %v6770_v21  ;;  %v3830_v18 = vld [vmem:[%s8607_s11 + $0xb0] sm:$0x1]  ;;  %v3403_v21 = vshrl.u32 %v3201_v53, 16  ;;  %v6887_v15 = vadd.f32 %v6886_v7, %v6885_v3  ;;  %v6888_v33 = vpop.f32.mrb[70].mxu0  ;;  %v9410_v44 = vld [vmem:[%s8607_s11 + $0xa8] sm:$0xff]  }
 0x18c   : > { %7299 = vmatprep.subr.bf16.mxu1 %v7921_v17  ;;  %v3416_v53 = vshrl.u32 %v3202_v49, 16  ;;  %v6889_v34 = vpop.f32.mrb[71].mxu0  ;;  %v3990_v5 = vrot.slane %v3988_v41, 4  ;;  %v3408_v7 = vrot.slane %v3406_v24, 5  ;;  %10433 = vst [vmem:[#allocation33_spill] sm:$0xff] %v9419_v47 }
 0x18d   : > { %v2414_v16 = vadd.f32 %v6772_v10, %v8740_v31  ;;  %v9398_v17 = vadd.f32 %v6881_v4, %v2411_v38  ;;  %v3386_v31 = vrot.slane %v3385_v20, 4  ;;  %v3412_v4 = vshll.u32 %v3202_v49, 16  ;;  %v6773_v38 = vpop.f32.mrb[68].mxu1 }
 0x18e   : > { %4917 = vmatmul.mubr.bf16.gmra.mrb[172].mxu1 %v9390_v27  ;;  %v6774_v10 = vpop.f32.mrb[69].mxu1  ;;  %v6890_v29 = vadd.f32 %v6889_v34, %v6888_v33  ;;  %v3405_v3 = vrot.slane %v3403_v21, 4  ;;  %v3204_v21 = vld [vmem:[%s8607_s11 + $0x60] sm:$0xf]  ;;  %v9432_v33 = vld [vmem:[%s8607_s11 + $0x30] sm:$0xff]  }
 0x18f   : > { %10431 = vst [vmem:[#allocation31_spill] sm:$0xff] %v9398_v17  ;;  %4924 = vmatprep.mubr.bf16.mxu1 %v9367_v48  ;;  %7300 = vmatpush3.bf16.msra.mxu1 %v7922_v59  ;;  %v9412_v32 = vadd.f32 %v6884_v42, %v2414_v16  ;;  %v3991_v59 = vrot.slane %v3830_v18, 5  ;;  %v3396_v17 = vrot.slane %v3395_v56, 4  ;;  %v6775_v37 = vadd.f32 %v6774_v10, %v6773_v38  ;;  %v6776_v20 = vpop.f32.mrb[70].mxu1  ;;  %v3203_v42 = vld [vmem:[%s8607_s11 + $0x5c] sm:$0x1] }
 0x190   : > { %7301 = vmatprep.subr.bf16.mxu1 %v7924_v22  ;;  %5150 = vmatmul.mubr.bf16.gmra.mrb[176].mxu0 %v9374_v12  ;;  %v9415_v22 = vcombine.low %v3367_v19, %v3377_v25  ;;  %v6777_v49 = vpop.f32.mrb[71].mxu1  ;;  %v9421_v18 = vrot.slane %v3412_v4, 5  ;;  %v3418_v56 = vrot.slane %v3416_v53, 4  ;;  %v3391_v19 = vsel %vm8072_vm2, %v3386_v31, %v9361_v52  ;;  %v9441_v52 = vld [vmem:[%s8607_s11 + $0xb8] sm:$0xf] }
 0x191   : > { %10432 = vst [vmem:[#allocation32_spill] sm:$0xff] %v9412_v32  ;;  %5157 = vmatprep.mubr.bf16.mxu0 %v9410_v44  ;;  %v2419_v24 = vadd.f32 %v6775_v37, %v8768_v62  ;;  %v6778_v16 = vadd.f32 %v6777_v49, %v6776_v20  ;;  %v3989_v25 = vsel %vm8334_vm5, %v6333_v55, %v3988_v41  ;;  %v6891_v45 = vpop.f32.mrb[72].mxu0  ;;  %v3422_v4 = vshll.u32 %v3203_v42, 16 }
 0x192   : > { %v3401_v28 = vsel %vm8072_vm2, %v3396_v17, %v9404_v51  ;;  %v3992_v62 = vsel %vm8334_vm5, %v3990_v5, %v3991_v59  ;;  %v3409_v37 = vor.u32 %v3408_v7, %v3405_v3  ;;  %v6892_v53 = vpop.f32.mrb[73].mxu0  ;;  %v3427_v38 = vshrl.u32 %v3204_v21, 16  ;;  %v9448_v51 = vld [vmem:[%s8607_s11 + $0xb4] sm:$0xff]  }
 0x193   : > { %7302 = vmatpush3.bf16.msra.mxu1 %v7925_v43  ;;  %v3205_v43 = vld [vmem:[%s8607_s11 + $0x64] sm:$0xf]  ;;  %v2422_v41 = vadd.f32 %v6778_v16, %v8779_v11  ;;  %v9444_v31 = vadd.f32 %v6887_v15, %v2419_v24  ;;  %v3430_v34 = vshll.u32 %v3204_v21, 16  ;;  %v6893_v55 = vadd.f32 %v6892_v53, %v6891_v45  ;;  %v6894_v17 = vpop.f32.mrb[74].mxu0  ;;  %v6779_v11 = vpop.f32.mrb[72].mxu1 }
 0x194   : > { %v3419_v5 = vor.u32 %v3418_v56, %v9421_v18  ;;  %v3436_v59 = vshll.u32 %v3205_v43, 16  ;;  %v3440_v10 = vshrl.u32 %v3205_v43, 16  ;;  %v6895_v15 = vpop.f32.mrb[75].mxu0  ;;  %v3831_v7 = vld [vmem:[%s8607_s11 + $0xb4] sm:$0xe]  ;;  %v3995_v20 = vrot.slane %v9441_v52, 5 }
 0x195   : > { %10434 = vst [vmem:[#allocation34_spill] sm:$0xff] %v9444_v31  ;;  %v9451_v3 = vadd.f32 %v6890_v29, %v2422_v41  ;;  %v6780_v42 = vpop.f32.mrb[73].mxu1  ;;  %v6896_v49 = vadd.f32 %v6895_v15, %v6894_v17  ;;  %v9455_v21 = vcombine.low %v3391_v19, %v3401_v28  ;;  %v9457_v24 = vcombine.low %v3989_v25, %v3992_v62  ;;  %v3833_v45 = vld [vmem:[%s8607_s11 + $0xbc] sm:$0x1]  ;;  %v3207_v53 = vld [vmem:[%s8607_s11 + $0x6c] sm:$0xf] }
 0x196   : > { %4925 = vmatmul.mubr.bf16.gmra.mrb[176].mxu1 %v9432_v33  ;;  %v3424_v16 = vrot.slane %v3422_v4, 5  ;;  %v6781_v56 = vadd.f32 %v6780_v42, %v6779_v11  ;;  %v6782_v43 = vpop.f32.mrb[74].mxu1  ;;  %v3410_v29 = vrot.slane %v3409_v37, 4  ;;  %v3429_v41 = vrot.slane %v3427_v38, 4  ;;  %v3206_v11 = vld [vmem:[%s8607_s11 + $0x68] sm:$0x1] }
 0x197   : > { %4932 = vmatprep.mubr.bf16.mxu1 %v9415_v22  ;;  %10435 = vst [vmem:[#allocation35_spill] sm:$0xff] %v9451_v3  ;;  %10436 = vst [vmem:[#allocation36_spill] sm:$0xff] %v9457_v24  ;;  %v3432_v12 = vrot.slane %v3430_v34, 5  ;;  %v3208_v3 = vld [vmem:[%s8607_s11 + $0x70] sm:$0xf]  ;;  %v6783_v52 = vpop.f32.mrb[75].mxu1 }
 0x198   : > { %5158 = vmatmul.mubr.bf16.gmra.mrb[180].mxu0 %v9419_v47  ;;  %v3420_v19 = vrot.slane %v3419_v5, 4  ;;  %v6334_v28 = vrot.slane %v3831_v7, 9  ;;  %v9464_v25 = vrot.slane %v3436_v59, 5  ;;  %v3442_v62 = vrot.slane %v3440_v10, 4  ;;  %v9469_v47 = vld [vmem:[%s8607_s11 + $0x3c] sm:$0xff]  }
 0x199   : > { %5165 = vmatprep.mubr.bf16.mxu0 %v9448_v51  ;;  %v2427_v4 = vadd.f32 %v6781_v56, %v8820_v57  ;;  %v6784_v17 = vadd.f32 %v6783_v52, %v6782_v43  ;;  %v3451_v15 = vshrl.u32 %v3207_v53, 16  ;;  %v3454_v42 = vshll.u32 %v3207_v53, 16  ;;  %v6897_v37 = vpop.f32.mrb[76].mxu0 }
 0x19a   : > { %v3997_v38 = vrot.slane %v3995_v20, 4  ;;  %v3998_v34 = vrot.slane %v3833_v45, 5  ;;  %v3460_v31 = vshll.u32 %v3208_v3, 16  ;;  %v3464_v5 = vshrl.u32 %v3208_v3, 16  ;;  %v6898_v57 = vpop.f32.mrb[77].mxu0  ;;  %v9482_v3 = vld [vmem:[%s8607_s11 + $0xc0] sm:$0xff]  }
 0x19b   : > { %v2430_v59 = vadd.f32 %v6784_v17, %v8829_v14  ;;  %v9473_v7 = vadd.f32 %v6893_v55, %v2427_v4  ;;  %v3415_v10 = vsel %vm8072_vm2, %v3410_v29, %v9421_v18  ;;  %v3433_v53 = vor.u32 %v3432_v12, %v3429_v41  ;;  %v6900_v43 = vpop.f32.mrb[78].mxu0  ;;  %v6785_v4 = vpop.f32.mrb[76].mxu1  ;;  %v3210_v18 = vld [vmem:[%s8607_s11 + $0x78] sm:$0xf] }
 0x19c   : > { %v6899_v56 = vadd.f32 %v6898_v57, %v6897_v37  ;;  %v3425_v45 = vsel %vm8072_vm2, %v3420_v19, %v3424_v16  ;;  %v3443_v14 = vor.u32 %v3442_v62, %v9464_v25  ;;  %v3446_v55 = vshll.u32 %v3206_v11, 16  ;;  %v6901_v17 = vpop.f32.mrb[79].mxu0  ;;  %v6786_v12 = vpop.f32.mrb[77].mxu1  ;;  %v3209_v37 = vld [vmem:[%s8607_s11 + $0x74] sm:$0x1] }
 0x19d   : > { %10437 = vst [vmem:[#allocation37_spill] sm:$0xff] %v9473_v7  ;;  %v9485_v52 = vadd.f32 %v6896_v49, %v2430_v59  ;;  %v3453_v7 = vrot.slane %v3451_v15, 4  ;;  %v3456_v32 = vrot.slane %v3454_v42, 5  ;;  %v6902_v29 = vadd.f32 %v6901_v17, %v6900_v43  ;;  %v6788_v62 = vpop.f32.mrb[78].mxu1  ;;  %v3211_v42 = vld [vmem:[%s8607_s11 + $0x7c] sm:$0xf] }
 0x19e   : > { %4933 = vmatmul.mubr.bf16.gmra.mrb[180].mxu1 %v9469_v47  ;;  %v3996_v41 = vsel %vm8334_vm5, %v6334_v28, %v3995_v20  ;;  %v9491_v16 = vrot.slane %v3460_v31, 5  ;;  %v3466_v19 = vrot.slane %v3464_v5, 4  ;;  %v6787_v57 = vadd.f32 %v6786_v12, %v6785_v4  ;;  %v6789_v59 = vpop.f32.mrb[79].mxu1 }
 0x19f   : > { %4940 = vmatprep.mubr.bf16.mxu1 %v9455_v21  ;;  %v9494_v49 = vcombine.low %v3415_v10, %v3425_v45  ;;  %v3999_v11 = vsel %vm8334_vm5, %v3997_v38, %v3998_v34  ;;  %v3434_v15 = vrot.slane %v3433_v53, 4  ;;  %v3444_v20 = vrot.slane %v3443_v14, 4 }
 0x1a0   : > { %5166 = vmatmul.mubr.bf16.gmra.mrb[184].mxu0 %v9457_v24  ;;  %v3448_v28 = vrot.slane %v3446_v55, 5  ;;  %v3475_v31 = vshrl.u32 %v3210_v18, 16  ;;  %v3478_v43 = vshll.u32 %v3210_v18, 16  ;;  %v2435_v5 = vadd.f32 %v6787_v57, %v8846_v63  ;;  %v9502_v24 = vld [vmem:[%s8607_s11 + $0x48] sm:$0xff]  }
 0x1a1   : > { %5173 = vmatprep.mubr.bf16.mxu0 %v9482_v3  ;;  %v6790_v4 = vadd.f32 %v6789_v59, %v6788_v62  ;;  %v3457_v17 = vor.u32 %v3456_v32, %v3453_v7  ;;  %v3470_v12 = vshll.u32 %v3209_v37, 16  ;;  %v6903_v10 = vpop.f32.mrb[80].mxu0  ;;  %v3467_v38 = vor.u32 %v3466_v19, %v9491_v16 }
 0x1a2   : > { %v3484_v34 = vshll.u32 %v3211_v42, 16  ;;  %v3488_v53 = vshrl.u32 %v3211_v42, 16  ;;  %v9507_v14 = vadd.f32 %v6899_v56, %v2435_v5  ;;  %v6904_v55 = vpop.f32.mrb[81].mxu0  ;;  %v9510_v63 = vcombine.low %v3996_v41, %v3999_v11  ;;  %v6791_v56 = vpop.f32.mrb[80].mxu1 }
 0x1a3   : > { %v2438_v45 = vadd.f32 %v6790_v4, %v8848_v6  ;;  %v3439_v32 = vsel %vm8072_vm2, %v3434_v15, %v9464_v25  ;;  %v6905_v7 = vadd.f32 %v6904_v55, %v6903_v10  ;;  %v6906_v18 = vpop.f32.mrb[82].mxu0  ;;  %v3449_v37 = vsel %vm8072_vm2, %v3444_v20, %v3448_v28  ;;  %v6792_v11 = vpop.f32.mrb[81].mxu1  ;;  %v3212_v4 = vld [vmem:[%s8607_s11 + $0x80] sm:$0x1] }
 0x1a4   : > { %10438 = vst [vmem:[#allocation38_spill] sm:$0xff] %v9510_v63  ;;  %v3477_v19 = vrot.slane %v3475_v31, 4  ;;  %v3480_v57 = vrot.slane %v3478_v43, 5  ;;  %v6907_v62 = vpop.f32.mrb[83].mxu0  ;;  %v3458_v42 = vrot.slane %v3457_v17, 4  ;;  %v3472_v41 = vrot.slane %v3470_v12, 5 }
 0x1a5   : > { %v9517_v6 = vadd.f32 %v6902_v29, %v2438_v45  ;;  %v6908_v59 = vadd.f32 %v6907_v62, %v6906_v18  ;;  %v3468_v5 = vrot.slane %v3467_v38, 4  ;;  %v9520_v25 = vrot.slane %v3484_v34, 5  ;;  %v6794_v20 = vpop.f32.mrb[82].mxu1  ;;  %v3213_v29 = vld [vmem:[%s8607_s11 + $0x84] sm:$0xf]  ;;  %v9533_v45 = vld [vmem:[%s8607_s11 + $0x54] sm:$0xff]  }
 0x1a6   : > { %4941 = vmatmul.mubr.bf16.gmra.mrb[184].mxu1 %v9502_v24  ;;  %v3490_v15 = vrot.slane %v3488_v53, 4  ;;  %v6793_v10 = vadd.f32 %v6792_v11, %v6791_v56  ;;  %v9523_v28 = vcombine.low %v3439_v32, %v3449_v37  ;;  %v6795_v31 = vpop.f32.mrb[83].mxu1  ;;  %v3481_v43 = vor.u32 %v3480_v57, %v3477_v19  ;;  %v3214_v17 = vld [vmem:[%s8607_s11 + $0x88] sm:$0xf] }
 0x1a7   : > { %4948 = vmatprep.mubr.bf16.mxu1 %v9494_v49  ;;  %10439 = vst [vmem:[#allocation39_spill] sm:$0xff] %v9517_v6  ;;  %v6796_v38 = vadd.f32 %v6795_v31, %v6794_v20  ;;  %v3463_v34 = vsel %vm8072_vm2, %v3458_v42, %v9491_v16  ;;  %v3494_v53 = vshll.u32 %v3212_v4, 16  ;;  %v3473_v32 = vsel %vm8072_vm2, %v3468_v5, %v3472_v41 }
 0x1a8   : > { %5174 = vmatmul.mubr.bf16.gmra.mrb[188].mxu0 %v9510_v63  ;;  %v2443_v12 = vadd.f32 %v6793_v10, %v8862_v23  ;;  %v3491_v18 = vor.u32 %v3490_v15, %v9520_v25  ;;  %v3499_v37 = vshrl.u32 %v3213_v29, 16  ;;  %v3502_v19 = vshll.u32 %v3213_v29, 16  ;;  %v3216_v10 = vld [vmem:[%s8607_s11 + $0x90] sm:$0xf]  ;;  %v3217_v29 = vld [vmem:[%s8607_s11 + $0x94] sm:$0xf] }
 0x1a9   : > { %5375 = vmatprep.mubr.bf16.mxu0 %v9245_v9  ;;  %v6909_v55 = vpop.f32.mrb[84].mxu0  ;;  %v2446_v23 = vadd.f32 %v6796_v38, %v8865_v1  ;;  %v3508_v56 = vshll.u32 %v3214_v17, 16  ;;  %v3512_v62 = vshrl.u32 %v3214_v17, 16  ;;  %v9543_v4 = vrot.slane %v3481_v43, 4  ;;  %v6797_v5 = vpop.f32.mrb[84].mxu1 }
 0x1aa   : > { %v9540_v57 = vadd.f32 %v6905_v7, %v2443_v12  ;;  %v6910_v16 = vpop.f32.mrb[85].mxu0  ;;  %v9548_v20 = vcombine.low %v3463_v34, %v3473_v32  ;;  %v3496_v1 = vrot.slane %v3494_v53, 5  ;;  %v7920_v7 = vld [vmem:[%s10365_s3 + $0x208] sm:$0xff]   ;;  %v6798_v31 = vpop.f32.mrb[85].mxu1  ;;  %v3492_v12 = vrot.slane %v3491_v18, 4 }
 0x1ab   : > { %v6911_v42 = vadd.f32 %v6910_v16, %v6909_v55  ;;  %v6912_v11 = vpop.f32.mrb[86].mxu0  ;;  %v9546_v41 = vadd.f32 %v6908_v59, %v2446_v23  ;;  %v3501_v38 = vrot.slane %v3499_v37, 4  ;;  %v3504_v43 = vrot.slane %v3502_v19, 5  ;;  %v6800_v16 = vpop.f32.mrb[86].mxu1  ;;  %v3215_v59 = vld [vmem:[%s8607_s11 + $0x8c] sm:$0x1] }
 0x1ac   : > { %10440 = vst [vmem:[#allocation40_spill] sm:$0xff] %v9540_v57  ;;  %v6913_v15 = vpop.f32.mrb[87].mxu0  ;;  %v6799_v55 = vadd.f32 %v6798_v31, %v6797_v5  ;;  %v9556_v23 = vrot.slane %v3508_v56, 5  ;;  %v3514_v34 = vrot.slane %v3512_v62, 4  ;;  %v3523_v53 = vshrl.u32 %v3216_v10, 16  ;;  %v6801_v32 = vpop.f32.mrb[87].mxu1 }
 0x1ad   : > { %10441 = vst [vmem:[#allocation41_spill] sm:$0xff] %v9546_v41  ;;  %v6914_v17 = vadd.f32 %v6913_v15, %v6912_v11  ;;  %v7953_v11 = vld [vmem:[%s10365_s3 + $0x200] sm:$0xff]   ;;  %v3526_v18 = vshll.u32 %v3216_v10, 16  ;;  %v3532_v37 = vshll.u32 %v3217_v29, 16  ;;  %v3536_v19 = vshrl.u32 %v3217_v29, 16  ;;  %v10442_v5 = vld [vmem:[#allocation6_spill] sm:$0xff] }
 0x1ae   : > { %4949 = vmatmul.mubr.bf16.gmra.mrb[188].mxu1 %v9533_v45  ;;  %v2451_v15 = vadd.f32 %v6799_v55, %v10442_v5  ;;  %v7923_v56 = vld [vmem:[%s10365_s3 + $0x210] sm:$0xff]   ;;  %v9567_v62 = vld [vmem:[%s8607_s11 + $0x60] sm:$0xff]   ;;  %v3487_v10 = vsel %vm8072_vm2, %v9543_v4, %v9520_v25  ;;  %v3497_v29 = vsel %vm8072_vm2, %v3492_v12, %v3496_v1  ;;  %v3505_v55 = vor.u32 %v3504_v43, %v3501_v38  ;;  %v3218_v43 = vld [vmem:[%s8607_s11 + $0x98] sm:$0x1] }
 0x1af   : > { %4956 = vmatprep.mubr.bf16.mxu1 %v9523_v28  ;;  %v3515_v36 = vor.u32 %v3514_v34, %v9556_v23  ;;  %v3525_v41 = vrot.slane %v3523_v53, 4  ;;  %v3528_v25 = vrot.slane %v3526_v18, 5  ;;  %v9581_v4 = vrot.slane %v3532_v37, 5 }
 0x1b0   : > { %5376 = vmatmul.mubr.bf16.vlgmr.msra.gmra.mrb[192].mxu0 %v9326_v13  ;;  %v6802_v13 = vadd.f32 %v6801_v32, %v6800_v16  ;;  %v3518_v16 = vshll.u32 %v3215_v59, 16  ;;  %v10443_v32 = vld [vmem:[#allocation7_spill] sm:$0xff]  ;;  %v9577_v5 = vadd.f32 %v6911_v42, %v2451_v15  ;;  %v3538_v1 = vrot.slane %v3536_v19, 4  ;;  %v7926_v59 = vld [vmem:[%s10365_s3 + $0x218] sm:$0xff]   ;;  %v3220_v19 = vld [vmem:[%s8607_s11 + $0xa0] sm:$0xf] }
 0x1b1   : > { %5383 = vmatprep.mubr.bf16.mxu0 %v9298_v8  ;;  %7584 = vmatpush3.bf16.msra.mxu0 %v7953_v11  ;;  %v6915_v31 = vpop.f32.mrb[88].mxu0  ;;  %v6803_v38 = vpop.f32.mrb[88].mxu1  ;;  %v9591_v18 = vcombine.low %v3487_v10, %v3497_v29  ;;  %v3506_v37 = vrot.slane %v3505_v55, 4  ;;  %v7927_v10 = vld [vmem:[%s10365_s3 + $0x220] sm:$0xff]   ;;  %v9601_v29 = vld [vmem:[%s8607_s11 + $0x6c] sm:$0xff]   ;;  %v3560_v55 = vshrl.u32 %v3220_v19, 16 }
 0x1b2   : > { %7585 = vmatprep.subr.bf16.mxu0 %v7920_v7  ;;  %v2454_v11 = vadd.f32 %v6802_v13, %v10443_v32  ;;  %v6916_v63 = vpop.f32.mrb[89].mxu0  ;;  %v6804_v34 = vpop.f32.mrb[89].mxu1  ;;  %v3529_v32 = vor.u32 %v3528_v25, %v3525_v41  ;;  %v3556_v41 = vshll.u32 %v3220_v19, 16 }
 0x1b3   : > { %v6917_v57 = vadd.f32 %v6916_v63, %v6915_v31  ;;  %v6918_v6 = vpop.f32.mrb[90].mxu0  ;;  %v3219_v63 = vld [vmem:[%s8607_s11 + $0x9c] sm:$0xf]  ;;  %v6805_v15 = vadd.f32 %v6804_v34, %v6803_v38  ;;  %v3516_v31 = vrot.slane %v3515_v36, 4 }
 0x1b4   : > { %v9583_v12 = vadd.f32 %v6914_v17, %v2454_v11  ;;  %v6919_v42 = vpop.f32.mrb[91].mxu0  ;;  %v3520_v17 = vrot.slane %v3518_v16, 5  ;;  %v3539_v11 = vor.u32 %v3538_v1, %v9581_v4  ;;  %v3547_v34 = vshrl.u32 %v3219_v63, 16  ;;  %v10446_v16 = vld [vmem:[#allocation10_spill] sm:$0xff] }
 0x1b5   : > { %7586 = vmatpush3.bf16.msra.mxu0 %v7920_v7  ;;  %v6920_v53 = vadd.f32 %v6919_v42, %v6918_v6  ;;  %v6806_v7 = vpop.f32.mrb[90].mxu1  ;;  %v10445_v6 = vld [vmem:[#allocation9_spill] sm:$0xff] }
 0x1b6   : > { %4957 = vmatmul.mubr.bf16.gmra.mrb[192].mxu1 %v9567_v62  ;;  %10444 = vst [vmem:[#allocation6_spill] sm:$0xff] %v9583_v12  ;;  %7587 = vmatprep.subr.bf16.mxu0 %v7923_v56  ;;  %v6807_v13 = vpop.f32.mrb[91].mxu1  ;;  %v3542_v12 = vshll.u32 %v3218_v43, 16  ;;  %v2459_v38 = vadd.f32 %v6805_v15, %v10445_v6  ;;  %v3511_v43 = vsel %vm8072_vm2, %v3506_v37, %v9556_v23  ;;  %v7928_v23 = vld [vmem:[%s10365_s3 + $0x228] sm:$0xff]  }
 0x1b7   : > { %4964 = vmatprep.mubr.bf16.mxu1 %v9548_v20  ;;  %v6808_v42 = vadd.f32 %v6807_v13, %v6806_v7  ;;  %v3521_v7 = vsel %vm8072_vm2, %v3516_v31, %v3520_v17  ;;  %v3530_v13 = vrot.slane %v3529_v32, 4  ;;  %v9618_v31 = vrot.slane %v3556_v41, 5  ;;  %v10448_v41 = vld [vmem:[#allocation12_spill] sm:$0xff] }
 0x1b8   : > { %5384 = vmatmul.mubr.bf16.gmra.mrb[196].mxu0 %v9390_v27  ;;  %v3550_v27 = vshll.u32 %v3219_v63, 16  ;;  %v3544_v6 = vrot.slane %v3542_v12, 5  ;;  %v3562_v12 = vrot.slane %v3560_v55, 4  ;;  %v9621_v32 = vcombine.low %v3511_v43, %v3521_v7  ;;  %v7929_v43 = vld [vmem:[%s10365_s3 + $0x230] sm:$0xff]   ;;  %v9637_v7 = vld [vmem:[%s8607_s11 + $0x78] sm:$0xff]  }
 0x1b9   : > { %5391 = vmatprep.mubr.bf16.mxu0 %v9367_v48  ;;  %7588 = vmatpush3.bf16.msra.mxu0 %v7923_v56  ;;  %v6921_v36 = vpop.f32.mrb[92].mxu0  ;;  %v2462_v25 = vadd.f32 %v6808_v42, %v10446_v16  ;;  %v9605_v56 = vadd.f32 %v6917_v57, %v2459_v38  ;;  %v6809_v57 = vpop.f32.mrb[92].mxu1  ;;  %v3540_v42 = vrot.slane %v3539_v11, 4  ;;  %v3549_v16 = vrot.slane %v3547_v34, 4  ;;  %v3221_v11 = vld [vmem:[%s8607_s11 + $0xa4] sm:$0x1] }
 0x1ba   : > { %7589 = vmatprep.subr.bf16.mxu0 %v7926_v59  ;;  %v6922_v1 = vpop.f32.mrb[93].mxu0  ;;  %v6810_v37 = vpop.f32.mrb[93].mxu1  ;;  %v3222_v34 = vld [vmem:[%s8607_s11 + $0xa8] sm:$0xf] }
 0x1bb   : > { %10447 = vst [vmem:[#allocation7_spill] sm:$0xff] %v9605_v56  ;;  %v6923_v63 = vadd.f32 %v6922_v1, %v6921_v36  ;;  %v6924_v15 = vpop.f32.mrb[94].mxu0  ;;  %v9613_v19 = vadd.f32 %v6920_v53, %v2462_v25  ;;  %v3552_v56 = vrot.slane %v3550_v27, 5  ;;  %v6812_v53 = vpop.f32.mrb[94].mxu1  ;;  %v3535_v36 = vsel %vm8072_vm2, %v3530_v13, %v9581_v4  ;;  %v3223_v25 = vld [vmem:[%s8607_s11 + $0xac] sm:$0xf] }
 0x1bc   : > { %v6925_v38 = vpop.f32.mrb[95].mxu0  ;;  %v6813_v27 = vpop.f32.mrb[95].mxu1  ;;  %v3563_v4 = vor.u32 %v3562_v12, %v9618_v31  ;;  %v3566_v13 = vshll.u32 %v3221_v11, 16  ;;  %v7931_v12 = vld [vmem:[%s10365_s3 + $0x238] sm:$0xff]  }
 0x1bd   : > { %7590 = vmatpush3.bf16.msra.mxu0 %v7926_v59  ;;  %v6926_v17 = vadd.f32 %v6925_v38, %v6924_v15  ;;  %v6811_v59 = vadd.f32 %v6810_v37, %v6809_v57  ;;  %v6814_v1 = vadd.f32 %v6813_v27, %v6812_v53  ;;  %v3545_v15 = vsel %vm8072_vm2, %v3540_v42, %v3544_v6  ;;  %v10449_v38 = vld [vmem:[#allocation13_spill] sm:$0xff] }
 0x1be   : > { %4965 = vmatmul.mubr.bf16.gmra.mrb[196].mxu1 %v9601_v29  ;;  %7591 = vmatprep.subr.bf16.mxu0 %v7927_v10  ;;  %v3574_v57 = vshll.u32 %v3222_v34, 16  ;;  %v3584_v6 = vshrl.u32 %v3223_v25, 16  ;;  %v9647_v53 = vcombine.low %v3535_v36, %v3545_v15  ;;  %v3568_v27 = vrot.slane %v3566_v13, 5  ;;  %v3224_v15 = vld [vmem:[%s8607_s11 + $0xb0] sm:$0x1] }
 0x1bf   : > { %4972 = vmatprep.mubr.bf16.mxu1 %v9591_v18  ;;  %v2467_v55 = vadd.f32 %v6811_v59, %v10448_v41  ;;  %v2470_v37 = vadd.f32 %v6814_v1, %v10449_v38  ;;  %v10451_v38 = vld [vmem:[#allocation16_spill] sm:$0xff] }
 0x1c0   : > { %5392 = vmatmul.mubr.bf16.gmra.mrb[200].mxu0 %v9432_v33  ;;  %v3553_v33 = vor.u32 %v3552_v56, %v3549_v16  ;;  %v3580_v56 = vshll.u32 %v3223_v25, 16  ;;  %v3576_v36 = vrot.slane %v3574_v57, 5  ;;  %v3226_v13 = vld [vmem:[%s8607_s11 + $0xb8] sm:$0xf] }
 0x1c1   : > { %5399 = vmatprep.mubr.bf16.mxu0 %v9415_v22  ;;  %7592 = vmatpush3.bf16.msra.mxu0 %v7927_v10  ;;  %v3571_v10 = vshrl.u32 %v3222_v34, 16  ;;  %v9642_v59 = vadd.f32 %v6923_v63, %v2467_v55  ;;  %v9645_v42 = vadd.f32 %v6926_v17, %v2470_v37  ;;  %v6943_v16 = vpop.f32.mrb[96].mxu1  ;;  %v3564_v63 = vrot.slane %v3563_v4, 4  ;;  %v3225_v37 = vld [vmem:[%s8607_s11 + $0xb4] sm:$0xf] }
 0x1c2   : > { %7593 = vmatprep.subr.bf16.mxu0 %v7928_v23  ;;  %v6944_v11 = vpop.f32.mrb[97].mxu1  ;;  %v3554_v34 = vrot.slane %v3553_v33, 4  ;;  %v3582_v25 = vrot.slane %v3580_v56, 5  ;;  %v3586_v55 = vrot.slane %v3584_v6, 4  ;;  %v10453_v56 = vld [vmem:[#allocation17_spill] sm:$0xff] }
 0x1c3   : > { %10450 = vst [vmem:[#allocation9_spill] sm:$0xff] %v9645_v42  ;;  %v3573_v41 = vrot.slane %v3571_v10, 4  ;;  %v6946_v17 = vpop.f32.mrb[98].mxu1  ;;  %v9661_v10 = vld [vmem:[%s8607_s11 + $0x84] sm:$0xff]   ;;  %v3569_v57 = vsel %vm8072_vm2, %v3564_v63, %v3568_v27 }
 0x1c4   : > { %v6947_v1 = vpop.f32.mrb[99].mxu1 }
 0x1c5   : > { %7594 = vmatpush3.bf16.msra.mxu0 %v7928_v23  ;;  %v6945_v23 = vadd.f32 %v6944_v11, %v6943_v16  ;;  %v6948_v4 = vadd.f32 %v6947_v1, %v6946_v17  ;;  %v3577_v6 = vor.u32 %v3576_v36, %v3573_v41  ;;  %v3587_v16 = vor.u32 %v3586_v55, %v3582_v25 }
 0x1c6   : > { %4973 = vmatmul.mubr.bf16.gmra.mrb[200].mxu1 %v9637_v7  ;;  %7595 = vmatprep.subr.bf16.mxu0 %v7929_v43  ;;  %v3590_v11 = vshll.u32 %v3224_v15, 16  ;;  %v3598_v17 = vshll.u32 %v3225_v37, 16  ;;  %v3604_v1 = vshll.u32 %v3226_v13, 16 }
 0x1c7   : > { %4980 = vmatprep.mubr.bf16.mxu1 %v9621_v32  ;;  %v9656_v33 = vadd.f32 %v6945_v23, %v10451_v38  ;;  %v3595_v23 = vshrl.u32 %v3225_v37, 16  ;;  %v3608_v38 = vshrl.u32 %v3226_v13, 16  ;;  %v3578_v27 = vrot.slane %v3577_v6, 4 }
 0x1c8   : > { %5400 = vmatmul.mubr.bf16.gmra.mrb[204].mxu0 %v9469_v47  ;;  %v3559_v47 = vsel %vm8072_vm2, %v3554_v34, %v9618_v31  ;;  %v3600_v55 = vrot.slane %v3598_v17, 5  ;;  %v3606_v15 = vrot.slane %v3604_v1, 5 }
 0x1c9   : > { %5407 = vmatprep.mubr.bf16.mxu0 %v9455_v21  ;;  %7596 = vmatpush3.bf16.msra.mxu0 %v7929_v43  ;;  %10452 = vst [vmem:[#allocation10_spill] sm:$0xff] %v9656_v33  ;;  %v9670_v43 = vadd.f32 %v6948_v4, %v10453_v56  ;;  %v6949_v33 = vpop.f32.mrb[100].mxu1  ;;  %v9673_v31 = vcombine.low %v3559_v47, %v3569_v57  ;;  %v3588_v4 = vrot.slane %v3587_v16, 4  ;;  %v3592_v56 = vrot.slane %v3590_v11, 5  ;;  %v3227_v47 = vld [vmem:[%s8607_s11 + $0xbc] sm:$0x1] }
 0x1ca   : > { %7597 = vmatprep.subr.bf16.mxu0 %v7931_v12  ;;  %v6950_v42 = vpop.f32.mrb[101].mxu1  ;;  %v3597_v36 = vrot.slane %v3595_v23, 4  ;;  %v3610_v37 = vrot.slane %v3608_v38, 4  ;;  %v3614_v16 = vshll.u32 %v3227_v47, 16 }
 0x1cb   : > { %10454 = vst [vmem:[#allocation12_spill] sm:$0xff] %v9670_v43  ;;  %v6951_v34 = vadd.f32 %v6950_v42, %v6949_v33  ;;  %v6952_v63 = vpop.f32.mrb[102].mxu1  ;;  %v3593_v33 = vsel %vm8072_vm2, %v3588_v4, %v3592_v56 }
 0x1cc   : > { %v6953_v41 = vpop.f32.mrb[103].mxu1  ;;  %v3601_v57 = vor.u32 %v3600_v55, %v3597_v36  ;;  %v3611_v6 = vor.u32 %v3610_v37, %v3606_v15 }
 0x1cd   : > { %7598 = vmatpush3.bf16.msra.mxu0 %v7931_v12  ;;  %v10455_v12 = vld [vmem:[#allocation19_spill] sm:$0xff]  ;;  %v6954_v43 = vadd.f32 %v6953_v41, %v6952_v63 }
 0x1ce   : > { %4981 = vmatmul.mubr.bf16.gmra.mrb[204].mxu1 %v9661_v10  ;;  %v9678_v13 = vadd.f32 %v6951_v34, %v10455_v12  ;;  %v3612_v38 = vrot.slane %v3611_v6, 4 }
 0x1cf   : > { %4988 = vmatprep.mubr.bf16.mxu1 %v9647_v53  ;;  %v9683_v42 = vadd.f32 %v6954_v43, %v9065_v30  ;;  %v3602_v43 = vrot.slane %v3601_v57, 4 }
 0x1d0   : > { %5408 = vmatmul.mubr.bf16.gmra.mrb[208].mxu0 %v9502_v24  ;;  %v3583_v24 = vsel %vm8072_vm2, %v3578_v27, %v3582_v25  ;;  %v3616_v25 = vrot.slane %v3614_v16, 5 }
 0x1d1   : > { %5415 = vmatprep.mubr.bf16.mxu0 %v9494_v49 }
 0x1d2   : > { %v3617_v4 = vsel %vm8072_vm2, %v3612_v38, %v3616_v25 }
 0x1d6   : > { %4989 = vmatmul.mubr.bf16.gmra.mrb[208].mxu1 %v9287_v58  ;;  %v9691_v58 = vcombine.low %v3583_v24, %v3593_v33 }
 0x1d7   : > { %4996 = vmatprep.mubr.bf16.mxu1 %v9673_v31 }
 0x1d8   : > { %5416 = vmatmul.mubr.bf16.gmra.mrb[212].mxu0 %v9533_v45  ;;  %v3607_v45 = vsel %vm8072_vm2, %v3602_v43, %v3606_v15 }
 0x1d9   : > { %v6955_v11 = vpop.f32.mrb[104].mxu1  ;;  %5423 = vmatprep.mubr.bf16.mxu0 %v9523_v28 }
 0x1da   : > { %v6956_v23 = vpop.f32.mrb[105].mxu1 }
 0x1db   : > { %v6957_v17 = vadd.f32 %v6956_v23, %v6955_v11  ;;  %v6958_v1 = vpop.f32.mrb[106].mxu1 }
 0x1dc   : > { %v6959_v30 = vpop.f32.mrb[107].mxu1 }
 0x1dd   : > { %v9695_v34 = vadd.f32 %v6957_v17, %v9094_v0  ;;  %v6960_v63 = vadd.f32 %v6959_v30, %v6958_v1  ;;  %v9707_v0 = vcombine.low %v3607_v45, %v3617_v4  ;;  %v10457_v1 = vld [vmem:[#allocation23_spill] sm:$0xff] }
 0x1de   : > { %4997 = vmatmul.mubr.bf16.gmra.mrb[212].mxu1 %v9341_v39  ;;  %v10458_v30 = vld [vmem:[#allocation11_spill] sm:$0xff] }
 0x1df   : > { %v9699_v27 = vadd.f32 %v6960_v63, %v9101_v61  ;;  %5004 = vmatprep.mubr.bf16.mxu1 %v9691_v58 }
 0x1e0   : > { %5424 = vmatmul.mubr.bf16.gmra.mrb[216].mxu0 %v9567_v62 }
 0x1e1   : > { %v6961_v56 = vpop.f32.mrb[108].mxu1  ;;  %5431 = vmatprep.mubr.bf16.mxu0 %v9548_v20 }
 0x1e2   : > { %v6962_v41 = vpop.f32.mrb[109].mxu1 }
 0x1e3   : > { %v6963_v36 = vadd.f32 %v6962_v41, %v6961_v56  ;;  %v6964_v55 = vpop.f32.mrb[110].mxu1  ;;  %v10460_v56 = vld [vmem:[#allocation14_spill] sm:$0xff]  ;;  %v3228_v41 = vld [vmem:[%s8607_s11 + $0xc0] sm:$0xf] }
 0x1e4   : > { %v6965_v39 = vpop.f32.mrb[111].mxu1 }
 0x1e5   : > { %v9711_v61 = vadd.f32 %v6963_v36, %v9130_v2  ;;  %v6966_v37 = vadd.f32 %v6965_v39, %v6964_v55  ;;  %v3229_v55 = vld [vmem:[%s8607_s11 + $0xc4] sm:$0xf] }
 0x1e6   : > { %5005 = vmatmul.mubr.bf16.gmra.mrb[216].mxu1 %v9410_v44  ;;  %v10456_v44 = vld [vmem:[#allocation8_spill] sm:$0xff] }
 0x1e7   : > { %v9715_v15 = vadd.f32 %v6966_v37, %v9140_v26  ;;  %5012 = vmatprep.mubr.bf16.mxu1 %v9707_v0 }
 0x1e8   : > { %5432 = vmatmul.mubr.bf16.gmra.mrb[220].mxu0 %v9601_v29 }
 0x1e9   : > { %v6967_v12 = vpop.f32.mrb[112].mxu1  ;;  %5439 = vmatprep.mubr.bf16.mxu0 %v9591_v18 }
 0x1ea   : > { %v6968_v47 = vpop.f32.mrb[113].mxu1 }
 0x1eb   : > { %v6969_v24 = vadd.f32 %v6968_v47, %v6967_v12  ;;  %v6970_v62 = vpop.f32.mrb[114].mxu1  ;;  %v7958_v12 = vld [vmem:[%s8607_s11 + $0x90] sm:$0xff]   ;;  %v3699_v47 = vshrl.u32 %v3228_v41, 16 }
 0x1ec   : > { %v6971_v33 = vpop.f32.mrb[115].mxu1 }
 0x1ed   : > { %v9721_v2 = vadd.f32 %v6969_v24, %v9169_v50  ;;  %v6972_v57 = vadd.f32 %v6971_v33, %v6970_v62  ;;  %v3702_v24 = vshll.u32 %v3228_v41, 16  ;;  %v3712_v62 = vshrl.u32 %v3229_v55, 16  ;;  %v10461_v33 = vld [vmem:[#allocation28_spill] sm:$0xff] }
 0x1ee   : > { %5013 = vmatmul.mubr.bf16.gmra.mrb[220].mxu1 %v9448_v51 }
 0x1ef   : > { %v9725_v26 = vadd.f32 %v6972_v57, %v9178_v60  ;;  %5214 = vmatprep.mubr.bf16.mxu1 %v10456_v44 }
 0x1f0   : > { %5440 = vmatmul.mubr.bf16.gmra.mrb[224].mxu0 %v9637_v7 }
 0x1f1   : > { %v6973_v6 = vpop.f32.mrb[116].mxu1  ;;  %5447 = vmatprep.mubr.bf16.mxu0 %v9621_v32 }
 0x1f2   : > { %v6974_v16 = vpop.f32.mrb[117].mxu1 }
 0x1f3   : > { %v6975_v11 = vadd.f32 %v6974_v16, %v6973_v6  ;;  %v6976_v23 = vpop.f32.mrb[118].mxu1  ;;  %v10463_v16 = vld [vmem:[#allocation29_spill] sm:$0xff] }
 0x1f4   : > { %v6977_v29 = vpop.f32.mrb[119].mxu1 }
 0x1f5   : > { %v9731_v50 = vadd.f32 %v6975_v11, %v9223_v54  ;;  %v6978_v17 = vadd.f32 %v6977_v29, %v6976_v23  ;;  %v10465_v23 = vld [vmem:[#allocation15_spill] sm:$0xff] }
 0x1f6   : > { %5215 = vmatmul.mubr.bf16.vlgmr.msra.gmra.mrb[224].mxu1 %v10457_v1  ;;  %v3704_v1 = vrot.slane %v3702_v24, 5 }
 0x1f7   : > { %v9735_v60 = vadd.f32 %v6978_v17, %v9236_v46  ;;  %5222 = vmatprep.mubr.bf16.mxu1 %v10458_v30  ;;  %v10459_v46 = vld [vmem:[#allocation26_spill] sm:$0xff]  ;;  %v3701_v17 = vrot.slane %v3699_v47, 4 }
 0x1f8   : > { %5448 = vmatmul.mubr.bf16.gmra.mrb[228].mxu0 %v9661_v10 }
 0x1f9   : > { %v6979_v43 = vpop.f32.mrb[120].mxu1  ;;  %5455 = vmatprep.mubr.bf16.mxu0 %v9647_v53 }
 0x1fa   : > { %v6980_v38 = vpop.f32.mrb[121].mxu1 }
 0x1fb   : > { %v6981_v25 = vadd.f32 %v6980_v38, %v6979_v43  ;;  %v6982_v7 = vpop.f32.mrb[122].mxu1 }
 0x1fc   : > { %v6983_v63 = vpop.f32.mrb[123].mxu1 }
 0x1fd   : > { %v9741_v54 = vadd.f32 %v6981_v25, %v9280_v40  ;;  %v6984_v45 = vadd.f32 %v6983_v63, %v6982_v7  ;;  %v3230_v25 = vld [vmem:[%s8607_s11 + $0xc8] sm:$0x1]  ;;  %v3714_v63 = vrot.slane %v3712_v62, 4 }
 0x1fe   : > { %5223 = vmatmul.mubr.bf16.gmra.mrb[228].mxu1 %v9245_v9  ;;  %v3708_v9 = vshll.u32 %v3229_v55, 16  ;;  %v3232_v55 = vld [vmem:[%s8607_s11 + $0xd0] sm:$0xf]  ;;  %v3718_v47 = vshll.u32 %v3230_v25, 16 }
 0x1ff   : > { %v9745_v4 = vadd.f32 %v6984_v45, %v10459_v46  ;;  %5230 = vmatprep.mubr.bf16.mxu1 %v10460_v56  ;;  %v3231_v46 = vld [vmem:[%s8607_s11 + $0xcc] sm:$0xf] }
 0x200   : > { %5456 = vmatmul.mubr.bf16.gmra.mrb[232].mxu0 %v7958_v12  ;;  %v9763_v7 = vrot.slane %v3708_v9, 5  ;;  %v3705_v12 = vor.u32 %v3704_v1, %v3701_v17  ;;  %v3743_v9 = vshrl.u32 %v3231_v46, 16  ;;  %v3746_v62 = vshll.u32 %v3231_v46, 16  ;;  %v10470_v17 = vld [vmem:[#allocation18_spill] sm:$0xff] }
 0x201   : > { %v6985_v36 = vpop.f32.mrb[124].mxu1  ;;  %5463 = vmatprep.mubr.bf16.mxu0 %v9673_v31 }
 0x202   : > { %v6986_v39 = vpop.f32.mrb[125].mxu1  ;;  %v3706_v25 = vrot.slane %v3705_v12, 4 }
 0x203   : > { %v6987_v37 = vadd.f32 %v6986_v39, %v6985_v36  ;;  %v6988_v10 = vpop.f32.mrb[126].mxu1  ;;  %v7191_v6 = vpop.f32.mrb[128].mxu0 }
 0x204   : > { %v6989_v40 = vpop.f32.mrb[127].mxu1  ;;  %v7192_v29 = vpop.f32.mrb[129].mxu0 }
 0x205   : > { %v9753_v57 = vadd.f32 %v6987_v37, %v10461_v33  ;;  %v6990_v44 = vadd.f32 %v6989_v40, %v6988_v10  ;;  %v9760_v43 = vadd.f32 %v7192_v29, %v7191_v6  ;;  %v7194_v38 = vpop.f32.mrb[130].mxu0  ;;  %v7959_v10 = vld [vmem:[%s8607_s11 + $0x9c] sm:$0xff]   ;;  %v3715_v40 = vor.u32 %v3714_v63, %v9763_v7  ;;  %v10466_v33 = vld [vmem:[#allocation31_spill] sm:$0xff] }
 0x206   : > { %5231 = vmatmul.mubr.bf16.gmra.mrb[232].mxu1 %v9298_v8  ;;  %v7195_v8 = vpop.f32.mrb[131].mxu0  ;;  %v3756_v29 = vshrl.u32 %v3232_v55, 16  ;;  %v3720_v63 = vrot.slane %v3718_v47, 5  ;;  %v3711_v47 = vsel %vm8072_vm2, %v3706_v25, %v9763_v7 }
 0x207   : > { %10462 = vst [vmem:[#allocation13_spill] sm:$0xff] %v9753_v57  ;;  %v9757_v11 = vadd.f32 %v6990_v44, %v10463_v16  ;;  %5238 = vmatprep.mubr.bf16.mxu1 %v10465_v23  ;;  %v9766_v36 = vadd.f32 %v7195_v8, %v7194_v38  ;;  %v3752_v16 = vshll.u32 %v3232_v55, 16  ;;  %v7960_v57 = vld [vmem:[%s8607_s11 + $0xa8] sm:$0xff]  }
 0x208   : > { %5464 = vmatmul.mubr.bf16.gmra.mrb[236].mxu0 %v7959_v10  ;;  %v3748_v10 = vrot.slane %v3746_v62, 5  ;;  %v10471_v62 = vld [vmem:[#allocation34_spill] sm:$0xff] }
 0x209   : > { %10464 = vst [vmem:[#allocation16_spill] sm:$0xff] %v9757_v11  ;;  %v6991_v45 = vpop.f32.mrb[128].mxu1  ;;  %5471 = vmatprep.mubr.bf16.mxu0 %v9691_v58 }
 0x20a   : > { %v6992_v41 = vpop.f32.mrb[129].mxu1 }
 0x20b   : > { %v6993_v39 = vadd.f32 %v6992_v41, %v6991_v45  ;;  %v6994_v37 = vpop.f32.mrb[130].mxu1  ;;  %v7197_v38 = vpop.f32.mrb[132].mxu0  ;;  %v10468_v45 = vld [vmem:[#allocation32_spill] sm:$0xff] }
 0x20c   : > { %v6995_v24 = vpop.f32.mrb[131].mxu1  ;;  %v7198_v1 = vpop.f32.mrb[133].mxu0 }
 0x20d   : > { %v9773_v44 = vadd.f32 %v6993_v39, %v10466_v33  ;;  %v6996_v6 = vadd.f32 %v6995_v24, %v6994_v37  ;;  %v9780_v46 = vadd.f32 %v7198_v1, %v7197_v38  ;;  %v7200_v41 = vpop.f32.mrb[134].mxu0  ;;  %v3716_v39 = vrot.slane %v3715_v40, 4  ;;  %v10473_v1 = vld [vmem:[#allocation35_spill] sm:$0xff] }
 0x20e   : > { %5239 = vmatmul.mubr.bf16.gmra.mrb[236].mxu1 %v9367_v48  ;;  %v3745_v37 = vrot.slane %v3743_v9, 4  ;;  %v7201_v24 = vpop.f32.mrb[135].mxu0  ;;  %v3754_v48 = vrot.slane %v3752_v16, 5  ;;  %v3758_v33 = vrot.slane %v3756_v29, 4 }
 0x20f   : > { %10467 = vst [vmem:[#allocation17_spill] sm:$0xff] %v9773_v44  ;;  %v9777_v8 = vadd.f32 %v6996_v6, %v10468_v45  ;;  %5246 = vmatprep.mubr.bf16.mxu1 %v10470_v17  ;;  %v9782_v6 = vadd.f32 %v7201_v24, %v7200_v41  ;;  %v3233_v45 = vld [vmem:[%s8607_s11 + $0xd4] sm:$0x1]  ;;  %v3721_v40 = vsel %vm8072_vm2, %v3716_v39, %v3720_v63 }
 0x210   : > { %5472 = vmatmul.mubr.bf16.gmra.mrb[240].mxu0 %v7960_v57  ;;  %v3749_v9 = vor.u32 %v3748_v10, %v3745_v37  ;;  %v3759_v38 = vor.u32 %v3758_v33, %v3754_v48  ;;  %v9802_v63 = vcombine.low %v3711_v47, %v3721_v40 }
 0x211   : > { %10469 = vst [vmem:[#allocation19_spill] sm:$0xff] %v9777_v8  ;;  %v6997_v55 = vpop.f32.mrb[132].mxu1  ;;  %5479 = vmatprep.mubr.bf16.mxu0 %v9707_v0 }
 0x212   : > { %v6998_v44 = vpop.f32.mrb[133].mxu1  ;;  %v3750_v37 = vrot.slane %v3749_v9, 4 }
 0x213   : > { %v6999_v8 = vadd.f32 %v6998_v44, %v6997_v55  ;;  %v7000_v11 = vpop.f32.mrb[134].mxu1  ;;  %v3762_v44 = vshll.u32 %v3233_v45, 16  ;;  %v7203_v57 = vpop.f32.mrb[136].mxu0  ;;  %v10475_v55 = vld [vmem:[#allocation20_spill] sm:$0xff] }
 0x214   : > { %v7001_v12 = vpop.f32.mrb[135].mxu1  ;;  %v7204_v24 = vpop.f32.mrb[137].mxu0  ;;  %v3755_v40 = vsel %vm8072_vm2, %v3750_v37, %v3754_v48 }
 0x215   : > { %v9793_v16 = vadd.f32 %v6999_v8, %v10471_v62  ;;  %v7002_v29 = vadd.f32 %v7001_v12, %v7000_v11  ;;  %v9800_v7 = vadd.f32 %v7204_v24, %v7203_v57  ;;  %v7206_v25 = vpop.f32.mrb[138].mxu0  ;;  %v3760_v11 = vrot.slane %v3759_v38, 4 }
 0x216   : > { %5247 = vmatmul.mubr.bf16.gmra.mrb[240].mxu1 %v9415_v22  ;;  %v7207_v8 = vpop.f32.mrb[139].mxu0  ;;  %v3764_v10 = vrot.slane %v3762_v44, 5 }
 0x217   : > { %10472 = vst [vmem:[#allocation8_spill] sm:$0xff] %v9793_v16  ;;  %v9797_v41 = vadd.f32 %v7002_v29, %v10473_v1  ;;  %5254 = vmatprep.mubr.bf16.mxu1 %v10475_v55  ;;  %v9804_v45 = vadd.f32 %v7207_v8, %v7206_v25  ;;  %v10476_v29 = vld [vmem:[#allocation37_spill] sm:$0xff] }
 0x218   : > { %5480 = vmatmul.mubr.bf16.gmra.mrb[244].mxu0 %v9448_v51  ;;  %v3765_v9 = vsel %vm8072_vm2, %v3760_v11, %v3764_v10  ;;  %v10479_v51 = vld [vmem:[#allocation21_spill] sm:$0xff] }
 0x219   : > { %10474 = vst [vmem:[#allocation23_spill] sm:$0xff] %v9797_v41  ;;  %v7003_v39 = vpop.f32.mrb[136].mxu1  ;;  %5487 = vmatprep.mubr.bf16.mxu0 %v9802_v63 }
 0x21a   : > { %v7004_v33 = vpop.f32.mrb[137].mxu1 }
 0x21b   : > { %v7005_v22 = vadd.f32 %v7004_v33, %v7003_v39  ;;  %v7006_v12 = vpop.f32.mrb[138].mxu1  ;;  %v7209_v38 = vpop.f32.mrb[140].mxu0  ;;  %v6318_v39 = vcombine.low %v3755_v40, %v3765_v9 }
 0x21c   : > { %v7007_v62 = vpop.f32.mrb[139].mxu1  ;;  %v7210_v1 = vpop.f32.mrb[141].mxu0 }
 0x21d   : > { %v9809_v57 = vadd.f32 %v7005_v22, %v10476_v29  ;;  %v7008_v47 = vadd.f32 %v7007_v62, %v7006_v12  ;;  %v9820_v24 = vadd.f32 %v7210_v1, %v7209_v38  ;;  %v7212_v25 = vpop.f32.mrb[142].mxu0  ;;  %v10481_v12 = vld [vmem:[#allocation39_spill] sm:$0xff]  ;;  %v10483_v29 = vld [vmem:[#allocation22_spill] sm:$0xff] }
 0x21e   : > { %5255 = vmatmul.mubr.bf16.gmra.mrb[244].mxu1 %v9455_v21  ;;  %v7213_v33 = vpop.f32.mrb[143].mxu0 }
 0x21f   : > { %10477 = vst [vmem:[#allocation11_spill] sm:$0xff] %v9809_v57  ;;  %v9817_v44 = vadd.f32 %v7008_v47, %v9485_v52  ;;  %5262 = vmatprep.mubr.bf16.mxu1 %v10479_v51  ;;  %v9822_v37 = vadd.f32 %v7213_v33, %v7212_v25  ;;  %v7930_v47 = vld [vmem:[%s8607_s11 + $0xcc] sm:$0xff]   ;;  %v10484_v33 = vld [vmem:[#allocation40_spill] sm:$0xff] }
 0x220   : > { %5488 = vmatmul.mubr.bf16.gmra.mrb[248].mxu0 %v9482_v3 }
 0x221   : > { %10478 = vst [vmem:[#allocation26_spill] sm:$0xff] %v9817_v44  ;;  %v7009_v8 = vpop.f32.mrb[140].mxu1  ;;  %5495 = vmatprep.mubr.bf16.mxu0 %v6318_v39 }
 0x222   : > { %v7010_v48 = vpop.f32.mrb[141].mxu1 }
 0x223   : > { %v7011_v35 = vadd.f32 %v7010_v48, %v7009_v8  ;;  %v7012_v11 = vpop.f32.mrb[142].mxu1  ;;  %v7215_v22 = vpop.f32.mrb[144].mxu0 }
 0x224   : > { %v7013_v21 = vpop.f32.mrb[143].mxu1  ;;  %v7216_v40 = vpop.f32.mrb[145].mxu0 }
 0x225   : > { %v9826_v52 = vadd.f32 %v7011_v35, %v9507_v14  ;;  %v7014_v10 = vadd.f32 %v7013_v21, %v7012_v11  ;;  %v9834_v9 = vadd.f32 %v7216_v40, %v7215_v22  ;;  %v7218_v38 = vpop.f32.mrb[146].mxu0  ;;  %v10486_v21 = vld [vmem:[#allocation41_spill] sm:$0xff]  ;;  %v10488_v22 = vld [vmem:[#allocation24_spill] sm:$0xff] }
 0x226   : > { %5263 = vmatmul.mubr.bf16.gmra.mrb[248].mxu1 %v9494_v49  ;;  %v7219_v1 = vpop.f32.mrb[147].mxu0 }
 0x227   : > { %10480 = vst [vmem:[#allocation14_spill] sm:$0xff] %v9826_v52  ;;  %v9830_v62 = vadd.f32 %v7014_v10, %v10481_v12  ;;  %5270 = vmatprep.mubr.bf16.mxu1 %v10483_v29  ;;  %v9836_v39 = vadd.f32 %v7219_v1, %v7218_v38 }
 0x228   : > { %5496 = vmatmul.mubr.bf16.gmra.mrb[252].mxu0 %v7930_v47 }
 0x229   : > { %10482 = vst [vmem:[#allocation28_spill] sm:$0xff] %v9830_v62  ;;  %v7015_v3 = vpop.f32.mrb[144].mxu1  ;;  %7599 = vmatprep.mubr.bf16.mxu0 %v10458_v30 }
 0x22a   : > { %v7016_v25 = vpop.f32.mrb[145].mxu1 }
 0x22b   : > { %v7017_v14 = vadd.f32 %v7016_v25, %v7015_v3  ;;  %v7018_v8 = vpop.f32.mrb[146].mxu1  ;;  %v7221_v11 = vpop.f32.mrb[148].mxu0 }
 0x22c   : > { %v7019_v49 = vpop.f32.mrb[147].mxu1  ;;  %v7222_v12 = vpop.f32.mrb[149].mxu0 }
 0x22d   : > { %v9840_v48 = vadd.f32 %v7017_v14, %v10484_v33  ;;  %v7020_v35 = vadd.f32 %v7019_v49, %v7018_v8  ;;  %v9847_v40 = vadd.f32 %v7222_v12, %v7221_v11  ;;  %v7224_v38 = vpop.f32.mrb[150].mxu0 }
 0x22e   : > { %5271 = vmatmul.mubr.bf16.gmra.mrb[252].mxu1 %v9523_v28  ;;  %v7225_v3 = vpop.f32.mrb[151].mxu0 }
 0x22f   : > { %10485 = vst [vmem:[#allocation29_spill] sm:$0xff] %v9840_v48  ;;  %v9844_v10 = vadd.f32 %v7020_v35, %v10486_v21  ;;  %5278 = vmatprep.mubr.bf16.mxu1 %v10488_v22  ;;  %v9849_v30 = vadd.f32 %v7225_v3, %v7224_v38  ;;  %v10490_v35 = vld [vmem:[#allocation6_spill] sm:$0xff]  ;;  %v10492_v21 = vld [vmem:[#allocation25_spill] sm:$0xff] }
 0x230   : > { %7600 = vmatmul.mubr.bf16.vlgmr.msra.gmra.mrb[96].mxu0 %v10460_v56 }
 0x231   : > { %10487 = vst [vmem:[#allocation15_spill] sm:$0xff] %v9844_v10  ;;  %v7021_v47 = vpop.f32.mrb[148].mxu1  ;;  %7603 = vmatprep.mubr.bf16.mxu0 %v10465_v23 }
 0x232   : > { %v7022_v1 = vpop.f32.mrb[149].mxu1 }
 0x233   : > { %v7023_v25 = vadd.f32 %v7022_v1, %v7021_v47  ;;  %v7024_v14 = vpop.f32.mrb[150].mxu1  ;;  %v7227_v33 = vpop.f32.mrb[152].mxu0 }
 0x234   : > { %v7025_v28 = vpop.f32.mrb[151].mxu1  ;;  %v7228_v12 = vpop.f32.mrb[153].mxu0 }
 0x235   : > { %v9854_v8 = vadd.f32 %v7023_v25, %v9577_v5  ;;  %v7026_v49 = vadd.f32 %v7025_v28, %v7024_v14  ;;  %v9861_v38 = vadd.f32 %v7228_v12, %v7227_v33  ;;  %v7230_v47 = vpop.f32.mrb[154].mxu0  ;;  %v10493_v14 = vld [vmem:[#allocation7_spill] sm:$0xff] }
 0x236   : > { %5279 = vmatmul.mubr.bf16.gmra.mrb[0].mxu1 %v9548_v20  ;;  %v7231_v3 = vpop.f32.mrb[155].mxu0  ;;  %v10496_v12 = vld [vmem:[#allocation27_spill] sm:$0xff] }
 0x237   : > { %10489 = vst [vmem:[#allocation31_spill] sm:$0xff] %v9854_v8  ;;  %v9858_v11 = vadd.f32 %v7026_v49, %v10490_v35  ;;  %5286 = vmatprep.mubr.bf16.mxu1 %v10492_v21  ;;  %v9863_v23 = vadd.f32 %v7231_v3, %v7230_v47 }
 0x238   : > { %7604 = vmatmul.mubr.bf16.gmra.mrb[100].mxu0 %v10470_v17 }
 0x239   : > { %10491 = vst [vmem:[#allocation32_spill] sm:$0xff] %v9858_v11  ;;  %v7027_v56 = vpop.f32.mrb[152].mxu1  ;;  %7607 = vmatprep.mubr.bf16.mxu0 %v10475_v55 }
 0x23a   : > { %v7028_v1 = vpop.f32.mrb[153].mxu1 }
 0x23b   : > { %v7029_v5 = vadd.f32 %v7028_v1, %v7027_v56  ;;  %v7030_v25 = vpop.f32.mrb[154].mxu1  ;;  %v7233_v33 = vpop.f32.mrb[156].mxu0 }
 0x23c   : > { %v7031_v20 = vpop.f32.mrb[155].mxu1  ;;  %v7234_v47 = vpop.f32.mrb[157].mxu0 }
 0x23d   : > { %v9868_v28 = vadd.f32 %v7029_v5, %v10493_v14  ;;  %v7032_v49 = vadd.f32 %v7031_v20, %v7030_v25  ;;  %v9875_v56 = vadd.f32 %v7234_v47, %v7233_v33  ;;  %v7236_v3 = vpop.f32.mrb[158].mxu0  ;;  %v10500_v47 = vld [vmem:[#allocation30_spill] sm:$0xff] }
 0x23e   : > { %5287 = vmatmul.mubr.bf16.gmra.mrb[4].mxu1 %v9591_v18  ;;  %v7237_v1 = vpop.f32.mrb[159].mxu0 }
 0x23f   : > { %10494 = vst [vmem:[#allocation18_spill] sm:$0xff] %v9868_v28  ;;  %v9872_v35 = vadd.f32 %v7032_v49, %v9613_v19  ;;  %5294 = vmatprep.mubr.bf16.mxu1 %v10496_v12  ;;  %v9877_v55 = vadd.f32 %v7237_v1, %v7236_v3  ;;  %v10498_v49 = vld [vmem:[#allocation9_spill] sm:$0xff] }
 0x240   : > { %7608 = vmatmul.mubr.bf16.gmra.mrb[104].mxu0 %v10479_v51 }
 0x241   : > { %10495 = vst [vmem:[#allocation34_spill] sm:$0xff] %v9872_v35  ;;  %v7033_v17 = vpop.f32.mrb[156].mxu1  ;;  %7611 = vmatprep.mubr.bf16.mxu0 %v10483_v29 }
 0x242   : > { %v7034_v11 = vpop.f32.mrb[157].mxu1 }
 0x243   : > { %v7035_v5 = vadd.f32 %v7034_v11, %v7033_v17  ;;  %v7036_v14 = vpop.f32.mrb[158].mxu1  ;;  %v7239_v20 = vpop.f32.mrb[160].mxu0 }
 0x244   : > { %v7037_v18 = vpop.f32.mrb[159].mxu1  ;;  %v7240_v3 = vpop.f32.mrb[161].mxu0 }
 0x245   : > { %v9882_v19 = vadd.f32 %v7035_v5, %v9642_v59  ;;  %v7038_v25 = vadd.f32 %v7037_v18, %v7036_v14  ;;  %v9889_v11 = vadd.f32 %v7240_v3, %v7239_v20  ;;  %v7242_v17 = vpop.f32.mrb[162].mxu0 }
 0x246   : > { %5295 = vmatmul.mubr.bf16.gmra.mrb[8].mxu1 %v9621_v32  ;;  %v7243_v1 = vpop.f32.mrb[163].mxu0 }
 0x247   : > { %10497 = vst [vmem:[#allocation35_spill] sm:$0xff] %v9882_v19  ;;  %v9886_v33 = vadd.f32 %v7038_v25, %v10498_v49  ;;  %5302 = vmatprep.mubr.bf16.mxu1 %v10500_v47  ;;  %v9891_v29 = vadd.f32 %v7243_v1, %v7242_v17  ;;  %v10501_v49 = vld [vmem:[#allocation33_spill] sm:$0xff] }
 0x248   : > { %7612 = vmatmul.mubr.bf16.gmra.mrb[108].mxu0 %v10488_v22  ;;  %v3835_v1 = vld [vmem:[%s8607_s11 + $0xc4] sm:$0xf] }
 0x249   : > { %10499 = vst [vmem:[#allocation20_spill] sm:$0xff] %v9886_v33  ;;  %v7079_v51 = vpop.f32.mrb[160].mxu1  ;;  %7615 = vmatprep.mubr.bf16.mxu0 %v10492_v21  ;;  %v3838_v33 = vld [vmem:[%s8607_s11 + $0xd0] sm:$0xf] }
 0x24a   : > { %v7080_v35 = vpop.f32.mrb[161].mxu1 }
 0x24b   : > { %v7081_v59 = vadd.f32 %v7080_v35, %v7079_v51  ;;  %v7082_v5 = vpop.f32.mrb[162].mxu1  ;;  %v7245_v25 = vpop.f32.mrb[164].mxu0 }
 0x24c   : > { %v7083_v32 = vpop.f32.mrb[163].mxu1  ;;  %v7246_v35 = vpop.f32.mrb[165].mxu0 }
 0x24d   : > { %v9896_v14 = vadd.f32 %v9760_v43, %v7081_v59  ;;  %v7084_v18 = vadd.f32 %v7083_v32, %v7082_v5  ;;  %v9903_v3 = vadd.f32 %v7246_v35, %v7245_v25  ;;  %v7248_v22 = vpop.f32.mrb[166].mxu0  ;;  %v3834_v35 = vld [vmem:[%s8607_s11 + $0xc0] sm:$0xe] }
 0x24e   : > { %5303 = vmatmul.mubr.bf16.gmra.mrb[12].mxu1 %v9647_v53  ;;  %v7249_v21 = vpop.f32.mrb[167].mxu0 }
 0x24f   : > { %v9900_v20 = vadd.f32 %v9766_v36, %v7084_v18  ;;  %5310 = vmatprep.mubr.bf16.mxu1 %v10501_v49  ;;  %v9905_v43 = vadd.f32 %v7249_v21, %v7248_v22  ;;  %v4085_v18 = vrot.slane %v3835_v1, 5  ;;  %v3836_v22 = vld [vmem:[%s8607_s11 + $0xc8] sm:$0x1] }
 0x250   : > { %7616 = vmatmul.mubr.bf16.gmra.mrb[112].mxu0 %v10496_v12 }
 0x251   : > { %v7085_v17 = vpop.f32.mrb[164].mxu1  ;;  %7619 = vmatprep.mubr.bf16.mxu0 %v10500_v47  ;;  %v4087_v1 = vrot.slane %v4085_v18, 4 }
 0x252   : > { %v7086_v51 = vpop.f32.mrb[165].mxu1 }
 0x253   : > { %v7087_v59 = vadd.f32 %v7086_v51, %v7085_v17  ;;  %v7088_v53 = vpop.f32.mrb[166].mxu1  ;;  %v7251_v25 = vpop.f32.mrb[168].mxu0  ;;  %v10502_v17 = vld [vmem:[#allocation36_spill] sm:$0xff] }
 0x254   : > { %v7089_v36 = vpop.f32.mrb[167].mxu1  ;;  %v7252_v51 = vpop.f32.mrb[169].mxu0 }
 0x255   : > { %v9911_v5 = vadd.f32 %v9780_v46, %v7087_v59  ;;  %v7090_v32 = vadd.f32 %v7089_v36, %v7088_v53  ;;  %v9920_v12 = vadd.f32 %v7252_v51, %v7251_v25  ;;  %v7254_v47 = vpop.f32.mrb[170].mxu0  ;;  %v6351_v53 = vrot.slane %v3834_v35, 9  ;;  %v3837_v25 = vld [vmem:[%s8607_s11 + $0xcc] sm:$0xe] }
 0x256   : > { %5311 = vmatmul.mubr.bf16.gmra.mrb[16].mxu1 %v9673_v31  ;;  %v7255_v59 = vpop.f32.mrb[171].mxu0  ;;  %v4088_v31 = vrot.slane %v3836_v22, 5  ;;  %v4115_v51 = vrot.slane %v3838_v33, 5 }
 0x257   : > { %v9917_v21 = vadd.f32 %v9782_v6, %v7090_v32  ;;  %5318 = vmatprep.mubr.bf16.mxu1 %v10502_v17  ;;  %v9923_v19 = vadd.f32 %v7255_v59, %v7254_v47  ;;  %v4086_v48 = vsel %vm8334_vm5, %v6351_v53, %v4085_v18  ;;  %v3839_v47 = vld [vmem:[%s8607_s11 + $0xd4] sm:$0x1]  ;;  %v6353_v59 = vrot.slane %v3837_v25, 9 }
 0x258   : > { %7620 = vmatmul.mubr.bf16.gmra.mrb[116].mxu0 %v10501_v49  ;;  %v4089_v22 = vsel %vm8334_vm5, %v4087_v1, %v4088_v31  ;;  %v4118_v18 = vrot.slane %v3839_v47, 5 }
 0x259   : > { %v7091_v46 = vpop.f32.mrb[168].mxu1  ;;  %7623 = vmatprep.mubr.bf16.mxu0 %v10502_v17  ;;  %v10504_v17 = vld [vmem:[#allocation38_spill] sm:$0xff] }
 0x25a   : > { %v7092_v36 = vpop.f32.mrb[169].mxu1 }
 0x25b   : > { %v7093_v28 = vadd.f32 %v7092_v36, %v7091_v46  ;;  %v7094_v6 = vpop.f32.mrb[170].mxu1  ;;  %v7257_v46 = vpop.f32.mrb[172].mxu0  ;;  %v6352_v36 = vcombine.low %v4086_v48, %v4089_v22 }
 0x25c   : > { %v7095_v32 = vpop.f32.mrb[171].mxu1  ;;  %v7258_v33 = vpop.f32.mrb[173].mxu0 }
 0x25d   : > { %v9929_v8 = vadd.f32 %v9800_v7, %v7093_v28  ;;  %v7096_v10 = vadd.f32 %v7095_v32, %v7094_v6  ;;  %v9941_v7 = vadd.f32 %v7258_v33, %v7257_v46  ;;  %v7260_v28 = vpop.f32.mrb[174].mxu0  ;;  %v4117_v6 = vrot.slane %v4115_v51, 4 }
 0x25e   : > { %5319 = vmatmul.mubr.bf16.gmra.mrb[20].mxu1 %v9691_v58  ;;  %v7261_v32 = vpop.f32.mrb[175].mxu0 }
 0x25f   : > { %v9938_v49 = vadd.f32 %v9804_v45, %v7096_v10  ;;  %5326 = vmatprep.mubr.bf16.mxu1 %v10504_v17  ;;  %v9943_v31 = vadd.f32 %v7261_v32, %v7260_v28  ;;  %v4116_v10 = vsel %vm8334_vm5, %v6353_v59, %v4115_v51  ;;  %v4119_v25 = vsel %vm8334_vm5, %v4117_v6, %v4118_v18 }
 0x260   : > { %7624 = vmatmul.mubr.bf16.gmra.mrb[120].mxu0 %v10504_v17  ;;  %v6354_v17 = vcombine.low %v4116_v10, %v4119_v25 }
 0x261   : > { %v7097_v53 = vpop.f32.mrb[172].mxu1  ;;  %7627 = vmatprep.mubr.bf16.mxu0 %v6352_v36 }
 0x262   : > { %v7098_v1 = vpop.f32.mrb[173].mxu1 }
 0x263   : > { %v7099_v58 = vadd.f32 %v7098_v1, %v7097_v53  ;;  %v7100_v62 = vpop.f32.mrb[174].mxu1  ;;  %v7263_v47 = vpop.f32.mrb[176].mxu0 }
 0x264   : > { %v7101_v45 = vpop.f32.mrb[175].mxu1  ;;  %v7264_v33 = vpop.f32.mrb[177].mxu0 }
 0x265   : > { %v9951_v48 = vadd.f32 %v9820_v24, %v7099_v58  ;;  %v7102_v22 = vadd.f32 %v7101_v45, %v7100_v62  ;;  %v9957_v28 = vadd.f32 %v7264_v33, %v7263_v47  ;;  %v7266_v53 = vpop.f32.mrb[178].mxu0 }
 0x266   : > { %5327 = vmatmul.mubr.bf16.gmra.mrb[24].mxu1 %v9707_v0  ;;  %v7267_v59 = vpop.f32.mrb[179].mxu0 }
 0x267   : > { %v9955_v46 = vadd.f32 %v9822_v37, %v7102_v22  ;;  %5334 = vmatprep.mubr.bf16.mxu1 %v6352_v36  ;;  %v9959_v6 = vadd.f32 %v7267_v59, %v7266_v53 }
 0x268   : > { %7628 = vmatmul.mubr.bf16.gmra.mrb[124].mxu0 %v6354_v17 }
 0x269   : > { %v7103_v51 = vpop.f32.mrb[176].mxu1 }
 0x26a   : > { %v7104_v35 = vpop.f32.mrb[177].mxu1 }
 0x26b   : > { %v7105_v24 = vadd.f32 %v7104_v35, %v7103_v51  ;;  %v7106_v18 = vpop.f32.mrb[178].mxu1  ;;  %v7269_v36 = vpop.f32.mrb[180].mxu0 }
 0x26c   : > { %v7107_v62 = vpop.f32.mrb[179].mxu1  ;;  %v7270_v1 = vpop.f32.mrb[181].mxu0 }
 0x26d   : > { %v9962_v0 = vadd.f32 %v9834_v9, %v7105_v24  ;;  %v7108_v37 = vadd.f32 %v7107_v62, %v7106_v18  ;;  %v9968_v58 = vadd.f32 %v7270_v1, %v7269_v36  ;;  %v7272_v45 = vpop.f32.mrb[182].mxu0 }
 0x26e   : > { %5335 = vmatmul.mubr.bf16.gmra.mrb[28].mxu1 %v9802_v63  ;;  %v7273_v25 = vpop.f32.mrb[183].mxu0 }
 0x26f   : > { %v9966_v32 = vadd.f32 %v9836_v39, %v7108_v37  ;;  %v9970_v47 = vadd.f32 %v7273_v25, %v7272_v45 }
 0x271   : > { %v7109_v10 = vpop.f32.mrb[180].mxu1 }
 0x272   : > { %v7110_v22 = vpop.f32.mrb[181].mxu1 }
 0x273   : > { %v7111_v17 = vadd.f32 %v7110_v22, %v7109_v10  ;;  %v7112_v33 = vpop.f32.mrb[182].mxu1  ;;  %v7275_v51 = vpop.f32.mrb[184].mxu0 }
 0x274   : > { %v7113_v9 = vpop.f32.mrb[183].mxu1  ;;  %v7276_v59 = vpop.f32.mrb[185].mxu0 }
 0x275   : > { %v9973_v53 = vadd.f32 %v9847_v40, %v7111_v17  ;;  %v7114_v63 = vadd.f32 %v7113_v9, %v7112_v33  ;;  %v9978_v35 = vadd.f32 %v7276_v59, %v7275_v51  ;;  %v7278_v24 = vpop.f32.mrb[186].mxu0 }
 0x276   : > { %v7279_v62 = vpop.f32.mrb[187].mxu0 }
 0x277   : > { %v9976_v39 = vadd.f32 %v9849_v30, %v7114_v63  ;;  %v9980_v36 = vadd.f32 %v7279_v62, %v7278_v24 }
 0x279   : > { %v7115_v18 = vpop.f32.mrb[184].mxu1 }
 0x27a   : > { %v7116_v37 = vpop.f32.mrb[185].mxu1 }
 0x27b   : > { %v7117_v1 = vadd.f32 %v7116_v37, %v7115_v18  ;;  %v7118_v45 = vpop.f32.mrb[186].mxu1  ;;  %v7281_v22 = vpop.f32.mrb[188].mxu0 }
 0x27c   : > { %v7119_v10 = vpop.f32.mrb[187].mxu1  ;;  %v7282_v17 = vpop.f32.mrb[189].mxu0 }
 0x27d   : > { %v9983_v40 = vadd.f32 %v9861_v38, %v7117_v1  ;;  %v7120_v25 = vadd.f32 %v7119_v10, %v7118_v45  ;;  %v9988_v33 = vadd.f32 %v7282_v17, %v7281_v22  ;;  %v7284_v9 = vpop.f32.mrb[190].mxu0 }
 0x27e   : > { %v7285_v51 = vpop.f32.mrb[191].mxu0 }
 0x27f   : > { %v9986_v30 = vadd.f32 %v9863_v23, %v7120_v25  ;;  %v9990_v24 = vadd.f32 %v7285_v51, %v7284_v9 }
 0x281   : > { %v7121_v63 = vpop.f32.mrb[188].mxu1 }
 0x282   : > { %v7122_v59 = vpop.f32.mrb[189].mxu1 }
 0x283   : > { %v7123_v18 = vadd.f32 %v7122_v59, %v7121_v63  ;;  %v7124_v62 = vpop.f32.mrb[190].mxu1  ;;  %v7415_v45 = vpop.f32.mrb[192].mxu0 }
 0x284   : > { %v7125_v37 = vpop.f32.mrb[191].mxu1  ;;  %v7416_v10 = vpop.f32.mrb[193].mxu0 }
 0x285   : > { %v9993_v38 = vadd.f32 %v9875_v56, %v7123_v18  ;;  %v7126_v1 = vadd.f32 %v7125_v37, %v7124_v62  ;;  %v9998_v25 = vadd.f32 %v7416_v10, %v7415_v45  ;;  %v7418_v22 = vpop.f32.mrb[194].mxu0 }
 0x286   : > { %v7419_v52 = vpop.f32.mrb[195].mxu0 }
 0x287   : > { %v9996_v23 = vadd.f32 %v9877_v55, %v7126_v1  ;;  %v10000_v9 = vadd.f32 %v7419_v52, %v7418_v22 }
 0x289   : > { %v7127_v17 = vpop.f32.mrb[192].mxu1 }
 0x28a   : > { %v7128_v44 = vpop.f32.mrb[193].mxu1 }
 0x28b   : > { %v7129_v63 = vadd.f32 %v7128_v44, %v7127_v17  ;;  %v7130_v51 = vpop.f32.mrb[194].mxu1  ;;  %v7421_v62 = vpop.f32.mrb[196].mxu0 }
 0x28c   : > { %v7131_v59 = vpop.f32.mrb[195].mxu1  ;;  %v7422_v37 = vpop.f32.mrb[197].mxu0 }
 0x28d   : > { %v10003_v56 = vadd.f32 %v9889_v11, %v7129_v63  ;;  %v7132_v18 = vadd.f32 %v7131_v59, %v7130_v51  ;;  %v10008_v1 = vadd.f32 %v7422_v37, %v7421_v62  ;;  %v7424_v45 = vpop.f32.mrb[198].mxu0 }
 0x28e   : > { %v7425_v57 = vpop.f32.mrb[199].mxu0 }
 0x28f   : > { %v10006_v55 = vadd.f32 %v9891_v29, %v7132_v18  ;;  %v10010_v52 = vadd.f32 %v7425_v57, %v7424_v45 }
 0x291   : > { %10505 = vst [vmem:[#allocation37_spill] sm:$0xff] %v10006_v55  ;;  %v7133_v10 = vpop.f32.mrb[196].mxu1 }
 0x292   : > { %v7134_v41 = vpop.f32.mrb[197].mxu1 }
 0x293   : > { %v7135_v44 = vadd.f32 %v7134_v41, %v7133_v10  ;;  %v7136_v22 = vpop.f32.mrb[198].mxu1  ;;  %v7427_v51 = vpop.f32.mrb[200].mxu0 }
 0x294   : > { %v7137_v17 = vpop.f32.mrb[199].mxu1  ;;  %v7428_v59 = vpop.f32.mrb[201].mxu0 }
 0x295   : > { %v10013_v11 = vadd.f32 %v9903_v3, %v7135_v44  ;;  %v7138_v63 = vadd.f32 %v7137_v17, %v7136_v22  ;;  %v10018_v18 = vadd.f32 %v7428_v59, %v7427_v51  ;;  %v7430_v62 = vpop.f32.mrb[202].mxu0 }
 0x296   : > { %v7431_v16 = vpop.f32.mrb[203].mxu0 }
 0x297   : > { %10506 = vst [vmem:[#allocation21_spill] sm:$0xff] %v10013_v11  ;;  %v10016_v29 = vadd.f32 %v9905_v43, %v7138_v63  ;;  %v10020_v57 = vadd.f32 %v7431_v16, %v7430_v62 }
 0x299   : > { %10507 = vst [vmem:[#allocation39_spill] sm:$0xff] %v10016_v29  ;;  %v7139_v37 = vpop.f32.mrb[200].mxu1 }
 0x29a   : > { %v7140_v55 = vpop.f32.mrb[201].mxu1 }
 0x29b   : > { %v7141_v41 = vadd.f32 %v7140_v55, %v7139_v37  ;;  %v7142_v45 = vpop.f32.mrb[202].mxu1  ;;  %v7433_v22 = vpop.f32.mrb[204].mxu0 }
 0x29c   : > { %v7143_v10 = vpop.f32.mrb[203].mxu1  ;;  %v7434_v17 = vpop.f32.mrb[205].mxu0 }
 0x29d   : > { %v10023_v3 = vadd.f32 %v9920_v12, %v7141_v41  ;;  %v7144_v44 = vadd.f32 %v7143_v10, %v7142_v45  ;;  %v10028_v63 = vadd.f32 %v7434_v17, %v7433_v22  ;;  %v7436_v51 = vpop.f32.mrb[206].mxu0 }
 0x29e   : > { %v7437_v29 = vpop.f32.mrb[207].mxu0 }
 0x29f   : > { %10508 = vst [vmem:[#allocation22_spill] sm:$0xff] %v10023_v3  ;;  %v10026_v43 = vadd.f32 %v9923_v19, %v7144_v44  ;;  %v10030_v16 = vadd.f32 %v7437_v29, %v7436_v51 }
 0x2a1   : > { %10509 = vst [vmem:[#allocation40_spill] sm:$0xff] %v10026_v43  ;;  %v7145_v59 = vpop.f32.mrb[204].mxu1 }
 0x2a2   : > { %v7146_v11 = vpop.f32.mrb[205].mxu1 }
 0x2a3   : > { %v7147_v55 = vadd.f32 %v7146_v11, %v7145_v59  ;;  %v7148_v62 = vpop.f32.mrb[206].mxu1  ;;  %v7439_v45 = vpop.f32.mrb[208].mxu0 }
 0x2a4   : > { %v7149_v37 = vpop.f32.mrb[207].mxu1  ;;  %v7440_v10 = vpop.f32.mrb[209].mxu0 }
 0x2a5   : > { %v10033_v12 = vadd.f32 %v9941_v7, %v7147_v55  ;;  %v7150_v41 = vadd.f32 %v7149_v37, %v7148_v62  ;;  %v10038_v44 = vadd.f32 %v7440_v10, %v7439_v45  ;;  %v7442_v22 = vpop.f32.mrb[210].mxu0 }
 0x2a6   : > { %v7443_v43 = vpop.f32.mrb[211].mxu0 }
 0x2a7   : > { %10510 = vst [vmem:[#allocation41_spill] sm:$0xff] %v10033_v12  ;;  %v10036_v19 = vadd.f32 %v9943_v31, %v7150_v41  ;;  %v10040_v29 = vadd.f32 %v7443_v43, %v7442_v22 }
 0x2a9   : > { %10511 = vst [vmem:[#allocation24_spill] sm:$0xff] %v10036_v19  ;;  %v7151_v17 = vpop.f32.mrb[208].mxu1 }
 0x2aa   : > { %v7152_v3 = vpop.f32.mrb[209].mxu1 }
 0x2ab   : > { %v7153_v11 = vadd.f32 %v7152_v3, %v7151_v17  ;;  %v7154_v51 = vpop.f32.mrb[210].mxu1  ;;  %v7445_v62 = vpop.f32.mrb[212].mxu0 }
 0x2ac   : > { %v7155_v59 = vpop.f32.mrb[211].mxu1  ;;  %v7446_v37 = vpop.f32.mrb[213].mxu0 }
 0x2ad   : > { %v10043_v7 = vadd.f32 %v9957_v28, %v7153_v11  ;;  %v7156_v55 = vadd.f32 %v7155_v59, %v7154_v51  ;;  %v10048_v41 = vadd.f32 %v7446_v37, %v7445_v62  ;;  %v7448_v45 = vpop.f32.mrb[214].mxu0 }
 0x2ae   : > { %v7449_v19 = vpop.f32.mrb[215].mxu0 }
 0x2af   : > { %10512 = vst [vmem:[#allocation6_spill] sm:$0xff] %v10043_v7  ;;  %v10046_v31 = vadd.f32 %v9959_v6, %v7156_v55  ;;  %v10050_v43 = vadd.f32 %v7449_v19, %v7448_v45 }
 0x2b1   : > { %10513 = vst [vmem:[#allocation25_spill] sm:$0xff] %v10046_v31  ;;  %v7157_v10 = vpop.f32.mrb[212].mxu1 }
 0x2b2   : > { %v7158_v12 = vpop.f32.mrb[213].mxu1 }
 0x2b3   : > { %v7159_v3 = vadd.f32 %v7158_v12, %v7157_v10  ;;  %v7160_v22 = vpop.f32.mrb[214].mxu1  ;;  %v7451_v51 = vpop.f32.mrb[216].mxu0 }
 0x2b4   : > { %v7161_v17 = vpop.f32.mrb[215].mxu1  ;;  %v7452_v59 = vpop.f32.mrb[217].mxu0 }
 0x2b5   : > { %v10053_v28 = vadd.f32 %v9968_v58, %v7159_v3  ;;  %v7162_v11 = vadd.f32 %v7161_v17, %v7160_v22  ;;  %v10058_v55 = vadd.f32 %v7452_v59, %v7451_v51  ;;  %v7454_v62 = vpop.f32.mrb[218].mxu0 }
 0x2b6   : > { %v7455_v31 = vpop.f32.mrb[219].mxu0 }
 0x2b7   : > { %10514 = vst [vmem:[#allocation7_spill] sm:$0xff] %v10053_v28  ;;  %v10056_v6 = vadd.f32 %v9970_v47, %v7162_v11  ;;  %v10060_v19 = vadd.f32 %v7455_v31, %v7454_v62 }
 0x2b9   : > { %10515 = vst [vmem:[#allocation27_spill] sm:$0xff] %v10056_v6  ;;  %v7163_v37 = vpop.f32.mrb[216].mxu1 }
 0x2ba   : > { %v7164_v7 = vpop.f32.mrb[217].mxu1 }
 0x2bb   : > { %v7165_v12 = vadd.f32 %v7164_v7, %v7163_v37  ;;  %v7166_v45 = vpop.f32.mrb[218].mxu1  ;;  %v7457_v22 = vpop.f32.mrb[220].mxu0 }
 0x2bc   : > { %v7167_v10 = vpop.f32.mrb[219].mxu1  ;;  %v7458_v17 = vpop.f32.mrb[221].mxu0 }
 0x2bd   : > { %v10063_v58 = vadd.f32 %v9978_v35, %v7165_v12  ;;  %v7168_v3 = vadd.f32 %v7167_v10, %v7166_v45  ;;  %v10068_v11 = vadd.f32 %v7458_v17, %v7457_v22  ;;  %v7460_v51 = vpop.f32.mrb[222].mxu0 }
 0x2be   : > { %v7461_v6 = vpop.f32.mrb[223].mxu0 }
 0x2bf   : > { %10516 = vst [vmem:[#allocation9_spill] sm:$0xff] %v10063_v58  ;;  %v10066_v47 = vadd.f32 %v9980_v36, %v7168_v3  ;;  %v10070_v31 = vadd.f32 %v7461_v6, %v7460_v51 }
 0x2c1   : > { %10517 = vst [vmem:[#allocation30_spill] sm:$0xff] %v10066_v47  ;;  %v7169_v59 = vpop.f32.mrb[220].mxu1 }
 0x2c2   : > { %v7170_v28 = vpop.f32.mrb[221].mxu1 }
 0x2c3   : > { %v7171_v7 = vadd.f32 %v7170_v28, %v7169_v59  ;;  %v7172_v62 = vpop.f32.mrb[222].mxu1  ;;  %v7463_v45 = vpop.f32.mrb[224].mxu0 }
 0x2c4   : > { %v7173_v37 = vpop.f32.mrb[223].mxu1  ;;  %v7464_v10 = vpop.f32.mrb[225].mxu0 }
 0x2c5   : > { %v10073_v35 = vadd.f32 %v9988_v33, %v7171_v7  ;;  %v7174_v12 = vadd.f32 %v7173_v37, %v7172_v62  ;;  %v10078_v3 = vadd.f32 %v7464_v10, %v7463_v45  ;;  %v7466_v22 = vpop.f32.mrb[226].mxu0 }
 0x2c6   : > { %v7467_v47 = vpop.f32.mrb[227].mxu0 }
 0x2c7   : > { %10518 = vst [vmem:[#allocation33_spill] sm:$0xff] %v10073_v35  ;;  %v10076_v36 = vadd.f32 %v9990_v24, %v7174_v12  ;;  %10520 = vst [vmem:[#allocation5_spill] sm:$0xff] %v10078_v3  ;;  %v10080_v6 = vadd.f32 %v7467_v47, %v7466_v22  ;;  %v10521_v3 = vld [vmem:[#allocation10_spill] sm:$0xff] }
 0x2c9   : > { %10519 = vst [vmem:[#allocation36_spill] sm:$0xff] %v10076_v36  ;;  %v7303_v17 = vpop.f32.mrb[224].mxu1 }
 0x2ca   : > { %v7304_v58 = vpop.f32.mrb[225].mxu1 }
 0x2cb   : > { %v7305_v28 = vadd.f32 %v7304_v58, %v7303_v17  ;;  %v7306_v51 = vpop.f32.mrb[226].mxu1  ;;  %v7469_v62 = vpop.f32.mrb[228].mxu0 }
 0x2cc   : > { %v7307_v59 = vpop.f32.mrb[227].mxu1  ;;  %v7470_v24 = vpop.f32.mrb[229].mxu0 }
 0x2cd   : > { %v5217_v33 = vadd.f32 %v7305_v28, %v9896_v14  ;;  %v7308_v7 = vadd.f32 %v7307_v59, %v7306_v51  ;;  %v10085_v45 = vadd.f32 %v7470_v24, %v7469_v62  ;;  %v7472_v10 = vpop.f32.mrb[230].mxu0  ;;  %v10522_v51 = vld [vmem:[#allocation12_spill] sm:$0xff] }
 0x2ce   : > { %v7473_v35 = vpop.f32.mrb[231].mxu0 }
 0x2cf   : > { %v5220_v37 = vadd.f32 %v7308_v7, %v9900_v20  ;;  %v5378_v12 = vadd.f32 %v9998_v25, %v5217_v33  ;;  %v10091_v17 = vadd.f32 %v7473_v35, %v7472_v10 }
 0x2d1   : > { %v7309_v36 = vpop.f32.mrb[228].mxu1  ;;  %v10088_v47 = vadd.f32 %v5378_v12, %v10521_v3  ;;  %v5381_v58 = vadd.f32 %v10000_v9, %v5220_v37 }
 0x2d2   : > { %v7310_v22 = vpop.f32.mrb[229].mxu1 }
 0x2d3   : > { %v7311_v14 = vadd.f32 %v7310_v22, %v7309_v36  ;;  %v7312_v28 = vpop.f32.mrb[230].mxu1  ;;  %v10094_v20 = vadd.f32 %v5381_v58, %v10522_v51  ;;  %v7475_v7 = vpop.f32.mrb[232].mxu0 }
 0x2d4   : > { %v7313_v59 = vpop.f32.mrb[231].mxu1  ;;  %v7476_v24 = vpop.f32.mrb[233].mxu0 }
 0x2d5   : > { %v5225_v25 = vadd.f32 %v7311_v14, %v9911_v5  ;;  %v7314_v33 = vadd.f32 %v7313_v59, %v7312_v28  ;;  %v10099_v12 = vadd.f32 %v7476_v24, %v7475_v7  ;;  %v7478_v9 = vpop.f32.mrb[234].mxu0 }
 0x2d6   : > { %v7479_v37 = vpop.f32.mrb[235].mxu0 }
 0x2d7   : > { %v5228_v62 = vadd.f32 %v7314_v33, %v9917_v21  ;;  %v5386_v3 = vadd.f32 %v10008_v1, %v5225_v25  ;;  %v10105_v22 = vadd.f32 %v7479_v37, %v7478_v9 }
 0x2d9   : > { %v7315_v35 = vpop.f32.mrb[232].mxu1  ;;  %v10102_v36 = vadd.f32 %v5386_v3, %v9678_v13  ;;  %v5389_v10 = vadd.f32 %v10010_v52, %v5228_v62 }
 0x2da   : > { %v7316_v58 = vpop.f32.mrb[233].mxu1 }
 0x2db   : > { %v7317_v5 = vadd.f32 %v7316_v58, %v7315_v35  ;;  %v7318_v14 = vpop.f32.mrb[234].mxu1  ;;  %v10108_v21 = vadd.f32 %v5389_v10, %v9683_v42  ;;  %v7481_v59 = vpop.f32.mrb[236].mxu0 }
 0x2dc   : > { %v7319_v28 = vpop.f32.mrb[235].mxu1  ;;  %v7482_v33 = vpop.f32.mrb[237].mxu0 }
 0x2dd   : > { %v5233_v1 = vadd.f32 %v7317_v5, %v9929_v8  ;;  %v7320_v51 = vadd.f32 %v7319_v28, %v7318_v14  ;;  %v10113_v7 = vadd.f32 %v7482_v33, %v7481_v59  ;;  %v7484_v52 = vpop.f32.mrb[238].mxu0 }
 0x2de   : > { %v7485_v24 = vpop.f32.mrb[239].mxu0 }
 0x2df   : > { %v5236_v25 = vadd.f32 %v7320_v51, %v9938_v49  ;;  %v5394_v13 = vadd.f32 %v10018_v18, %v5233_v1  ;;  %v10119_v35 = vadd.f32 %v7485_v24, %v7484_v52 }
 0x2e1   : > { %v7321_v62 = vpop.f32.mrb[236].mxu1  ;;  %v10116_v3 = vadd.f32 %v5394_v13, %v9695_v34  ;;  %v5397_v42 = vadd.f32 %v10020_v57, %v5236_v25 }
 0x2e2   : > { %v7322_v9 = vpop.f32.mrb[237].mxu1 }
 0x2e3   : > { %v7323_v8 = vadd.f32 %v7322_v9, %v7321_v62  ;;  %v7324_v37 = vpop.f32.mrb[238].mxu1  ;;  %v10122_v49 = vadd.f32 %v5397_v42, %v9699_v27  ;;  %v7487_v5 = vpop.f32.mrb[240].mxu0 }
 0x2e4   : > { %v7325_v10 = vpop.f32.mrb[239].mxu1  ;;  %v7488_v28 = vpop.f32.mrb[241].mxu0 }
 0x2e5   : > { %v5241_v18 = vadd.f32 %v7323_v8, %v9951_v48  ;;  %v7326_v58 = vadd.f32 %v7325_v10, %v7324_v37  ;;  %v10127_v1 = vadd.f32 %v7488_v28, %v7487_v5  ;;  %v7490_v57 = vpop.f32.mrb[242].mxu0 }
 0x2e6   : > { %v7491_v59 = vpop.f32.mrb[243].mxu0 }
 0x2e7   : > { %v5244_v14 = vadd.f32 %v7326_v58, %v9955_v46  ;;  %v5402_v34 = vadd.f32 %v10028_v63, %v5241_v18  ;;  %v10133_v13 = vadd.f32 %v7491_v59, %v7490_v57 }
 0x2e9   : > { %v7327_v51 = vpop.f32.mrb[240].mxu1  ;;  %v10130_v25 = vadd.f32 %v5402_v34, %v9711_v61  ;;  %v5405_v27 = vadd.f32 %v10030_v16, %v5244_v14 }
 0x2ea   : > { %v7328_v33 = vpop.f32.mrb[241].mxu1 }
 0x2eb   : > { %v7329_v48 = vadd.f32 %v7328_v33, %v7327_v51  ;;  %v7330_v52 = vpop.f32.mrb[242].mxu1  ;;  %v10136_v46 = vadd.f32 %v5405_v27, %v9715_v15  ;;  %v7493_v42 = vpop.f32.mrb[244].mxu0 }
 0x2ec   : > { %v7331_v62 = vpop.f32.mrb[243].mxu1  ;;  %v7494_v8 = vpop.f32.mrb[245].mxu0 }
 0x2ed   : > { %v5249_v63 = vadd.f32 %v7329_v48, %v9962_v0  ;;  %v7332_v24 = vadd.f32 %v7331_v62, %v7330_v52  ;;  %v10141_v37 = vadd.f32 %v7494_v8, %v7493_v42  ;;  %v7496_v16 = vpop.f32.mrb[246].mxu0 }
 0x2ee   : > { %v7497_v18 = vpop.f32.mrb[247].mxu0 }
 0x2ef   : > { %v5252_v9 = vadd.f32 %v7332_v24, %v9966_v32  ;;  %v5410_v61 = vadd.f32 %v10038_v44, %v5249_v63  ;;  %v10147_v14 = vadd.f32 %v7497_v18, %v7496_v16 }
 0x2f1   : > { %v7333_v10 = vpop.f32.mrb[244].mxu1  ;;  %v10144_v58 = vadd.f32 %v5410_v61, %v9721_v2  ;;  %v5413_v15 = vadd.f32 %v10040_v29, %v5252_v9 }
 0x2f2   : > { %v7334_v5 = vpop.f32.mrb[245].mxu1 }
 0x2f3   : > { %v7335_v0 = vadd.f32 %v7334_v5, %v7333_v10  ;;  %v7336_v28 = vpop.f32.mrb[246].mxu1  ;;  %v10150_v32 = vadd.f32 %v5413_v15, %v9725_v26  ;;  %v7499_v51 = vpop.f32.mrb[248].mxu0 }
 0x2f4   : > { %v7337_v34 = vpop.f32.mrb[247].mxu1  ;;  %v7500_v27 = vpop.f32.mrb[249].mxu0 }
 0x2f5   : > { %v5257_v44 = vadd.f32 %v7335_v0, %v9973_v53  ;;  %v7338_v57 = vadd.f32 %v7337_v34, %v7336_v28  ;;  %v10155_v33 = vadd.f32 %v7500_v27, %v7499_v51  ;;  %v7502_v29 = vpop.f32.mrb[250].mxu0 }
 0x2f6   : > { %v7503_v52 = vpop.f32.mrb[251].mxu0 }
 0x2f7   : > { %v5260_v59 = vadd.f32 %v7338_v57, %v9976_v39  ;;  %v5418_v2 = vadd.f32 %v10048_v41, %v5257_v44  ;;  %v10161_v24 = vadd.f32 %v7503_v52, %v7502_v29 }
 0x2f9   : > { %v7339_v48 = vpop.f32.mrb[248].mxu1  ;;  %v10158_v62 = vadd.f32 %v5418_v2, %v9731_v50  ;;  %v5421_v26 = vadd.f32 %v10050_v43, %v5260_v59 }
 0x2fa   : > { %v7340_v63 = vpop.f32.mrb[249].mxu1 }
 0x2fb   : > { %v7341_v53 = vadd.f32 %v7340_v63, %v7339_v48  ;;  %v7342_v42 = vpop.f32.mrb[250].mxu1  ;;  %v10164_v39 = vadd.f32 %v5421_v26, %v9735_v60  ;;  %v7505_v61 = vpop.f32.mrb[252].mxu0 }
 0x2fc   : > { %v7343_v9 = vpop.f32.mrb[251].mxu1  ;;  %v7506_v10 = vpop.f32.mrb[253].mxu0 }
 0x2fd   : > { %v5265_v41 = vadd.f32 %v7341_v53, %v9983_v40  ;;  %v7344_v8 = vadd.f32 %v7343_v9, %v7342_v42  ;;  %v10169_v18 = vadd.f32 %v7506_v10, %v7505_v61  ;;  %v7508_v43 = vpop.f32.mrb[254].mxu0  ;;  %v10523_v53 = vld [vmem:[#allocation13_spill] sm:$0xff]  ;;  %v10524_v10 = vld [vmem:[#allocation16_spill] sm:$0xff] }
 0x2fe   : > { %v7509_v5 = vpop.f32.mrb[255].mxu0 }
 0x2ff   : > { %v5268_v16 = vadd.f32 %v7344_v8, %v9986_v30  ;;  %v5426_v50 = vadd.f32 %v10058_v55, %v5265_v41  ;;  %v10175_v34 = vadd.f32 %v7509_v5, %v7508_v43 }
 0x301   : > { %v7345_v15 = vpop.f32.mrb[252].mxu1  ;;  %v10172_v0 = vadd.f32 %v5426_v50, %v9741_v54  ;;  %v5429_v60 = vadd.f32 %v10060_v19, %v5268_v16  ;;  %v10184_v54 = vld [vmem:[%s10366_s4] ss:$0 sm:$0xff] }
 0x302   : > { %v7346_v28 = vpop.f32.mrb[253].mxu1 }
 0x303   : > { %v7347_v40 = vadd.f32 %v7346_v28, %v7345_v15  ;;  %v7348_v44 = vpop.f32.mrb[254].mxu1  ;;  %v10178_v30 = vadd.f32 %v5429_v60, %v9745_v4  ;;  %v7601_v59 = vpop.f32.mrb[96].mxu0  ;;  %v10192_v4 = vld [vmem:[%s10367_s5] ss:$0 sm:$0xff] }
 0x304   : > { %v7349_v57 = vpop.f32.mrb[255].mxu1  ;;  %v7648_v27 = vadd.f32 %v10102_v36, %v7601_v59  ;;  %v5538_v2 = vpop.f32.mrb[97].mxu0 }
 0x305   : > { %v5273_v55 = vadd.f32 %v7347_v40, %v9993_v38  ;;  %v7350_v51 = vadd.f32 %v7349_v57, %v7348_v44  ;;  %v7650_v38 = vadd.f32 %v10088_v47, %v5538_v2  ;;  %v7602_v48 = vpop.f32.mrb[98].mxu0  ;;  %v10525_v57 = vld [vmem:[#allocation37_spill] sm:$0xff] }
 0x306   : > { %v5802_v26 = vmul.f32 %v7648_v27, %v10184_v54  ;;  %v7652_v63 = vadd.f32 %v10108_v21, %v7602_v48 }
 0x307   : > { %v5276_v19 = vadd.f32 %v7350_v51, %v9996_v23  ;;  %v5434_v29 = vadd.f32 %v10068_v11, %v5273_v55  ;;  %v5541_v23 = vpop.f32.mrb[99].mxu0  ;;  %v5800_v9 = vmul.f32 %v7650_v38, %v10184_v54 }
 0x308   : > { %v7654_v41 = vadd.f32 %v10094_v20, %v5541_v23  ;;  %v5841_v47 = vadd.f32 %v10192_v4, %v5802_v26  ;;  %v5803_v16 = vmul.f32 %v7652_v63, %v10184_v54  ;;  %v10527_v23 = vld [vmem:[#allocation17_spill] sm:$0xff] }
 0x309   : > { %v7351_v52 = vpop.f32.mrb[0].mxu1  ;;  %v10198_v36 = vadd.f32 %v5434_v29, %v10523_v53  ;;  %v5437_v11 = vadd.f32 %v10070_v31, %v5276_v19  ;;  %v5839_v50 = vadd.f32 %v10192_v4, %v5800_v9  ;;  %v10526_v19 = vld [vmem:[#allocation5_spill] sm:$0xff] }
 0x30a   : > { %v7352_v42 = vpop.f32.mrb[1].mxu1  ;;  %v5801_v15 = vmul.f32 %v7654_v41, %v10184_v54  ;;  %v5842_v5 = vadd.f32 %v10192_v4, %v5803_v16  ;;  %v5873_v60 = vmax.f32 %v5841_v47, 0.0 }
 0x30b   : > { %v7353_v8 = vadd.f32 %v7352_v42, %v7351_v52  ;;  %v7354_v61 = vpop.f32.mrb[2].mxu1  ;;  %v10206_v21 = vadd.f32 %v5437_v11, %v10524_v10  ;;  %v7605_v40 = vpop.f32.mrb[100].mxu0  ;;  %v5871_v2 = vmax.f32 %v5839_v50, 0.0 }
 0x30c   : > { %v7355_v43 = vpop.f32.mrb[3].mxu1  ;;  %v5840_v28 = vadd.f32 %v10192_v4, %v5801_v15  ;;  %v5874_v44 = vmax.f32 %v5842_v5, 0.0  ;;  %v7656_v51 = vadd.f32 %v10130_v25, %v7605_v40  ;;  %v5554_v59 = vpop.f32.mrb[101].mxu0 }
 0x30d   : > { %v5281_v31 = vadd.f32 %v7353_v8, %v10003_v56  ;;  %v7356_v20 = vadd.f32 %v7355_v43, %v7354_v61  ;;  %v7658_v29 = vadd.f32 %v10116_v3, %v5554_v59  ;;  %v7606_v38 = vpop.f32.mrb[102].mxu0  ;;  %v10528_v43 = vld [vmem:[#allocation19_spill] sm:$0xff] }
 0x30e   : > { %v5872_v56 = vmax.f32 %v5840_v28, 0.0  ;;  %v6504_v48 = vpack.c.bf16 %v5874_v44, %v5873_v60  ;;  %v5806_v26 = vmul.f32 %v7656_v51, %v10184_v54  ;;  %v7660_v25 = vadd.f32 %v10136_v46, %v7606_v38  ;;  %v5557_v63 = vpop.f32.mrb[103].mxu0  ;;  %v10530_v44 = vld [vmem:[#allocation39_spill] sm:$0xff] }
 0x30f   : > { %v5284_v55 = vadd.f32 %v7356_v20, %v10525_v57  ;;  %v5442_v27 = vadd.f32 %v10526_v19, %v5281_v31  ;;  %v5804_v9 = vmul.f32 %v7658_v29, %v10184_v54  ;;  %v7662_v41 = vadd.f32 %v10122_v49, %v5557_v63  ;;  %v10529_v31 = vld [vmem:[#allocation21_spill] sm:$0xff] }
 0x310   : > { %v6499_v11 = vpack.c.bf16 %v5872_v56, %v5871_v2  ;;  %6576 = vst [vmem:[%s10220_s22 + $0x8] sm:$0xff] %v6504_v48   ;;  %v5845_v47 = vadd.f32 %v10192_v4, %v5806_v26  ;;  %v5807_v16 = vmul.f32 %v7660_v25, %v10184_v54  ;;  %v10531_v25 = vld [vmem:[#allocation8_spill] sm:$0xff] }
 0x311   : > { %v7357_v52 = vpop.f32.mrb[4].mxu1  ;;  %v10226_v53 = vadd.f32 %v5442_v27, %v10527_v23  ;;  %v5445_v3 = vadd.f32 %v10080_v6, %v5284_v55  ;;  %v5843_v46 = vadd.f32 %v10192_v4, %v5804_v9  ;;  %v5805_v50 = vmul.f32 %v7662_v41, %v10184_v54 }
 0x312   : > { %v7358_v42 = vpop.f32.mrb[5].mxu1  ;;  %6500 = vst [vmem:[%s10220_s22] sm:$0xff] %v6499_v11   ;;  %v5846_v6 = vadd.f32 %v10192_v4, %v5807_v16  ;;  %v5877_v20 = vmax.f32 %v5845_v47, 0.0 }
 0x313   : > { %v7359_v8 = vadd.f32 %v7358_v42, %v7357_v52  ;;  %v7360_v61 = vpop.f32.mrb[6].mxu1  ;;  %v10238_v15 = vadd.f32 %v5445_v3, %v10528_v43  ;;  %v5844_v60 = vadd.f32 %v10192_v4, %v5805_v50  ;;  %v7609_v28 = vpop.f32.mrb[104].mxu0  ;;  %v5875_v19 = vmax.f32 %v5843_v46, 0.0  ;;  %v10533_v46 = vld [vmem:[#allocation22_spill] sm:$0xff] }
 0x314   : > { %v7361_v10 = vpop.f32.mrb[7].mxu1  ;;  %v5878_v40 = vmax.f32 %v5846_v6, 0.0  ;;  %v7664_v55 = vadd.f32 %v10158_v62, %v7609_v28  ;;  %v5570_v51 = vpop.f32.mrb[105].mxu0  ;;  %v10534_v6 = vld [vmem:[#allocation40_spill] sm:$0xff] }
 0x315   : > { %v5289_v49 = vadd.f32 %v7359_v8, %v10529_v31  ;;  %v7362_v5 = vadd.f32 %v7361_v10, %v7360_v61  ;;  %v5876_v27 = vmax.f32 %v5844_v60, 0.0  ;;  %v7666_v2 = vadd.f32 %v10144_v58, %v5570_v51  ;;  %v7610_v56 = vpop.f32.mrb[106].mxu0  ;;  %v10532_v61 = vld [vmem:[#allocation23_spill] sm:$0xff] }
 0x316   : > { %v6514_v29 = vpack.c.bf16 %v5878_v40, %v5877_v20  ;;  %v5810_v48 = vmul.f32 %v7664_v55, %v10184_v54  ;;  %v7668_v52 = vadd.f32 %v10164_v39, %v7610_v56  ;;  %v5573_v26 = vpop.f32.mrb[107].mxu0  ;;  %v10535_v56 = vld [vmem:[#allocation11_spill] sm:$0xff] }
 0x317   : > { %v5292_v57 = vadd.f32 %v7362_v5, %v10530_v44  ;;  %v5450_v59 = vadd.f32 %v10085_v45, %v5289_v49  ;;  %v6509_v62 = vpack.c.bf16 %v5876_v27, %v5875_v19  ;;  %v5808_v45 = vmul.f32 %v7666_v2, %v10184_v54 }
 0x318   : > { %v7670_v11 = vadd.f32 %v10150_v32, %v5573_v26  ;;  %6578 = vst [vmem:[%s10220_s22 + $0x18] sm:$0xff] %v6514_v29   ;;  %v5849_v58 = vadd.f32 %v10192_v4, %v5810_v48  ;;  %v5811_v3 = vmul.f32 %v7668_v52, %v10184_v54 }
 0x319   : > { %v7363_v38 = vpop.f32.mrb[8].mxu1  ;;  %v7679_v63 = vadd.f32 %v5450_v59, %v10531_v25  ;;  %v5453_v42 = vadd.f32 %v10091_v17, %v5292_v57  ;;  %6577 = vst [vmem:[%s10220_s22 + $0x10] sm:$0xff] %v6509_v62   ;;  %v5847_v39 = vadd.f32 %v10192_v4, %v5808_v45 }
 0x31a   : > { %v7364_v23 = vpop.f32.mrb[9].mxu1  ;;  %v5809_v8 = vmul.f32 %v7670_v11, %v10184_v54  ;;  %v5850_v32 = vadd.f32 %v10192_v4, %v5811_v3  ;;  %v5881_v50 = vmax.f32 %v5849_v58, 0.0  ;;  %v10536_v11 = vld [vmem:[#allocation26_spill] sm:$0xff]  ;;  %v10537_v58 = vld [vmem:[#allocation41_spill] sm:$0xff] }
 0x31b   : > { %v7365_v9 = vadd.f32 %v7364_v23, %v7363_v38  ;;  %v7366_v41 = vpop.f32.mrb[10].mxu1  ;;  %v7683_v16 = vadd.f32 %v5453_v42, %v10532_v61  ;;  %v7613_v31 = vpop.f32.mrb[108].mxu0  ;;  %v5879_v40 = vmax.f32 %v5847_v39, 0.0 }
 0x31c   : > { %v7367_v47 = vpop.f32.mrb[11].mxu1  ;;  %v5848_v43 = vadd.f32 %v10192_v4, %v5809_v8  ;;  %v5882_v49 = vmax.f32 %v5850_v32, 0.0  ;;  %v7672_v20 = vadd.f32 %v10198_v36, %v7613_v31  ;;  %v5586_v60 = vpop.f32.mrb[109].mxu0  ;;  %v10538_v8 = vld [vmem:[#allocation24_spill] sm:$0xff] }
 0x31d   : > { %v5297_v10 = vadd.f32 %v7365_v9, %v10533_v46  ;;  %v7368_v17 = vadd.f32 %v7367_v47, %v7366_v41  ;;  %v7674_v57 = vadd.f32 %v10172_v0, %v5586_v60  ;;  %v7614_v55 = vpop.f32.mrb[110].mxu0 }
 0x31e   : > { %v5880_v44 = vmax.f32 %v5848_v43, 0.0  ;;  %v6524_v51 = vpack.c.bf16 %v5882_v49, %v5881_v50  ;;  %v5814_v19 = vmul.f32 %v7672_v20, %v10184_v54  ;;  %v7676_v27 = vadd.f32 %v10206_v21, %v7614_v55  ;;  %v5589_v2 = vpop.f32.mrb[111].mxu0 }
 0x31f   : > { %v5300_v5 = vadd.f32 %v7368_v17, %v10534_v6  ;;  %v5458_v28 = vadd.f32 %v10099_v12, %v5297_v10  ;;  %v5812_v12 = vmul.f32 %v7674_v57, %v10184_v54  ;;  %v7678_v48 = vadd.f32 %v10178_v30, %v5589_v2 }
 0x320   : > { %v6519_v36 = vpack.c.bf16 %v5880_v44, %v5879_v40  ;;  %6580 = vst [vmem:[%s10220_s22 + $0x28] sm:$0xff] %v6524_v51   ;;  %v5853_v52 = vadd.f32 %v10192_v4, %v5814_v19  ;;  %v5815_v62 = vmul.f32 %v7676_v27, %v10184_v54 }
 0x321   : > { %v7369_v59 = vpop.f32.mrb[12].mxu1  ;;  %v10270_v29 = vadd.f32 %v5458_v28, %v10535_v56  ;;  %v5461_v0 = vadd.f32 %v10105_v22, %v5300_v5  ;;  %v5851_v21 = vadd.f32 %v10192_v4, %v5812_v12  ;;  %v5813_v45 = vmul.f32 %v7678_v48, %v10184_v54  ;;  %v10539_v28 = vld [vmem:[#allocation14_spill] sm:$0xff]  ;;  %v10540_v56 = vld [vmem:[#allocation28_spill] sm:$0xff] }
 0x322   : > { %v7370_v38 = vpop.f32.mrb[13].mxu1  ;;  %6579 = vst [vmem:[%s10220_s22 + $0x20] sm:$0xff] %v6519_v36   ;;  %v5854_v30 = vadd.f32 %v10192_v4, %v5815_v62  ;;  %v5885_v41 = vmax.f32 %v5853_v52, 0.0 }
 0x323   : > { %v7371_v26 = vadd.f32 %v7370_v38, %v7369_v59  ;;  %v7372_v25 = vpop.f32.mrb[14].mxu1  ;;  %v7693_v42 = vadd.f32 %v5461_v0, %v10536_v11  ;;  %v5852_v3 = vadd.f32 %v10192_v4, %v5813_v45  ;;  %v7617_v39 = vpop.f32.mrb[112].mxu0  ;;  %v5883_v17 = vmax.f32 %v5851_v21, 0.0  ;;  %v10541_v38 = vld [vmem:[#allocation6_spill] sm:$0xff] }
 0x324   : > { %v7373_v23 = vpop.f32.mrb[15].mxu1  ;;  %v5886_v47 = vmax.f32 %v5854_v30, 0.0  ;;  %v7680_v46 = vadd.f32 %v7679_v63, %v7617_v39  ;;  %v5602_v10 = vpop.f32.mrb[113].mxu0 }
 0x325   : > { %v5305_v9 = vadd.f32 %v7371_v26, %v10537_v58  ;;  %v7374_v22 = vadd.f32 %v7373_v23, %v7372_v25  ;;  %v5884_v50 = vmax.f32 %v5852_v3, 0.0  ;;  %v7682_v43 = vadd.f32 %v10226_v53, %v5602_v10  ;;  %v7618_v31 = vpop.f32.mrb[114].mxu0  ;;  %v10542_v25 = vld [vmem:[#allocation25_spill] sm:$0xff] }
 0x326   : > { %v6534_v49 = vpack.c.bf16 %v5886_v47, %v5885_v41  ;;  %v5818_v5 = vmul.f32 %v7680_v46, %v10184_v54  ;;  %v7684_v20 = vadd.f32 %v7683_v16, %v7618_v31  ;;  %v5605_v60 = vpop.f32.mrb[115].mxu0 }
 0x327   : > { %v5308_v61 = vadd.f32 %v7374_v22, %v10538_v8  ;;  %v5466_v32 = vadd.f32 %v10113_v7, %v5305_v9  ;;  %v6529_v44 = vpack.c.bf16 %v5884_v50, %v5883_v17  ;;  %v5816_v57 = vmul.f32 %v7682_v43, %v10184_v54  ;;  %v10543_v8 = vld [vmem:[#allocation29_spill] sm:$0xff] }
 0x328   : > { %v7686_v7 = vadd.f32 %v10238_v15, %v5605_v60  ;;  %6582 = vst [vmem:[%s10220_s22 + $0x38] sm:$0xff] %v6534_v49   ;;  %v5857_v53 = vadd.f32 %v10192_v4, %v5818_v5  ;;  %v5819_v19 = vmul.f32 %v7684_v20, %v10184_v54  ;;  %v10544_v20 = vld [vmem:[#allocation15_spill] sm:$0xff] }
 0x329   : > { %v7375_v6 = vpop.f32.mrb[16].mxu1  ;;  %v7687_v40 = vadd.f32 %v5466_v32, %v10539_v28  ;;  %v5469_v55 = vadd.f32 %v10119_v35, %v5308_v61  ;;  %6581 = vst [vmem:[%s10220_s22 + $0x30] sm:$0xff] %v6529_v44   ;;  %v5855_v16 = vadd.f32 %v10192_v4, %v5816_v57  ;;  %v10545_v28 = vld [vmem:[#allocation7_spill] sm:$0xff] }
 0x32a   : > { %v7376_v63 = vpop.f32.mrb[17].mxu1  ;;  %v5817_v2 = vmul.f32 %v7686_v7, %v10184_v54  ;;  %v5858_v15 = vadd.f32 %v10192_v4, %v5819_v19  ;;  %v5889_v48 = vmax.f32 %v5857_v53, 0.0 }
 0x32b   : > { %v7377_v51 = vadd.f32 %v7376_v63, %v7375_v6  ;;  %v7378_v59 = vpop.f32.mrb[18].mxu1  ;;  %v7691_v36 = vadd.f32 %v5469_v55, %v10540_v56  ;;  %v7621_v52 = vpop.f32.mrb[116].mxu0  ;;  %v5887_v11 = vmax.f32 %v5855_v16, 0.0  ;;  %v10546_v55 = vld [vmem:[#allocation27_spill] sm:$0xff] }
 0x32c   : > { %v7379_v27 = vpop.f32.mrb[19].mxu1  ;;  %v5856_v0 = vadd.f32 %v10192_v4, %v5817_v2  ;;  %v5890_v26 = vmax.f32 %v5858_v15, 0.0  ;;  %v7688_v21 = vadd.f32 %v7687_v40, %v7621_v52  ;;  %v5618_v23 = vpop.f32.mrb[117].mxu0 }
 0x32d   : > { %v5313_v12 = vadd.f32 %v7377_v51, %v10541_v38  ;;  %v7380_v35 = vadd.f32 %v7379_v27, %v7378_v59  ;;  %v7690_v9 = vadd.f32 %v10270_v29, %v5618_v23  ;;  %v7622_v30 = vpop.f32.mrb[118].mxu0  ;;  %v10547_v38 = vld [vmem:[#allocation31_spill] sm:$0xff] }
 0x32e   : > { %v5888_v58 = vmax.f32 %v5856_v0, 0.0  ;;  %v6544_v22 = vpack.c.bf16 %v5890_v26, %v5889_v48  ;;  %v5822_v3 = vmul.f32 %v7688_v21, %v10184_v54  ;;  %v7692_v39 = vadd.f32 %v7691_v36, %v7622_v30  ;;  %v5621_v47 = vpop.f32.mrb[119].mxu0  ;;  %v10548_v21 = vld [vmem:[#allocation32_spill] sm:$0xff] }
 0x32f   : > { %v5316_v62 = vadd.f32 %v7380_v35, %v10542_v25  ;;  %v5474_v45 = vadd.f32 %v10127_v1, %v5313_v12  ;;  %v5820_v32 = vmul.f32 %v7690_v9, %v10184_v54  ;;  %v7694_v1 = vadd.f32 %v7693_v42, %v5621_v47  ;;  %v10549_v9 = vld [vmem:[#allocation9_spill] sm:$0xff] }
 0x330   : > { %v6539_v46 = vpack.c.bf16 %v5888_v58, %v5887_v11  ;;  %6584 = vst [vmem:[%s10220_s22 + $0x48] sm:$0xff] %v6544_v22   ;;  %v5861_v29 = vadd.f32 %v10192_v4, %v5822_v3  ;;  %v5823_v31 = vmul.f32 %v7692_v39, %v10184_v54 }
 0x331   : > { %v7381_v41 = vpop.f32.mrb[20].mxu1  ;;  %v7697_v61 = vadd.f32 %v5474_v45, %v10543_v8  ;;  %v5477_v17 = vadd.f32 %v10133_v13, %v5316_v62  ;;  %v5859_v49 = vadd.f32 %v10192_v4, %v5820_v32  ;;  %v5821_v5 = vmul.f32 %v7694_v1, %v10184_v54 }
 0x332   : > { %v7382_v10 = vpop.f32.mrb[21].mxu1  ;;  %6583 = vst [vmem:[%s10220_s22 + $0x40] sm:$0xff] %v6539_v46   ;;  %v5862_v42 = vadd.f32 %v10192_v4, %v5823_v31  ;;  %v5893_v57 = vmax.f32 %v5861_v29, 0.0  ;;  %v10551_v31 = vld [vmem:[#allocation18_spill] sm:$0xff] }
 0x333   : > { %v7383_v50 = vadd.f32 %v7382_v10, %v7381_v41  ;;  %v7384_v43 = vpop.f32.mrb[22].mxu1  ;;  %v7701_v60 = vadd.f32 %v5477_v17, %v10544_v20  ;;  %v5860_v44 = vadd.f32 %v10192_v4, %v5821_v5  ;;  %v7625_v63 = vpop.f32.mrb[120].mxu0  ;;  %v5891_v19 = vmax.f32 %v5859_v49, 0.0 }
 0x334   : > { %v7385_v6 = vpop.f32.mrb[23].mxu1  ;;  %v5894_v7 = vmax.f32 %v5862_v42, 0.0  ;;  %v5634_v59 = vpop.f32.mrb[121].mxu0 }
 0x335   : > { %v5321_v40 = vadd.f32 %v7383_v50, %v10545_v28  ;;  %v7386_v13 = vadd.f32 %v7385_v6, %v7384_v43  ;;  %v5892_v16 = vmax.f32 %v5860_v44, 0.0  ;;  %v7698_v27 = vadd.f32 %v7697_v61, %v5634_v59  ;;  %v7626_v2 = vpop.f32.mrb[122].mxu0  ;;  %v10550_v61 = vld [vmem:[#allocation30_spill] sm:$0xff] }
 0x336   : > { %v6554_v56 = vpack.c.bf16 %v5894_v7, %v5893_v57  ;;  %v5637_v35 = vpop.f32.mrb[123].mxu0  ;;  %v10552_v44 = vld [vmem:[#allocation34_spill] sm:$0xff] }
 0x337   : > { %v5324_v53 = vadd.f32 %v7386_v13, %v10546_v55  ;;  %v5482_v51 = vadd.f32 %v10141_v37, %v5321_v40  ;;  %v6549_v48 = vpack.c.bf16 %v5892_v16, %v5891_v19  ;;  %v5824_v52 = vmul.f32 %v7698_v27, %v10184_v54  ;;  %v10553_v55 = vld [vmem:[#allocation33_spill] sm:$0xff]  ;;  %v10554_v16 = vld [vmem:[#allocation36_spill] sm:$0xff] }
 0x338   : > { %v7702_v26 = vadd.f32 %v7701_v60, %v5637_v35  ;;  %6586 = vst [vmem:[%s10220_s22 + $0x58] sm:$0xff] %v6554_v56  }
 0x339   : > { %v7387_v36 = vpop.f32.mrb[24].mxu1  ;;  %v7695_v12 = vadd.f32 %v5482_v51, %v10547_v38  ;;  %v5485_v15 = vadd.f32 %v10147_v14, %v5324_v53  ;;  %6585 = vst [vmem:[%s10220_s22 + $0x50] sm:$0xff] %v6549_v48   ;;  %v5863_v45 = vadd.f32 %v10192_v4, %v5824_v52  ;;  %v10556_v48 = vld [vmem:[#allocation20_spill] sm:$0xff] }
 0x33a   : > { %v7388_v0 = vpop.f32.mrb[25].mxu1  ;;  %v5825_v58 = vmul.f32 %v7702_v26, %v10184_v54 }
 0x33b   : > { %v7696_v37 = vadd.f32 %v7695_v12, %v7625_v63  ;;  %v7389_v25 = vadd.f32 %v7388_v0, %v7387_v36  ;;  %v7390_v62 = vpop.f32.mrb[26].mxu1  ;;  %v7699_v23 = vadd.f32 %v5485_v15, %v10548_v21  ;;  %v7629_v39 = vpop.f32.mrb[124].mxu0  ;;  %v5895_v1 = vmax.f32 %v5863_v45, 0.0  ;;  %v10555_v36 = vld [vmem:[#allocation35_spill] sm:$0xff] }
 0x33c   : > { %v7391_v11 = vpop.f32.mrb[27].mxu1  ;;  %v5864_v3 = vadd.f32 %v10192_v4, %v5825_v58  ;;  %v5650_v32 = vpop.f32.mrb[125].mxu0 }
 0x33d   : > { %v5826_v14 = vmul.f32 %v7696_v37, %v10184_v54  ;;  %v5329_v30 = vadd.f32 %v7389_v25, %v10549_v9  ;;  %v7700_v22 = vadd.f32 %v7699_v23, %v7626_v2  ;;  %v7392_v41 = vadd.f32 %v7391_v11, %v7390_v62  ;;  %v7630_v29 = vpop.f32.mrb[126].mxu0 }
 0x33e   : > { %v5896_v17 = vmax.f32 %v5864_v3, 0.0  ;;  %v5653_v5 = vpop.f32.mrb[127].mxu0 }
 0x33f   : > { %v5865_v47 = vadd.f32 %v10192_v4, %v5826_v14  ;;  %v5827_v8 = vmul.f32 %v7700_v22, %v10184_v54  ;;  %v5332_v46 = vadd.f32 %v7392_v41, %v10550_v61  ;;  %v5490_v10 = vadd.f32 %v10155_v33, %v5329_v30 }
 0x340   : > { %v6559_v60 = vpack.c.bf16 %v5896_v17, %v5895_v1 }
 0x341   : > { %v5866_v50 = vadd.f32 %v10192_v4, %v5827_v8  ;;  %v7393_v43 = vpop.f32.mrb[28].mxu1  ;;  %v7705_v49 = vadd.f32 %v5490_v10, %v10551_v31  ;;  %v5493_v6 = vadd.f32 %v10161_v24, %v5332_v46  ;;  %v5897_v20 = vmax.f32 %v5865_v47, 0.0 }
 0x342   : > { %v7394_v28 = vpop.f32.mrb[29].mxu1  ;;  %6587 = vst [vmem:[%s10220_s22 + $0x60] sm:$0xff] %v6559_v60  }
 0x343   : > { %v5898_v40 = vmax.f32 %v5866_v50, 0.0  ;;  %v7395_v42 = vadd.f32 %v7394_v28, %v7393_v43  ;;  %v7706_v33 = vadd.f32 %v7705_v49, %v5650_v32  ;;  %v7396_v13 = vpop.f32.mrb[30].mxu1  ;;  %v7709_v63 = vadd.f32 %v5493_v6, %v10552_v44 }
 0x344   : > { %v7397_v57 = vpop.f32.mrb[31].mxu1 }
 0x345   : > { %v6564_v7 = vpack.c.bf16 %v5898_v40, %v5897_v20  ;;  %v5337_v53 = vadd.f32 %v7395_v42, %v10553_v55  ;;  %v5828_v51 = vmul.f32 %v7706_v33, %v10184_v54  ;;  %v7398_v59 = vadd.f32 %v7397_v57, %v7396_v13 }
 0x346   : > { %v7710_v24 = vadd.f32 %v7709_v63, %v5653_v5 }
 0x347   : > { %6588 = vst [vmem:[%s10220_s22 + $0x68] sm:$0xff] %v6564_v7   ;;  %v5498_v19 = vadd.f32 %v10169_v18, %v5337_v53  ;;  %v5340_v27 = vadd.f32 %v7398_v59, %v10554_v16  ;;  %v5867_v2 = vadd.f32 %v10192_v4, %v5828_v51 }
 0x348   : > { %v5829_v56 = vmul.f32 %v7710_v24, %v10184_v54 }
 0x349   : > { %v7703_v38 = vadd.f32 %v5498_v19, %v10555_v36  ;;  %v5501_v12 = vadd.f32 %v10175_v34, %v5340_v27  ;;  %v5899_v52 = vmax.f32 %v5867_v2, 0.0 }
 0x34a   : > { %v5868_v15 = vadd.f32 %v10192_v4, %v5829_v56 }
 0x34b   : > { %v7704_v35 = vadd.f32 %v7703_v38, %v7629_v39  ;;  %v7707_v0 = vadd.f32 %v5501_v12, %v10556_v48 }
 0x34c   : > { %v5900_v26 = vmax.f32 %v5868_v15, 0.0 }
 0x34d   : > { %v5830_v18 = vmul.f32 %v7704_v35, %v10184_v54  ;;  %v7708_v37 = vadd.f32 %v7707_v0, %v7630_v29 }
 0x34e   : > { %v6569_v25 = vpack.c.bf16 %v5900_v26, %v5899_v52 }
 0x34f   : > { %v5869_v62 = vadd.f32 %v10192_v4, %v5830_v18  ;;  %v5831_v21 = vmul.f32 %v7708_v37, %v10184_v54 }
 0x350   : > { %6589 = vst [vmem:[%s10220_s22 + $0x70] sm:$0xff] %v6569_v25  }
 0x351   : > { %v5870_v23 = vadd.f32 %v10192_v4, %v5831_v21  ;;  %v5901_v34 = vmax.f32 %v5869_v62, 0.0 }
 0x353   : > { %v5902_v45 = vmax.f32 %v5870_v23, 0.0 }
 0x355   : > { %v6574_v11 = vpack.c.bf16 %v5902_v45, %v5901_v34 }
 0x357   : > { %6590 = vst [vmem:[%s10220_s22 + $0x78] sm:$0xff] %v6574_v11  }
 0x358 PF: > { %s16_s21 = sadd.s32 1, %s7967_s21  }
 0x359   : > { %p13_p4 = scmp.ge.s32.totalorder %s16_s21, 4  }
 0x35b   :  { %15 = sbr.rel (!%p13_p4) target bundleno = 1 (0x1), region = 77 }

</bundles_post_ra>
